<compile_context>
chip_gen: v7x
topology: tpu7x:2x2x1
jax: 0.10.0
libtpu: 0.0.40
codegen_flags: <defaults>
</compile_context>

<pallas_src>
import functools
import math

import jax
import jax.numpy as jnp
from jax.experimental import pallas as pl
from jax.experimental.pallas import tpu as pltpu


def _round_up(x, m):
    return (x + m - 1) // m * m


# ----------------------------------------------------------------------------
# GEMM kernels (bf16 MXU inputs, fp32 accumulator, fused bias / residual)
# ----------------------------------------------------------------------------

def _mm_bias_kernel(a_ref, b_ref, bias_ref, o_ref, acc_ref):
    @pl.when(pl.program_id(2) == 0)
    def _():
        acc_ref[...] = jnp.zeros_like(acc_ref)

    acc_ref[...] += jnp.dot(a_ref[...], b_ref[...],
                            preferred_element_type=jnp.float32)

    @pl.when(pl.program_id(2) == pl.num_programs(2) - 1)
    def _():
        o_ref[...] = (acc_ref[...] + bias_ref[...]).astype(o_ref.dtype)


def _mm_bias_res_kernel(a_ref, b_ref, bias_ref, res_ref, o_ref, acc_ref):
    @pl.when(pl.program_id(2) == 0)
    def _():
        acc_ref[...] = jnp.zeros_like(acc_ref)

    acc_ref[...] += jnp.dot(a_ref[...], b_ref[...],
                            preferred_element_type=jnp.float32)

    @pl.when(pl.program_id(2) == pl.num_programs(2) - 1)
    def _():
        o_ref[...] = (acc_ref[...] + bias_ref[...] + res_ref[...]).astype(o_ref.dtype)


def matmul(a, b, bias=None, residual=None, tm=256, tn=256, tk=512):
    """out = a @ b + bias (+ residual).  a: (M, K), b: (K, N), fp32 out.

    Inputs are cast to bf16 for the MXU; accumulation is fp32.  Blocks use the
    full extent for any dim that fits in one tile, so small K/N (e.g. 4, 27, 64)
    are never padded to 128 and no zero-padded HBM copies are made.
    """
    M, K = a.shape
    K2, N = b.shape
    assert K == K2
    tm_e = M if M <= tm else tm
    tn_e = N if N <= tn else tn
    tk_e = K if K <= tk else tk
    Mp, Kp, Np = _round_up(M, tm_e), _round_up(K, tk_e), _round_up(N, tn_e)

    a_bf = a.astype(jnp.bfloat16)
    b_bf = b.astype(jnp.bfloat16)
    if (Mp, Kp) != (M, K):
        a_bf = jnp.zeros((Mp, Kp), jnp.bfloat16).at[:M, :K].set(a_bf)
    if (Kp, Np) != (K, N):
        b_bf = jnp.zeros((Kp, Np), jnp.bfloat16).at[:K, :N].set(b_bf)

    if bias is None:
        bias_p = jnp.zeros((1, Np), jnp.float32)
    else:
        bias_p = bias.reshape(1, N).astype(jnp.float32)
        if Np != N:
            bias_p = jnp.zeros((1, Np), jnp.float32).at[:, :N].set(bias_p)

    in_specs = [pl.BlockSpec((tm_e, tk_e), lambda i, j, k: (i, k)),
                pl.BlockSpec((tk_e, tn_e), lambda i, j, k: (k, j)),
                pl.BlockSpec((1, tn_e), lambda i, j, k: (0, j))]
    args = [a_bf, b_bf, bias_p]
    if residual is not None:
        res_p = residual.astype(jnp.float32)
        if (Mp, Np) != (M, N):
            res_p = jnp.zeros((Mp, Np), jnp.float32).at[:M, :N].set(res_p)
        in_specs.append(pl.BlockSpec((tm_e, tn_e), lambda i, j, k: (i, j)))
        args.append(res_p)
        kernel = _mm_bias_res_kernel
    else:
        kernel = _mm_bias_kernel

    out = pl.pallas_call(
        kernel,
        out_shape=jax.ShapeDtypeStruct((Mp, Np), jnp.float32),
        grid=(Mp // tm_e, Np // tn_e, Kp // tk_e),
        in_specs=in_specs,
        out_specs=pl.BlockSpec((tm_e, tn_e), lambda i, j, k: (i, j)),
        scratch_shapes=[pltpu.VMEM((tm_e, tn_e), jnp.float32)],
        compiler_params=pltpu.CompilerParams(
            dimension_semantics=("parallel", "parallel", "arbitrary"),
            vmem_limit_bytes=48 * 1024 * 1024),
    )(*args)
    if (Mp, Np) != (M, N):
        out = out[:M, :N]
    return out


# ----------------------------------------------------------------------------
# GroupNorm (+fused SiLU) kernels
# ----------------------------------------------------------------------------

def _groupnorm_cg1_kernel(x_ref, g_ref, b_ref, o_ref, *, eps, cnt, apply_silu):
    # groups == channels: per-group stats == per-channel stats (pure VPU path).
    x = x_ref[0].astype(jnp.float32)                 # (HW, C)
    mean = jnp.sum(x, axis=0, keepdims=True) / cnt   # (1, C)
    d = x - mean
    var = jnp.sum(d * d, axis=0, keepdims=True) / cnt
    y = d * jax.lax.rsqrt(var + eps) * g_ref[...] + b_ref[...]
    if apply_silu:
        y = y * jax.nn.sigmoid(y)
    o_ref[0] = y.astype(o_ref.dtype)


def _groupnorm_grouped_kernel(x_ref, m_ref, mt_ref, g_ref, b_ref, o_ref, *,
                              eps, cnt, apply_silu):
    # General Cg > 1 path: group reduction via one-hot projections.
    x = x_ref[0].astype(jnp.float32)                 # (HW, C)
    gmap = m_ref[...]                                # (C, G)
    gmap_t = mt_ref[...]                             # (G, C)
    s = jnp.sum(x, axis=0, keepdims=True)            # (1, C)
    gmean = jnp.dot(s, gmap, preferred_element_type=jnp.float32) / cnt
    mean_c = jnp.dot(gmean, gmap_t, preferred_element_type=jnp.float32)
    d = x - mean_c
    s2 = jnp.sum(d * d, axis=0, keepdims=True)
    gvar = jnp.dot(s2, gmap, preferred_element_type=jnp.float32) / cnt
    var_c = jnp.dot(gvar, gmap_t, preferred_element_type=jnp.float32)
    y = d * jax.lax.rsqrt(var_c + eps) * g_ref[...] + b_ref[...]
    if apply_silu:
        y = y * jax.nn.sigmoid(y)
    o_ref[0] = y.astype(o_ref.dtype)


def group_norm(x, gamma, beta, groups, eps=1e-6, silu=False):
    """GroupNorm (optionally fused SiLU). x: NHWC."""
    N, H, W, C = x.shape
    HW = H * W
    Cg = C // groups
    xf = x.reshape(N, HW, C)
    g2 = gamma.reshape(1, C).astype(jnp.float32)
    b2 = beta.reshape(1, C).astype(jnp.float32)
    # TODO(synk): tile HW with an 'arbitrary' reduction grid axis for large
    # resolutions so the block fits v7x's 64 MiB VMEM.
    if Cg == 1:
        kernel = functools.partial(_groupnorm_cg1_kernel, eps=eps, cnt=float(HW),
                                   apply_silu=silu)
        in_specs = [pl.BlockSpec((1, HW, C), lambda n: (n, 0, 0)),
                    pl.BlockSpec((1, C), lambda n: (0, 0)),
                    pl.BlockSpec((1, C), lambda n: (0, 0))]
        args = (xf, g2, b2)
    else:
        grp = jnp.arange(C) // Cg
        gmap = (grp[:, None] == jnp.arange(groups)[None, :]).astype(jnp.float32)
        gmap_t = jnp.transpose(gmap)
        kernel = functools.partial(_groupnorm_grouped_kernel, eps=eps,
                                   cnt=float(HW * Cg), apply_silu=silu)
        in_specs = [pl.BlockSpec((1, HW, C), lambda n: (n, 0, 0)),
                    pl.BlockSpec((C, groups), lambda n: (0, 0)),
                    pl.BlockSpec((groups, C), lambda n: (0, 0)),
                    pl.BlockSpec((1, C), lambda n: (0, 0)),
                    pl.BlockSpec((1, C), lambda n: (0, 0))]
        args = (xf, gmap, gmap_t, g2, b2)
    out = pl.pallas_call(
        kernel,
        out_shape=jax.ShapeDtypeStruct((N, HW, C), x.dtype),
        grid=(N,),
        in_specs=in_specs,
        out_specs=pl.BlockSpec((1, HW, C), lambda n: (n, 0, 0)),
        compiler_params=pltpu.CompilerParams(dimension_semantics=("parallel",)),
    )(*args)
    return out.reshape(N, H, W, C)


# ----------------------------------------------------------------------------
# LayerNorm kernel
# ----------------------------------------------------------------------------

def _layernorm_kernel(x_ref, g_ref, b_ref, o_ref, *, eps):
    x = x_ref[...].astype(jnp.float32)
    mean = jnp.mean(x, axis=-1, keepdims=True)
    d = x - mean
    var = jnp.mean(d * d, axis=-1, keepdims=True)
    y = d * jax.lax.rsqrt(var + eps) * g_ref[...] + b_ref[...]
    o_ref[...] = y.astype(o_ref.dtype)


def layer_norm(x2d, gamma, beta, eps=1e-6, tm=1024):
    M, C = x2d.shape
    tm_e = M if M <= tm else tm
    Mp = _round_up(M, tm_e)
    xp = x2d if Mp == M else jnp.zeros((Mp, C), x2d.dtype).at[:M].set(x2d)
    out = pl.pallas_call(
        functools.partial(_layernorm_kernel, eps=eps),
        out_shape=jax.ShapeDtypeStruct((Mp, C), x2d.dtype),
        grid=(Mp // tm_e,),
        in_specs=[pl.BlockSpec((tm_e, C), lambda i: (i, 0)),
                  pl.BlockSpec((1, C), lambda i: (0, 0)),
                  pl.BlockSpec((1, C), lambda i: (0, 0))],
        out_specs=pl.BlockSpec((tm_e, C), lambda i: (i, 0)),
        compiler_params=pltpu.CompilerParams(dimension_semantics=("parallel",)),
    )(xp, gamma.reshape(1, C).astype(jnp.float32),
      beta.reshape(1, C).astype(jnp.float32))
    return out if Mp == M else out[:M]


# ----------------------------------------------------------------------------
# Attention kernel (all heads of one batch element per grid step)
# ----------------------------------------------------------------------------

def _attention_kernel(q_ref, k_ref, v_ref, o_ref, *, scale):
    q = q_ref[0].astype(jnp.float32)                 # (H, N, D)
    k = k_ref[0].astype(jnp.float32)
    v = v_ref[0].astype(jnp.float32)
    s = jnp.einsum('hqd,hkd->hqk', q, k,
                   preferred_element_type=jnp.float32) * scale
    s = s - jnp.max(s, axis=-1, keepdims=True)
    p = jnp.exp(s)
    p = p * pl.reciprocal(jnp.sum(p, axis=-1, keepdims=True), approx=True)
    o = jnp.einsum('hqk,hkd->hqd', p, v, preferred_element_type=jnp.float32)
    o_ref[0] = o.astype(o_ref.dtype)


def sdpa(q, k, v, scale):
    """Scaled dot-product attention. q, k, v: (B, heads, N, head_dim)."""
    # TODO(synk): switch to flash-style KV tiling for large N (v7x VMEM).
    B, Hh, N, D = q.shape
    return pl.pallas_call(
        functools.partial(_attention_kernel, scale=scale),
        out_shape=jax.ShapeDtypeStruct((B, Hh, N, D), q.dtype),
        grid=(B,),
        in_specs=[pl.BlockSpec((1, Hh, N, D), lambda b: (b, 0, 0, 0))] * 3,
        out_specs=pl.BlockSpec((1, Hh, N, D), lambda b: (b, 0, 0, 0)),
        compiler_params=pltpu.CompilerParams(dimension_semantics=("parallel",)),
    )(q, k, v)


# ----------------------------------------------------------------------------
# Vector quantizer kernel (distances + argmin + dequant fused, codebook in VMEM)
# ----------------------------------------------------------------------------

def _vq_kernel(z_ref, cbt_ref, cb_ref, cb2_ref, zq_ref):
    z = z_ref[...].astype(jnp.float32)                    # (tm, D)
    cbt = cbt_ref[...].astype(jnp.float32)                # (D, K)
    cb = cb_ref[...].astype(jnp.float32)                  # (K, D)
    xe = jnp.dot(z, cbt, preferred_element_type=jnp.float32)       # (tm, K)
    d = jnp.sum(z * z, axis=-1, keepdims=True) - 2.0 * xe + cb2_ref[...]
    dmin = jnp.min(d, axis=-1, keepdims=True)
    kidx = jax.lax.broadcasted_iota(jnp.int32, d.shape, 1)
    first = jnp.min(jnp.where(d <= dmin, kidx, d.shape[1]),
                    axis=-1, keepdims=True)               # first argmin (PyTorch tie rule)
    onehot = (kidx == first).astype(jnp.float32)          # (tm, K)
    zq_ref[...] = jnp.dot(onehot, cb,
                          preferred_element_type=jnp.float32).astype(zq_ref.dtype)


def vector_quantize(z, codebook, beta=0.25):
    """z: NHWC with C == embed_dim; codebook: (K, D)."""
    B, H, W, D = z.shape
    M = B * H * W
    Kc = codebook.shape[0]
    flat = z.reshape(M, D)
    cb_t = jnp.transpose(codebook)                                       # (D, K)
    cb2 = jnp.sum(codebook.astype(jnp.float32) ** 2, axis=-1).reshape(1, Kc)
    tm = M if M <= 1024 else 1024
    Mp = _round_up(M, tm)
    flat_p = flat if Mp == M else jnp.zeros((Mp, D), flat.dtype).at[:M].set(flat)
    zq = pl.pallas_call(
        _vq_kernel,
        out_shape=jax.ShapeDtypeStruct((Mp, D), jnp.float32),
        grid=(Mp // tm,),
        in_specs=[pl.BlockSpec((tm, D), lambda i: (i, 0)),
                  pl.BlockSpec((D, Kc), lambda i: (0, 0)),
                  pl.BlockSpec((Kc, D), lambda i: (0, 0)),
                  pl.BlockSpec((1, Kc), lambda i: (0, 0))],
        out_specs=pl.BlockSpec((tm, D), lambda i: (i, 0)),
        compiler_params=pltpu.CompilerParams(dimension_semantics=("parallel",)),
    )(flat_p, cb_t, codebook, cb2)
    if Mp != M:
        zq = zq[:M]
    zq = zq.reshape(B, H, W, D)
    # TODO(synk): VectorQuantizer source was not provided; using the standard
    # VQ-VAE codebook + commitment (beta=0.25) loss. Forward value only;
    # straight-through / stop_gradient wiring matters only for training.
    diff = zq - z
    loss = (1.0 + beta) * jnp.mean(diff * diff)
    return zq, loss


# ----------------------------------------------------------------------------
# JAX glue (conv as GEMM, reshapes, parameter plumbing)
# ----------------------------------------------------------------------------

def conv2d(x, w, b=None, stride=1, padding=0, residual=None):
    """Conv2d matching PyTorch semantics, bias (+residual) fused into the GEMM.

    x: NHWC, w: (Cout, Cin, kh, kw). residual (if given) is NHWC at the output
    resolution and is added in the GEMM epilogue."""
    N, H, W, C = x.shape
    Cout, Cin, kh, kw = w.shape
    assert C == Cin
    if kh == 1 and kw == 1 and stride == 1 and padding == 0:
        res2d = None if residual is None else residual.reshape(N * H * W, Cout)
        out = matmul(x.reshape(N * H * W, C),
                     jnp.transpose(w.reshape(Cout, Cin)), bias=b, residual=res2d)
        return out.reshape(N, H, W, Cout)
    # im2col built in bf16 (halves the HBM bytes of the duplicated patch tensor;
    # the MXU consumes bf16 anyway).
    # TODO(synk): fold the 9 taps into a GEMM K-grid axis so patches never hit HBM.
    xp = jnp.pad(x, ((0, 0), (padding, padding), (padding, padding), (0, 0)))
    xp = xp.astype(jnp.bfloat16)
    Ho = (H + 2 * padding - kh) // stride + 1
    Wo = (W + 2 * padding - kw) // stride + 1
    cols = []
    for i in range(kh):
        for j in range(kw):
            cols.append(xp[:, i:i + (Ho - 1) * stride + 1:stride,
                           j:j + (Wo - 1) * stride + 1:stride, :])
    patches = jnp.concatenate(cols, axis=-1).reshape(N * Ho * Wo, kh * kw * Cin)
    wmat = jnp.transpose(w, (2, 3, 1, 0)).reshape(kh * kw * Cin, Cout)
    res2d = None if residual is None else residual.reshape(N * Ho * Wo, Cout)
    out = matmul(patches, wmat, bias=b, residual=res2d)
    return out.reshape(N, Ho, Wo, Cout)


def upsample_nearest_2x(x):
    # TODO(synk): fold into the following conv's gather instead of materializing 4x.
    x = jnp.repeat(x, 2, axis=1)
    x = jnp.repeat(x, 2, axis=2)
    return x


# ----------------------------------------------------------------------------
# Model blocks (forward)
# ----------------------------------------------------------------------------

def resnet_block(x, p, groups=32, eps=1e-6):
    skip = x
    if p.get('skip') is not None:
        skip = conv2d(x, p['skip'][0], None, stride=1, padding=0)
    h = group_norm(x, p['n1_g'], p['n1_b'], groups, eps, silu=True)
    h = conv2d(h, p['c1_w'], p['c1_b'], stride=1, padding=1)
    h = group_norm(h, p['n2_g'], p['n2_b'], groups, eps, silu=True)
    # dropout == Identity (p=0.0)
    # Fold gamma into the conv weights/bias and fuse `skip +` into the GEMM epilogue:
    # skip + gamma*(conv(h) + b) == conv_{w*gamma}(h) + b*gamma + skip.
    w2 = p['c2_w'] * p['gamma']
    b2 = p['c2_b'] * p['gamma']
    return conv2d(h, w2, b2, stride=1, padding=1, residual=skip)


def attention_block(x, p, heads, head_dim, eps=1e-6):
    B, H, W, C = x.shape
    N = H * W
    inner = heads * head_dim
    skip2d = x.reshape(B * N, C)
    t = layer_norm(skip2d, p['ln_g'], p['ln_b'], eps=eps)
    qkv = matmul(t, jnp.transpose(p['qkv_w']))              # (B*N, 3*inner)
    qkv = qkv.reshape(B, N, 3, heads, head_dim).transpose(2, 0, 3, 1, 4)
    q, k, v = qkv[0], qkv[1], qkv[2]                        # (B, heads, N, hd)
    o = sdpa(q, k, v, scale=head_dim ** (-0.5))             # (B, heads, N, hd)
    o = o.transpose(0, 2, 1, 3).reshape(B * N, inner)
    # skip + gamma*(o @ Wo^T + bo) with gamma folded and skip fused in the epilogue.
    wo = jnp.transpose(p['out_w']) * p['gamma']
    bo = p['out_b'] * p['gamma']
    o = matmul(o, wo, bias=bo, residual=skip2d)
    return o.reshape(B, H, W, C)


def midblock_forward(x, p, heads=8, head_dim=64, groups=32):
    x = resnet_block(x, p['res'][0], groups)
    for i in range(len(p['attn'])):
        x = attention_block(x, p['attn'][i], heads, head_dim)
        x = resnet_block(x, p['res'][i + 1], groups)
    return x


def encoder_forward(x, p, groups=32):
    x = conv2d(x, *p['inp'], stride=1, padding=1)
    for blk in p['blocks']:
        for rb in blk['res']:
            x = resnet_block(x, rb, groups)
        x = conv2d(x, *blk['sample'], stride=2, padding=1)        # Downsample2D
    x = midblock_forward(x, p['mid'], groups=groups)
    x = group_norm(x, p['out_n_g'], p['out_n_b'], groups, 1e-6, silu=True)
    x = conv2d(x, *p['out_conv'], stride=1, padding=1)
    return x


def decoder_forward(x, p, groups=32):
    x = conv2d(x, *p['inp'], stride=1, padding=1)
    x = midblock_forward(x, p['mid'], groups=groups)
    for blk in p['blocks']:
        for rb in blk['res']:
            x = resnet_block(x, rb, groups)
        x = upsample_nearest_2x(x)                                # Upsample2D
        x = conv2d(x, *blk['sample'], stride=1, padding=1)
    x = group_norm(x, p['out_n_g'], p['out_n_b'], groups, 1e-6, silu=True)
    x = conv2d(x, *p['out_conv'], stride=1, padding=1)
    return x


def vqvae_forward(x_nchw, p):
    x = jnp.transpose(x_nchw, (0, 2, 3, 1))                       # NCHW -> NHWC
    z = encoder_forward(x, p['enc'])
    z = conv2d(z, *p['pre_vq'], stride=1, padding=0)
    zq, loss = vector_quantize(z, p['codebook'])
    h = conv2d(zq, *p['pos_vq'], stride=1, padding=0)
    y = decoder_forward(h, p['dec'])
    return jnp.transpose(y, (0, 3, 1, 2)), loss                   # back to NCHW


# ----------------------------------------------------------------------------
# Deterministic parameter init (shapes follow the PyTorch module __init__)
# ----------------------------------------------------------------------------

class KeyGen:
    def __init__(self, seed):
        self.key = jax.random.PRNGKey(seed)

    def __call__(self):
        self.key, sub = jax.random.split(self.key)
        return sub


def conv_init(kg, cin, cout, k, bias=True):
    bound = 1.0 / math.sqrt(cin * k * k)
    w = jax.random.uniform(kg(), (cout, cin, k, k), jnp.float32, -bound, bound)
    b = jax.random.uniform(kg(), (cout,), jnp.float32, -bound, bound) if bias else None
    return (w, b)


def linear_init(kg, cin, cout, bias=True):
    bound = 1.0 / math.sqrt(cin)
    w = jax.random.uniform(kg(), (cout, cin), jnp.float32, -bound, bound)
    b = jax.random.uniform(kg(), (cout,), jnp.float32, -bound, bound) if bias else None
    return (w, b)


def resblock_init(kg, cin, cout, gamma_init):
    p = {'n1_g': jnp.ones((cin,), jnp.float32), 'n1_b': jnp.zeros((cin,), jnp.float32),
         'n2_g': jnp.ones((cout,), jnp.float32), 'n2_b': jnp.zeros((cout,), jnp.float32)}
    p['c1_w'], p['c1_b'] = conv_init(kg, cin, cout, 3)
    p['c2_w'], p['c2_b'] = conv_init(kg, cout, cout, 3)
    p['gamma'] = jnp.asarray(gamma_init, jnp.float32)
    p['skip'] = conv_init(kg, cin, cout, 1, bias=False) if cin != cout else None
    return p


def attn_init(kg, dims, heads, head_dim, gamma_init):
    inner = heads * head_dim
    p = {'ln_g': jnp.ones((dims,), jnp.float32), 'ln_b': jnp.zeros((dims,), jnp.float32)}
    p['qkv_w'], _ = linear_init(kg, dims, inner * 3, bias=False)
    p['out_w'], p['out_b'] = linear_init(kg, inner, dims, bias=True)
    p['gamma'] = jnp.asarray(gamma_init, jnp.float32)
    return p


def midblock_init(kg, channels, num_layers, heads=8, head_dim=64):
    res = [resblock_init(kg, channels, channels, 1.0)]
    attn = []
    for _ in range(num_layers):
        attn.append(attn_init(kg, channels, heads, head_dim, 1.0))
        res.append(resblock_init(kg, channels, channels, 1.0))
    return {'res': res, 'attn': attn}


def block2d_init(kg, cin, cout, num_layers, residual_scale_init):
    res = []
    for i in range(num_layers):
        ich = cin if i == 0 else cout
        res.append(resblock_init(kg, ich, cout, residual_scale_init))
    sample = conv_init(kg, cout, cout, 3, bias=True)   # down- or up-sample conv
    return {'res': res, 'sample': sample}


def encoder_init(kg, in_channels, out_channels, boc, lpb, rsi):
    p = {'inp': conv_init(kg, in_channels, boc[0], 3)}
    io = list(boc) + [boc[-1]]
    p['blocks'] = [block2d_init(kg, ich, och, lpb, rsi)
                   for ich, och in zip(io[:-1], io[1:])]
    och = io[-1]
    p['mid'] = midblock_init(kg, och, lpb)
    p['out_n_g'] = jnp.ones((och,), jnp.float32)
    p['out_n_b'] = jnp.zeros((och,), jnp.float32)
    p['out_conv'] = conv_init(kg, och, out_channels, 3)
    return p


def decoder_init(kg, in_channels, out_channels, boc, lpb, rsi):
    boc = list(reversed(boc))
    p = {'inp': conv_init(kg, in_channels, boc[0], 3)}
    p['mid'] = midblock_init(kg, boc[0], lpb)
    io = boc + [boc[-1]]
    p['blocks'] = [block2d_init(kg, ich, och, lpb, rsi)
                   for ich, och in zip(io[:-1], io[1:])]
    och = io[-1]
    p['out_n_g'] = jnp.ones((och,), jnp.float32)
    p['out_n_b'] = jnp.zeros((och,), jnp.float32)
    p['out_conv'] = conv_init(kg, och, out_channels, 3)
    return p


def vqvae_init(kg, num_embeddings=64, embed_dim=4, block_out_channels=(32, 32),
               layers_per_block=1, image_channels=3, residual_scale_init=0.001,
               latent_dim=None):
    latent_dim = latent_dim or embed_dim
    p = {}
    p['enc'] = encoder_init(kg, image_channels, latent_dim, block_out_channels,
                            layers_per_block, residual_scale_init)
    p['pre_vq'] = conv_init(kg, latent_dim, embed_dim, 1)
    p['codebook'] = jax.random.normal(kg(), (num_embeddings, embed_dim), jnp.float32)
    p['pos_vq'] = conv_init(kg, embed_dim, latent_dim, 1)
    p['dec'] = decoder_init(kg, latent_dim, image_channels, block_out_channels,
                            layers_per_block, residual_scale_init)
    return p


# ----------------------------------------------------------------------------

if __name__ == "__main__":
    # Small config consistent with the module (GroupNorm requires channels % 32 == 0):
    # block_out_channels=(32, 32), layers_per_block=1, embed_dim=4, 64 codes.
    kg = KeyGen(0)
    params = vqvae_init(kg)

    x = jax.random.normal(jax.random.PRNGKey(0), (2, 3, 16, 16), jnp.float32)

    fwd = jax.jit(vqvae_forward)
    recon, loss = fwd(x, params)
    jax.block_until_ready((recon, loss))

    assert recon.shape == (2, 3, 16, 16), recon.shape
    assert recon.dtype == jnp.float32
    assert loss.shape == ()
    assert bool(jnp.all(jnp.isfinite(recon))) and bool(jnp.isfinite(loss))
    print("KERNEL_OK")
</pallas_src>

<mosaic_0001>
module attributes {stable_mosaic.version = 11 : i64} {
  func.func @_mm_bias_kernel(%arg0: i32, %arg1: i32, %arg2: i32, %arg3: memref<256x27xbf16, #tpu.memory_space<vmem>>, %arg4: memref<27x32xbf16, #tpu.memory_space<vmem>>, %arg5: memref<1x32xf32, #tpu.memory_space<vmem>>, %arg6: memref<256x32xf32, #tpu.memory_space<vmem>>, %arg7: memref<256x32xf32, #tpu.memory_space<vmem>>) attributes {dimension_semantics = [#tpu.dimension_semantics<parallel>, #tpu.dimension_semantics<parallel>, #tpu.dimension_semantics<arbitrary>], iteration_bounds = array<i64: 2, 1, 1>, scalar_prefetch = 0 : i64, scratch_operands = 1 : i64, tpu.core_type = #tpu.core_type<tc>, window_params = [{transform_indices = @transform_0, window_bounds = array<i64: 256, 27>}, {transform_indices = @transform_1, window_bounds = array<i64: 27, 32>}, {transform_indices = @transform_2, window_bounds = array<i64: 1, 32>}, {transform_indices = @transform_3, window_bounds = array<i64: 256, 32>}]} {
    %c0_i32 = arith.constant 0 : i32
    %0 = arith.cmpi eq, %arg2, %c0_i32 : i32
    %1 = arith.extui %0 : i1 to i32
    %c0_i32_0 = arith.constant 0 : i32
    %2 = arith.cmpi ne, %1, %c0_i32_0 : i32
    scf.if %2 {
      %cst_10 = arith.constant 0.000000e+00 : f32
      %12 = vector.broadcast %cst_10 : f32 to vector<256x32xf32>
      %c0_11 = arith.constant 0 : index
      %c0_12 = arith.constant 0 : index
      %13 = vector.load %arg7[%c0_11, %c0_12] : memref<256x32xf32, #tpu.memory_space<vmem>>, vector<256x32xf32>
      tpu.vector_store %arg7[%c0_11, %c0_12], %12 {strides = array<i32>} : memref<256x32xf32, #tpu.memory_space<vmem>>, vector<256x32xf32>,
    } else {
    }
    %c0 = arith.constant 0 : index
    %c0_1 = arith.constant 0 : index
    %3 = vector.load %arg7[%c0, %c0_1] : memref<256x32xf32, #tpu.memory_space<vmem>>, vector<256x32xf32>
    %c0_2 = arith.constant 0 : index
    %c0_3 = arith.constant 0 : index
    %4 = vector.load %arg3[%c0_2, %c0_3] : memref<256x27xbf16, #tpu.memory_space<vmem>>, vector<256x27xbf16>
    %c0_4 = arith.constant 0 : index
    %c0_5 = arith.constant 0 : index
    %5 = vector.load %arg4[%c0_4, %c0_5] : memref<27x32xbf16, #tpu.memory_space<vmem>>, vector<27x32xbf16>
    %cst = arith.constant dense<0.000000e+00> : vector<256x32xf32>
    %6 = tpu.matmul %4, %5, %cst {dimension_numbers = #tpu.dot_dimension_numbers<[1], [0], [0], [1], [0, 0, 1, 1], [], []>} : vector<256x27xbf16>, vector<27x32xbf16>, vector<256x32xf32> -> vector<256x32xf32>
    %7 = arith.addf %3, %6 : vector<256x32xf32>
    %c0_6 = arith.constant 0 : index
    %c0_7 = arith.constant 0 : index
    %8 = vector.load %arg7[%c0_6, %c0_7] : memref<256x32xf32, #tpu.memory_space<vmem>>, vector<256x32xf32>
    tpu.vector_store %arg7[%c0_6, %c0_7], %7 {strides = array<i32>} : memref<256x32xf32, #tpu.memory_space<vmem>>, vector<256x32xf32>,
    %c0_i32_8 = arith.constant 0 : i32
    %9 = arith.cmpi eq, %arg2, %c0_i32_8 : i32
    %10 = arith.extui %9 : i1 to i32
    %c0_i32_9 = arith.constant 0 : i32
    %11 = arith.cmpi ne, %10, %c0_i32_9 : i32
    scf.if %11 {
      %c0_10 = arith.constant 0 : index
      %c0_11 = arith.constant 0 : index
      %12 = vector.load %arg7[%c0_10, %c0_11] : memref<256x32xf32, #tpu.memory_space<vmem>>, vector<256x32xf32>
      %c0_12 = arith.constant 0 : index
      %c0_13 = arith.constant 0 : index
      %13 = vector.load %arg5[%c0_12, %c0_13] : memref<1x32xf32, #tpu.memory_space<vmem>>, vector<1x32xf32>
      %14 = vector.broadcast %13 : vector<1x32xf32> to vector<256x32xf32>
      %15 = arith.addf %12, %14 : vector<256x32xf32>
      %c0_14 = arith.constant 0 : index
      %c0_15 = arith.constant 0 : index
      %16 = vector.load %arg6[%c0_14, %c0_15] : memref<256x32xf32, #tpu.memory_space<vmem>>, vector<256x32xf32>
      tpu.vector_store %arg6[%c0_14, %c0_15], %15 {strides = array<i32>} : memref<256x32xf32, #tpu.memory_space<vmem>>, vector<256x32xf32>,
    } else {
    }
    return
  }
  func.func @transform_0(%arg0: i32, %arg1: i32, %arg2: i32) -> (i32, i32) {
    %c0_i32 = arith.constant 0 : i32
    return %arg0, %arg2 : i32, i32
  }
  func.func @transform_1(%arg0: i32, %arg1: i32, %arg2: i32) -> (i32, i32) {
    %c0_i32 = arith.constant 0 : i32
    return %arg2, %arg1 : i32, i32
  }
  func.func @transform_2(%arg0: i32, %arg1: i32, %arg2: i32) -> (i32, i32) {
    %c0_i32 = arith.constant 0 : i32
    %c0_i32_0 = arith.constant 0 : i32
    return %c0_i32, %arg1 : i32, i32
  }
  func.func @transform_3(%arg0: i32, %arg1: i32, %arg2: i32) -> (i32, i32) {
    %c0_i32 = arith.constant 0 : i32
    return %arg0, %arg1 : i32, i32
  }
}

module attributes {stable_mosaic.version = 11 : i64} {
  func.func @_groupnorm_cg1_kernel(%arg0: i32, %arg1: memref<1x256x32xf32, #tpu.memory_space<vmem>>, %arg2: memref<1x32xf32, #tpu.memory_space<vmem>>, %arg3: memref<1x32xf32, #tpu.memory_space<vmem>>, %arg4: memref<1x256x32xf32, #tpu.memory_space<vmem>>) attributes {dimension_semantics = [#tpu.dimension_semantics<parallel>], iteration_bounds = array<i64: 2>, scalar_prefetch = 0 : i64, scratch_operands = 0 : i64, tpu.core_type = #tpu.core_type<tc>, window_params = [{transform_indices = @transform_0, window_bounds = array<i64: 1, 256, 32>}, {pipeline_mode = #tpu.pipeline_mode<synchronous>, transform_indices = @transform_1, window_bounds = array<i64: 1, 32>}, {pipeline_mode = #tpu.pipeline_mode<synchronous>, transform_indices = @transform_2, window_bounds = array<i64: 1, 32>}, {transform_indices = @transform_3, window_bounds = array<i64: 1, 256, 32>}]} {
    %c0 = arith.constant 0 : index
    %c0_0 = arith.constant 0 : index
    %c0_1 = arith.constant 0 : index
    %0 = vector.load %arg1[%c0, %c0_0, %c0_1] : memref<1x256x32xf32, #tpu.memory_space<vmem>>, vector<1x256x32xf32>
    %1 = vector.shape_cast %0 : vector<1x256x32xf32> to vector<256x32xf32>
    %cst = arith.constant dense<0.000000e+00> : vector<32xf32>
    %2 = vector.multi_reduction <add>, %1, %cst [0] : vector<256x32xf32> to vector<32xf32>
    %3 = vector.shape_cast %2 : vector<32xf32> to vector<1x32xf32>
    %cst_2 = arith.constant 2.560000e+02 : f32
    %4 = vector.broadcast %cst_2 : f32 to vector<1x32xf32>
    %5 = arith.divf %3, %4 : vector<1x32xf32>
    %6 = vector.broadcast %5 : vector<1x32xf32> to vector<256x32xf32>
    %7 = arith.subf %1, %6 : vector<256x32xf32>
    %8 = arith.mulf %7, %7 : vector<256x32xf32>
    %cst_3 = arith.constant dense<0.000000e+00> : vector<32xf32>
    %9 = vector.multi_reduction <add>, %8, %cst_3 [0] : vector<256x32xf32> to vector<32xf32>
    %10 = vector.shape_cast %9 : vector<32xf32> to vector<1x32xf32>
    %cst_4 = arith.constant 2.560000e+02 : f32
    %11 = vector.broadcast %cst_4 : f32 to vector<1x32xf32>
    %12 = arith.divf %10, %11 : vector<1x32xf32>
    %cst_5 = arith.constant 9.99999997E-7 : f32
    %13 = vector.broadcast %cst_5 : f32 to vector<1x32xf32>
    %14 = arith.addf %12, %13 : vector<1x32xf32>
    %15 = math.rsqrt %14 : vector<1x32xf32>
    %16 = vector.broadcast %15 : vector<1x32xf32> to vector<256x32xf32>
    %17 = arith.mulf %7, %16 : vector<256x32xf32>
    %c0_6 = arith.constant 0 : index
    %c0_7 = arith.constant 0 : index
    %18 = vector.load %arg2[%c0_6, %c0_7] : memref<1x32xf32, #tpu.memory_space<vmem>>, vector<1x32xf32>
    %19 = vector.broadcast %18 : vector<1x32xf32> to vector<256x32xf32>
    %20 = arith.mulf %17, %19 : vector<256x32xf32>
    %c0_8 = arith.constant 0 : index
    %c0_9 = arith.constant 0 : index
    %21 = vector.load %arg3[%c0_8, %c0_9] : memref<1x32xf32, #tpu.memory_space<vmem>>, vector<1x32xf32>
    %22 = vector.broadcast %21 : vector<1x32xf32> to vector<256x32xf32>
    %23 = arith.addf %20, %22 : vector<256x32xf32>
    %24 = arith.negf %23 : vector<256x32xf32>
    %25 = math.exp %24 : vector<256x32xf32>
    %cst_10 = arith.constant 1.000000e+00 : f32
    %26 = vector.broadcast %cst_10 : f32 to vector<256x32xf32>
    %27 = arith.addf %26, %25 : vector<256x32xf32>
    %28 = arith.divf %26, %27 : vector<256x32xf32>
    %29 = arith.mulf %23, %28 : vector<256x32xf32>
    %c0_11 = arith.constant 0 : index
    %c0_12 = arith.constant 0 : index
    %c0_13 = arith.constant 0 : index
    %30 = vector.load %arg4[%c0_11, %c0_12, %c0_13] : memref<1x256x32xf32, #tpu.memory_space<vmem>>, vector<1x256x32xf32>
    %31 = vector.shape_cast %30 : vector<1x256x32xf32> to vector<256x32xf32>
    %32 = vector.shape_cast %29 : vector<256x32xf32> to vector<1x256x32xf32>
    tpu.vector_store %arg4[%c0_11, %c0_12, %c0_13], %32 {strides = array<i32>} : memref<1x256x32xf32, #tpu.memory_space<vmem>>, vector<1x256x32xf32>,
    return
  }
  func.func @transform_0(%arg0: i32) -> (i32, i32, i32) {
    %c0_i32 = arith.constant 0 : i32
    %c0_i32_0 = arith.constant 0 : i32
    %c0_i32_1 = arith.constant 0 : i32
    return %arg0, %c0_i32, %c0_i32_0 : i32, i32, i32
  }
  func.func @transform_1(%arg0: i32) -> (i32, i32) {
    %c0_i32 = arith.constant 0 : i32
    %c0_i32_0 = arith.constant 0 : i32
    %c0_i32_1 = arith.constant 0 : i32
    return %c0_i32, %c0_i32_0 : i32, i32
  }
  func.func @transform_2(%arg0: i32) -> (i32, i32) {
    %c0_i32 = arith.constant 0 : i32
    %c0_i32_0 = arith.constant 0 : i32
    %c0_i32_1 = arith.constant 0 : i32
    return %c0_i32, %c0_i32_0 : i32, i32
  }
  func.func @transform_3(%arg0: i32) -> (i32, i32, i32) {
    %c0_i32 = arith.constant 0 : i32
    %c0_i32_0 = arith.constant 0 : i32
    %c0_i32_1 = arith.constant 0 : i32
    return %arg0, %c0_i32, %c0_i32_0 : i32, i32, i32
  }
}

module attributes {stable_mosaic.version = 11 : i64} {
  func.func @_mm_bias_kernel(%arg0: i32, %arg1: i32, %arg2: i32, %arg3: memref<256x288xbf16, #tpu.memory_space<vmem>>, %arg4: memref<288x32xbf16, #tpu.memory_space<vmem>>, %arg5: memref<1x32xf32, #tpu.memory_space<vmem>>, %arg6: memref<256x32xf32, #tpu.memory_space<vmem>>, %arg7: memref<256x32xf32, #tpu.memory_space<vmem>>) attributes {dimension_semantics = [#tpu.dimension_semantics<parallel>, #tpu.dimension_semantics<parallel>, #tpu.dimension_semantics<arbitrary>], iteration_bounds = array<i64: 2, 1, 1>, scalar_prefetch = 0 : i64, scratch_operands = 1 : i64, tpu.core_type = #tpu.core_type<tc>, window_params = [{transform_indices = @transform_0, window_bounds = array<i64: 256, 288>}, {transform_indices = @transform_1, window_bounds = array<i64: 288, 32>}, {transform_indices = @transform_2, window_bounds = array<i64: 1, 32>}, {transform_indices = @transform_3, window_bounds = array<i64: 256, 32>}]} {
    %c0_i32 = arith.constant 0 : i32
    %0 = arith.cmpi eq, %arg2, %c0_i32 : i32
    %1 = arith.extui %0 : i1 to i32
    %c0_i32_0 = arith.constant 0 : i32
    %2 = arith.cmpi ne, %1, %c0_i32_0 : i32
    scf.if %2 {
      %cst_10 = arith.constant 0.000000e+00 : f32
      %12 = vector.broadcast %cst_10 : f32 to vector<256x32xf32>
      %c0_11 = arith.constant 0 : index
      %c0_12 = arith.constant 0 : index
      %13 = vector.load %arg7[%c0_11, %c0_12] : memref<256x32xf32, #tpu.memory_space<vmem>>, vector<256x32xf32>
      tpu.vector_store %arg7[%c0_11, %c0_12], %12 {strides = array<i32>} : memref<256x32xf32, #tpu.memory_space<vmem>>, vector<256x32xf32>,
    } else {
    }
    %c0 = arith.constant 0 : index
    %c0_1 = arith.constant 0 : index
    %3 = vector.load %arg7[%c0, %c0_1] : memref<256x32xf32, #tpu.memory_space<vmem>>, vector<256x32xf32>
    %c0_2 = arith.constant 0 : index
    %c0_3 = arith.constant 0 : index
    %4 = vector.load %arg3[%c0_2, %c0_3] : memref<256x288xbf16, #tpu.memory_space<vmem>>, vector<256x288xbf16>
    %c0_4 = arith.constant 0 : index
    %c0_5 = arith.constant 0 : index
    %5 = vector.load %arg4[%c0_4, %c0_5] : memref<288x32xbf16, #tpu.memory_space<vmem>>, vector<288x32xbf16>
    %cst = arith.constant dense<0.000000e+00> : vector<256x32xf32>
    %6 = tpu.matmul %4, %5, %cst {dimension_numbers = #tpu.dot_dimension_numbers<[1], [0], [0], [1], [0, 0, 1, 1], [], []>} : vector<256x288xbf16>, vector<288x32xbf16>, vector<256x32xf32> -> vector<256x32xf32>
    %7 = arith.addf %3, %6 : vector<256x32xf32>
    %c0_6 = arith.constant 0 : index
    %c0_7 = arith.constant 0 : index
    %8 = vector.load %arg7[%c0_6, %c0_7] : memref<256x32xf32, #tpu.memory_space<vmem>>, vector<256x32xf32>
    tpu.vector_store %arg7[%c0_6, %c0_7], %7 {strides = array<i32>} : memref<256x32xf32, #tpu.memory_space<vmem>>, vector<256x32xf32>,
    %c0_i32_8 = arith.constant 0 : i32
    %9 = arith.cmpi eq, %arg2, %c0_i32_8 : i32
    %10 = arith.extui %9 : i1 to i32
    %c0_i32_9 = arith.constant 0 : i32
    %11 = arith.cmpi ne, %10, %c0_i32_9 : i32
    scf.if %11 {
      %c0_10 = arith.constant 0 : index
      %c0_11 = arith.constant 0 : index
      %12 = vector.load %arg7[%c0_10, %c0_11] : memref<256x32xf32, #tpu.memory_space<vmem>>, vector<256x32xf32>
      %c0_12 = arith.constant 0 : index
      %c0_13 = arith.constant 0 : index
      %13 = vector.load %arg5[%c0_12, %c0_13] : memref<1x32xf32, #tpu.memory_space<vmem>>, vector<1x32xf32>
      %14 = vector.broadcast %13 : vector<1x32xf32> to vector<256x32xf32>
      %15 = arith.addf %12, %14 : vector<256x32xf32>
      %c0_14 = arith.constant 0 : index
      %c0_15 = arith.constant 0 : index
      %16 = vector.load %arg6[%c0_14, %c0_15] : memref<256x32xf32, #tpu.memory_space<vmem>>, vector<256x32xf32>
      tpu.vector_store %arg6[%c0_14, %c0_15], %15 {strides = array<i32>} : memref<256x32xf32, #tpu.memory_space<vmem>>, vector<256x32xf32>,
    } else {
    }
    return
  }
  func.func @transform_0(%arg0: i32, %arg1: i32, %arg2: i32) -> (i32, i32) {
    %c0_i32 = arith.constant 0 : i32
    return %arg0, %arg2 : i32, i32
  }
  func.func @transform_1(%arg0: i32, %arg1: i32, %arg2: i32) -> (i32, i32) {
    %c0_i32 = arith.constant 0 : i32
    return %arg2, %arg1 : i32, i32
  }
  func.func @transform_2(%arg0: i32, %arg1: i32, %arg2: i32) -> (i32, i32) {
    %c0_i32 = arith.constant 0 : i32
    %c0_i32_0 = arith.constant 0 : i32
    return %c0_i32, %arg1 : i32, i32
  }
  func.func @transform_3(%arg0: i32, %arg1: i32, %arg2: i32) -> (i32, i32) {
    %c0_i32 = arith.constant 0 : i32
    return %arg0, %arg1 : i32, i32
  }
}

module attributes {stable_mosaic.version = 11 : i64} {
  func.func @_mm_bias_res_kernel(%arg0: i32, %arg1: i32, %arg2: i32, %arg3: memref<256x288xbf16, #tpu.memory_space<vmem>>, %arg4: memref<288x32xbf16, #tpu.memory_space<vmem>>, %arg5: memref<1x32xf32, #tpu.memory_space<vmem>>, %arg6: memref<256x32xf32, #tpu.memory_space<vmem>>, %arg7: memref<256x32xf32, #tpu.memory_space<vmem>>, %arg8: memref<256x32xf32, #tpu.memory_space<vmem>>) attributes {dimension_semantics = [#tpu.dimension_semantics<parallel>, #tpu.dimension_semantics<parallel>, #tpu.dimension_semantics<arbitrary>], iteration_bounds = array<i64: 2, 1, 1>, scalar_prefetch = 0 : i64, scratch_operands = 1 : i64, tpu.core_type = #tpu.core_type<tc>, window_params = [{transform_indices = @transform_0, window_bounds = array<i64: 256, 288>}, {transform_indices = @transform_1, window_bounds = array<i64: 288, 32>}, {transform_indices = @transform_2, window_bounds = array<i64: 1, 32>}, {transform_indices = @transform_3, window_bounds = array<i64: 256, 32>}, {transform_indices = @transform_4, window_bounds = array<i64: 256, 32>}]} {
    %c0_i32 = arith.constant 0 : i32
    %0 = arith.cmpi eq, %arg2, %c0_i32 : i32
    %1 = arith.extui %0 : i1 to i32
    %c0_i32_0 = arith.constant 0 : i32
    %2 = arith.cmpi ne, %1, %c0_i32_0 : i32
    scf.if %2 {
      %cst_10 = arith.constant 0.000000e+00 : f32
      %12 = vector.broadcast %cst_10 : f32 to vector<256x32xf32>
      %c0_11 = arith.constant 0 : index
      %c0_12 = arith.constant 0 : index
      %13 = vector.load %arg8[%c0_11, %c0_12] : memref<256x32xf32, #tpu.memory_space<vmem>>, vector<256x32xf32>
      tpu.vector_store %arg8[%c0_11, %c0_12], %12 {strides = array<i32>} : memref<256x32xf32, #tpu.memory_space<vmem>>, vector<256x32xf32>,
    } else {
    }
    %c0 = arith.constant 0 : index
    %c0_1 = arith.constant 0 : index
    %3 = vector.load %arg8[%c0, %c0_1] : memref<256x32xf32, #tpu.memory_space<vmem>>, vector<256x32xf32>
    %c0_2 = arith.constant 0 : index
    %c0_3 = arith.constant 0 : index
    %4 = vector.load %arg3[%c0_2, %c0_3] : memref<256x288xbf16, #tpu.memory_space<vmem>>, vector<256x288xbf16>
    %c0_4 = arith.constant 0 : index
    %c0_5 = arith.constant 0 : index
    %5 = vector.load %arg4[%c0_4, %c0_5] : memref<288x32xbf16, #tpu.memory_space<vmem>>, vector<288x32xbf16>
    %cst = arith.constant dense<0.000000e+00> : vector<256x32xf32>
    %6 = tpu.matmul %4, %5, %cst {dimension_numbers = #tpu.dot_dimension_numbers<[1], [0], [0], [1], [0, 0, 1, 1], [], []>} : vector<256x288xbf16>, vector<288x32xbf16>, vector<256x32xf32> -> vector<256x32xf32>
    %7 = arith.addf %3, %6 : vector<256x32xf32>
    %c0_6 = arith.constant 0 : index
    %c0_7 = arith.constant 0 : index
    %8 = vector.load %arg8[%c0_6, %c0_7] : memref<256x32xf32, #tpu.memory_space<vmem>>, vector<256x32xf32>
    tpu.vector_store %arg8[%c0_6, %c0_7], %7 {strides = array<i32>} : memref<256x32xf32, #tpu.memory_space<vmem>>, vector<256x32xf32>,
    %c0_i32_8 = arith.constant 0 : i32
    %9 = arith.cmpi eq, %arg2, %c0_i32_8 : i32
    %10 = arith.extui %9 : i1 to i32
    %c0_i32_9 = arith.constant 0 : i32
    %11 = arith.cmpi ne, %10, %c0_i32_9 : i32
    scf.if %11 {
      %c0_10 = arith.constant 0 : index
      %c0_11 = arith.constant 0 : index
      %12 = vector.load %arg8[%c0_10, %c0_11] : memref<256x32xf32, #tpu.memory_space<vmem>>, vector<256x32xf32>
      %c0_12 = arith.constant 0 : index
      %c0_13 = arith.constant 0 : index
      %13 = vector.load %arg5[%c0_12, %c0_13] : memref<1x32xf32, #tpu.memory_space<vmem>>, vector<1x32xf32>
      %14 = vector.broadcast %13 : vector<1x32xf32> to vector<256x32xf32>
      %15 = arith.addf %12, %14 : vector<256x32xf32>
      %c0_14 = arith.constant 0 : index
      %c0_15 = arith.constant 0 : index
      %16 = vector.load %arg6[%c0_14, %c0_15] : memref<256x32xf32, #tpu.memory_space<vmem>>, vector<256x32xf32>
      %17 = arith.addf %15, %16 : vector<256x32xf32>
      %c0_16 = arith.constant 0 : index
      %c0_17 = arith.constant 0 : index
      %18 = vector.load %arg7[%c0_16, %c0_17] : memref<256x32xf32, #tpu.memory_space<vmem>>, vector<256x32xf32>
      tpu.vector_store %arg7[%c0_16, %c0_17], %17 {strides = array<i32>} : memref<256x32xf32, #tpu.memory_space<vmem>>, vector<256x32xf32>,
    } else {
    }
    return
  }
  func.func @transform_0(%arg0: i32, %arg1: i32, %arg2: i32) -> (i32, i32) {
    %c0_i32 = arith.constant 0 : i32
    return %arg0, %arg2 : i32, i32
  }
  func.func @transform_1(%arg0: i32, %arg1: i32, %arg2: i32) -> (i32, i32) {
    %c0_i32 = arith.constant 0 : i32
    return %arg2, %arg1 : i32, i32
  }
  func.func @transform_2(%arg0: i32, %arg1: i32, %arg2: i32) -> (i32, i32) {
    %c0_i32 = arith.constant 0 : i32
    %c0_i32_0 = arith.constant 0 : i32
    return %c0_i32, %arg1 : i32, i32
  }
  func.func @transform_3(%arg0: i32, %arg1: i32, %arg2: i32) -> (i32, i32) {
    %c0_i32 = arith.constant 0 : i32
    return %arg0, %arg1 : i32, i32
  }
  func.func @transform_4(%arg0: i32, %arg1: i32, %arg2: i32) -> (i32, i32) {
    %c0_i32 = arith.constant 0 : i32
    return %arg0, %arg1 : i32, i32
  }
}

module attributes {stable_mosaic.version = 11 : i64} {
  func.func @_mm_bias_kernel(%arg0: i32, %arg1: i32, %arg2: i32, %arg3: memref<128x288xbf16, #tpu.memory_space<vmem>>, %arg4: memref<288x32xbf16, #tpu.memory_space<vmem>>, %arg5: memref<1x32xf32, #tpu.memory_space<vmem>>, %arg6: memref<128x32xf32, #tpu.memory_space<vmem>>, %arg7: memref<128x32xf32, #tpu.memory_space<vmem>>) attributes {dimension_semantics = [#tpu.dimension_semantics<parallel>, #tpu.dimension_semantics<parallel>, #tpu.dimension_semantics<arbitrary>], iteration_bounds = array<i64: 1, 1, 1>, scalar_prefetch = 0 : i64, scratch_operands = 1 : i64, tpu.core_type = #tpu.core_type<tc>, window_params = [{transform_indices = @transform_0, window_bounds = array<i64: 128, 288>}, {transform_indices = @transform_1, window_bounds = array<i64: 288, 32>}, {transform_indices = @transform_2, window_bounds = array<i64: 1, 32>}, {transform_indices = @transform_3, window_bounds = array<i64: 128, 32>}]} {
    %c0_i32 = arith.constant 0 : i32
    %0 = arith.cmpi eq, %arg2, %c0_i32 : i32
    %1 = arith.extui %0 : i1 to i32
    %c0_i32_0 = arith.constant 0 : i32
    %2 = arith.cmpi ne, %1, %c0_i32_0 : i32
    scf.if %2 {
      %cst_10 = arith.constant 0.000000e+00 : f32
      %12 = vector.broadcast %cst_10 : f32 to vector<128x32xf32>
      %c0_11 = arith.constant 0 : index
      %c0_12 = arith.constant 0 : index
      %13 = vector.load %arg7[%c0_11, %c0_12] : memref<128x32xf32, #tpu.memory_space<vmem>>, vector<128x32xf32>
      tpu.vector_store %arg7[%c0_11, %c0_12], %12 {strides = array<i32>} : memref<128x32xf32, #tpu.memory_space<vmem>>, vector<128x32xf32>,
    } else {
    }
    %c0 = arith.constant 0 : index
    %c0_1 = arith.constant 0 : index
    %3 = vector.load %arg7[%c0, %c0_1] : memref<128x32xf32, #tpu.memory_space<vmem>>, vector<128x32xf32>
    %c0_2 = arith.constant 0 : index
    %c0_3 = arith.constant 0 : index
    %4 = vector.load %arg3[%c0_2, %c0_3] : memref<128x288xbf16, #tpu.memory_space<vmem>>, vector<128x288xbf16>
    %c0_4 = arith.constant 0 : index
    %c0_5 = arith.constant 0 : index
    %5 = vector.load %arg4[%c0_4, %c0_5] : memref<288x32xbf16, #tpu.memory_space<vmem>>, vector<288x32xbf16>
    %cst = arith.constant dense<0.000000e+00> : vector<128x32xf32>
    %6 = tpu.matmul %4, %5, %cst {dimension_numbers = #tpu.dot_dimension_numbers<[1], [0], [0], [1], [0, 0, 1, 1], [], []>} : vector<128x288xbf16>, vector<288x32xbf16>, vector<128x32xf32> -> vector<128x32xf32>
    %7 = arith.addf %3, %6 : vector<128x32xf32>
    %c0_6 = arith.constant 0 : index
    %c0_7 = arith.constant 0 : index
    %8 = vector.load %arg7[%c0_6, %c0_7] : memref<128x32xf32, #tpu.memory_space<vmem>>, vector<128x32xf32>
    tpu.vector_store %arg7[%c0_6, %c0_7], %7 {strides = array<i32>} : memref<128x32xf32, #tpu.memory_space<vmem>>, vector<128x32xf32>,
    %c0_i32_8 = arith.constant 0 : i32
    %9 = arith.cmpi eq, %arg2, %c0_i32_8 : i32
    %10 = arith.extui %9 : i1 to i32
    %c0_i32_9 = arith.constant 0 : i32
    %11 = arith.cmpi ne, %10, %c0_i32_9 : i32
    scf.if %11 {
      %c0_10 = arith.constant 0 : index
      %c0_11 = arith.constant 0 : index
      %12 = vector.load %arg7[%c0_10, %c0_11] : memref<128x32xf32, #tpu.memory_space<vmem>>, vector<128x32xf32>
      %c0_12 = arith.constant 0 : index
      %c0_13 = arith.constant 0 : index
      %13 = vector.load %arg5[%c0_12, %c0_13] : memref<1x32xf32, #tpu.memory_space<vmem>>, vector<1x32xf32>
      %14 = vector.broadcast %13 : vector<1x32xf32> to vector<128x32xf32>
      %15 = arith.addf %12, %14 : vector<128x32xf32>
      %c0_14 = arith.constant 0 : index
      %c0_15 = arith.constant 0 : index
      %16 = vector.load %arg6[%c0_14, %c0_15] : memref<128x32xf32, #tpu.memory_space<vmem>>, vector<128x32xf32>
      tpu.vector_store %arg6[%c0_14, %c0_15], %15 {strides = array<i32>} : memref<128x32xf32, #tpu.memory_space<vmem>>, vector<128x32xf32>,
    } else {
    }
    return
  }
  func.func @transform_0(%arg0: i32, %arg1: i32, %arg2: i32) -> (i32, i32) {
    %c0_i32 = arith.constant 0 : i32
    return %arg0, %arg2 : i32, i32
  }
  func.func @transform_1(%arg0: i32, %arg1: i32, %arg2: i32) -> (i32, i32) {
    %c0_i32 = arith.constant 0 : i32
    return %arg2, %arg1 : i32, i32
  }
  func.func @transform_2(%arg0: i32, %arg1: i32, %arg2: i32) -> (i32, i32) {
    %c0_i32 = arith.constant 0 : i32
    %c0_i32_0 = arith.constant 0 : i32
    return %c0_i32, %arg1 : i32, i32
  }
  func.func @transform_3(%arg0: i32, %arg1: i32, %arg2: i32) -> (i32, i32) {
    %c0_i32 = arith.constant 0 : i32
    return %arg0, %arg1 : i32, i32
  }
}

module attributes {stable_mosaic.version = 11 : i64} {
  func.func @_groupnorm_cg1_kernel(%arg0: i32, %arg1: memref<1x64x32xf32, #tpu.memory_space<vmem>>, %arg2: memref<1x32xf32, #tpu.memory_space<vmem>>, %arg3: memref<1x32xf32, #tpu.memory_space<vmem>>, %arg4: memref<1x64x32xf32, #tpu.memory_space<vmem>>) attributes {dimension_semantics = [#tpu.dimension_semantics<parallel>], iteration_bounds = array<i64: 2>, scalar_prefetch = 0 : i64, scratch_operands = 0 : i64, tpu.core_type = #tpu.core_type<tc>, window_params = [{transform_indices = @transform_0, window_bounds = array<i64: 1, 64, 32>}, {pipeline_mode = #tpu.pipeline_mode<synchronous>, transform_indices = @transform_1, window_bounds = array<i64: 1, 32>}, {pipeline_mode = #tpu.pipeline_mode<synchronous>, transform_indices = @transform_2, window_bounds = array<i64: 1, 32>}, {transform_indices = @transform_3, window_bounds = array<i64: 1, 64, 32>}]} {
    %c0 = arith.constant 0 : index
    %c0_0 = arith.constant 0 : index
    %c0_1 = arith.constant 0 : index
    %0 = vector.load %arg1[%c0, %c0_0, %c0_1] : memref<1x64x32xf32, #tpu.memory_space<vmem>>, vector<1x64x32xf32>
    %1 = vector.shape_cast %0 : vector<1x64x32xf32> to vector<64x32xf32>
    %cst = arith.constant dense<0.000000e+00> : vector<32xf32>
    %2 = vector.multi_reduction <add>, %1, %cst [0] : vector<64x32xf32> to vector<32xf32>
    %3 = vector.shape_cast %2 : vector<32xf32> to vector<1x32xf32>
    %cst_2 = arith.constant 6.400000e+01 : f32
    %4 = vector.broadcast %cst_2 : f32 to vector<1x32xf32>
    %5 = arith.divf %3, %4 : vector<1x32xf32>
    %6 = vector.broadcast %5 : vector<1x32xf32> to vector<64x32xf32>
    %7 = arith.subf %1, %6 : vector<64x32xf32>
    %8 = arith.mulf %7, %7 : vector<64x32xf32>
    %cst_3 = arith.constant dense<0.000000e+00> : vector<32xf32>
    %9 = vector.multi_reduction <add>, %8, %cst_3 [0] : vector<64x32xf32> to vector<32xf32>
    %10 = vector.shape_cast %9 : vector<32xf32> to vector<1x32xf32>
    %cst_4 = arith.constant 6.400000e+01 : f32
    %11 = vector.broadcast %cst_4 : f32 to vector<1x32xf32>
    %12 = arith.divf %10, %11 : vector<1x32xf32>
    %cst_5 = arith.constant 9.99999997E-7 : f32
    %13 = vector.broadcast %cst_5 : f32 to vector<1x32xf32>
    %14 = arith.addf %12, %13 : vector<1x32xf32>
    %15 = math.rsqrt %14 : vector<1x32xf32>
    %16 = vector.broadcast %15 : vector<1x32xf32> to vector<64x32xf32>
    %17 = arith.mulf %7, %16 : vector<64x32xf32>
    %c0_6 = arith.constant 0 : index
    %c0_7 = arith.constant 0 : index
    %18 = vector.load %arg2[%c0_6, %c0_7] : memref<1x32xf32, #tpu.memory_space<vmem>>, vector<1x32xf32>
    %19 = vector.broadcast %18 : vector<1x32xf32> to vector<64x32xf32>
    %20 = arith.mulf %17, %19 : vector<64x32xf32>
    %c0_8 = arith.constant 0 : index
    %c0_9 = arith.constant 0 : index
    %21 = vector.load %arg3[%c0_8, %c0_9] : memref<1x32xf32, #tpu.memory_space<vmem>>, vector<1x32xf32>
    %22 = vector.broadcast %21 : vector<1x32xf32> to vector<64x32xf32>
    %23 = arith.addf %20, %22 : vector<64x32xf32>
    %24 = arith.negf %23 : vector<64x32xf32>
    %25 = math.exp %24 : vector<64x32xf32>
    %cst_10 = arith.constant 1.000000e+00 : f32
    %26 = vector.broadcast %cst_10 : f32 to vector<64x32xf32>
    %27 = arith.addf %26, %25 : vector<64x32xf32>
    %28 = arith.divf %26, %27 : vector<64x32xf32>
    %29 = arith.mulf %23, %28 : vector<64x32xf32>
    %c0_11 = arith.constant 0 : index
    %c0_12 = arith.constant 0 : index
    %c0_13 = arith.constant 0 : index
    %30 = vector.load %arg4[%c0_11, %c0_12, %c0_13] : memref<1x64x32xf32, #tpu.memory_space<vmem>>, vector<1x64x32xf32>
    %31 = vector.shape_cast %30 : vector<1x64x32xf32> to vector<64x32xf32>
    %32 = vector.shape_cast %29 : vector<64x32xf32> to vector<1x64x32xf32>
    tpu.vector_store %arg4[%c0_11, %c0_12, %c0_13], %32 {strides = array<i32>} : memref<1x64x32xf32, #tpu.memory_space<vmem>>, vector<1x64x32xf32>,
    return
  }
  func.func @transform_0(%arg0: i32) -> (i32, i32, i32) {
    %c0_i32 = arith.constant 0 : i32
    %c0_i32_0 = arith.constant 0 : i32
    %c0_i32_1 = arith.constant 0 : i32
    return %arg0, %c0_i32, %c0_i32_0 : i32, i32, i32
  }
  func.func @transform_1(%arg0: i32) -> (i32, i32) {
    %c0_i32 = arith.constant 0 : i32
    %c0_i32_0 = arith.constant 0 : i32
    %c0_i32_1 = arith.constant 0 : i32
    return %c0_i32, %c0_i32_0 : i32, i32
  }
  func.func @transform_2(%arg0: i32) -> (i32, i32) {
    %c0_i32 = arith.constant 0 : i32
    %c0_i32_0 = arith.constant 0 : i32
    %c0_i32_1 = arith.constant 0 : i32
    return %c0_i32, %c0_i32_0 : i32, i32
  }
  func.func @transform_3(%arg0: i32) -> (i32, i32, i32) {
    %c0_i32 = arith.constant 0 : i32
    %c0_i32_0 = arith.constant 0 : i32
    %c0_i32_1 = arith.constant 0 : i32
    return %arg0, %c0_i32, %c0_i32_0 : i32, i32, i32
  }
}

module attributes {stable_mosaic.version = 11 : i64} {
  func.func @_mm_bias_res_kernel(%arg0: i32, %arg1: i32, %arg2: i32, %arg3: memref<128x288xbf16, #tpu.memory_space<vmem>>, %arg4: memref<288x32xbf16, #tpu.memory_space<vmem>>, %arg5: memref<1x32xf32, #tpu.memory_space<vmem>>, %arg6: memref<128x32xf32, #tpu.memory_space<vmem>>, %arg7: memref<128x32xf32, #tpu.memory_space<vmem>>, %arg8: memref<128x32xf32, #tpu.memory_space<vmem>>) attributes {dimension_semantics = [#tpu.dimension_semantics<parallel>, #tpu.dimension_semantics<parallel>, #tpu.dimension_semantics<arbitrary>], iteration_bounds = array<i64: 1, 1, 1>, scalar_prefetch = 0 : i64, scratch_operands = 1 : i64, tpu.core_type = #tpu.core_type<tc>, window_params = [{transform_indices = @transform_0, window_bounds = array<i64: 128, 288>}, {transform_indices = @transform_1, window_bounds = array<i64: 288, 32>}, {transform_indices = @transform_2, window_bounds = array<i64: 1, 32>}, {transform_indices = @transform_3, window_bounds = array<i64: 128, 32>}, {transform_indices = @transform_4, window_bounds = array<i64: 128, 32>}]} {
    %c0_i32 = arith.constant 0 : i32
    %0 = arith.cmpi eq, %arg2, %c0_i32 : i32
    %1 = arith.extui %0 : i1 to i32
    %c0_i32_0 = arith.constant 0 : i32
    %2 = arith.cmpi ne, %1, %c0_i32_0 : i32
    scf.if %2 {
      %cst_10 = arith.constant 0.000000e+00 : f32
      %12 = vector.broadcast %cst_10 : f32 to vector<128x32xf32>
      %c0_11 = arith.constant 0 : index
      %c0_12 = arith.constant 0 : index
      %13 = vector.load %arg8[%c0_11, %c0_12] : memref<128x32xf32, #tpu.memory_space<vmem>>, vector<128x32xf32>
      tpu.vector_store %arg8[%c0_11, %c0_12], %12 {strides = array<i32>} : memref<128x32xf32, #tpu.memory_space<vmem>>, vector<128x32xf32>,
    } else {
    }
    %c0 = arith.constant 0 : index
    %c0_1 = arith.constant 0 : index
    %3 = vector.load %arg8[%c0, %c0_1] : memref<128x32xf32, #tpu.memory_space<vmem>>, vector<128x32xf32>
    %c0_2 = arith.constant 0 : index
    %c0_3 = arith.constant 0 : index
    %4 = vector.load %arg3[%c0_2, %c0_3] : memref<128x288xbf16, #tpu.memory_space<vmem>>, vector<128x288xbf16>
    %c0_4 = arith.constant 0 : index
    %c0_5 = arith.constant 0 : index
    %5 = vector.load %arg4[%c0_4, %c0_5] : memref<288x32xbf16, #tpu.memory_space<vmem>>, vector<288x32xbf16>
    %cst = arith.constant dense<0.000000e+00> : vector<128x32xf32>
    %6 = tpu.matmul %4, %5, %cst {dimension_numbers = #tpu.dot_dimension_numbers<[1], [0], [0], [1], [0, 0, 1, 1], [], []>} : vector<128x288xbf16>, vector<288x32xbf16>, vector<128x32xf32> -> vector<128x32xf32>
    %7 = arith.addf %3, %6 : vector<128x32xf32>
    %c0_6 = arith.constant 0 : index
    %c0_7 = arith.constant 0 : index
    %8 = vector.load %arg8[%c0_6, %c0_7] : memref<128x32xf32, #tpu.memory_space<vmem>>, vector<128x32xf32>
    tpu.vector_store %arg8[%c0_6, %c0_7], %7 {strides = array<i32>} : memref<128x32xf32, #tpu.memory_space<vmem>>, vector<128x32xf32>,
    %c0_i32_8 = arith.constant 0 : i32
    %9 = arith.cmpi eq, %arg2, %c0_i32_8 : i32
    %10 = arith.extui %9 : i1 to i32
    %c0_i32_9 = arith.constant 0 : i32
    %11 = arith.cmpi ne, %10, %c0_i32_9 : i32
    scf.if %11 {
      %c0_10 = arith.constant 0 : index
      %c0_11 = arith.constant 0 : index
      %12 = vector.load %arg8[%c0_10, %c0_11] : memref<128x32xf32, #tpu.memory_space<vmem>>, vector<128x32xf32>
      %c0_12 = arith.constant 0 : index
      %c0_13 = arith.constant 0 : index
      %13 = vector.load %arg5[%c0_12, %c0_13] : memref<1x32xf32, #tpu.memory_space<vmem>>, vector<1x32xf32>
      %14 = vector.broadcast %13 : vector<1x32xf32> to vector<128x32xf32>
      %15 = arith.addf %12, %14 : vector<128x32xf32>
      %c0_14 = arith.constant 0 : index
      %c0_15 = arith.constant 0 : index
      %16 = vector.load %arg6[%c0_14, %c0_15] : memref<128x32xf32, #tpu.memory_space<vmem>>, vector<128x32xf32>
      %17 = arith.addf %15, %16 : vector<128x32xf32>
      %c0_16 = arith.constant 0 : index
      %c0_17 = arith.constant 0 : index
      %18 = vector.load %arg7[%c0_16, %c0_17] : memref<128x32xf32, #tpu.memory_space<vmem>>, vector<128x32xf32>
      tpu.vector_store %arg7[%c0_16, %c0_17], %17 {strides = array<i32>} : memref<128x32xf32, #tpu.memory_space<vmem>>, vector<128x32xf32>,
    } else {
    }
    return
  }
  func.func @transform_0(%arg0: i32, %arg1: i32, %arg2: i32) -> (i32, i32) {
    %c0_i32 = arith.constant 0 : i32
    return %arg0, %arg2 : i32, i32
  }
  func.func @transform_1(%arg0: i32, %arg1: i32, %arg2: i32) -> (i32, i32) {
    %c0_i32 = arith.constant 0 : i32
    return %arg2, %arg1 : i32, i32
  }
  func.func @transform_2(%arg0: i32, %arg1: i32, %arg2: i32) -> (i32, i32) {
    %c0_i32 = arith.constant 0 : i32
    %c0_i32_0 = arith.constant 0 : i32
    return %c0_i32, %arg1 : i32, i32
  }
  func.func @transform_3(%arg0: i32, %arg1: i32, %arg2: i32) -> (i32, i32) {
    %c0_i32 = arith.constant 0 : i32
    return %arg0, %arg1 : i32, i32
  }
  func.func @transform_4(%arg0: i32, %arg1: i32, %arg2: i32) -> (i32, i32) {
    %c0_i32 = arith.constant 0 : i32
    return %arg0, %arg1 : i32, i32
  }
}

module attributes {stable_mosaic.version = 11 : i64} {
  func.func @_mm_bias_kernel(%arg0: i32, %arg1: i32, %arg2: i32, %arg3: memref<32x288xbf16, #tpu.memory_space<vmem>>, %arg4: memref<288x32xbf16, #tpu.memory_space<vmem>>, %arg5: memref<1x32xf32, #tpu.memory_space<vmem>>, %arg6: memref<32x32xf32, #tpu.memory_space<vmem>>, %arg7: memref<32x32xf32, #tpu.memory_space<vmem>>) attributes {dimension_semantics = [#tpu.dimension_semantics<parallel>, #tpu.dimension_semantics<parallel>, #tpu.dimension_semantics<arbitrary>], iteration_bounds = array<i64: 1, 1, 1>, scalar_prefetch = 0 : i64, scratch_operands = 1 : i64, tpu.core_type = #tpu.core_type<tc>, window_params = [{transform_indices = @transform_0, window_bounds = array<i64: 32, 288>}, {transform_indices = @transform_1, window_bounds = array<i64: 288, 32>}, {transform_indices = @transform_2, window_bounds = array<i64: 1, 32>}, {transform_indices = @transform_3, window_bounds = array<i64: 32, 32>}]} {
    %c0_i32 = arith.constant 0 : i32
    %0 = arith.cmpi eq, %arg2, %c0_i32 : i32
    %1 = arith.extui %0 : i1 to i32
    %c0_i32_0 = arith.constant 0 : i32
    %2 = arith.cmpi ne, %1, %c0_i32_0 : i32
    scf.if %2 {
      %cst_10 = arith.constant 0.000000e+00 : f32
      %12 = vector.broadcast %cst_10 : f32 to vector<32x32xf32>
      %c0_11 = arith.constant 0 : index
      %c0_12 = arith.constant 0 : index
      %13 = vector.load %arg7[%c0_11, %c0_12] : memref<32x32xf32, #tpu.memory_space<vmem>>, vector<32x32xf32>
      tpu.vector_store %arg7[%c0_11, %c0_12], %12 {strides = array<i32>} : memref<32x32xf32, #tpu.memory_space<vmem>>, vector<32x32xf32>,
    } else {
    }
    %c0 = arith.constant 0 : index
    %c0_1 = arith.constant 0 : index
    %3 = vector.load %arg7[%c0, %c0_1] : memref<32x32xf32, #tpu.memory_space<vmem>>, vector<32x32xf32>
    %c0_2 = arith.constant 0 : index
    %c0_3 = arith.constant 0 : index
    %4 = vector.load %arg3[%c0_2, %c0_3] : memref<32x288xbf16, #tpu.memory_space<vmem>>, vector<32x288xbf16>
    %c0_4 = arith.constant 0 : index
    %c0_5 = arith.constant 0 : index
    %5 = vector.load %arg4[%c0_4, %c0_5] : memref<288x32xbf16, #tpu.memory_space<vmem>>, vector<288x32xbf16>
    %cst = arith.constant dense<0.000000e+00> : vector<32x32xf32>
    %6 = tpu.matmul %4, %5, %cst {dimension_numbers = #tpu.dot_dimension_numbers<[1], [0], [0], [1], [0, 0, 1, 1], [], []>} : vector<32x288xbf16>, vector<288x32xbf16>, vector<32x32xf32> -> vector<32x32xf32>
    %7 = arith.addf %3, %6 : vector<32x32xf32>
    %c0_6 = arith.constant 0 : index
    %c0_7 = arith.constant 0 : index
    %8 = vector.load %arg7[%c0_6, %c0_7] : memref<32x32xf32, #tpu.memory_space<vmem>>, vector<32x32xf32>
    tpu.vector_store %arg7[%c0_6, %c0_7], %7 {strides = array<i32>} : memref<32x32xf32, #tpu.memory_space<vmem>>, vector<32x32xf32>,
    %c0_i32_8 = arith.constant 0 : i32
    %9 = arith.cmpi eq, %arg2, %c0_i32_8 : i32
    %10 = arith.extui %9 : i1 to i32
    %c0_i32_9 = arith.constant 0 : i32
    %11 = arith.cmpi ne, %10, %c0_i32_9 : i32
    scf.if %11 {
      %c0_10 = arith.constant 0 : index
      %c0_11 = arith.constant 0 : index
      %12 = vector.load %arg7[%c0_10, %c0_11] : memref<32x32xf32, #tpu.memory_space<vmem>>, vector<32x32xf32>
      %c0_12 = arith.constant 0 : index
      %c0_13 = arith.constant 0 : index
      %13 = vector.load %arg5[%c0_12, %c0_13] : memref<1x32xf32, #tpu.memory_space<vmem>>, vector<1x32xf32>
      %14 = vector.broadcast %13 : vector<1x32xf32> to vector<32x32xf32>
      %15 = arith.addf %12, %14 : vector<32x32xf32>
      %c0_14 = arith.constant 0 : index
      %c0_15 = arith.constant 0 : index
      %16 = vector.load %arg6[%c0_14, %c0_15] : memref<32x32xf32, #tpu.memory_space<vmem>>, vector<32x32xf32>
      tpu.vector_store %arg6[%c0_14, %c0_15], %15 {strides = array<i32>} : memref<32x32xf32, #tpu.memory_space<vmem>>, vector<32x32xf32>,
    } else {
    }
    return
  }
  func.func @transform_0(%arg0: i32, %arg1: i32, %arg2: i32) -> (i32, i32) {
    %c0_i32 = arith.constant 0 : i32
    return %arg0, %arg2 : i32, i32
  }
  func.func @transform_1(%arg0: i32, %arg1: i32, %arg2: i32) -> (i32, i32) {
    %c0_i32 = arith.constant 0 : i32
    return %arg2, %arg1 : i32, i32
  }
  func.func @transform_2(%arg0: i32, %arg1: i32, %arg2: i32) -> (i32, i32) {
    %c0_i32 = arith.constant 0 : i32
    %c0_i32_0 = arith.constant 0 : i32
    return %c0_i32, %arg1 : i32, i32
  }
  func.func @transform_3(%arg0: i32, %arg1: i32, %arg2: i32) -> (i32, i32) {
    %c0_i32 = arith.constant 0 : i32
    return %arg0, %arg1 : i32, i32
  }
}

module attributes {stable_mosaic.version = 11 : i64} {
  func.func @_groupnorm_cg1_kernel(%arg0: i32, %arg1: memref<1x16x32xf32, #tpu.memory_space<vmem>>, %arg2: memref<1x32xf32, #tpu.memory_space<vmem>>, %arg3: memref<1x32xf32, #tpu.memory_space<vmem>>, %arg4: memref<1x16x32xf32, #tpu.memory_space<vmem>>) attributes {dimension_semantics = [#tpu.dimension_semantics<parallel>], iteration_bounds = array<i64: 2>, scalar_prefetch = 0 : i64, scratch_operands = 0 : i64, tpu.core_type = #tpu.core_type<tc>, window_params = [{transform_indices = @transform_0, window_bounds = array<i64: 1, 16, 32>}, {pipeline_mode = #tpu.pipeline_mode<synchronous>, transform_indices = @transform_1, window_bounds = array<i64: 1, 32>}, {pipeline_mode = #tpu.pipeline_mode<synchronous>, transform_indices = @transform_2, window_bounds = array<i64: 1, 32>}, {transform_indices = @transform_3, window_bounds = array<i64: 1, 16, 32>}]} {
    %c0 = arith.constant 0 : index
    %c0_0 = arith.constant 0 : index
    %c0_1 = arith.constant 0 : index
    %0 = vector.load %arg1[%c0, %c0_0, %c0_1] : memref<1x16x32xf32, #tpu.memory_space<vmem>>, vector<1x16x32xf32>
    %1 = vector.shape_cast %0 : vector<1x16x32xf32> to vector<16x32xf32>
    %cst = arith.constant dense<0.000000e+00> : vector<32xf32>
    %2 = vector.multi_reduction <add>, %1, %cst [0] : vector<16x32xf32> to vector<32xf32>
    %3 = vector.shape_cast %2 : vector<32xf32> to vector<1x32xf32>
    %cst_2 = arith.constant 1.600000e+01 : f32
    %4 = vector.broadcast %cst_2 : f32 to vector<1x32xf32>
    %5 = arith.divf %3, %4 : vector<1x32xf32>
    %6 = vector.broadcast %5 : vector<1x32xf32> to vector<16x32xf32>
    %7 = arith.subf %1, %6 : vector<16x32xf32>
    %8 = arith.mulf %7, %7 : vector<16x32xf32>
    %cst_3 = arith.constant dense<0.000000e+00> : vector<32xf32>
    %9 = vector.multi_reduction <add>, %8, %cst_3 [0] : vector<16x32xf32> to vector<32xf32>
    %10 = vector.shape_cast %9 : vector<32xf32> to vector<1x32xf32>
    %cst_4 = arith.constant 1.600000e+01 : f32
    %11 = vector.broadcast %cst_4 : f32 to vector<1x32xf32>
    %12 = arith.divf %10, %11 : vector<1x32xf32>
    %cst_5 = arith.constant 9.99999997E-7 : f32
    %13 = vector.broadcast %cst_5 : f32 to vector<1x32xf32>
    %14 = arith.addf %12, %13 : vector<1x32xf32>
    %15 = math.rsqrt %14 : vector<1x32xf32>
    %16 = vector.broadcast %15 : vector<1x32xf32> to vector<16x32xf32>
    %17 = arith.mulf %7, %16 : vector<16x32xf32>
    %c0_6 = arith.constant 0 : index
    %c0_7 = arith.constant 0 : index
    %18 = vector.load %arg2[%c0_6, %c0_7] : memref<1x32xf32, #tpu.memory_space<vmem>>, vector<1x32xf32>
    %19 = vector.broadcast %18 : vector<1x32xf32> to vector<16x32xf32>
    %20 = arith.mulf %17, %19 : vector<16x32xf32>
    %c0_8 = arith.constant 0 : index
    %c0_9 = arith.constant 0 : index
    %21 = vector.load %arg3[%c0_8, %c0_9] : memref<1x32xf32, #tpu.memory_space<vmem>>, vector<1x32xf32>
    %22 = vector.broadcast %21 : vector<1x32xf32> to vector<16x32xf32>
    %23 = arith.addf %20, %22 : vector<16x32xf32>
    %24 = arith.negf %23 : vector<16x32xf32>
    %25 = math.exp %24 : vector<16x32xf32>
    %cst_10 = arith.constant 1.000000e+00 : f32
    %26 = vector.broadcast %cst_10 : f32 to vector<16x32xf32>
    %27 = arith.addf %26, %25 : vector<16x32xf32>
    %28 = arith.divf %26, %27 : vector<16x32xf32>
    %29 = arith.mulf %23, %28 : vector<16x32xf32>
    %c0_11 = arith.constant 0 : index
    %c0_12 = arith.constant 0 : index
    %c0_13 = arith.constant 0 : index
    %30 = vector.load %arg4[%c0_11, %c0_12, %c0_13] : memref<1x16x32xf32, #tpu.memory_space<vmem>>, vector<1x16x32xf32>
    %31 = vector.shape_cast %30 : vector<1x16x32xf32> to vector<16x32xf32>
    %32 = vector.shape_cast %29 : vector<16x32xf32> to vector<1x16x32xf32>
    tpu.vector_store %arg4[%c0_11, %c0_12, %c0_13], %32 {strides = array<i32>} : memref<1x16x32xf32, #tpu.memory_space<vmem>>, vector<1x16x32xf32>,
    return
  }
  func.func @transform_0(%arg0: i32) -> (i32, i32, i32) {
    %c0_i32 = arith.constant 0 : i32
    %c0_i32_0 = arith.constant 0 : i32
    %c0_i32_1 = arith.constant 0 : i32
    return %arg0, %c0_i32, %c0_i32_0 : i32, i32, i32
  }
  func.func @transform_1(%arg0: i32) -> (i32, i32) {
    %c0_i32 = arith.constant 0 : i32
    %c0_i32_0 = arith.constant 0 : i32
    %c0_i32_1 = arith.constant 0 : i32
    return %c0_i32, %c0_i32_0 : i32, i32
  }
  func.func @transform_2(%arg0: i32) -> (i32, i32) {
    %c0_i32 = arith.constant 0 : i32
    %c0_i32_0 = arith.constant 0 : i32
    %c0_i32_1 = arith.constant 0 : i32
    return %c0_i32, %c0_i32_0 : i32, i32
  }
  func.func @transform_3(%arg0: i32) -> (i32, i32, i32) {
    %c0_i32 = arith.constant 0 : i32
    %c0_i32_0 = arith.constant 0 : i32
    %c0_i32_1 = arith.constant 0 : i32
    return %arg0, %c0_i32, %c0_i32_0 : i32, i32, i32
  }
}

module attributes {stable_mosaic.version = 11 : i64} {
  func.func @_mm_bias_res_kernel(%arg0: i32, %arg1: i32, %arg2: i32, %arg3: memref<32x288xbf16, #tpu.memory_space<vmem>>, %arg4: memref<288x32xbf16, #tpu.memory_space<vmem>>, %arg5: memref<1x32xf32, #tpu.memory_space<vmem>>, %arg6: memref<32x32xf32, #tpu.memory_space<vmem>>, %arg7: memref<32x32xf32, #tpu.memory_space<vmem>>, %arg8: memref<32x32xf32, #tpu.memory_space<vmem>>) attributes {dimension_semantics = [#tpu.dimension_semantics<parallel>, #tpu.dimension_semantics<parallel>, #tpu.dimension_semantics<arbitrary>], iteration_bounds = array<i64: 1, 1, 1>, scalar_prefetch = 0 : i64, scratch_operands = 1 : i64, tpu.core_type = #tpu.core_type<tc>, window_params = [{transform_indices = @transform_0, window_bounds = array<i64: 32, 288>}, {transform_indices = @transform_1, window_bounds = array<i64: 288, 32>}, {transform_indices = @transform_2, window_bounds = array<i64: 1, 32>}, {transform_indices = @transform_3, window_bounds = array<i64: 32, 32>}, {transform_indices = @transform_4, window_bounds = array<i64: 32, 32>}]} {
    %c0_i32 = arith.constant 0 : i32
    %0 = arith.cmpi eq, %arg2, %c0_i32 : i32
    %1 = arith.extui %0 : i1 to i32
    %c0_i32_0 = arith.constant 0 : i32
    %2 = arith.cmpi ne, %1, %c0_i32_0 : i32
    scf.if %2 {
      %cst_10 = arith.constant 0.000000e+00 : f32
      %12 = vector.broadcast %cst_10 : f32 to vector<32x32xf32>
      %c0_11 = arith.constant 0 : index
      %c0_12 = arith.constant 0 : index
      %13 = vector.load %arg8[%c0_11, %c0_12] : memref<32x32xf32, #tpu.memory_space<vmem>>, vector<32x32xf32>
      tpu.vector_store %arg8[%c0_11, %c0_12], %12 {strides = array<i32>} : memref<32x32xf32, #tpu.memory_space<vmem>>, vector<32x32xf32>,
    } else {
    }
    %c0 = arith.constant 0 : index
    %c0_1 = arith.constant 0 : index
    %3 = vector.load %arg8[%c0, %c0_1] : memref<32x32xf32, #tpu.memory_space<vmem>>, vector<32x32xf32>
    %c0_2 = arith.constant 0 : index
    %c0_3 = arith.constant 0 : index
    %4 = vector.load %arg3[%c0_2, %c0_3] : memref<32x288xbf16, #tpu.memory_space<vmem>>, vector<32x288xbf16>
    %c0_4 = arith.constant 0 : index
    %c0_5 = arith.constant 0 : index
    %5 = vector.load %arg4[%c0_4, %c0_5] : memref<288x32xbf16, #tpu.memory_space<vmem>>, vector<288x32xbf16>
    %cst = arith.constant dense<0.000000e+00> : vector<32x32xf32>
    %6 = tpu.matmul %4, %5, %cst {dimension_numbers = #tpu.dot_dimension_numbers<[1], [0], [0], [1], [0, 0, 1, 1], [], []>} : vector<32x288xbf16>, vector<288x32xbf16>, vector<32x32xf32> -> vector<32x32xf32>
    %7 = arith.addf %3, %6 : vector<32x32xf32>
    %c0_6 = arith.constant 0 : index
    %c0_7 = arith.constant 0 : index
    %8 = vector.load %arg8[%c0_6, %c0_7] : memref<32x32xf32, #tpu.memory_space<vmem>>, vector<32x32xf32>
    tpu.vector_store %arg8[%c0_6, %c0_7], %7 {strides = array<i32>} : memref<32x32xf32, #tpu.memory_space<vmem>>, vector<32x32xf32>,
    %c0_i32_8 = arith.constant 0 : i32
    %9 = arith.cmpi eq, %arg2, %c0_i32_8 : i32
    %10 = arith.extui %9 : i1 to i32
    %c0_i32_9 = arith.constant 0 : i32
    %11 = arith.cmpi ne, %10, %c0_i32_9 : i32
    scf.if %11 {
      %c0_10 = arith.constant 0 : index
      %c0_11 = arith.constant 0 : index
      %12 = vector.load %arg8[%c0_10, %c0_11] : memref<32x32xf32, #tpu.memory_space<vmem>>, vector<32x32xf32>
      %c0_12 = arith.constant 0 : index
      %c0_13 = arith.constant 0 : index
      %13 = vector.load %arg5[%c0_12, %c0_13] : memref<1x32xf32, #tpu.memory_space<vmem>>, vector<1x32xf32>
      %14 = vector.broadcast %13 : vector<1x32xf32> to vector<32x32xf32>
      %15 = arith.addf %12, %14 : vector<32x32xf32>
      %c0_14 = arith.constant 0 : index
      %c0_15 = arith.constant 0 : index
      %16 = vector.load %arg6[%c0_14, %c0_15] : memref<32x32xf32, #tpu.memory_space<vmem>>, vector<32x32xf32>
      %17 = arith.addf %15, %16 : vector<32x32xf32>
      %c0_16 = arith.constant 0 : index
      %c0_17 = arith.constant 0 : index
      %18 = vector.load %arg7[%c0_16, %c0_17] : memref<32x32xf32, #tpu.memory_space<vmem>>, vector<32x32xf32>
      tpu.vector_store %arg7[%c0_16, %c0_17], %17 {strides = array<i32>} : memref<32x32xf32, #tpu.memory_space<vmem>>, vector<32x32xf32>,
    } else {
    }
    return
  }
  func.func @transform_0(%arg0: i32, %arg1: i32, %arg2: i32) -> (i32, i32) {
    %c0_i32 = arith.constant 0 : i32
    return %arg0, %arg2 : i32, i32
  }
  func.func @transform_1(%arg0: i32, %arg1: i32, %arg2: i32) -> (i32, i32) {
    %c0_i32 = arith.constant 0 : i32
    return %arg2, %arg1 : i32, i32
  }
  func.func @transform_2(%arg0: i32, %arg1: i32, %arg2: i32) -> (i32, i32) {
    %c0_i32 = arith.constant 0 : i32
    %c0_i32_0 = arith.constant 0 : i32
    return %c0_i32, %arg1 : i32, i32
  }
  func.func @transform_3(%arg0: i32, %arg1: i32, %arg2: i32) -> (i32, i32) {
    %c0_i32 = arith.constant 0 : i32
    return %arg0, %arg1 : i32, i32
  }
  func.func @transform_4(%arg0: i32, %arg1: i32, %arg2: i32) -> (i32, i32) {
    %c0_i32 = arith.constant 0 : i32
    return %arg0, %arg1 : i32, i32
  }
}

module attributes {stable_mosaic.version = 11 : i64} {
  func.func @_layernorm_kernel(%arg0: i32, %arg1: memref<32x32xf32, #tpu.memory_space<vmem>>, %arg2: memref<1x32xf32, #tpu.memory_space<vmem>>, %arg3: memref<1x32xf32, #tpu.memory_space<vmem>>, %arg4: memref<32x32xf32, #tpu.memory_space<vmem>>) attributes {dimension_semantics = [#tpu.dimension_semantics<parallel>], iteration_bounds = array<i64: 1>, scalar_prefetch = 0 : i64, scratch_operands = 0 : i64, tpu.core_type = #tpu.core_type<tc>, window_params = [{transform_indices = @transform_0, window_bounds = array<i64: 32, 32>}, {pipeline_mode = #tpu.pipeline_mode<synchronous>, transform_indices = @transform_1, window_bounds = array<i64: 1, 32>}, {pipeline_mode = #tpu.pipeline_mode<synchronous>, transform_indices = @transform_2, window_bounds = array<i64: 1, 32>}, {transform_indices = @transform_3, window_bounds = array<i64: 32, 32>}]} {
    %c0 = arith.constant 0 : index
    %c0_0 = arith.constant 0 : index
    %0 = vector.load %arg1[%c0, %c0_0] : memref<32x32xf32, #tpu.memory_space<vmem>>, vector<32x32xf32>
    %cst = arith.constant dense<0.000000e+00> : vector<32xf32>
    %1 = vector.multi_reduction <add>, %0, %cst [1] : vector<32x32xf32> to vector<32xf32>
    %2 = vector.shape_cast %1 : vector<32xf32> to vector<32x1xf32>
    %cst_1 = arith.constant 3.200000e+01 : f32
    %3 = vector.broadcast %cst_1 : f32 to vector<32x1xf32>
    %4 = arith.divf %2, %3 : vector<32x1xf32>
    %5 = vector.broadcast %4 : vector<32x1xf32> to vector<32x32xf32>
    %6 = arith.subf %0, %5 : vector<32x32xf32>
    %7 = arith.mulf %6, %6 : vector<32x32xf32>
    %cst_2 = arith.constant dense<0.000000e+00> : vector<32xf32>
    %8 = vector.multi_reduction <add>, %7, %cst_2 [1] : vector<32x32xf32> to vector<32xf32>
    %9 = vector.shape_cast %8 : vector<32xf32> to vector<32x1xf32>
    %cst_3 = arith.constant 3.200000e+01 : f32
    %10 = vector.broadcast %cst_3 : f32 to vector<32x1xf32>
    %11 = arith.divf %9, %10 : vector<32x1xf32>
    %cst_4 = arith.constant 9.99999997E-7 : f32
    %12 = vector.broadcast %cst_4 : f32 to vector<32x1xf32>
    %13 = arith.addf %11, %12 : vector<32x1xf32>
    %14 = math.rsqrt %13 : vector<32x1xf32>
    %15 = vector.broadcast %14 : vector<32x1xf32> to vector<32x32xf32>
    %16 = arith.mulf %6, %15 : vector<32x32xf32>
    %c0_5 = arith.constant 0 : index
    %c0_6 = arith.constant 0 : index
    %17 = vector.load %arg2[%c0_5, %c0_6] : memref<1x32xf32, #tpu.memory_space<vmem>>, vector<1x32xf32>
    %18 = vector.broadcast %17 : vector<1x32xf32> to vector<32x32xf32>
    %19 = arith.mulf %16, %18 : vector<32x32xf32>
    %c0_7 = arith.constant 0 : index
    %c0_8 = arith.constant 0 : index
    %20 = vector.load %arg3[%c0_7, %c0_8] : memref<1x32xf32, #tpu.memory_space<vmem>>, vector<1x32xf32>
    %21 = vector.broadcast %20 : vector<1x32xf32> to vector<32x32xf32>
    %22 = arith.addf %19, %21 : vector<32x32xf32>
    %c0_9 = arith.constant 0 : index
    %c0_10 = arith.constant 0 : index
    %23 = vector.load %arg4[%c0_9, %c0_10] : memref<32x32xf32, #tpu.memory_space<vmem>>, vector<32x32xf32>
    tpu.vector_store %arg4[%c0_9, %c0_10], %22 {strides = array<i32>} : memref<32x32xf32, #tpu.memory_space<vmem>>, vector<32x32xf32>,
    return
  }
  func.func @transform_0(%arg0: i32) -> (i32, i32) {
    %c0_i32 = arith.constant 0 : i32
    %c0_i32_0 = arith.constant 0 : i32
    return %arg0, %c0_i32 : i32, i32
  }
  func.func @transform_1(%arg0: i32) -> (i32, i32) {
    %c0_i32 = arith.constant 0 : i32
    %c0_i32_0 = arith.constant 0 : i32
    %c0_i32_1 = arith.constant 0 : i32
    return %c0_i32, %c0_i32_0 : i32, i32
  }
  func.func @transform_2(%arg0: i32) -> (i32, i32) {
    %c0_i32 = arith.constant 0 : i32
    %c0_i32_0 = arith.constant 0 : i32
    %c0_i32_1 = arith.constant 0 : i32
    return %c0_i32, %c0_i32_0 : i32, i32
  }
  func.func @transform_3(%arg0: i32) -> (i32, i32) {
    %c0_i32 = arith.constant 0 : i32
    %c0_i32_0 = arith.constant 0 : i32
    return %arg0, %c0_i32 : i32, i32
  }
}

module attributes {stable_mosaic.version = 11 : i64} {
  func.func @_mm_bias_kernel(%arg0: i32, %arg1: i32, %arg2: i32, %arg3: memref<32x32xbf16, #tpu.memory_space<vmem>>, %arg4: memref<32x256xbf16, #tpu.memory_space<vmem>>, %arg5: memref<1x256xf32, #tpu.memory_space<vmem>>, %arg6: memref<32x256xf32, #tpu.memory_space<vmem>>, %arg7: memref<32x256xf32, #tpu.memory_space<vmem>>) attributes {dimension_semantics = [#tpu.dimension_semantics<parallel>, #tpu.dimension_semantics<parallel>, #tpu.dimension_semantics<arbitrary>], iteration_bounds = array<i64: 1, 6, 1>, scalar_prefetch = 0 : i64, scratch_operands = 1 : i64, tpu.core_type = #tpu.core_type<tc>, window_params = [{transform_indices = @transform_0, window_bounds = array<i64: 32, 32>}, {transform_indices = @transform_1, window_bounds = array<i64: 32, 256>}, {transform_indices = @transform_2, window_bounds = array<i64: 1, 256>}, {transform_indices = @transform_3, window_bounds = array<i64: 32, 256>}]} {
    %c0_i32 = arith.constant 0 : i32
    %0 = arith.cmpi eq, %arg2, %c0_i32 : i32
    %1 = arith.extui %0 : i1 to i32
    %c0_i32_0 = arith.constant 0 : i32
    %2 = arith.cmpi ne, %1, %c0_i32_0 : i32
    scf.if %2 {
      %cst_10 = arith.constant 0.000000e+00 : f32
      %12 = vector.broadcast %cst_10 : f32 to vector<32x256xf32>
      %c0_11 = arith.constant 0 : index
      %c0_12 = arith.constant 0 : index
      %13 = vector.load %arg7[%c0_11, %c0_12] : memref<32x256xf32, #tpu.memory_space<vmem>>, vector<32x256xf32>
      tpu.vector_store %arg7[%c0_11, %c0_12], %12 {strides = array<i32>} : memref<32x256xf32, #tpu.memory_space<vmem>>, vector<32x256xf32>,
    } else {
    }
    %c0 = arith.constant 0 : index
    %c0_1 = arith.constant 0 : index
    %3 = vector.load %arg7[%c0, %c0_1] : memref<32x256xf32, #tpu.memory_space<vmem>>, vector<32x256xf32>
    %c0_2 = arith.constant 0 : index
    %c0_3 = arith.constant 0 : index
    %4 = vector.load %arg3[%c0_2, %c0_3] : memref<32x32xbf16, #tpu.memory_space<vmem>>, vector<32x32xbf16>
    %c0_4 = arith.constant 0 : index
    %c0_5 = arith.constant 0 : index
    %5 = vector.load %arg4[%c0_4, %c0_5] : memref<32x256xbf16, #tpu.memory_space<vmem>>, vector<32x256xbf16>
    %cst = arith.constant dense<0.000000e+00> : vector<32x256xf32>
    %6 = tpu.matmul %4, %5, %cst {dimension_numbers = #tpu.dot_dimension_numbers<[1], [0], [0], [1], [0, 0, 1, 1], [], []>} : vector<32x32xbf16>, vector<32x256xbf16>, vector<32x256xf32> -> vector<32x256xf32>
    %7 = arith.addf %3, %6 : vector<32x256xf32>
    %c0_6 = arith.constant 0 : index
    %c0_7 = arith.constant 0 : index
    %8 = vector.load %arg7[%c0_6, %c0_7] : memref<32x256xf32, #tpu.memory_space<vmem>>, vector<32x256xf32>
    tpu.vector_store %arg7[%c0_6, %c0_7], %7 {strides = array<i32>} : memref<32x256xf32, #tpu.memory_space<vmem>>, vector<32x256xf32>,
    %c0_i32_8 = arith.constant 0 : i32
    %9 = arith.cmpi eq, %arg2, %c0_i32_8 : i32
    %10 = arith.extui %9 : i1 to i32
    %c0_i32_9 = arith.constant 0 : i32
    %11 = arith.cmpi ne, %10, %c0_i32_9 : i32
    scf.if %11 {
      %c0_10 = arith.constant 0 : index
      %c0_11 = arith.constant 0 : index
      %12 = vector.load %arg7[%c0_10, %c0_11] : memref<32x256xf32, #tpu.memory_space<vmem>>, vector<32x256xf32>
      %c0_12 = arith.constant 0 : index
      %c0_13 = arith.constant 0 : index
      %13 = vector.load %arg5[%c0_12, %c0_13] : memref<1x256xf32, #tpu.memory_space<vmem>>, vector<1x256xf32>
      %14 = vector.broadcast %13 : vector<1x256xf32> to vector<32x256xf32>
      %15 = arith.addf %12, %14 : vector<32x256xf32>
      %c0_14 = arith.constant 0 : index
      %c0_15 = arith.constant 0 : index
      %16 = vector.load %arg6[%c0_14, %c0_15] : memref<32x256xf32, #tpu.memory_space<vmem>>, vector<32x256xf32>
      tpu.vector_store %arg6[%c0_14, %c0_15], %15 {strides = array<i32>} : memref<32x256xf32, #tpu.memory_space<vmem>>, vector<32x256xf32>,
    } else {
    }
    return
  }
  func.func @transform_0(%arg0: i32, %arg1: i32, %arg2: i32) -> (i32, i32) {
    %c0_i32 = arith.constant 0 : i32
    return %arg0, %arg2 : i32, i32
  }
  func.func @transform_1(%arg0: i32, %arg1: i32, %arg2: i32) -> (i32, i32) {
    %c0_i32 = arith.constant 0 : i32
    return %arg2, %arg1 : i32, i32
  }
  func.func @transform_2(%arg0: i32, %arg1: i32, %arg2: i32) -> (i32, i32) {
    %c0_i32 = arith.constant 0 : i32
    %c0_i32_0 = arith.constant 0 : i32
    return %c0_i32, %arg1 : i32, i32
  }
  func.func @transform_3(%arg0: i32, %arg1: i32, %arg2: i32) -> (i32, i32) {
    %c0_i32 = arith.constant 0 : i32
    return %arg0, %arg1 : i32, i32
  }
}

module attributes {stable_mosaic.version = 11 : i64} {
  func.func @_attention_kernel(%arg0: i32, %arg1: memref<1x8x16x64xf32, #tpu.memory_space<vmem>>, %arg2: memref<1x8x16x64xf32, #tpu.memory_space<vmem>>, %arg3: memref<1x8x16x64xf32, #tpu.memory_space<vmem>>, %arg4: memref<1x8x16x64xf32, #tpu.memory_space<vmem>>) attributes {dimension_semantics = [#tpu.dimension_semantics<parallel>], iteration_bounds = array<i64: 2>, scalar_prefetch = 0 : i64, scratch_operands = 0 : i64, tpu.core_type = #tpu.core_type<tc>, window_params = [{transform_indices = @transform_0, window_bounds = array<i64: 1, 8, 16, 64>}, {transform_indices = @transform_1, window_bounds = array<i64: 1, 8, 16, 64>}, {transform_indices = @transform_2, window_bounds = array<i64: 1, 8, 16, 64>}, {transform_indices = @transform_3, window_bounds = array<i64: 1, 8, 16, 64>}]} {
    %c0 = arith.constant 0 : index
    %c0_0 = arith.constant 0 : index
    %c0_1 = arith.constant 0 : index
    %c0_2 = arith.constant 0 : index
    %0 = vector.load %arg1[%c0, %c0_0, %c0_1, %c0_2] : memref<1x8x16x64xf32, #tpu.memory_space<vmem>>, vector<1x8x16x64xf32>
    %1 = vector.shape_cast %0 : vector<1x8x16x64xf32> to vector<8x16x64xf32>
    %c0_3 = arith.constant 0 : index
    %c0_4 = arith.constant 0 : index
    %c0_5 = arith.constant 0 : index
    %c0_6 = arith.constant 0 : index
    %2 = vector.load %arg2[%c0_3, %c0_4, %c0_5, %c0_6] : memref<1x8x16x64xf32, #tpu.memory_space<vmem>>, vector<1x8x16x64xf32>
    %3 = vector.shape_cast %2 : vector<1x8x16x64xf32> to vector<8x16x64xf32>
    %c0_7 = arith.constant 0 : index
    %c0_8 = arith.constant 0 : index
    %c0_9 = arith.constant 0 : index
    %c0_10 = arith.constant 0 : index
    %4 = vector.load %arg3[%c0_7, %c0_8, %c0_9, %c0_10] : memref<1x8x16x64xf32, #tpu.memory_space<vmem>>, vector<1x8x16x64xf32>
    %5 = vector.shape_cast %4 : vector<1x8x16x64xf32> to vector<8x16x64xf32>
    "tpu.trace_start"() <{level = 10 : i32, message = "hqd,hkd->hqk"}> : () -> ()
    %cst = arith.constant dense<0.000000e+00> : vector<8x16x16xf32>
    %6 = tpu.matmul %1, %3, %cst {dimension_numbers = #tpu.dot_dimension_numbers<[2], [2], [1], [1], [0, 0, 0, 1, 1, 1], [0], [0]>} : vector<8x16x64xf32>, vector<8x16x64xf32>, vector<8x16x16xf32> -> vector<8x16x16xf32>
    "tpu.trace_stop"() : () -> ()
    %cst_11 = arith.constant 1.250000e-01 : f32
    %7 = vector.broadcast %cst_11 : f32 to vector<8x16x16xf32>
    %8 = arith.mulf %6, %7 : vector<8x16x16xf32>
    %cst_12 = arith.constant dense<0xFF800000> : vector<8x16xf32>
    %9 = vector.multi_reduction <maximumf>, %8, %cst_12 [2] : vector<8x16x16xf32> to vector<8x16xf32>
    %10 = vector.shape_cast %9 : vector<8x16xf32> to vector<8x16x1xf32>
    %11 = vector.broadcast %10 : vector<8x16x1xf32> to vector<8x16x16xf32>
    %12 = arith.subf %8, %11 : vector<8x16x16xf32>
    %13 = math.exp %12 : vector<8x16x16xf32>
    %cst_13 = arith.constant dense<0.000000e+00> : vector<8x16xf32>
    %14 = vector.multi_reduction <add>, %13, %cst_13 [2] : vector<8x16x16xf32> to vector<8x16xf32>
    %15 = vector.shape_cast %14 : vector<8x16xf32> to vector<8x16x1xf32>
    %16 = tpu.reciprocal %15 {approx = true} : vector<8x16x1xf32> -> vector<8x16x1xf32>
    %17 = vector.broadcast %16 : vector<8x16x1xf32> to vector<8x16x16xf32>
    %18 = arith.mulf %13, %17 : vector<8x16x16xf32>
    "tpu.trace_start"() <{level = 10 : i32, message = "hqk,hkd->hqd"}> : () -> ()
    %cst_14 = arith.constant dense<0.000000e+00> : vector<8x16x64xf32>
    %19 = tpu.matmul %18, %5, %cst_14 {dimension_numbers = #tpu.dot_dimension_numbers<[2], [1], [1], [2], [0, 0, 0, 1, 1, 2], [0], [0]>} : vector<8x16x16xf32>, vector<8x16x64xf32>, vector<8x16x64xf32> -> vector<8x16x64xf32>
    "tpu.trace_stop"() : () -> ()
    %c0_15 = arith.constant 0 : index
    %c0_16 = arith.constant 0 : index
    %c0_17 = arith.constant 0 : index
    %c0_18 = arith.constant 0 : index
    %20 = vector.load %arg4[%c0_15, %c0_16, %c0_17, %c0_18] : memref<1x8x16x64xf32, #tpu.memory_space<vmem>>, vector<1x8x16x64xf32>
    %21 = vector.shape_cast %20 : vector<1x8x16x64xf32> to vector<8x16x64xf32>
    %22 = vector.shape_cast %19 : vector<8x16x64xf32> to vector<1x8x16x64xf32>
    tpu.vector_store %arg4[%c0_15, %c0_16, %c0_17, %c0_18], %22 {strides = array<i32>} : memref<1x8x16x64xf32, #tpu.memory_space<vmem>>, vector<1x8x16x64xf32>,
    return
  }
  func.func @transform_0(%arg0: i32) -> (i32, i32, i32, i32) {
    %c0_i32 = arith.constant 0 : i32
    %c0_i32_0 = arith.constant 0 : i32
    %c0_i32_1 = arith.constant 0 : i32
    %c0_i32_2 = arith.constant 0 : i32
    return %arg0, %c0_i32, %c0_i32_0, %c0_i32_1 : i32, i32, i32, i32
  }
  func.func @transform_1(%arg0: i32) -> (i32, i32, i32, i32) {
    %c0_i32 = arith.constant 0 : i32
    %c0_i32_0 = arith.constant 0 : i32
    %c0_i32_1 = arith.constant 0 : i32
    %c0_i32_2 = arith.constant 0 : i32
    return %arg0, %c0_i32, %c0_i32_0, %c0_i32_1 : i32, i32, i32, i32
  }
  func.func @transform_2(%arg0: i32) -> (i32, i32, i32, i32) {
    %c0_i32 = arith.constant 0 : i32
    %c0_i32_0 = arith.constant 0 : i32
    %c0_i32_1 = arith.constant 0 : i32
    %c0_i32_2 = arith.constant 0 : i32
    return %arg0, %c0_i32, %c0_i32_0, %c0_i32_1 : i32, i32, i32, i32
  }
  func.func @transform_3(%arg0: i32) -> (i32, i32, i32, i32) {
    %c0_i32 = arith.constant 0 : i32
    %c0_i32_0 = arith.constant 0 : i32
    %c0_i32_1 = arith.constant 0 : i32
    %c0_i32_2 = arith.constant 0 : i32
    return %arg0, %c0_i32, %c0_i32_0, %c0_i32_1 : i32, i32, i32, i32
  }
}

module attributes {stable_mosaic.version = 11 : i64} {
  func.func @_mm_bias_res_kernel(%arg0: i32, %arg1: i32, %arg2: i32, %arg3: memref<32x512xbf16, #tpu.memory_space<vmem>>, %arg4: memref<512x32xbf16, #tpu.memory_space<vmem>>, %arg5: memref<1x32xf32, #tpu.memory_space<vmem>>, %arg6: memref<32x32xf32, #tpu.memory_space<vmem>>, %arg7: memref<32x32xf32, #tpu.memory_space<vmem>>, %arg8: memref<32x32xf32, #tpu.memory_space<vmem>>) attributes {dimension_semantics = [#tpu.dimension_semantics<parallel>, #tpu.dimension_semantics<parallel>, #tpu.dimension_semantics<arbitrary>], iteration_bounds = array<i64: 1, 1, 1>, scalar_prefetch = 0 : i64, scratch_operands = 1 : i64, tpu.core_type = #tpu.core_type<tc>, window_params = [{transform_indices = @transform_0, window_bounds = array<i64: 32, 512>}, {transform_indices = @transform_1, window_bounds = array<i64: 512, 32>}, {transform_indices = @transform_2, window_bounds = array<i64: 1, 32>}, {transform_indices = @transform_3, window_bounds = array<i64: 32, 32>}, {transform_indices = @transform_4, window_bounds = array<i64: 32, 32>}]} {
    %c0_i32 = arith.constant 0 : i32
    %0 = arith.cmpi eq, %arg2, %c0_i32 : i32
    %1 = arith.extui %0 : i1 to i32
    %c0_i32_0 = arith.constant 0 : i32
    %2 = arith.cmpi ne, %1, %c0_i32_0 : i32
    scf.if %2 {
      %cst_10 = arith.constant 0.000000e+00 : f32
      %12 = vector.broadcast %cst_10 : f32 to vector<32x32xf32>
      %c0_11 = arith.constant 0 : index
      %c0_12 = arith.constant 0 : index
      %13 = vector.load %arg8[%c0_11, %c0_12] : memref<32x32xf32, #tpu.memory_space<vmem>>, vector<32x32xf32>
      tpu.vector_store %arg8[%c0_11, %c0_12], %12 {strides = array<i32>} : memref<32x32xf32, #tpu.memory_space<vmem>>, vector<32x32xf32>,
    } else {
    }
    %c0 = arith.constant 0 : index
    %c0_1 = arith.constant 0 : index
    %3 = vector.load %arg8[%c0, %c0_1] : memref<32x32xf32, #tpu.memory_space<vmem>>, vector<32x32xf32>
    %c0_2 = arith.constant 0 : index
    %c0_3 = arith.constant 0 : index
    %4 = vector.load %arg3[%c0_2, %c0_3] : memref<32x512xbf16, #tpu.memory_space<vmem>>, vector<32x512xbf16>
    %c0_4 = arith.constant 0 : index
    %c0_5 = arith.constant 0 : index
    %5 = vector.load %arg4[%c0_4, %c0_5] : memref<512x32xbf16, #tpu.memory_space<vmem>>, vector<512x32xbf16>
    %cst = arith.constant dense<0.000000e+00> : vector<32x32xf32>
    %6 = tpu.matmul %4, %5, %cst {dimension_numbers = #tpu.dot_dimension_numbers<[1], [0], [0], [1], [0, 0, 1, 1], [], []>} : vector<32x512xbf16>, vector<512x32xbf16>, vector<32x32xf32> -> vector<32x32xf32>
    %7 = arith.addf %3, %6 : vector<32x32xf32>
    %c0_6 = arith.constant 0 : index
    %c0_7 = arith.constant 0 : index
    %8 = vector.load %arg8[%c0_6, %c0_7] : memref<32x32xf32, #tpu.memory_space<vmem>>, vector<32x32xf32>
    tpu.vector_store %arg8[%c0_6, %c0_7], %7 {strides = array<i32>} : memref<32x32xf32, #tpu.memory_space<vmem>>, vector<32x32xf32>,
    %c0_i32_8 = arith.constant 0 : i32
    %9 = arith.cmpi eq, %arg2, %c0_i32_8 : i32
    %10 = arith.extui %9 : i1 to i32
    %c0_i32_9 = arith.constant 0 : i32
    %11 = arith.cmpi ne, %10, %c0_i32_9 : i32
    scf.if %11 {
      %c0_10 = arith.constant 0 : index
      %c0_11 = arith.constant 0 : index
      %12 = vector.load %arg8[%c0_10, %c0_11] : memref<32x32xf32, #tpu.memory_space<vmem>>, vector<32x32xf32>
      %c0_12 = arith.constant 0 : index
      %c0_13 = arith.constant 0 : index
      %13 = vector.load %arg5[%c0_12, %c0_13] : memref<1x32xf32, #tpu.memory_space<vmem>>, vector<1x32xf32>
      %14 = vector.broadcast %13 : vector<1x32xf32> to vector<32x32xf32>
      %15 = arith.addf %12, %14 : vector<32x32xf32>
      %c0_14 = arith.constant 0 : index
      %c0_15 = arith.constant 0 : index
      %16 = vector.load %arg6[%c0_14, %c0_15] : memref<32x32xf32, #tpu.memory_space<vmem>>, vector<32x32xf32>
      %17 = arith.addf %15, %16 : vector<32x32xf32>
      %c0_16 = arith.constant 0 : index
      %c0_17 = arith.constant 0 : index
      %18 = vector.load %arg7[%c0_16, %c0_17] : memref<32x32xf32, #tpu.memory_space<vmem>>, vector<32x32xf32>
      tpu.vector_store %arg7[%c0_16, %c0_17], %17 {strides = array<i32>} : memref<32x32xf32, #tpu.memory_space<vmem>>, vector<32x32xf32>,
    } else {
    }
    return
  }
  func.func @transform_0(%arg0: i32, %arg1: i32, %arg2: i32) -> (i32, i32) {
    %c0_i32 = arith.constant 0 : i32
    return %arg0, %arg2 : i32, i32
  }
  func.func @transform_1(%arg0: i32, %arg1: i32, %arg2: i32) -> (i32, i32) {
    %c0_i32 = arith.constant 0 : i32
    return %arg2, %arg1 : i32, i32
  }
  func.func @transform_2(%arg0: i32, %arg1: i32, %arg2: i32) -> (i32, i32) {
    %c0_i32 = arith.constant 0 : i32
    %c0_i32_0 = arith.constant 0 : i32
    return %c0_i32, %arg1 : i32, i32
  }
  func.func @transform_3(%arg0: i32, %arg1: i32, %arg2: i32) -> (i32, i32) {
    %c0_i32 = arith.constant 0 : i32
    return %arg0, %arg1 : i32, i32
  }
  func.func @transform_4(%arg0: i32, %arg1: i32, %arg2: i32) -> (i32, i32) {
    %c0_i32 = arith.constant 0 : i32
    return %arg0, %arg1 : i32, i32
  }
}

module attributes {stable_mosaic.version = 11 : i64} {
  func.func @_mm_bias_kernel(%arg0: i32, %arg1: i32, %arg2: i32, %arg3: memref<32x288xbf16, #tpu.memory_space<vmem>>, %arg4: memref<288x4xbf16, #tpu.memory_space<vmem>>, %arg5: memref<1x4xf32, #tpu.memory_space<vmem>>, %arg6: memref<32x4xf32, #tpu.memory_space<vmem>>, %arg7: memref<32x4xf32, #tpu.memory_space<vmem>>) attributes {dimension_semantics = [#tpu.dimension_semantics<parallel>, #tpu.dimension_semantics<parallel>, #tpu.dimension_semantics<arbitrary>], iteration_bounds = array<i64: 1, 1, 1>, scalar_prefetch = 0 : i64, scratch_operands = 1 : i64, tpu.core_type = #tpu.core_type<tc>, window_params = [{transform_indices = @transform_0, window_bounds = array<i64: 32, 288>}, {transform_indices = @transform_1, window_bounds = array<i64: 288, 4>}, {transform_indices = @transform_2, window_bounds = array<i64: 1, 4>}, {transform_indices = @transform_3, window_bounds = array<i64: 32, 4>}]} {
    %c0_i32 = arith.constant 0 : i32
    %0 = arith.cmpi eq, %arg2, %c0_i32 : i32
    %1 = arith.extui %0 : i1 to i32
    %c0_i32_0 = arith.constant 0 : i32
    %2 = arith.cmpi ne, %1, %c0_i32_0 : i32
    scf.if %2 {
      %cst_10 = arith.constant 0.000000e+00 : f32
      %12 = vector.broadcast %cst_10 : f32 to vector<32x4xf32>
      %c0_11 = arith.constant 0 : index
      %c0_12 = arith.constant 0 : index
      %13 = vector.load %arg7[%c0_11, %c0_12] : memref<32x4xf32, #tpu.memory_space<vmem>>, vector<32x4xf32>
      tpu.vector_store %arg7[%c0_11, %c0_12], %12 {strides = array<i32>} : memref<32x4xf32, #tpu.memory_space<vmem>>, vector<32x4xf32>,
    } else {
    }
    %c0 = arith.constant 0 : index
    %c0_1 = arith.constant 0 : index
    %3 = vector.load %arg7[%c0, %c0_1] : memref<32x4xf32, #tpu.memory_space<vmem>>, vector<32x4xf32>
    %c0_2 = arith.constant 0 : index
    %c0_3 = arith.constant 0 : index
    %4 = vector.load %arg3[%c0_2, %c0_3] : memref<32x288xbf16, #tpu.memory_space<vmem>>, vector<32x288xbf16>
    %c0_4 = arith.constant 0 : index
    %c0_5 = arith.constant 0 : index
    %5 = vector.load %arg4[%c0_4, %c0_5] : memref<288x4xbf16, #tpu.memory_space<vmem>>, vector<288x4xbf16>
    %cst = arith.constant dense<0.000000e+00> : vector<32x4xf32>
    %6 = tpu.matmul %4, %5, %cst {dimension_numbers = #tpu.dot_dimension_numbers<[1], [0], [0], [1], [0, 0, 1, 1], [], []>} : vector<32x288xbf16>, vector<288x4xbf16>, vector<32x4xf32> -> vector<32x4xf32>
    %7 = arith.addf %3, %6 : vector<32x4xf32>
    %c0_6 = arith.constant 0 : index
    %c0_7 = arith.constant 0 : index
    %8 = vector.load %arg7[%c0_6, %c0_7] : memref<32x4xf32, #tpu.memory_space<vmem>>, vector<32x4xf32>
    tpu.vector_store %arg7[%c0_6, %c0_7], %7 {strides = array<i32>} : memref<32x4xf32, #tpu.memory_space<vmem>>, vector<32x4xf32>,
    %c0_i32_8 = arith.constant 0 : i32
    %9 = arith.cmpi eq, %arg2, %c0_i32_8 : i32
    %10 = arith.extui %9 : i1 to i32
    %c0_i32_9 = arith.constant 0 : i32
    %11 = arith.cmpi ne, %10, %c0_i32_9 : i32
    scf.if %11 {
      %c0_10 = arith.constant 0 : index
      %c0_11 = arith.constant 0 : index
      %12 = vector.load %arg7[%c0_10, %c0_11] : memref<32x4xf32, #tpu.memory_space<vmem>>, vector<32x4xf32>
      %c0_12 = arith.constant 0 : index
      %c0_13 = arith.constant 0 : index
      %13 = vector.load %arg5[%c0_12, %c0_13] : memref<1x4xf32, #tpu.memory_space<vmem>>, vector<1x4xf32>
      %14 = vector.broadcast %13 : vector<1x4xf32> to vector<32x4xf32>
      %15 = arith.addf %12, %14 : vector<32x4xf32>
      %c0_14 = arith.constant 0 : index
      %c0_15 = arith.constant 0 : index
      %16 = vector.load %arg6[%c0_14, %c0_15] : memref<32x4xf32, #tpu.memory_space<vmem>>, vector<32x4xf32>
      tpu.vector_store %arg6[%c0_14, %c0_15], %15 {strides = array<i32>} : memref<32x4xf32, #tpu.memory_space<vmem>>, vector<32x4xf32>,
    } else {
    }
    return
  }
  func.func @transform_0(%arg0: i32, %arg1: i32, %arg2: i32) -> (i32, i32) {
    %c0_i32 = arith.constant 0 : i32
    return %arg0, %arg2 : i32, i32
  }
  func.func @transform_1(%arg0: i32, %arg1: i32, %arg2: i32) -> (i32, i32) {
    %c0_i32 = arith.constant 0 : i32
    return %arg2, %arg1 : i32, i32
  }
  func.func @transform_2(%arg0: i32, %arg1: i32, %arg2: i32) -> (i32, i32) {
    %c0_i32 = arith.constant 0 : i32
    %c0_i32_0 = arith.constant 0 : i32
    return %c0_i32, %arg1 : i32, i32
  }
  func.func @transform_3(%arg0: i32, %arg1: i32, %arg2: i32) -> (i32, i32) {
    %c0_i32 = arith.constant 0 : i32
    return %arg0, %arg1 : i32, i32
  }
}

module attributes {stable_mosaic.version = 11 : i64} {
  func.func @_mm_bias_kernel(%arg0: i32, %arg1: i32, %arg2: i32, %arg3: memref<32x4xbf16, #tpu.memory_space<vmem>>, %arg4: memref<4x4xbf16, #tpu.memory_space<vmem>>, %arg5: memref<1x4xf32, #tpu.memory_space<vmem>>, %arg6: memref<32x4xf32, #tpu.memory_space<vmem>>, %arg7: memref<32x4xf32, #tpu.memory_space<vmem>>) attributes {dimension_semantics = [#tpu.dimension_semantics<parallel>, #tpu.dimension_semantics<parallel>, #tpu.dimension_semantics<arbitrary>], iteration_bounds = array<i64: 1, 1, 1>, scalar_prefetch = 0 : i64, scratch_operands = 1 : i64, tpu.core_type = #tpu.core_type<tc>, window_params = [{transform_indices = @transform_0, window_bounds = array<i64: 32, 4>}, {transform_indices = @transform_1, window_bounds = array<i64: 4, 4>}, {transform_indices = @transform_2, window_bounds = array<i64: 1, 4>}, {transform_indices = @transform_3, window_bounds = array<i64: 32, 4>}]} {
    %c0_i32 = arith.constant 0 : i32
    %0 = arith.cmpi eq, %arg2, %c0_i32 : i32
    %1 = arith.extui %0 : i1 to i32
    %c0_i32_0 = arith.constant 0 : i32
    %2 = arith.cmpi ne, %1, %c0_i32_0 : i32
    scf.if %2 {
      %cst_10 = arith.constant 0.000000e+00 : f32
      %12 = vector.broadcast %cst_10 : f32 to vector<32x4xf32>
      %c0_11 = arith.constant 0 : index
      %c0_12 = arith.constant 0 : index
      %13 = vector.load %arg7[%c0_11, %c0_12] : memref<32x4xf32, #tpu.memory_space<vmem>>, vector<32x4xf32>
      tpu.vector_store %arg7[%c0_11, %c0_12], %12 {strides = array<i32>} : memref<32x4xf32, #tpu.memory_space<vmem>>, vector<32x4xf32>,
    } else {
    }
    %c0 = arith.constant 0 : index
    %c0_1 = arith.constant 0 : index
    %3 = vector.load %arg7[%c0, %c0_1] : memref<32x4xf32, #tpu.memory_space<vmem>>, vector<32x4xf32>
    %c0_2 = arith.constant 0 : index
    %c0_3 = arith.constant 0 : index
    %4 = vector.load %arg3[%c0_2, %c0_3] : memref<32x4xbf16, #tpu.memory_space<vmem>>, vector<32x4xbf16>
    %c0_4 = arith.constant 0 : index
    %c0_5 = arith.constant 0 : index
    %5 = vector.load %arg4[%c0_4, %c0_5] : memref<4x4xbf16, #tpu.memory_space<vmem>>, vector<4x4xbf16>
    %cst = arith.constant dense<0.000000e+00> : vector<32x4xf32>
    %6 = tpu.matmul %4, %5, %cst {dimension_numbers = #tpu.dot_dimension_numbers<[1], [0], [0], [1], [0, 0, 1, 1], [], []>} : vector<32x4xbf16>, vector<4x4xbf16>, vector<32x4xf32> -> vector<32x4xf32>
    %7 = arith.addf %3, %6 : vector<32x4xf32>
    %c0_6 = arith.constant 0 : index
    %c0_7 = arith.constant 0 : index
    %8 = vector.load %arg7[%c0_6, %c0_7] : memref<32x4xf32, #tpu.memory_space<vmem>>, vector<32x4xf32>
    tpu.vector_store %arg7[%c0_6, %c0_7], %7 {strides = array<i32>} : memref<32x4xf32, #tpu.memory_space<vmem>>, vector<32x4xf32>,
    %c0_i32_8 = arith.constant 0 : i32
    %9 = arith.cmpi eq, %arg2, %c0_i32_8 : i32
    %10 = arith.extui %9 : i1 to i32
    %c0_i32_9 = arith.constant 0 : i32
    %11 = arith.cmpi ne, %10, %c0_i32_9 : i32
    scf.if %11 {
      %c0_10 = arith.constant 0 : index
      %c0_11 = arith.constant 0 : index
      %12 = vector.load %arg7[%c0_10, %c0_11] : memref<32x4xf32, #tpu.memory_space<vmem>>, vector<32x4xf32>
      %c0_12 = arith.constant 0 : index
      %c0_13 = arith.constant 0 : index
      %13 = vector.load %arg5[%c0_12, %c0_13] : memref<1x4xf32, #tpu.memory_space<vmem>>, vector<1x4xf32>
      %14 = vector.broadcast %13 : vector<1x4xf32> to vector<32x4xf32>
      %15 = arith.addf %12, %14 : vector<32x4xf32>
      %c0_14 = arith.constant 0 : index
      %c0_15 = arith.constant 0 : index
      %16 = vector.load %arg6[%c0_14, %c0_15] : memref<32x4xf32, #tpu.memory_space<vmem>>, vector<32x4xf32>
      tpu.vector_store %arg6[%c0_14, %c0_15], %15 {strides = array<i32>} : memref<32x4xf32, #tpu.memory_space<vmem>>, vector<32x4xf32>,
    } else {
    }
    return
  }
  func.func @transform_0(%arg0: i32, %arg1: i32, %arg2: i32) -> (i32, i32) {
    %c0_i32 = arith.constant 0 : i32
    return %arg0, %arg2 : i32, i32
  }
  func.func @transform_1(%arg0: i32, %arg1: i32, %arg2: i32) -> (i32, i32) {
    %c0_i32 = arith.constant 0 : i32
    return %arg2, %arg1 : i32, i32
  }
  func.func @transform_2(%arg0: i32, %arg1: i32, %arg2: i32) -> (i32, i32) {
    %c0_i32 = arith.constant 0 : i32
    %c0_i32_0 = arith.constant 0 : i32
    return %c0_i32, %arg1 : i32, i32
  }
  func.func @transform_3(%arg0: i32, %arg1: i32, %arg2: i32) -> (i32, i32) {
    %c0_i32 = arith.constant 0 : i32
    return %arg0, %arg1 : i32, i32
  }
}

module attributes {stable_mosaic.version = 11 : i64} {
  func.func @_vq_kernel(%arg0: i32, %arg1: memref<32x4xf32, #tpu.memory_space<vmem>>, %arg2: memref<4x64xf32, #tpu.memory_space<vmem>>, %arg3: memref<64x4xf32, #tpu.memory_space<vmem>>, %arg4: memref<1x64xf32, #tpu.memory_space<vmem>>, %arg5: memref<32x4xf32, #tpu.memory_space<vmem>>) attributes {dimension_semantics = [#tpu.dimension_semantics<parallel>], iteration_bounds = array<i64: 1>, scalar_prefetch = 0 : i64, scratch_operands = 0 : i64, tpu.core_type = #tpu.core_type<tc>, window_params = [{transform_indices = @transform_0, window_bounds = array<i64: 32, 4>}, {pipeline_mode = #tpu.pipeline_mode<synchronous>, transform_indices = @transform_1, window_bounds = array<i64: 4, 64>}, {pipeline_mode = #tpu.pipeline_mode<synchronous>, transform_indices = @transform_2, window_bounds = array<i64: 64, 4>}, {pipeline_mode = #tpu.pipeline_mode<synchronous>, transform_indices = @transform_3, window_bounds = array<i64: 1, 64>}, {transform_indices = @transform_4, window_bounds = array<i64: 32, 4>}]} {
    %c0 = arith.constant 0 : index
    %c0_0 = arith.constant 0 : index
    %0 = vector.load %arg1[%c0, %c0_0] : memref<32x4xf32, #tpu.memory_space<vmem>>, vector<32x4xf32>
    %c0_1 = arith.constant 0 : index
    %c0_2 = arith.constant 0 : index
    %1 = vector.load %arg2[%c0_1, %c0_2] : memref<4x64xf32, #tpu.memory_space<vmem>>, vector<4x64xf32>
    %c0_3 = arith.constant 0 : index
    %c0_4 = arith.constant 0 : index
    %2 = vector.load %arg3[%c0_3, %c0_4] : memref<64x4xf32, #tpu.memory_space<vmem>>, vector<64x4xf32>
    %cst = arith.constant dense<0.000000e+00> : vector<32x64xf32>
    %3 = tpu.matmul %0, %1, %cst {dimension_numbers = #tpu.dot_dimension_numbers<[1], [0], [0], [1], [0, 0, 1, 1], [], []>} : vector<32x4xf32>, vector<4x64xf32>, vector<32x64xf32> -> vector<32x64xf32>
    %4 = arith.mulf %0, %0 : vector<32x4xf32>
    %cst_5 = arith.constant dense<0.000000e+00> : vector<32xf32>
    %5 = vector.multi_reduction <add>, %4, %cst_5 [1] : vector<32x4xf32> to vector<32xf32>
    %6 = vector.shape_cast %5 : vector<32xf32> to vector<32x1xf32>
    %cst_6 = arith.constant 2.000000e+00 : f32
    %7 = vector.broadcast %cst_6 : f32 to vector<32x64xf32>
    %8 = arith.mulf %7, %3 : vector<32x64xf32>
    %9 = vector.broadcast %6 : vector<32x1xf32> to vector<32x64xf32>
    %10 = arith.subf %9, %8 : vector<32x64xf32>
    %c0_7 = arith.constant 0 : index
    %c0_8 = arith.constant 0 : index
    %11 = vector.load %arg4[%c0_7, %c0_8] : memref<1x64xf32, #tpu.memory_space<vmem>>, vector<1x64xf32>
    %12 = vector.broadcast %11 : vector<1x64xf32> to vector<32x64xf32>
    %13 = arith.addf %10, %12 : vector<32x64xf32>
    %cst_9 = arith.constant dense<0x7F800000> : vector<32xf32>
    %14 = vector.multi_reduction <minimumf>, %13, %cst_9 [1] : vector<32x64xf32> to vector<32xf32>
    %15 = vector.shape_cast %14 : vector<32xf32> to vector<32x1xf32>
    %16 = tpu.iota {dimensions = array<i32: 1>} : vector<32x64xi32>
    %17 = vector.broadcast %15 : vector<32x1xf32> to vector<32x64xf32>
    %18 = arith.cmpf ole, %13, %17 : vector<32x64xf32>
    %c64_i32 = arith.constant 64 : i32
    %19 = vector.broadcast %c64_i32 : i32 to vector<32x64xi32>
    %20 = arith.select %18, %16, %19 : vector<32x64xi1>, vector<32x64xi32>
    %cst_10 = arith.constant dense<2147483647> : vector<32xi32>
    %21 = vector.multi_reduction <minsi>, %20, %cst_10 [1] : vector<32x64xi32> to vector<32xi32>
    %22 = vector.shape_cast %21 : vector<32xi32> to vector<32x1xi32>
    %23 = vector.broadcast %22 : vector<32x1xi32> to vector<32x64xi32>
    %24 = arith.cmpi eq, %16, %23 : vector<32x64xi32>
    %25 = arith.extui %24 : vector<32x64xi1> to vector<32x64xi32>
    %26 = arith.sitofp %25 : vector<32x64xi32> to vector<32x64xf32>
    %cst_11 = arith.constant dense<0.000000e+00> : vector<32x4xf32>
    %27 = tpu.matmul %26, %2, %cst_11 {dimension_numbers = #tpu.dot_dimension_numbers<[1], [0], [0], [1], [0, 0, 1, 1], [], []>} : vector<32x64xf32>, vector<64x4xf32>, vector<32x4xf32> -> vector<32x4xf32>
    %c0_12 = arith.constant 0 : index
    %c0_13 = arith.constant 0 : index
    %28 = vector.load %arg5[%c0_12, %c0_13] : memref<32x4xf32, #tpu.memory_space<vmem>>, vector<32x4xf32>
    tpu.vector_store %arg5[%c0_12, %c0_13], %27 {strides = array<i32>} : memref<32x4xf32, #tpu.memory_space<vmem>>, vector<32x4xf32>,
    return
  }
  func.func @transform_0(%arg0: i32) -> (i32, i32) {
    %c0_i32 = arith.constant 0 : i32
    %c0_i32_0 = arith.constant 0 : i32
    return %arg0, %c0_i32 : i32, i32
  }
  func.func @transform_1(%arg0: i32) -> (i32, i32) {
    %c0_i32 = arith.constant 0 : i32
    %c0_i32_0 = arith.constant 0 : i32
    %c0_i32_1 = arith.constant 0 : i32
    return %c0_i32, %c0_i32_0 : i32, i32
  }
  func.func @transform_2(%arg0: i32) -> (i32, i32) {
    %c0_i32 = arith.constant 0 : i32
    %c0_i32_0 = arith.constant 0 : i32
    %c0_i32_1 = arith.constant 0 : i32
    return %c0_i32, %c0_i32_0 : i32, i32
  }
  func.func @transform_3(%arg0: i32) -> (i32, i32) {
    %c0_i32 = arith.constant 0 : i32
    %c0_i32_0 = arith.constant 0 : i32
    %c0_i32_1 = arith.constant 0 : i32
    return %c0_i32, %c0_i32_0 : i32, i32
  }
  func.func @transform_4(%arg0: i32) -> (i32, i32) {
    %c0_i32 = arith.constant 0 : i32
    %c0_i32_0 = arith.constant 0 : i32
    return %arg0, %c0_i32 : i32, i32
  }
}

module attributes {stable_mosaic.version = 11 : i64} {
  func.func @_mm_bias_kernel(%arg0: i32, %arg1: i32, %arg2: i32, %arg3: memref<32x36xbf16, #tpu.memory_space<vmem>>, %arg4: memref<36x32xbf16, #tpu.memory_space<vmem>>, %arg5: memref<1x32xf32, #tpu.memory_space<vmem>>, %arg6: memref<32x32xf32, #tpu.memory_space<vmem>>, %arg7: memref<32x32xf32, #tpu.memory_space<vmem>>) attributes {dimension_semantics = [#tpu.dimension_semantics<parallel>, #tpu.dimension_semantics<parallel>, #tpu.dimension_semantics<arbitrary>], iteration_bounds = array<i64: 1, 1, 1>, scalar_prefetch = 0 : i64, scratch_operands = 1 : i64, tpu.core_type = #tpu.core_type<tc>, window_params = [{transform_indices = @transform_0, window_bounds = array<i64: 32, 36>}, {transform_indices = @transform_1, window_bounds = array<i64: 36, 32>}, {transform_indices = @transform_2, window_bounds = array<i64: 1, 32>}, {transform_indices = @transform_3, window_bounds = array<i64: 32, 32>}]} {
    %c0_i32 = arith.constant 0 : i32
    %0 = arith.cmpi eq, %arg2, %c0_i32 : i32
    %1 = arith.extui %0 : i1 to i32
    %c0_i32_0 = arith.constant 0 : i32
    %2 = arith.cmpi ne, %1, %c0_i32_0 : i32
    scf.if %2 {
      %cst_10 = arith.constant 0.000000e+00 : f32
      %12 = vector.broadcast %cst_10 : f32 to vector<32x32xf32>
      %c0_11 = arith.constant 0 : index
      %c0_12 = arith.constant 0 : index
      %13 = vector.load %arg7[%c0_11, %c0_12] : memref<32x32xf32, #tpu.memory_space<vmem>>, vector<32x32xf32>
      tpu.vector_store %arg7[%c0_11, %c0_12], %12 {strides = array<i32>} : memref<32x32xf32, #tpu.memory_space<vmem>>, vector<32x32xf32>,
    } else {
    }
    %c0 = arith.constant 0 : index
    %c0_1 = arith.constant 0 : index
    %3 = vector.load %arg7[%c0, %c0_1] : memref<32x32xf32, #tpu.memory_space<vmem>>, vector<32x32xf32>
    %c0_2 = arith.constant 0 : index
    %c0_3 = arith.constant 0 : index
    %4 = vector.load %arg3[%c0_2, %c0_3] : memref<32x36xbf16, #tpu.memory_space<vmem>>, vector<32x36xbf16>
    %c0_4 = arith.constant 0 : index
    %c0_5 = arith.constant 0 : index
    %5 = vector.load %arg4[%c0_4, %c0_5] : memref<36x32xbf16, #tpu.memory_space<vmem>>, vector<36x32xbf16>
    %cst = arith.constant dense<0.000000e+00> : vector<32x32xf32>
    %6 = tpu.matmul %4, %5, %cst {dimension_numbers = #tpu.dot_dimension_numbers<[1], [0], [0], [1], [0, 0, 1, 1], [], []>} : vector<32x36xbf16>, vector<36x32xbf16>, vector<32x32xf32> -> vector<32x32xf32>
    %7 = arith.addf %3, %6 : vector<32x32xf32>
    %c0_6 = arith.constant 0 : index
    %c0_7 = arith.constant 0 : index
    %8 = vector.load %arg7[%c0_6, %c0_7] : memref<32x32xf32, #tpu.memory_space<vmem>>, vector<32x32xf32>
    tpu.vector_store %arg7[%c0_6, %c0_7], %7 {strides = array<i32>} : memref<32x32xf32, #tpu.memory_space<vmem>>, vector<32x32xf32>,
    %c0_i32_8 = arith.constant 0 : i32
    %9 = arith.cmpi eq, %arg2, %c0_i32_8 : i32
    %10 = arith.extui %9 : i1 to i32
    %c0_i32_9 = arith.constant 0 : i32
    %11 = arith.cmpi ne, %10, %c0_i32_9 : i32
    scf.if %11 {
      %c0_10 = arith.constant 0 : index
      %c0_11 = arith.constant 0 : index
      %12 = vector.load %arg7[%c0_10, %c0_11] : memref<32x32xf32, #tpu.memory_space<vmem>>, vector<32x32xf32>
      %c0_12 = arith.constant 0 : index
      %c0_13 = arith.constant 0 : index
      %13 = vector.load %arg5[%c0_12, %c0_13] : memref<1x32xf32, #tpu.memory_space<vmem>>, vector<1x32xf32>
      %14 = vector.broadcast %13 : vector<1x32xf32> to vector<32x32xf32>
      %15 = arith.addf %12, %14 : vector<32x32xf32>
      %c0_14 = arith.constant 0 : index
      %c0_15 = arith.constant 0 : index
      %16 = vector.load %arg6[%c0_14, %c0_15] : memref<32x32xf32, #tpu.memory_space<vmem>>, vector<32x32xf32>
      tpu.vector_store %arg6[%c0_14, %c0_15], %15 {strides = array<i32>} : memref<32x32xf32, #tpu.memory_space<vmem>>, vector<32x32xf32>,
    } else {
    }
    return
  }
  func.func @transform_0(%arg0: i32, %arg1: i32, %arg2: i32) -> (i32, i32) {
    %c0_i32 = arith.constant 0 : i32
    return %arg0, %arg2 : i32, i32
  }
  func.func @transform_1(%arg0: i32, %arg1: i32, %arg2: i32) -> (i32, i32) {
    %c0_i32 = arith.constant 0 : i32
    return %arg2, %arg1 : i32, i32
  }
  func.func @transform_2(%arg0: i32, %arg1: i32, %arg2: i32) -> (i32, i32) {
    %c0_i32 = arith.constant 0 : i32
    %c0_i32_0 = arith.constant 0 : i32
    return %c0_i32, %arg1 : i32, i32
  }
  func.func @transform_3(%arg0: i32, %arg1: i32, %arg2: i32) -> (i32, i32) {
    %c0_i32 = arith.constant 0 : i32
    return %arg0, %arg1 : i32, i32
  }
}

module attributes {stable_mosaic.version = 11 : i64} {
  func.func @_mm_bias_kernel(%arg0: i32, %arg1: i32, %arg2: i32, %arg3: memref<256x288xbf16, #tpu.memory_space<vmem>>, %arg4: memref<288x3xbf16, #tpu.memory_space<vmem>>, %arg5: memref<1x3xf32, #tpu.memory_space<vmem>>, %arg6: memref<256x3xf32, #tpu.memory_space<vmem>>, %arg7: memref<256x3xf32, #tpu.memory_space<vmem>>) attributes {dimension_semantics = [#tpu.dimension_semantics<parallel>, #tpu.dimension_semantics<parallel>, #tpu.dimension_semantics<arbitrary>], iteration_bounds = array<i64: 2, 1, 1>, scalar_prefetch = 0 : i64, scratch_operands = 1 : i64, tpu.core_type = #tpu.core_type<tc>, window_params = [{transform_indices = @transform_0, window_bounds = array<i64: 256, 288>}, {transform_indices = @transform_1, window_bounds = array<i64: 288, 3>}, {transform_indices = @transform_2, window_bounds = array<i64: 1, 3>}, {transform_indices = @transform_3, window_bounds = array<i64: 256, 3>}]} {
    %c0_i32 = arith.constant 0 : i32
    %0 = arith.cmpi eq, %arg2, %c0_i32 : i32
    %1 = arith.extui %0 : i1 to i32
    %c0_i32_0 = arith.constant 0 : i32
    %2 = arith.cmpi ne, %1, %c0_i32_0 : i32
    scf.if %2 {
      %cst_10 = arith.constant 0.000000e+00 : f32
      %12 = vector.broadcast %cst_10 : f32 to vector<256x3xf32>
      %c0_11 = arith.constant 0 : index
      %c0_12 = arith.constant 0 : index
      %13 = vector.load %arg7[%c0_11, %c0_12] : memref<256x3xf32, #tpu.memory_space<vmem>>, vector<256x3xf32>
      tpu.vector_store %arg7[%c0_11, %c0_12], %12 {strides = array<i32>} : memref<256x3xf32, #tpu.memory_space<vmem>>, vector<256x3xf32>,
    } else {
    }
    %c0 = arith.constant 0 : index
    %c0_1 = arith.constant 0 : index
    %3 = vector.load %arg7[%c0, %c0_1] : memref<256x3xf32, #tpu.memory_space<vmem>>, vector<256x3xf32>
    %c0_2 = arith.constant 0 : index
    %c0_3 = arith.constant 0 : index
    %4 = vector.load %arg3[%c0_2, %c0_3] : memref<256x288xbf16, #tpu.memory_space<vmem>>, vector<256x288xbf16>
    %c0_4 = arith.constant 0 : index
    %c0_5 = arith.constant 0 : index
    %5 = vector.load %arg4[%c0_4, %c0_5] : memref<288x3xbf16, #tpu.memory_space<vmem>>, vector<288x3xbf16>
    %cst = arith.constant dense<0.000000e+00> : vector<256x3xf32>
    %6 = tpu.matmul %4, %5, %cst {dimension_numbers = #tpu.dot_dimension_numbers<[1], [0], [0], [1], [0, 0, 1, 1], [], []>} : vector<256x288xbf16>, vector<288x3xbf16>, vector<256x3xf32> -> vector<256x3xf32>
    %7 = arith.addf %3, %6 : vector<256x3xf32>
    %c0_6 = arith.constant 0 : index
    %c0_7 = arith.constant 0 : index
    %8 = vector.load %arg7[%c0_6, %c0_7] : memref<256x3xf32, #tpu.memory_space<vmem>>, vector<256x3xf32>
    tpu.vector_store %arg7[%c0_6, %c0_7], %7 {strides = array<i32>} : memref<256x3xf32, #tpu.memory_space<vmem>>, vector<256x3xf32>,
    %c0_i32_8 = arith.constant 0 : i32
    %9 = arith.cmpi eq, %arg2, %c0_i32_8 : i32
    %10 = arith.extui %9 : i1 to i32
    %c0_i32_9 = arith.constant 0 : i32
    %11 = arith.cmpi ne, %10, %c0_i32_9 : i32
    scf.if %11 {
      %c0_10 = arith.constant 0 : index
      %c0_11 = arith.constant 0 : index
      %12 = vector.load %arg7[%c0_10, %c0_11] : memref<256x3xf32, #tpu.memory_space<vmem>>, vector<256x3xf32>
      %c0_12 = arith.constant 0 : index
      %c0_13 = arith.constant 0 : index
      %13 = vector.load %arg5[%c0_12, %c0_13] : memref<1x3xf32, #tpu.memory_space<vmem>>, vector<1x3xf32>
      %14 = vector.broadcast %13 : vector<1x3xf32> to vector<256x3xf32>
      %15 = arith.addf %12, %14 : vector<256x3xf32>
      %c0_14 = arith.constant 0 : index
      %c0_15 = arith.constant 0 : index
      %16 = vector.load %arg6[%c0_14, %c0_15] : memref<256x3xf32, #tpu.memory_space<vmem>>, vector<256x3xf32>
      tpu.vector_store %arg6[%c0_14, %c0_15], %15 {strides = array<i32>} : memref<256x3xf32, #tpu.memory_space<vmem>>, vector<256x3xf32>,
    } else {
    }
    return
  }
  func.func @transform_0(%arg0: i32, %arg1: i32, %arg2: i32) -> (i32, i32) {
    %c0_i32 = arith.constant 0 : i32
    return %arg0, %arg2 : i32, i32
  }
  func.func @transform_1(%arg0: i32, %arg1: i32, %arg2: i32) -> (i32, i32) {
    %c0_i32 = arith.constant 0 : i32
    return %arg2, %arg1 : i32, i32
  }
  func.func @transform_2(%arg0: i32, %arg1: i32, %arg2: i32) -> (i32, i32) {
    %c0_i32 = arith.constant 0 : i32
    %c0_i32_0 = arith.constant 0 : i32
    return %c0_i32, %arg1 : i32, i32
  }
  func.func @transform_3(%arg0: i32, %arg1: i32, %arg2: i32) -> (i32, i32) {
    %c0_i32 = arith.constant 0 : i32
    return %arg0, %arg1 : i32, i32
  }
}

</mosaic_0001>

<bundles_post_ra>
// kernel: vqvae_forward.54
= control target key start
LH: loop header
LB: loop body
LE: loop exit
PB: predicated region body
PF: predicated region fallthrough
CT: control target
= control target key end

     0   :  { %s1045_s12 = smov 0   ;;  %s1791_s0 = inlined_call_operand.vmem [shape: f32[2,256,32], index: 0, kind: input, shape index: {}]   ;;  %s1792_s1 = inlined_call_operand.vmem [shape: f32[1,32], index: 1, kind: input, shape index: {}]   ;;  %s1793_s2 = inlined_call_operand.vmem [shape: f32[1,32], index: 2, kind: input, shape index: {}]   ;;  %s1794_s3 = inlined_call_operand.vmem [shape: f32[2,256,32], index: 3, kind: output, shape index: {}]  }
   0x1 LB: > { %s832_s13 = sadd.s32 4294967295, %s1023_s12   ;;  %p836_p0 = scmp.ge.s32.totalorder %s1023_s12, 1  ;;  %s1023_s12 = sphi %s1045_s12, %s13_s12  }
   0x2   : > { %p137_p1 = scmp.lt.s32.totalorder %s1023_s12, 3 }
   0x4   : > { %p138_p2 = pnand %p836_p0, %p137_p1 }
   0x5   : > { %p161_p3 = scmp.lt.s32.totalorder (!%p138_p2), %s832_s13, 1  ;;  %vm203_vm0 = vcmask (!%p138_p2), 261120  }
   0x6   : > { %141 = sbr.rel (%p138_p2) target bundleno = 280 (0x118), region = 32 }
   0xd   : > { %s1796_s13 = smov (!%p161_p3, %s832_s13), 1 }
   0xe   : > { %s877_s14 = sshll.u32 %s1796_s13, 8 }
   0xf   : > { %s1061_s17 = scalar_lea.vmem %s1791_s0, %s877_s14  ;;  %s1614_s24 = scalar_lea.vmem %s1794_s3, %s877_s14 }
  0x10   : > { %v1064_v0 = vld [vmem:[%s1061_s17] sm:$0xff]  ;;  %v1067_v1 = vld [vmem:[%s1061_s17 + $0x8] sm:$0xff]  ;;  %v1070_v2 = vld [vmem:[%s1061_s17 + $0x10] sm:$0xff] }
  0x11   : > { %v1073_v3 = vld [vmem:[%s1061_s17 + $0x18] sm:$0xff]  ;;  %v204_v4 = vsel %vm203_vm0, %v1064_v0, 0.0  ;;  %v205_v5 = vsel %vm203_vm0, %v1067_v1, 0.0  ;;  %v207_v6 = vsel %vm203_vm0, %v1070_v2, 0.0  ;;  %v1082_v7 = vld [vmem:[%s1061_s17 + $0x20] sm:$0xff]  ;;  %v1087_v10 = vld [vmem:[%s1061_s17 + $0x28] sm:$0xff] }
  0x12   : > { %v206_v8 = vadd.f32 %v205_v5, %v204_v4  ;;  %v209_v9 = vsel %vm203_vm0, %v1073_v3, 0.0  ;;  %v211_v12 = vsel %vm203_vm0, %v1082_v7, 0.0  ;;  %v1092_v13 = vld [vmem:[%s1061_s17 + $0x30] sm:$0xff]  ;;  %v213_v15 = vsel %vm203_vm0, %v1087_v10, 0.0  ;;  %v1097_v16 = vld [vmem:[%s1061_s17 + $0x38] sm:$0xff]  ;;  %v1102_v19 = vld [vmem:[%s1061_s17 + $0x40] sm:$0xff] }
  0x13   : > { %v215_v18 = vsel %vm203_vm0, %v1092_v13, 0.0  ;;  %v217_v21 = vsel %vm203_vm0, %v1097_v16, 0.0  ;;  %v1107_v22 = vld [vmem:[%s1061_s17 + $0x48] sm:$0xff]  ;;  %v219_v24 = vsel %vm203_vm0, %v1102_v19, 0.0  ;;  %v1112_v25 = vld [vmem:[%s1061_s17 + $0x50] sm:$0xff]  ;;  %v1117_v28 = vld [vmem:[%s1061_s17 + $0x58] sm:$0xff] }
  0x14   : > { %v208_v11 = vadd.f32 %v207_v6, %v206_v8  ;;  %v221_v27 = vsel %vm203_vm0, %v1107_v22, 0.0  ;;  %v223_v30 = vsel %vm203_vm0, %v1112_v25, 0.0  ;;  %v1122_v31 = vld [vmem:[%s1061_s17 + $0x60] sm:$0xff]  ;;  %v225_v33 = vsel %vm203_vm0, %v1117_v28, 0.0  ;;  %v1127_v34 = vld [vmem:[%s1061_s17 + $0x68] sm:$0xff]  ;;  %v1132_v37 = vld [vmem:[%s1061_s17 + $0x70] sm:$0xff] }
  0x15   : > { %v227_v36 = vsel %vm203_vm0, %v1122_v31, 0.0  ;;  %v229_v39 = vsel %vm203_vm0, %v1127_v34, 0.0  ;;  %v1137_v40 = vld [vmem:[%s1061_s17 + $0x78] sm:$0xff]  ;;  %v231_v42 = vsel %vm203_vm0, %v1132_v37, 0.0  ;;  %v1142_v43 = vld [vmem:[%s1061_s17 + $0x80] sm:$0xff]  ;;  %v1147_v46 = vld [vmem:[%s1061_s17 + $0x88] sm:$0xff] }
  0x16   : > { %v210_v14 = vadd.f32 %v209_v9, %v208_v11  ;;  %v233_v45 = vsel %vm203_vm0, %v1137_v40, 0.0  ;;  %v235_v48 = vsel %vm203_vm0, %v1142_v43, 0.0  ;;  %v1152_v49 = vld [vmem:[%s1061_s17 + $0x90] sm:$0xff]  ;;  %v237_v51 = vsel %vm203_vm0, %v1147_v46, 0.0  ;;  %v1157_v52 = vld [vmem:[%s1061_s17 + $0x98] sm:$0xff]  ;;  %v1162_v55 = vld [vmem:[%s1061_s17 + $0xa0] sm:$0xff] }
  0x17   : > { %v239_v54 = vsel %vm203_vm0, %v1152_v49, 0.0  ;;  %v241_v57 = vsel %vm203_vm0, %v1157_v52, 0.0  ;;  %v1167_v58 = vld [vmem:[%s1061_s17 + $0xa8] sm:$0xff]  ;;  %v243_v60 = vsel %vm203_vm0, %v1162_v55, 0.0  ;;  %v1172_v61 = vld [vmem:[%s1061_s17 + $0xb0] sm:$0xff]  ;;  %v1177_v4 = vld [vmem:[%s1061_s17 + $0xb8] sm:$0xff] }
  0x18   : > { %v212_v17 = vadd.f32 %v211_v12, %v210_v14  ;;  %v245_v63 = vsel %vm203_vm0, %v1167_v58, 0.0  ;;  %v247_v6 = vsel %vm203_vm0, %v1172_v61, 0.0  ;;  %v1182_v8 = vld [vmem:[%s1061_s17 + $0xc0] sm:$0xff]  ;;  %v249_v11 = vsel %vm203_vm0, %v1177_v4, 0.0  ;;  %v1187_v12 = vld [vmem:[%s1061_s17 + $0xc8] sm:$0xff] }
  0x1a   : > { %v214_v20 = vadd.f32 %v213_v15, %v212_v17  ;;  %v251_v15 = vsel %vm203_vm0, %v1182_v8, 0.0  ;;  %v1192_v17 = vld [vmem:[%s1061_s17 + $0xd0] sm:$0xff] }
  0x1c   : > { %v216_v23 = vadd.f32 %v215_v18, %v214_v20  ;;  %v253_v20 = vsel %vm203_vm0, %v1187_v12, 0.0 }
  0x1e   : > { %v218_v26 = vadd.f32 %v217_v21, %v216_v23  ;;  %v1197_v21 = vld [vmem:[%s1061_s17 + $0xd8] sm:$0xff] }
  0x20   : > { %v220_v29 = vadd.f32 %v219_v24, %v218_v26  ;;  %v255_v24 = vsel %vm203_vm0, %v1192_v17, 0.0  ;;  %v1202_v26 = vld [vmem:[%s1061_s17 + $0xe0] sm:$0xff] }
  0x22   : > { %v222_v32 = vadd.f32 %v221_v27, %v220_v29  ;;  %v257_v29 = vsel %vm203_vm0, %v1197_v21, 0.0 }
  0x24   : > { %v224_v35 = vadd.f32 %v223_v30, %v222_v32  ;;  %v1207_v30 = vld [vmem:[%s1061_s17 + $0xe8] sm:$0xff] }
  0x26   : > { %v226_v38 = vadd.f32 %v225_v33, %v224_v35  ;;  %v259_v33 = vsel %vm203_vm0, %v1202_v26, 0.0  ;;  %v1212_v35 = vld [vmem:[%s1061_s17 + $0xf0] sm:$0xff] }
  0x28   : > { %v228_v41 = vadd.f32 %v227_v36, %v226_v38  ;;  %v261_v38 = vsel %vm203_vm0, %v1207_v30, 0.0 }
  0x2a   : > { %v230_v44 = vadd.f32 %v229_v39, %v228_v41  ;;  %v1217_v39 = vld [vmem:[%s1061_s17 + $0xf8] sm:$0xff] }
  0x2c   : > { %v232_v47 = vadd.f32 %v231_v42, %v230_v44  ;;  %v263_v42 = vsel %vm203_vm0, %v1212_v35, 0.0 }
  0x2e   : > { %v234_v50 = vadd.f32 %v233_v45, %v232_v47  ;;  %v265_v45 = vsel %vm203_vm0, %v1217_v39, 0.0 }
  0x30   : > { %v236_v53 = vadd.f32 %v235_v48, %v234_v50 }
  0x32   : > { %v238_v56 = vadd.f32 %v237_v51, %v236_v53 }
  0x34   : > { %v240_v59 = vadd.f32 %v239_v54, %v238_v56 }
  0x36   : > { %v242_v62 = vadd.f32 %v241_v57, %v240_v59 }
  0x38   : > { %v244_v5 = vadd.f32 %v243_v60, %v242_v62 }
  0x3a   : > { %v246_v9 = vadd.f32 %v245_v63, %v244_v5 }
  0x3c   : > { %v248_v14 = vadd.f32 %v247_v6, %v246_v9 }
  0x3e   : > { %v250_v18 = vadd.f32 %v249_v11, %v248_v14 }
  0x40   : > { %v252_v23 = vadd.f32 %v251_v15, %v250_v18 }
  0x42   : > { %v254_v27 = vadd.f32 %v253_v20, %v252_v23 }
  0x44   : > { %v256_v32 = vadd.f32 %v255_v24, %v254_v27 }
  0x46   : > { %v258_v36 = vadd.f32 %v257_v29, %v256_v32 }
  0x48   : > { %v260_v41 = vadd.f32 %v259_v33, %v258_v36 }
  0x4a   : > { %v262_v44 = vadd.f32 %v261_v38, %v260_v41 }
  0x4c   : > { %v264_v47 = vadd.f32 %v263_v42, %v262_v44 }
  0x4e   : > { %v266_v48 = vadd.f32 %v265_v45, %v264_v47 }
  0x50   : > { %v267_v50 = vrot.slane %v266_v48, 4 }
  0x52   : > { %v268_v51 = vadd.f32 %v267_v50, %v266_v48 }
  0x54   : > { %v269_v53 = vrot.slane %v268_v51, 2 }
  0x56   : > { %v270_v54 = vadd.f32 %v269_v53, %v268_v51 }
  0x58   : > { %v271_v56 = vrot.slane %v270_v54, 1 }
  0x5a   : > { %v272_v57 = vadd.f32 %v271_v56, %v270_v54 }
  0x5c   : > { %v1223_v59 = vmul.f32 0.00390625, %v272_v57 }
  0x5e   : > { %v1227_v60 = vsub.f32 %v1064_v0, %v1223_v59  ;;  %v1231_v62 = vsub.f32 %v1067_v1, %v1223_v59  ;;  %v1235_v63 = vsub.f32 %v1070_v2, %v1223_v59  ;;  %v1239_v5 = vsub.f32 %v1073_v3, %v1223_v59 }
  0x5f   : > { %v1243_v6 = vsub.f32 %v1082_v7, %v1223_v59  ;;  %v1253_v2 = vsub.f32 %v1087_v10, %v1223_v59  ;;  %v1259_v7 = vsub.f32 %v1092_v13, %v1223_v59  ;;  %v1268_v10 = vsub.f32 %v1097_v16, %v1223_v59 }
  0x60   : > { %v307_v0 = vmul.f32 %v1227_v60, %v1227_v60  ;;  %v308_v9 = vmul.f32 %v1231_v62, %v1231_v62  ;;  %v309_v1 = vmul.f32 %v1235_v63, %v1235_v63  ;;  %v310_v3 = vmul.f32 %v1239_v5, %v1239_v5 }
  0x61   : > { %v311_v11 = vmul.f32 %v1243_v6, %v1243_v6  ;;  %v312_v23 = vmul.f32 %v1253_v2, %v1253_v2  ;;  %v1275_v27 = vsub.f32 %v1102_v19, %v1223_v59  ;;  %v313_v29 = vmul.f32 %v1259_v7, %v1259_v7 }
  0x62   : > { %v339_v14 = vsel %vm203_vm0, %v307_v0, 0.0  ;;  %v340_v15 = vsel %vm203_vm0, %v308_v9, 0.0  ;;  %v342_v18 = vsel %vm203_vm0, %v309_v1, 0.0  ;;  %v344_v13 = vsel %vm203_vm0, %v310_v3, 0.0 }
  0x63   : > { %v341_v20 = vadd.f32 %v340_v15, %v339_v14  ;;  %v346_v32 = vsel %vm203_vm0, %v311_v11, 0.0  ;;  %v1282_v16 = vsub.f32 %v1107_v22, %v1223_v59  ;;  %v314_v36 = vmul.f32 %v1268_v10, %v1268_v10 }
  0x64   : > { %v348_v38 = vsel %vm203_vm0, %v312_v23, 0.0  ;;  %v1289_v19 = vsub.f32 %v1112_v25, %v1223_v59  ;;  %v315_v42 = vmul.f32 %v1275_v27, %v1275_v27  ;;  %v350_v44 = vsel %vm203_vm0, %v313_v29, 0.0 }
  0x65   : > { %v343_v24 = vadd.f32 %v342_v18, %v341_v20  ;;  %v1296_v22 = vsub.f32 %v1117_v28, %v1223_v59  ;;  %v316_v47 = vmul.f32 %v1282_v16, %v1282_v16  ;;  %v352_v48 = vsel %vm203_vm0, %v314_v36, 0.0 }
  0x66   : > { %v1303_v25 = vsub.f32 %v1122_v31, %v1223_v59  ;;  %v317_v51 = vmul.f32 %v1289_v19, %v1289_v19  ;;  %v354_v53 = vsel %vm203_vm0, %v315_v42, 0.0  ;;  %v1310_v28 = vsub.f32 %v1127_v34, %v1223_v59 }
  0x67   : > { %v345_v33 = vadd.f32 %v344_v13, %v343_v24  ;;  %v318_v56 = vmul.f32 %v1296_v22, %v1296_v22  ;;  %v356_v57 = vsel %vm203_vm0, %v316_v47, 0.0  ;;  %v1317_v31 = vsub.f32 %v1132_v37, %v1223_v59 }
  0x68   : > { %v319_v9 = vmul.f32 %v1303_v25, %v1303_v25  ;;  %v358_v1 = vsel %vm203_vm0, %v317_v51, 0.0  ;;  %v1324_v34 = vsub.f32 %v1137_v40, %v1223_v59  ;;  %v320_v11 = vmul.f32 %v1310_v28, %v1310_v28 }
  0x69   : > { %v347_v41 = vadd.f32 %v346_v32, %v345_v33  ;;  %v360_v14 = vsel %vm203_vm0, %v318_v56, 0.0  ;;  %v1331_v37 = vsub.f32 %v1142_v43, %v1223_v59  ;;  %v321_v18 = vmul.f32 %v1317_v31, %v1317_v31 }
  0x6a   : > { %v362_v20 = vsel %vm203_vm0, %v319_v9, 0.0  ;;  %v1338_v40 = vsub.f32 %v1147_v46, %v1223_v59  ;;  %v322_v13 = vmul.f32 %v1324_v34, %v1324_v34  ;;  %v364_v24 = vsel %vm203_vm0, %v320_v11, 0.0 }
  0x6b   : > { %v349_v45 = vadd.f32 %v348_v38, %v347_v41  ;;  %v1345_v43 = vsub.f32 %v1152_v49, %v1223_v59  ;;  %v323_v32 = vmul.f32 %v1331_v37, %v1331_v37  ;;  %v366_v33 = vsel %vm203_vm0, %v321_v18, 0.0 }
  0x6c   : > { %v1352_v46 = vsub.f32 %v1157_v52, %v1223_v59  ;;  %v324_v38 = vmul.f32 %v1338_v40, %v1338_v40  ;;  %v368_v41 = vsel %vm203_vm0, %v322_v13, 0.0  ;;  %v1359_v49 = vsub.f32 %v1162_v55, %v1223_v59 }
  0x6d   : > { %v351_v50 = vadd.f32 %v350_v44, %v349_v45  ;;  %v325_v44 = vmul.f32 %v1345_v43, %v1345_v43  ;;  %v370_v45 = vsel %vm203_vm0, %v323_v32, 0.0  ;;  %v1366_v52 = vsub.f32 %v1167_v58, %v1223_v59 }
  0x6e   : > { %v1373_v55 = vsub.f32 %v1172_v61, %v1223_v59  ;;  %v1380_v58 = vsub.f32 %v1177_v4, %v1223_v59  ;;  %v1387_v61 = vsub.f32 %v1182_v8, %v1223_v59  ;;  %v1394_v4 = vsub.f32 %v1187_v12, %v1223_v59 }
  0x6f   : > { %v353_v54 = vadd.f32 %v352_v48, %v351_v50  ;;  %v326_v48 = vmul.f32 %v1352_v46, %v1352_v46  ;;  %v372_v50 = vsel %vm203_vm0, %v324_v38, 0.0  ;;  %v1401_v8 = vsub.f32 %v1192_v17, %v1223_v59 }
  0x70   : > { %v1408_v12 = vsub.f32 %v1197_v21, %v1223_v59  ;;  %v1415_v17 = vsub.f32 %v1202_v26, %v1223_v59  ;;  %v1422_v21 = vsub.f32 %v1207_v30, %v1223_v59  ;;  %v1429_v26 = vsub.f32 %v1212_v35, %v1223_v59 }
  0x71   : > { %v355_v0 = vadd.f32 %v354_v53, %v353_v54  ;;  %v327_v53 = vmul.f32 %v1359_v49, %v1359_v49  ;;  %v374_v54 = vsel %vm203_vm0, %v325_v44, 0.0  ;;  %v1436_v30 = vsub.f32 %v1217_v39, %v1223_v59 }
  0x72   : > { %v337_v35 = vmul.f32 %v1429_v26, %v1429_v26 }
  0x73   : > { %v357_v3 = vadd.f32 %v356_v57, %v355_v0  ;;  %v328_v57 = vmul.f32 %v1366_v52, %v1366_v52  ;;  %v376_v0 = vsel %vm203_vm0, %v326_v48, 0.0 }
  0x74   : > { %v398_v39 = vsel %vm203_vm0, %v337_v35, 0.0 }
  0x75   : > { %v359_v15 = vadd.f32 %v358_v1, %v357_v3  ;;  %v329_v1 = vmul.f32 %v1373_v55, %v1373_v55  ;;  %v378_v3 = vsel %vm203_vm0, %v327_v53, 0.0 }
  0x77   : > { %v361_v23 = vadd.f32 %v360_v14, %v359_v15  ;;  %v330_v14 = vmul.f32 %v1380_v58, %v1380_v58  ;;  %v380_v15 = vsel %vm203_vm0, %v328_v57, 0.0  ;;  %v338_v57 = vmul.f32 %v1436_v30, %v1436_v30 }
  0x79   : > { %v363_v29 = vadd.f32 %v362_v20, %v361_v23  ;;  %v331_v20 = vmul.f32 %v1387_v61, %v1387_v61  ;;  %v382_v23 = vsel %vm203_vm0, %v329_v1, 0.0  ;;  %v400_v1 = vsel %vm203_vm0, %v338_v57, 0.0 }
  0x7b   : > { %v365_v36 = vadd.f32 %v364_v24, %v363_v29  ;;  %v332_v24 = vmul.f32 %v1394_v4, %v1394_v4  ;;  %v384_v29 = vsel %vm203_vm0, %v330_v14, 0.0 }
  0x7d   : > { %v367_v42 = vadd.f32 %v366_v33, %v365_v36  ;;  %v333_v33 = vmul.f32 %v1401_v8, %v1401_v8  ;;  %v386_v36 = vsel %vm203_vm0, %v331_v20, 0.0 }
  0x7f   : > { %v369_v47 = vadd.f32 %v368_v41, %v367_v42  ;;  %v334_v41 = vmul.f32 %v1408_v12, %v1408_v12  ;;  %v388_v42 = vsel %vm203_vm0, %v332_v24, 0.0 }
  0x81   : > { %v371_v51 = vadd.f32 %v370_v45, %v369_v47  ;;  %v335_v45 = vmul.f32 %v1415_v17, %v1415_v17  ;;  %v390_v47 = vsel %vm203_vm0, %v333_v33, 0.0  ;;  %v1454_v33 = vld [vmem:[%s1792_s1] ss:$0 sm:$0xff] }
  0x83   : > { %v373_v56 = vadd.f32 %v372_v50, %v371_v51  ;;  %v336_v50 = vmul.f32 %v1422_v21, %v1422_v21  ;;  %v392_v51 = vsel %vm203_vm0, %v334_v41, 0.0 }
  0x85   : > { %v375_v9 = vadd.f32 %v374_v54, %v373_v56  ;;  %v394_v54 = vsel %vm203_vm0, %v335_v45, 0.0 }
  0x87   : > { %v377_v11 = vadd.f32 %v376_v0, %v375_v9  ;;  %v396_v0 = vsel %vm203_vm0, %v336_v50, 0.0 }
  0x89   : > { %v379_v18 = vadd.f32 %v378_v3, %v377_v11 }
  0x8b   : > { %v381_v13 = vadd.f32 %v380_v15, %v379_v18 }
  0x8d   : > { %v383_v32 = vadd.f32 %v382_v23, %v381_v13 }
  0x8f   : > { %v385_v38 = vadd.f32 %v384_v29, %v383_v32 }
  0x91   : > { %v387_v44 = vadd.f32 %v386_v36, %v385_v38 }
  0x93   : > { %v389_v48 = vadd.f32 %v388_v42, %v387_v44  ;;  %v1467_v44 = vld [vmem:[%s1793_s2] ss:$0 sm:$0xff] }
  0x95   : > { %v391_v53 = vadd.f32 %v390_v47, %v389_v48 }
  0x97   : > { %v393_v56 = vadd.f32 %v392_v51, %v391_v53 }
  0x99   : > { %v395_v9 = vadd.f32 %v394_v54, %v393_v56 }
  0x9b   : > { %v397_v59 = vadd.f32 %v396_v0, %v395_v9 }
  0x9d   : > { %v399_v3 = vadd.f32 %v398_v39, %v397_v59 }
  0x9f   : > { %v401_v11 = vadd.f32 %v400_v1, %v399_v3 }
  0xa1   : > { %v402_v14 = vrot.slane %v401_v11, 4 }
  0xa3   : > { %v403_v15 = vadd.f32 %v402_v14, %v401_v11 }
  0xa5   : > { %v404_v18 = vrot.slane %v403_v15, 2 }
  0xa7   : > { %v405_v20 = vadd.f32 %v404_v18, %v403_v15 }
  0xa9   : > { %v406_v23 = vrot.slane %v405_v20, 1 }
  0xab   : > { %v407_v13 = vadd.f32 %v406_v23, %v405_v20 }
  0xad   : > { %v408_v24 = vmul.f32 0.00390625, %v407_v13 }
  0xaf   : > { %v409_v29 = vadd.f32 1e-06, %v408_v24 }
  0xb1   : > { %887 = vrsqrt.f32 %v409_v29 }
  0xbb   : > { %v1449_v32 = vpop.eup %887 }
  0xbc   : > { %v411_v36 = vmul.f32 %v1449_v32, %v1227_v60  ;;  %v412_v38 = vmul.f32 %v1449_v32, %v1231_v62  ;;  %v413_v41 = vmul.f32 %v1449_v32, %v1235_v63  ;;  %v414_v42 = vmul.f32 %v1449_v32, %v1239_v5 }
  0xbd   : > { %v415_v45 = vmul.f32 %v1449_v32, %v1243_v6  ;;  %v416_v60 = vmul.f32 %v1449_v32, %v1253_v2  ;;  %v417_v62 = vmul.f32 %v1449_v32, %v1259_v7  ;;  %v418_v63 = vmul.f32 %v1449_v32, %v1268_v10 }
  0xbe   : > { %v450_v47 = vmul.f32 %v1454_v33, %v411_v36  ;;  %v451_v5 = vmul.f32 %v1454_v33, %v412_v38  ;;  %v452_v48 = vmul.f32 %v1454_v33, %v413_v41  ;;  %v453_v50 = vmul.f32 %v1454_v33, %v414_v42 }
  0xbf   : > { %v454_v51 = vmul.f32 %v1454_v33, %v415_v45  ;;  %v455_v6 = vmul.f32 %v1454_v33, %v416_v60  ;;  %v456_v2 = vmul.f32 %v1454_v33, %v417_v62  ;;  %v457_v53 = vmul.f32 %v1454_v33, %v418_v63 }
  0xc0   : > { %v1486_v7 = vadd.f32 %v1467_v44, %v450_v47  ;;  %v1489_v10 = vadd.f32 %v1467_v44, %v451_v5  ;;  %v1492_v35 = vadd.f32 %v1467_v44, %v452_v48  ;;  %v1495_v54 = vadd.f32 %v1467_v44, %v453_v50 }
  0xc1   : > { %v1498_v56 = vadd.f32 %v1467_v44, %v454_v51  ;;  %v1501_v57 = vadd.f32 %v1467_v44, %v455_v6  ;;  %v1504_v0 = vadd.f32 %v1467_v44, %v456_v2  ;;  %v1507_v9 = vadd.f32 %v1467_v44, %v457_v53 }
  0xc2   : > { %v843_v39 = vmul.f32 -1.442695, %v1486_v7  ;;  %v844_v59 = vmul.f32 -1.442695, %v1489_v10  ;;  %v845_v1 = vmul.f32 -1.442695, %v1492_v35  ;;  %v419_v3 = vmul.f32 %v1449_v32, %v1275_v27 }
  0xc3   : > { %v846_v11 = vmul.f32 -1.442695, %v1495_v54  ;;  %v847_v14 = vmul.f32 -1.442695, %v1498_v56  ;;  %v848_v15 = vmul.f32 -1.442695, %v1501_v57  ;;  %v420_v18 = vmul.f32 %v1449_v32, %v1282_v16 }
  0xc4   : > { %889 = vpow2.f32 %v843_v39  ;;  %v849_v20 = vmul.f32 -1.442695, %v1504_v0  ;;  %v850_v23 = vmul.f32 -1.442695, %v1507_v9  ;;  %v458_v13 = vmul.f32 %v1454_v33, %v419_v3 }
  0xc5   : > { %891 = vpow2.f32 %v844_v59  ;;  %v459_v24 = vmul.f32 %v1454_v33, %v420_v18  ;;  %v421_v27 = vmul.f32 %v1449_v32, %v1289_v19  ;;  %v422_v29 = vmul.f32 %v1449_v32, %v1296_v22 }
  0xc6   : > { %893 = vpow2.f32 %v845_v1  ;;  %v1528_v36 = vadd.f32 %v1467_v44, %v458_v13  ;;  %v423_v16 = vmul.f32 %v1449_v32, %v1303_v25  ;;  %v424_v38 = vmul.f32 %v1449_v32, %v1310_v28 }
  0xc7   : > { %895 = vpow2.f32 %v846_v11  ;;  %v1535_v41 = vadd.f32 %v1467_v44, %v459_v24  ;;  %v460_v42 = vmul.f32 %v1454_v33, %v421_v27  ;;  %v461_v19 = vmul.f32 %v1454_v33, %v422_v29 }
  0xc8   : > { %897 = vpow2.f32 %v847_v14  ;;  %v851_v22 = vmul.f32 -1.442695, %v1528_v36  ;;  %v462_v45 = vmul.f32 %v1454_v33, %v423_v16  ;;  %v463_v63 = vmul.f32 %v1454_v33, %v424_v38 }
  0xc9   : > { %899 = vpow2.f32 %v848_v15  ;;  %v852_v60 = vmul.f32 -1.442695, %v1535_v41  ;;  %v1543_v25 = vadd.f32 %v1467_v44, %v460_v42  ;;  %v1546_v28 = vadd.f32 %v1467_v44, %v461_v19 }
  0xca   : > { %901 = vpow2.f32 %v849_v20  ;;  %v1549_v62 = vadd.f32 %v1467_v44, %v462_v45  ;;  %v425_v47 = vmul.f32 %v1449_v32, %v1317_v31  ;;  %v426_v50 = vmul.f32 %v1449_v32, %v1324_v34 }
  0xcb   : > { %903 = vpow2.f32 %v850_v23  ;;  %v853_v5 = vmul.f32 -1.442695, %v1543_v25  ;;  %v854_v48 = vmul.f32 -1.442695, %v1546_v28  ;;  %v427_v53 = vmul.f32 %v1449_v32, %v1331_v37 }
  0xcc   : > { %905 = vpow2.f32 %v851_v22  ;;  %v855_v51 = vmul.f32 -1.442695, %v1549_v62  ;;  %v464_v6 = vmul.f32 %v1454_v33, %v425_v47  ;;  %v465_v2 = vmul.f32 %v1454_v33, %v426_v50 }
  0xcd   : > { %907 = vpow2.f32 %v852_v60  ;;  %v1564_v39 = vadd.f32 %v1467_v44, %v463_v63  ;;  %v428_v59 = vmul.f32 %v1449_v32, %v1338_v40  ;;  %v466_v3 = vmul.f32 %v1454_v33, %v427_v53 }
  0xce   : > { %v890_v31 = vpop.eup %889  ;;  %909 = vpow2.f32 %v853_v5  ;;  %v429_v11 = vmul.f32 %v1449_v32, %v1345_v43  ;;  %v1572_v37 = vadd.f32 %v1467_v44, %v464_v6  ;;  %v430_v18 = vmul.f32 %v1449_v32, %v1352_v46 }
  0xcf   : > { %v892_v34 = vpop.eup %891  ;;  %v617_v1 = vadd.f32 1.0, %v890_v31  ;;  %911 = vpow2.f32 %v854_v48  ;;  %v1577_v23 = vadd.f32 %v1467_v44, %v465_v2  ;;  %v856_v43 = vmul.f32 -1.442695, %v1564_v39 }
  0xd0   : > { %v894_v14 = vpop.eup %893  ;;  %v618_v15 = vadd.f32 1.0, %v892_v34  ;;  %913 = vpow2.f32 %v855_v51  ;;  %v467_v27 = vmul.f32 %v1454_v33, %v428_v59  ;;  %v1582_v38 = vadd.f32 %v1467_v44, %v466_v3 }
  0xd1   : > { %v896_v20 = vpop.eup %895  ;;  %915 = vrcp.f32 %v617_v1  ;;  %v619_v40 = vadd.f32 1.0, %v894_v14  ;;  %v468_v46 = vmul.f32 %v1454_v33, %v429_v11  ;;  %v857_v22 = vmul.f32 -1.442695, %v1572_v37 }
  0xd2   : > { %v898_v13 = vpop.eup %897  ;;  %917 = vrcp.f32 %v618_v15  ;;  %v620_v24 = vadd.f32 1.0, %v896_v20  ;;  %v469_v45 = vmul.f32 %v1454_v33, %v430_v18  ;;  %v858_v47 = vmul.f32 -1.442695, %v1577_v23 }
  0xd3   : > { %v900_v29 = vpop.eup %899  ;;  %919 = vrcp.f32 %v619_v40  ;;  %v621_v16 = vadd.f32 1.0, %v898_v13  ;;  %v431_v5 = vmul.f32 %v1449_v32, %v1359_v49  ;;  %v1591_v51 = vadd.f32 %v1467_v44, %v467_v27 }
  0xd4   : > { %v902_v42 = vpop.eup %901  ;;  %921 = vrcp.f32 %v620_v24  ;;  %v622_v19 = vadd.f32 1.0, %v900_v29  ;;  %v432_v6 = vmul.f32 %v1449_v32, %v1366_v52  ;;  %v859_v31 = vmul.f32 -1.442695, %v1582_v38 }
  0xd5   : > { %v904_v60 = vpop.eup %903  ;;  %923 = vrcp.f32 %v621_v16  ;;  %v623_v63 = vadd.f32 1.0, %v902_v42  ;;  %v1597_v59 = vadd.f32 %v1467_v44, %v468_v46  ;;  %v1600_v1 = vadd.f32 %v1467_v44, %v469_v45 }
  0xd6   : > { %v906_v48 = vpop.eup %905  ;;  %925 = vrcp.f32 %v622_v19  ;;  %v624_v50 = vadd.f32 1.0, %v904_v60  ;;  %v433_v3 = vmul.f32 %v1449_v32, %v1373_v55  ;;  %v470_v14 = vmul.f32 %v1454_v33, %v431_v5 }
  0xd7   : > { %v908_v2 = vpop.eup %907  ;;  %927 = vrcp.f32 %v623_v63  ;;  %v625_v53 = vadd.f32 1.0, %v906_v48  ;;  %v434_v15 = vmul.f32 %v1449_v32, %v1380_v58  ;;  %v860_v40 = vmul.f32 -1.442695, %v1591_v51 }
  0xd8   : > { %v910_v34 = vpop.eup %909  ;;  %929 = vrcp.f32 %v624_v50  ;;  %v626_v49 = vadd.f32 1.0, %v908_v2  ;;  %v471_v13 = vmul.f32 %v1454_v33, %v432_v6  ;;  %v861_v27 = vmul.f32 -1.442695, %v1597_v59 }
  0xd9   : > { %v912_v11 = vpop.eup %911  ;;  %931 = vrcp.f32 %v625_v53  ;;  %v627_v52 = vadd.f32 1.0, %v910_v34  ;;  %v472_v58 = vmul.f32 %v1454_v33, %v433_v3  ;;  %v862_v46 = vmul.f32 -1.442695, %v1600_v1 }
  0xda   : > { %v914_v18 = vpop.eup %913  ;;  %933 = vrcp.f32 %v626_v49  ;;  %v628_v20 = vadd.f32 1.0, %v912_v11  ;;  %v473_v42 = vmul.f32 %v1454_v33, %v434_v15  ;;  %v1623_v60 = vadd.f32 %v1467_v44, %v470_v14 }
  0xdb   : > { %v916_v24 = vpop.eup %915  ;;  %935 = vrcp.f32 %v627_v52  ;;  %v629_v55 = vadd.f32 1.0, %v914_v18  ;;  %v435_v63 = vmul.f32 %v1449_v32, %v1387_v61  ;;  %v1631_v48 = vadd.f32 %v1467_v44, %v471_v13 }
  0xdc   : > { %v918_v29 = vpop.eup %917  ;;  %v713_v16 = vmul.f32 %v916_v24, %v1486_v7  ;;  %937 = vrcp.f32 %v628_v20  ;;  %v1639_v61 = vadd.f32 %v1467_v44, %v472_v58  ;;  %v863_v34 = vmul.f32 -1.442695, %v1623_v60 }
  0xdd   : > { %v920_v19 = vpop.eup %919  ;;  %v714_v45 = vmul.f32 %v918_v29, %v1489_v10  ;;  %939 = vrcp.f32 %v629_v55  ;;  %v436_v10 = vmul.f32 %v1449_v32, %v1394_v4  ;;  %v1646_v4 = vadd.f32 %v1467_v44, %v473_v42 }
  0xde   : > { %v922_v5 = vpop.eup %921  ;;  %745 = vst.msk [vmem:[%s1614_s24] sm:$0xff] %vm203_vm0, %v713_v16  ;;  %v715_v7 = vmul.f32 %v920_v19, %v1492_v35  ;;  %941 = vpow2.f32 %v856_v43  ;;  %v474_v35 = vmul.f32 %v1454_v33, %v435_v63  ;;  %v864_v3 = vmul.f32 -1.442695, %v1631_v48 }
  0xdf   : > { %v924_v50 = vpop.eup %923  ;;  %746 = vst.msk [vmem:[%s1614_s24 + $0x8] sm:$0xff] %vm203_vm0, %v714_v45  ;;  %v716_v6 = vmul.f32 %v922_v5, %v1495_v54  ;;  %943 = vpow2.f32 %v857_v22  ;;  %v475_v53 = vmul.f32 %v1454_v33, %v436_v10  ;;  %v865_v52 = vmul.f32 -1.442695, %v1639_v61 }
  0xe0   : > { %v926_v43 = vpop.eup %925  ;;  %747 = vst.msk [vmem:[%s1614_s24 + $0x10] sm:$0xff] %vm203_vm0, %v715_v7  ;;  %v717_v2 = vmul.f32 %v924_v50, %v1498_v56  ;;  %945 = vpow2.f32 %v858_v47  ;;  %v1654_v49 = vadd.f32 %v1467_v44, %v474_v35  ;;  %v866_v15 = vmul.f32 -1.442695, %v1646_v4 }
  0xe1   : > { %v928_v54 = vpop.eup %927  ;;  %748 = vst.msk [vmem:[%s1614_s24 + $0x18] sm:$0xff] %vm203_vm0, %v716_v6  ;;  %v718_v22 = vmul.f32 %v926_v43, %v1501_v57  ;;  %947 = vpow2.f32 %v859_v31  ;;  %v1661_v11 = vadd.f32 %v1467_v44, %v475_v53  ;;  %v437_v58 = vmul.f32 %v1449_v32, %v1401_v8 }
  0xe2   : > { %v930_v56 = vpop.eup %929  ;;  %749 = vst.msk [vmem:[%s1614_s24 + $0x20] sm:$0xff] %vm203_vm0, %v717_v2  ;;  %v719_v47 = vmul.f32 %v928_v54, %v1504_v0  ;;  %949 = vpow2.f32 %v860_v40  ;;  %v438_v16 = vmul.f32 %v1449_v32, %v1408_v12  ;;  %v440_v8 = vmul.f32 %v1449_v32, %v1422_v21 }
  0xe3   : > { %v932_v57 = vpop.eup %931  ;;  %750 = vst.msk [vmem:[%s1614_s24 + $0x28] sm:$0xff] %vm203_vm0, %v718_v22  ;;  %v720_v31 = vmul.f32 %v930_v56, %v1507_v9  ;;  %951 = vpow2.f32 %v861_v27  ;;  %v867_v9 = vmul.f32 -1.442695, %v1654_v49  ;;  %v476_v5 = vmul.f32 %v1454_v33, %v437_v58 }
  0xe4   : > { %v934_v14 = vpop.eup %933  ;;  %751 = vst.msk [vmem:[%s1614_s24 + $0x30] sm:$0xff] %vm203_vm0, %v719_v47  ;;  %v721_v0 = vmul.f32 %v932_v57, %v1528_v36  ;;  %953 = vpow2.f32 %v862_v46  ;;  %v868_v36 = vmul.f32 -1.442695, %v1661_v11  ;;  %v441_v12 = vmul.f32 %v1449_v32, %v1429_v26 }
  0xe5   : > { %v936_v18 = vpop.eup %935  ;;  %752 = vst.msk [vmem:[%s1614_s24 + $0x38] sm:$0xff] %vm203_vm0, %v720_v31  ;;  %v722_v20 = vmul.f32 %v934_v14, %v1535_v41  ;;  %955 = vpow2.f32 %v863_v34  ;;  %v477_v50 = vmul.f32 %v1454_v33, %v438_v16  ;;  %v479_v53 = vmul.f32 %v1454_v33, %v440_v8 }
  0xe6   : > { %v938_v40 = vpop.eup %937  ;;  %753 = vst.msk [vmem:[%s1614_s24 + $0x40] sm:$0xff] %vm203_vm0, %v721_v0  ;;  %v723_v13 = vmul.f32 %v936_v18, %v1543_v25  ;;  %957 = vpow2.f32 %v864_v3  ;;  %v1706_v22 = vadd.f32 %v1467_v44, %v476_v5  ;;  %v480_v34 = vmul.f32 %v1454_v33, %v441_v12 }
  0xe7   : > { %v940_v24 = vpop.eup %939  ;;  %754 = vst.msk [vmem:[%s1614_s24 + $0x48] sm:$0xff] %vm203_vm0, %v722_v20  ;;  %v724_v55 = vmul.f32 %v938_v40, %v1546_v28  ;;  %959 = vpow2.f32 %v865_v52  ;;  %v1717_v0 = vadd.f32 %v1467_v44, %v479_v53 }
  0xe8   : > { %v942_v41 = vpop.eup %941  ;;  %755 = vst.msk [vmem:[%s1614_s24 + $0x50] sm:$0xff] %vm203_vm0, %v723_v13  ;;  %v725_v27 = vmul.f32 %v940_v24, %v1549_v62  ;;  %961 = vpow2.f32 %v866_v15  ;;  %v439_v62 = vmul.f32 %v1449_v32, %v1415_v17  ;;  %v442_v17 = vmul.f32 %v1449_v32, %v1436_v30 }
  0xe9   : > { %v944_v25 = vpop.eup %943  ;;  %756 = vst.msk [vmem:[%s1614_s24 + $0x58] sm:$0xff] %vm203_vm0, %v724_v55  ;;  %v630_v29 = vadd.f32 1.0, %v942_v41  ;;  %963 = vpow2.f32 %v867_v9  ;;  %v1710_v32 = vadd.f32 %v1467_v44, %v477_v50  ;;  %v869_v20 = vmul.f32 -1.442695, %v1706_v22 }
  0xea   : > { %v946_v46 = vpop.eup %945  ;;  %757 = vst.msk [vmem:[%s1614_s24 + $0x60] sm:$0xff] %vm203_vm0, %v725_v27  ;;  %v631_v28 = vadd.f32 1.0, %v944_v25  ;;  %965 = vpow2.f32 %v868_v36  ;;  %v478_v21 = vmul.f32 %v1454_v33, %v439_v62  ;;  %v481_v47 = vmul.f32 %v1454_v33, %v442_v17 }
  0xeb   : > { %v948_v42 = vpop.eup %947  ;;  %967 = vrcp.f32 %v630_v29  ;;  %v632_v19 = vadd.f32 1.0, %v946_v46  ;;  %v1721_v33 = vadd.f32 %v1467_v44, %v480_v34  ;;  %v870_v13 = vmul.f32 -1.442695, %v1710_v32 }
  0xec   : > { %v950_v45 = vpop.eup %949  ;;  %969 = vrcp.f32 %v631_v28  ;;  %v633_v63 = vadd.f32 1.0, %v948_v42  ;;  %v1714_v31 = vadd.f32 %v1467_v44, %v478_v21  ;;  %v1725_v36 = vadd.f32 %v1467_v44, %v481_v47 }
  0xed   : > { %v952_v7 = vpop.eup %951  ;;  %971 = vrcp.f32 %v632_v19  ;;  %v634_v10 = vadd.f32 1.0, %v950_v45  ;;  %v872_v25 = vmul.f32 -1.442695, %v1717_v0 }
  0xee   : > { %v954_v6 = vpop.eup %953  ;;  %973 = vrcp.f32 %v633_v63  ;;  %v635_v35 = vadd.f32 1.0, %v952_v7  ;;  %v871_v41 = vmul.f32 -1.442695, %v1714_v31 }
  0xef   : > { %v956_v43 = vpop.eup %955  ;;  %975 = vrcp.f32 %v634_v10  ;;  %v636_v2 = vadd.f32 1.0, %v954_v6 }
  0xf0   : > { %v958_v54 = vpop.eup %957  ;;  %977 = vrcp.f32 %v635_v35  ;;  %v637_v26 = vadd.f32 1.0, %v956_v43 }
  0xf1   : > { %v960_v56 = vpop.eup %959  ;;  %979 = vrcp.f32 %v636_v2  ;;  %v638_v30 = vadd.f32 1.0, %v958_v54 }
  0xf2   : > { %v962_v3 = vpop.eup %961  ;;  %981 = vrcp.f32 %v637_v26  ;;  %v639_v57 = vadd.f32 1.0, %v960_v56 }
  0xf3   : > { %v964_v52 = vpop.eup %963  ;;  %983 = vrcp.f32 %v638_v30  ;;  %v640_v14 = vadd.f32 1.0, %v962_v3 }
  0xf4   : > { %v966_v15 = vpop.eup %965  ;;  %985 = vrcp.f32 %v639_v57  ;;  %v641_v18 = vadd.f32 1.0, %v964_v52 }
  0xf5   : > { %v968_v9 = vpop.eup %967  ;;  %987 = vrcp.f32 %v640_v14  ;;  %v642_v40 = vadd.f32 1.0, %v966_v15 }
  0xf6   : > { %v970_v24 = vpop.eup %969  ;;  %v726_v55 = vmul.f32 %v968_v9, %v1564_v39  ;;  %989 = vrcp.f32 %v641_v18  ;;  %v873_v39 = vmul.f32 -1.442695, %v1721_v33 }
  0xf7   : > { %v972_v27 = vpop.eup %971  ;;  %v727_v58 = vmul.f32 %v970_v24, %v1572_v37  ;;  %991 = vrcp.f32 %v642_v40  ;;  %v874_v37 = vmul.f32 -1.442695, %v1725_v36 }
  0xf8   : > { %v974_v29 = vpop.eup %973  ;;  %758 = vst.msk [vmem:[%s1614_s24 + $0x68] sm:$0xff] %vm203_vm0, %v726_v55  ;;  %v728_v44 = vmul.f32 %v972_v27, %v1577_v23  ;;  %993 = vpow2.f32 %v869_v20 }
  0xf9   : > { %v976_v16 = vpop.eup %975  ;;  %759 = vst.msk [vmem:[%s1614_s24 + $0x70] sm:$0xff] %vm203_vm0, %v727_v58  ;;  %v729_v46 = vmul.f32 %v974_v29, %v1582_v38  ;;  %995 = vpow2.f32 %v870_v13 }
  0xfa   : > { %v978_v28 = vpop.eup %977  ;;  %760 = vst.msk [vmem:[%s1614_s24 + $0x78] sm:$0xff] %vm203_vm0, %v728_v44  ;;  %v730_v62 = vmul.f32 %v976_v16, %v1591_v51  ;;  %997 = vpow2.f32 %v871_v41 }
  0xfb   : > { %v980_v23 = vpop.eup %979  ;;  %761 = vst.msk [vmem:[%s1614_s24 + $0x80] sm:$0xff] %vm203_vm0, %v729_v46  ;;  %v731_v42 = vmul.f32 %v978_v28, %v1597_v59  ;;  %999 = vpow2.f32 %v872_v25 }
  0xfc   : > { %v982_v38 = vpop.eup %981  ;;  %762 = vst.msk [vmem:[%s1614_s24 + $0x88] sm:$0xff] %vm203_vm0, %v730_v62  ;;  %v732_v19 = vmul.f32 %v980_v23, %v1600_v1  ;;  %1001 = vpow2.f32 %v873_v39 }
  0xfd   : > { %v984_v8 = vpop.eup %983  ;;  %763 = vst.msk [vmem:[%s1614_s24 + $0x90] sm:$0xff] %vm203_vm0, %v731_v42  ;;  %v733_v51 = vmul.f32 %v982_v38, %v1623_v60  ;;  %1003 = vpow2.f32 %v874_v37 }
  0xfe   : > { %v986_v45 = vpop.eup %985  ;;  %764 = vst.msk [vmem:[%s1614_s24 + $0x98] sm:$0xff] %vm203_vm0, %v732_v19  ;;  %v734_v59 = vmul.f32 %v984_v8, %v1631_v48 }
  0xff   : > { %v988_v63 = vpop.eup %987  ;;  %765 = vst.msk [vmem:[%s1614_s24 + $0xa0] sm:$0xff] %vm203_vm0, %v733_v51  ;;  %v735_v1 = vmul.f32 %v986_v45, %v1639_v61 }
 0x100   : > { %v990_v5 = vpop.eup %989  ;;  %766 = vst.msk [vmem:[%s1614_s24 + $0xa8] sm:$0xff] %vm203_vm0, %v734_v59  ;;  %v736_v12 = vmul.f32 %v988_v63, %v1646_v4 }
 0x101   : > { %v992_v7 = vpop.eup %991  ;;  %767 = vst.msk [vmem:[%s1614_s24 + $0xb0] sm:$0xff] %vm203_vm0, %v735_v1  ;;  %v737_v60 = vmul.f32 %v990_v5, %v1654_v49 }
 0x102   : > { %v994_v10 = vpop.eup %993  ;;  %768 = vst.msk [vmem:[%s1614_s24 + $0xb8] sm:$0xff] %vm203_vm0, %v736_v12  ;;  %v738_v48 = vmul.f32 %v992_v7, %v1661_v11 }
 0x103   : > { %v996_v50 = vpop.eup %995  ;;  %769 = vst.msk [vmem:[%s1614_s24 + $0xc0] sm:$0xff] %vm203_vm0, %v737_v60  ;;  %v643_v17 = vadd.f32 1.0, %v994_v10 }
 0x104   : > { %v998_v61 = vpop.eup %997  ;;  %770 = vst.msk [vmem:[%s1614_s24 + $0xc8] sm:$0xff] %vm203_vm0, %v738_v48  ;;  %v644_v6 = vadd.f32 1.0, %v996_v50 }
 0x105   : > { %v1000_v35 = vpop.eup %999  ;;  %1005 = vrcp.f32 %v643_v17  ;;  %v645_v4 = vadd.f32 1.0, %v998_v61 }
 0x106   : > { %v1002_v21 = vpop.eup %1001  ;;  %1007 = vrcp.f32 %v644_v6  ;;  %v646_v49 = vadd.f32 1.0, %v1000_v35 }
 0x107   : > { %v1004_v43 = vpop.eup %1003  ;;  %1009 = vrcp.f32 %v645_v4  ;;  %v647_v2 = vadd.f32 1.0, %v1002_v21 }
 0x108   : > { %1011 = vrcp.f32 %v646_v49  ;;  %v648_v11 = vadd.f32 1.0, %v1004_v43 }
 0x109   : > { %1013 = vrcp.f32 %v647_v2 }
 0x10a   : > { %1015 = vrcp.f32 %v648_v11 }
 0x10f   : > { %v1006_v53 = vpop.eup %1005 }
 0x110   : > { %v1008_v54 = vpop.eup %1007  ;;  %v739_v26 = vmul.f32 %v1006_v53, %v1706_v22 }
 0x111   : > { %v1010_v34 = vpop.eup %1009  ;;  %v740_v56 = vmul.f32 %v1008_v54, %v1710_v32 }
 0x112   : > { %v1012_v30 = vpop.eup %1011  ;;  %771 = vst.msk [vmem:[%s1614_s24 + $0xd0] sm:$0xff] %vm203_vm0, %v739_v26  ;;  %v741_v47 = vmul.f32 %v1010_v34, %v1714_v31 }
 0x113   : > { %v1014_v3 = vpop.eup %1013  ;;  %772 = vst.msk [vmem:[%s1614_s24 + $0xd8] sm:$0xff] %vm203_vm0, %v740_v56  ;;  %v742_v57 = vmul.f32 %v1012_v30, %v1717_v0 }
 0x114   : > { %v1016_v52 = vpop.eup %1015  ;;  %773 = vst.msk [vmem:[%s1614_s24 + $0xe0] sm:$0xff] %vm203_vm0, %v741_v47  ;;  %v743_v14 = vmul.f32 %v1014_v3, %v1721_v33 }
 0x115   : > { %774 = vst.msk [vmem:[%s1614_s24 + $0xe8] sm:$0xff] %vm203_vm0, %v742_v57  ;;  %v744_v22 = vmul.f32 %v1016_v52, %v1725_v36 }
 0x116   : > { %775 = vst.msk [vmem:[%s1614_s24 + $0xf0] sm:$0xff] %vm203_vm0, %v743_v14 }
 0x117   : > { %776 = vst.msk [vmem:[%s1614_s24 + $0xf8] sm:$0xff] %vm203_vm0, %v744_v22 }
 0x118 PF: > { %s13_s12 = sadd.s32 1, %s1023_s12  }
 0x119   : > { %p10_p4 = scmp.ge.s32.totalorder %s13_s12, 4  }
 0x11b   :  { %12 = sbr.rel (!%p10_p4) target bundleno = 1 (0x1), region = 62 }

// kernel: vqvae_forward.53
= control target key start
LH: loop header
LB: loop body
LE: loop exit
PB: predicated region body
PF: predicated region fallthrough
CT: control target
= control target key end

     0   :  { %s1151_s12 = smov 0   ;;  %s1153_s13 = smov 0   ;;  %s1408_s0 = inlined_call_operand.vmem [shape: bf16[512,27], index: 0, kind: input, shape index: {}]   ;;  %s1409_s1 = inlined_call_operand.vmem [shape: bf16[27,32], index: 1, kind: input, shape index: {}]   ;;  %s1410_s2 = inlined_call_operand.vmem [shape: f32[1,32], index: 2, kind: input, shape index: {}]   ;;  %s1411_s3 = inlined_call_operand.vmem [shape: f32[512,32], index: 3, kind: output, shape index: {}]  }
   0x1   :  { %s1155_s14 = smov 0  }
   0x2 LB: > { %s32_s15 = sadd.s32 1, %s1123_s13  ;;  %p961_p0 = scmp.ge.s32.totalorder %s1127_s14, 1  ;;  %s1127_s14 = sphi %s1155_s14, %s13_s14   ;;  %s1123_s13 = sphi %s1153_s13, %s1414_s13   ;;  %s1119_s12 = sphi %s1151_s12, %s1413_s12  }
   0x3   : > { %p34_p1 = scmp.ge.s32.totalorder %s32_s15, 2  ;;  %p188_p2 = scmp.lt.s32.totalorder %s1127_s14, 3 }
   0x5   : > { %s1416_s15 = smov (%p34_p1, %s32_s15), 0  ;;  %p189_p3 = pnand %p961_p0, %p188_p2 }
   0x6   : > { %v1087_v0 = vld [vmem:[%s1409_s1] sm:$0xff] (!%p189_p3)   ;;  %vm505_vm0 = vcmask (!%p189_p3), 1044480   ;;  %v1088_v1 = vld [vmem:[%s1409_s1 + $0x8] sm:$0x3f] (!%p189_p3)   ;;  %vm506_vm1 = vcmask (!%p189_p3), 1045504   ;;  %s962_s20 = sshll.u32 (!%p189_p3), %s1119_s12, 5 }
   0x7   : > { %192 = sbr.rel (%p189_p3) target bundleno = 274 (0x112), region = 32  ;;  %1021 = vmatprep.subr.bf16.mxu0 (!%p189_p3), %v1087_v0  ;;  %1057 = vmatprep.subr.bf16.mxu1 (!%p189_p3), %v1087_v0  ;;  %vm264_vm2 = vcmask (!%p189_p3), 261120   ;;  %v1129_v2 = vmov (!%p189_p3), 65535   ;;  %p1180_p4 = scmp.lt.s32.totalorder (!%p189_p3), %s962_s20, 63  ;;  %v1130_v5 = vmov (!%p189_p3), 0.0   ;;  %vm456_vm3 = vcmask (!%p189_p3), 220160  }
   0x8   : > { %1022 = vmatpush3.bf16.msra.mxu0 (!%p189_p3), %v1087_v0  ;;  %1059 = vmatpush3.bf16.msra.mxu1 (!%p189_p3), %v1087_v0  ;;  %v507_v3 = vsel (!%p189_p3), %vm505_vm0, 4294967295, %v1129_v2  ;;  %267 = vst.msk [vmem:[#allocation2 + $0x10] sm:$0xff] (!%p189_p3), %vm264_vm2, %v1130_v5  ;;  %265 = vst.msk [vmem:[#allocation2] sm:$0xff] (!%p189_p3), %vm264_vm2, %v1130_v5  ;;  %v1272_v50 = vld [vmem:[%s1410_s2] ss:$0 sm:$0xff] (!%p189_p3) }
   0x9   : > { %v508_v4 = vsel (!%p189_p3), %vm506_vm1, %v507_v3, 0  ;;  %266 = vst.msk [vmem:[#allocation2 + $0x8] sm:$0xff] (!%p189_p3), %vm264_vm2, %v1130_v5  ;;  %268 = vst.msk [vmem:[#allocation2 + $0x18] sm:$0xff] (!%p189_p3), %vm264_vm2, %v1130_v5 }
   0xa   : > { %269 = vst.msk [vmem:[#allocation2 + $0x20] sm:$0xff] (!%p189_p3), %vm264_vm2, %v1130_v5  ;;  %270 = vst.msk [vmem:[#allocation2 + $0x28] sm:$0xff] (!%p189_p3), %vm264_vm2, %v1130_v5  ;;  %v510_v6 = vand.u32 (!%p189_p3), %v1088_v1, %v508_v4 }
   0xb   : > { %271 = vst.msk [vmem:[#allocation2 + $0x30] sm:$0xff] (!%p189_p3), %vm264_vm2, %v1130_v5  ;;  %272 = vst.msk [vmem:[#allocation2 + $0x38] sm:$0xff] (!%p189_p3), %vm264_vm2, %v1130_v5 }
   0xc   : > { %273 = vst.msk [vmem:[#allocation2 + $0x40] sm:$0xff] (!%p189_p3), %vm264_vm2, %v1130_v5  ;;  %274 = vst.msk [vmem:[#allocation2 + $0x48] sm:$0xff] (!%p189_p3), %vm264_vm2, %v1130_v5  ;;  %1023 = vmatprep.subr.bf16.mxu0 (!%p189_p3), %v510_v6  ;;  %1058 = vmatprep.subr.bf16.mxu1 (!%p189_p3), %v510_v6 }
   0xd   : > { %275 = vst.msk [vmem:[#allocation2 + $0x50] sm:$0xff] (!%p189_p3), %vm264_vm2, %v1130_v5  ;;  %276 = vst.msk [vmem:[#allocation2 + $0x58] sm:$0xff] (!%p189_p3), %vm264_vm2, %v1130_v5  ;;  %1024 = vmatpush3.bf16.msra.mxu0 (!%p189_p3), %v510_v6  ;;  %1060 = vmatpush3.bf16.msra.mxu1 (!%p189_p3), %v510_v6 }
   0xe   : > { %277 = vst.msk [vmem:[#allocation2 + $0x60] sm:$0xff] %vm264_vm2, %v1130_v5  ;;  %278 = vst.msk [vmem:[#allocation2 + $0x68] sm:$0xff] %vm264_vm2, %v1130_v5  ;;  %s1418_s20 = smov (!%p1180_p4, %s962_s20), 63 }
   0xf   : > { %279 = vst.msk [vmem:[#allocation2 + $0x70] sm:$0xff] %vm264_vm2, %v1130_v5  ;;  %280 = vst.msk [vmem:[#allocation2 + $0x78] sm:$0xff] %vm264_vm2, %v1130_v5  ;;  %s963_s22 = sshll.u32 %s1418_s20, 2  ;;  %v299_v23 = vld [vmem:[#allocation2 + $0x10] sm:$0xff]  ;;  %v297_v25 = vld [vmem:[#allocation2] sm:$0xff]  ;;  %s965_s26 = sshll.u32 %s1418_s20, 3 }
  0x10   : > { %281 = vst.msk [vmem:[#allocation2 + $0x80] sm:$0xff] %vm264_vm2, %v1130_v5  ;;  %282 = vst.msk [vmem:[#allocation2 + $0x88] sm:$0xff] %vm264_vm2, %v1130_v5  ;;  %s1226_s25 = scalar_lea.vmem %s1408_s0, %s963_s22  ;;  %v300_v28 = vld [vmem:[#allocation2 + $0x18] sm:$0xff]  ;;  %v298_v33 = vld [vmem:[#allocation2 + $0x8] sm:$0xff]  ;;  %s1277_s4 = scalar_lea.vmem %s1411_s3, %s965_s26 }
  0x11   : > { %283 = vst.msk [vmem:[#allocation2 + $0x90] sm:$0xff] %vm264_vm2, %v1130_v5  ;;  %284 = vst.msk [vmem:[#allocation2 + $0x98] sm:$0xff] %vm264_vm2, %v1130_v5  ;;  %v1089_v7 = vld [vmem:[%s1226_s25] sm:$0xff]   ;;  %v1091_v9 = vld [vmem:[%s1226_s25 + $0x8] sm:$0xff]  }
  0x12   : > { %285 = vst.msk [vmem:[#allocation2 + $0xa0] sm:$0xff] %vm264_vm2, %v1130_v5  ;;  %286 = vst.msk [vmem:[#allocation2 + $0xa8] sm:$0xff] %vm264_vm2, %v1130_v5  ;;  %v1090_v8 = vld [vmem:[%s1226_s25 + $0x40] sm:$0xff]   ;;  %1025 = vmatprep.mubr.msk.bf16.mxu0 %vm456_vm3, %v1089_v7  ;;  %v1092_v10 = vld [vmem:[%s1226_s25 + $0x48] sm:$0xff]  }
  0x13   : > { %287 = vst.msk [vmem:[#allocation2 + $0xb0] sm:$0xff] %vm264_vm2, %v1130_v5  ;;  %288 = vst.msk [vmem:[#allocation2 + $0xb8] sm:$0xff] %vm264_vm2, %v1130_v5  ;;  %1041 = vmatprep.mubr.msk.bf16.mxu1 %vm456_vm3, %v1090_v8  ;;  %1026 = vmatmul.mubr.msk.bf16.vlgmr.msra.gmra.mrb[0].mxu0 %vm456_vm3, %v1091_v9  ;;  %v1093_v11 = vld [vmem:[%s1226_s25 + $0x10] sm:$0xff]   ;;  %v1095_v13 = vld [vmem:[%s1226_s25 + $0x18] sm:$0xff]  }
  0x14   : > { %289 = vst.msk [vmem:[#allocation2 + $0xc0] sm:$0xff] %vm264_vm2, %v1130_v5  ;;  %290 = vst.msk [vmem:[#allocation2 + $0xc8] sm:$0xff] %vm264_vm2, %v1130_v5  ;;  %1042 = vmatmul.mubr.msk.bf16.vlgmr.msra.gmra.mrb[0].mxu1 %vm456_vm3, %v1092_v10  ;;  %v1094_v12 = vld [vmem:[%s1226_s25 + $0x50] sm:$0xff]   ;;  %1029 = vmatprep.mubr.msk.bf16.mxu0 %vm456_vm3, %v1093_v11  ;;  %v1096_v14 = vld [vmem:[%s1226_s25 + $0x58] sm:$0xff]  }
  0x15   : > { %291 = vst.msk [vmem:[#allocation2 + $0xd0] sm:$0xff] %vm264_vm2, %v1130_v5  ;;  %292 = vst.msk [vmem:[#allocation2 + $0xd8] sm:$0xff] %vm264_vm2, %v1130_v5  ;;  %1045 = vmatprep.mubr.msk.bf16.mxu1 %vm456_vm3, %v1094_v12  ;;  %v1097_v15 = vld [vmem:[%s1226_s25 + $0x20] sm:$0xff]   ;;  %v1099_v17 = vld [vmem:[%s1226_s25 + $0x28] sm:$0xff]  }
  0x16   : > { %293 = vst.msk [vmem:[#allocation2 + $0xe0] sm:$0xff] %vm264_vm2, %v1130_v5  ;;  %294 = vst.msk [vmem:[#allocation2 + $0xe8] sm:$0xff] %vm264_vm2, %v1130_v5  ;;  %v1098_v16 = vld [vmem:[%s1226_s25 + $0x60] sm:$0xff]   ;;  %v1100_v18 = vld [vmem:[%s1226_s25 + $0x68] sm:$0xff]  }
  0x17   : > { %295 = vst.msk [vmem:[#allocation2 + $0xf0] sm:$0xff] %vm264_vm2, %v1130_v5  ;;  %296 = vst.msk [vmem:[#allocation2 + $0xf8] sm:$0xff] %vm264_vm2, %v1130_v5  ;;  %v1101_v19 = vld [vmem:[%s1226_s25 + $0x30] sm:$0xff]   ;;  %v1103_v21 = vld [vmem:[%s1226_s25 + $0x38] sm:$0xff]  }
  0x18   : > { %v1102_v20 = vld [vmem:[%s1226_s25 + $0x70] sm:$0xff]   ;;  %v1104_v22 = vld [vmem:[%s1226_s25 + $0x78] sm:$0xff]   ;;  %v313_v27 = vld [vmem:[#allocation2 + $0x80] sm:$0xff] }
  0x19   : > { %v315_v24 = vld [vmem:[#allocation2 + $0x90] sm:$0xff]  ;;  %v316_v32 = vld [vmem:[#allocation2 + $0x98] sm:$0xff]  ;;  %v314_v38 = vld [vmem:[#allocation2 + $0x88] sm:$0xff] }
  0x1a   : > { %v303_v47 = vld [vmem:[#allocation2 + $0x30] sm:$0xff]  ;;  %v301_v49 = vld [vmem:[#allocation2 + $0x20] sm:$0xff]  ;;  %v304_v53 = vld [vmem:[#allocation2 + $0x38] sm:$0xff] }
  0x1b   : > { %1030 = vmatmul.mubr.msk.bf16.gmra.mrb[4].mxu0 %vm456_vm3, %v1095_v13  ;;  %v319_v48 = vld [vmem:[#allocation2 + $0xb0] sm:$0xff]  ;;  %v317_v52 = vld [vmem:[#allocation2 + $0xa0] sm:$0xff]  ;;  %v320_v57 = vld [vmem:[#allocation2 + $0xb8] sm:$0xff] }
  0x1c   : > { %1046 = vmatmul.mubr.msk.bf16.gmra.mrb[4].mxu1 %vm456_vm3, %v1096_v14  ;;  %1033 = vmatprep.mubr.msk.bf16.mxu0 %vm456_vm3, %v1097_v15  ;;  %v302_v58 = vld [vmem:[#allocation2 + $0x28] sm:$0xff] }
  0x1d   : > { %1049 = vmatprep.mubr.msk.bf16.mxu1 %vm456_vm3, %v1098_v16  ;;  %v318_v0 = vld [vmem:[#allocation2 + $0xa8] sm:$0xff] }
  0x23   : > { %1034 = vmatmul.mubr.msk.bf16.gmra.mrb[8].mxu0 %vm456_vm3, %v1099_v17 }
  0x24   : > { %1050 = vmatmul.mubr.msk.bf16.gmra.mrb[8].mxu1 %vm456_vm3, %v1100_v18  ;;  %1037 = vmatprep.mubr.msk.bf16.mxu0 %vm456_vm3, %v1101_v19 }
  0x25   : > { %1053 = vmatprep.mubr.msk.bf16.mxu1 %vm456_vm3, %v1102_v20 }
  0x2b   : > { %1038 = vmatmul.mubr.msk.bf16.gmra.mrb[12].mxu0 %vm456_vm3, %v1103_v21 }
  0x2c   : > { %1054 = vmatmul.mubr.msk.bf16.gmra.mrb[12].mxu1 %vm456_vm3, %v1104_v22 }
  0xe6   : > { %v1027_v26 = vpop.f32.mrb[0].mxu0 }
  0xe7   : > { %v675_v29 = vadd.f32 %v1027_v26, %v299_v23  ;;  %v1043_v30 = vpop.f32.mrb[0].mxu1  ;;  %v546_v31 = vpop.f32.mrb[1].mxu0  ;;  %v307_v23 = vld [vmem:[#allocation2 + $0x50] sm:$0xff]  ;;  %v305_v26 = vld [vmem:[#allocation2 + $0x40] sm:$0xff] }
  0xe8   : > { %v691_v34 = vadd.f32 %v1043_v30, %v315_v24  ;;  %v673_v35 = vadd.f32 %v546_v31, %v297_v25  ;;  %v610_v36 = vpop.f32.mrb[1].mxu1  ;;  %v1028_v37 = vpop.f32.mrb[2].mxu0  ;;  %v323_v25 = vld [vmem:[#allocation2 + $0xd0] sm:$0xff] }
  0xe9   : > { %708 = vst.msk [vmem:[#allocation2 + $0x10] sm:$0xff] %vm264_vm2, %v675_v29  ;;  %v689_v39 = vadd.f32 %v610_v36, %v313_v27  ;;  %v676_v40 = vadd.f32 %v1028_v37, %v300_v28  ;;  %v1044_v41 = vpop.f32.mrb[2].mxu1  ;;  %v549_v42 = vpop.f32.mrb[3].mxu0  ;;  %v321_v28 = vld [vmem:[#allocation2 + $0xc0] sm:$0xff]  ;;  %v308_v29 = vld [vmem:[#allocation2 + $0x58] sm:$0xff] }
  0xea   : > { %724 = vst.msk [vmem:[#allocation2 + $0x90] sm:$0xff] %vm264_vm2, %v691_v34  ;;  %706 = vst.msk [vmem:[#allocation2] sm:$0xff] %vm264_vm2, %v673_v35  ;;  %v692_v43 = vadd.f32 %v1044_v41, %v316_v32  ;;  %v674_v44 = vadd.f32 %v549_v42, %v298_v33  ;;  %v613_v45 = vpop.f32.mrb[3].mxu1  ;;  %v324_v33 = vld [vmem:[#allocation2 + $0xd8] sm:$0xff]  ;;  %v306_v34 = vld [vmem:[#allocation2 + $0x48] sm:$0xff] }
  0xeb   : > { %722 = vst.msk [vmem:[#allocation2 + $0x80] sm:$0xff] %vm264_vm2, %v689_v39  ;;  %709 = vst.msk [vmem:[#allocation2 + $0x18] sm:$0xff] %vm264_vm2, %v676_v40  ;;  %v690_v46 = vadd.f32 %v613_v45, %v314_v38  ;;  %v322_v40 = vld [vmem:[#allocation2 + $0xc8] sm:$0xff] }
  0xec   : > { %725 = vst.msk [vmem:[#allocation2 + $0x98] sm:$0xff] %vm264_vm2, %v692_v43  ;;  %707 = vst.msk [vmem:[#allocation2 + $0x8] sm:$0xff] %vm264_vm2, %v674_v44 }
  0xed   : > { %723 = vst.msk [vmem:[#allocation2 + $0x88] sm:$0xff] %vm264_vm2, %v690_v46 }
  0xee   : > { %v1031_v51 = vpop.f32.mrb[4].mxu0 }
  0xef   : > { %v679_v54 = vadd.f32 %v1031_v51, %v303_v47  ;;  %v1047_v55 = vpop.f32.mrb[4].mxu1  ;;  %v562_v56 = vpop.f32.mrb[5].mxu0 }
  0xf0   : > { %v743_v59 = vld [vmem:[#allocation2 + $0x10] sm:$0xff]  ;;  %v695_v60 = vadd.f32 %v1047_v55, %v319_v48  ;;  %v677_v61 = vadd.f32 %v562_v56, %v301_v49  ;;  %v626_v62 = vpop.f32.mrb[5].mxu1  ;;  %v1032_v63 = vpop.f32.mrb[6].mxu0 }
  0xf1   : > { %v782_v1 = vadd.f32 %v1272_v50, %v743_v59  ;;  %v759_v2 = vld [vmem:[#allocation2 + $0x90] sm:$0xff]  ;;  %v741_v3 = vld [vmem:[#allocation2] sm:$0xff]  ;;  %712 = vst.msk [vmem:[#allocation2 + $0x30] sm:$0xff] %vm264_vm2, %v679_v54  ;;  %v693_v4 = vadd.f32 %v626_v62, %v317_v52  ;;  %v680_v5 = vadd.f32 %v1032_v63, %v304_v53  ;;  %v1048_v6 = vpop.f32.mrb[6].mxu1  ;;  %v565_v7 = vpop.f32.mrb[7].mxu0 }
  0xf2   : > { %v798_v8 = vadd.f32 %v1272_v50, %v759_v2  ;;  %v780_v9 = vadd.f32 %v1272_v50, %v741_v3  ;;  %v757_v10 = vld [vmem:[#allocation2 + $0x80] sm:$0xff]  ;;  %v744_v11 = vld [vmem:[#allocation2 + $0x18] sm:$0xff]  ;;  %728 = vst.msk [vmem:[#allocation2 + $0xb0] sm:$0xff] %vm264_vm2, %v695_v60  ;;  %710 = vst.msk [vmem:[#allocation2 + $0x20] sm:$0xff] %vm264_vm2, %v677_v61  ;;  %v696_v12 = vadd.f32 %v1048_v6, %v320_v57  ;;  %v629_v14 = vpop.f32.mrb[7].mxu1 }
  0xf3   : > { %v678_v13 = vadd.f32 %v565_v7, %v302_v58  ;;  %814 = vst.msk [vmem:[%s1277_s4 + $0x10] sm:$0xff] %vm264_vm2, %v782_v1  ;;  %v796_v15 = vadd.f32 %v1272_v50, %v757_v10  ;;  %v783_v16 = vadd.f32 %v1272_v50, %v744_v11  ;;  %v760_v17 = vld [vmem:[#allocation2 + $0x98] sm:$0xff]  ;;  %v742_v18 = vld [vmem:[#allocation2 + $0x8] sm:$0xff]  ;;  %726 = vst.msk [vmem:[#allocation2 + $0xa0] sm:$0xff] %vm264_vm2, %v693_v4 }
  0xf4   : > { %713 = vst.msk [vmem:[#allocation2 + $0x38] sm:$0xff] %vm264_vm2, %v680_v5  ;;  %v694_v19 = vadd.f32 %v629_v14, %v318_v0  ;;  %830 = vst.msk [vmem:[%s1277_s4 + $0x90] sm:$0xff] %vm264_vm2, %v798_v8  ;;  %v799_v20 = vadd.f32 %v1272_v50, %v760_v17  ;;  %v781_v21 = vadd.f32 %v1272_v50, %v742_v18  ;;  %v758_v22 = vld [vmem:[#allocation2 + $0x88] sm:$0xff]  ;;  %v311_v0 = vld [vmem:[#allocation2 + $0x70] sm:$0xff] }
  0xf5   : > { %812 = vst.msk [vmem:[%s1277_s4] sm:$0xff] %vm264_vm2, %v780_v9  ;;  %729 = vst.msk [vmem:[#allocation2 + $0xb8] sm:$0xff] %vm264_vm2, %v696_v12  ;;  %v797_v24 = vadd.f32 %v1272_v50, %v758_v22  ;;  %v327_v2 = vld [vmem:[#allocation2 + $0xf0] sm:$0xff]  ;;  %v309_v3 = vld [vmem:[#allocation2 + $0x60] sm:$0xff] }
  0xf6   : > { %711 = vst.msk [vmem:[#allocation2 + $0x28] sm:$0xff] %vm264_vm2, %v678_v13  ;;  %828 = vst.msk [vmem:[%s1277_s4 + $0x80] sm:$0xff] %vm264_vm2, %v796_v15  ;;  %v1035_v27 = vpop.f32.mrb[8].mxu0  ;;  %v325_v5 = vld [vmem:[#allocation2 + $0xe0] sm:$0xff]  ;;  %v312_v6 = vld [vmem:[#allocation2 + $0x78] sm:$0xff] }
  0xf7   : > { %815 = vst.msk [vmem:[%s1277_s4 + $0x18] sm:$0xff] %vm264_vm2, %v783_v16  ;;  %727 = vst.msk [vmem:[#allocation2 + $0xa8] sm:$0xff] %vm264_vm2, %v694_v19  ;;  %v683_v30 = vadd.f32 %v1035_v27, %v307_v23  ;;  %v1051_v31 = vpop.f32.mrb[8].mxu1  ;;  %v578_v32 = vpop.f32.mrb[9].mxu0  ;;  %v328_v10 = vld [vmem:[#allocation2 + $0xf8] sm:$0xff]  ;;  %v310_v11 = vld [vmem:[#allocation2 + $0x68] sm:$0xff] }
  0xf8   : > { %831 = vst.msk [vmem:[%s1277_s4 + $0x98] sm:$0xff] %vm264_vm2, %v799_v20  ;;  %813 = vst.msk [vmem:[%s1277_s4 + $0x8] sm:$0xff] %vm264_vm2, %v781_v21  ;;  %v747_v35 = vld [vmem:[#allocation2 + $0x30] sm:$0xff]  ;;  %v699_v36 = vadd.f32 %v1051_v31, %v323_v25  ;;  %v681_v37 = vadd.f32 %v578_v32, %v305_v26  ;;  %v642_v38 = vpop.f32.mrb[9].mxu1  ;;  %v1036_v39 = vpop.f32.mrb[10].mxu0  ;;  %v326_v17 = vld [vmem:[#allocation2 + $0xe8] sm:$0xff] }
  0xf9   : > { %829 = vst.msk [vmem:[%s1277_s4 + $0x88] sm:$0xff] %vm264_vm2, %v797_v24  ;;  %v786_v41 = vadd.f32 %v1272_v50, %v747_v35  ;;  %v763_v42 = vld [vmem:[#allocation2 + $0xb0] sm:$0xff]  ;;  %v745_v43 = vld [vmem:[#allocation2 + $0x20] sm:$0xff]  ;;  %716 = vst.msk [vmem:[#allocation2 + $0x50] sm:$0xff] %vm264_vm2, %v683_v30  ;;  %v697_v44 = vadd.f32 %v642_v38, %v321_v28  ;;  %v684_v45 = vadd.f32 %v1036_v39, %v308_v29  ;;  %v1052_v46 = vpop.f32.mrb[10].mxu1  ;;  %v581_v47 = vpop.f32.mrb[11].mxu0 }
  0xfa   : > { %v802_v48 = vadd.f32 %v1272_v50, %v763_v42  ;;  %v784_v49 = vadd.f32 %v1272_v50, %v745_v43  ;;  %v761_v51 = vld [vmem:[#allocation2 + $0xa0] sm:$0xff]  ;;  %732 = vst.msk [vmem:[#allocation2 + $0xd0] sm:$0xff] %vm264_vm2, %v699_v36  ;;  %714 = vst.msk [vmem:[#allocation2 + $0x40] sm:$0xff] %vm264_vm2, %v681_v37  ;;  %v700_v53 = vadd.f32 %v1052_v46, %v324_v33  ;;  %v645_v55 = vpop.f32.mrb[11].mxu1 }
  0xfb   : > { %v748_v52 = vld [vmem:[#allocation2 + $0x38] sm:$0xff]  ;;  %v682_v54 = vadd.f32 %v581_v47, %v306_v34  ;;  %818 = vst.msk [vmem:[%s1277_s4 + $0x30] sm:$0xff] %vm264_vm2, %v786_v41  ;;  %v800_v56 = vadd.f32 %v1272_v50, %v761_v51  ;;  %730 = vst.msk [vmem:[#allocation2 + $0xc0] sm:$0xff] %vm264_vm2, %v697_v44  ;;  %v698_v60 = vadd.f32 %v645_v55, %v322_v40 }
  0xfc   : > { %v787_v57 = vadd.f32 %v1272_v50, %v748_v52  ;;  %v764_v58 = vld [vmem:[#allocation2 + $0xb8] sm:$0xff]  ;;  %717 = vst.msk [vmem:[#allocation2 + $0x58] sm:$0xff] %vm264_vm2, %v684_v45  ;;  %834 = vst.msk [vmem:[%s1277_s4 + $0xb0] sm:$0xff] %vm264_vm2, %v802_v48 }
  0xfd   : > { %v746_v59 = vld [vmem:[#allocation2 + $0x28] sm:$0xff]  ;;  %816 = vst.msk [vmem:[%s1277_s4 + $0x20] sm:$0xff] %vm264_vm2, %v784_v49  ;;  %v803_v61 = vadd.f32 %v1272_v50, %v764_v58  ;;  %733 = vst.msk [vmem:[#allocation2 + $0xd8] sm:$0xff] %vm264_vm2, %v700_v53 }
  0xfe   : > { %v785_v62 = vadd.f32 %v1272_v50, %v746_v59  ;;  %v762_v63 = vld [vmem:[#allocation2 + $0xa8] sm:$0xff]  ;;  %715 = vst.msk [vmem:[#allocation2 + $0x48] sm:$0xff] %vm264_vm2, %v682_v54  ;;  %832 = vst.msk [vmem:[%s1277_s4 + $0xa0] sm:$0xff] %vm264_vm2, %v800_v56  ;;  %v1039_v4 = vpop.f32.mrb[12].mxu0 }
  0xff   : > { %819 = vst.msk [vmem:[%s1277_s4 + $0x38] sm:$0xff] %vm264_vm2, %v787_v57  ;;  %v801_v1 = vadd.f32 %v1272_v50, %v762_v63  ;;  %731 = vst.msk [vmem:[#allocation2 + $0xc8] sm:$0xff] %vm264_vm2, %v698_v60  ;;  %v687_v7 = vadd.f32 %v1039_v4, %v311_v0  ;;  %v1055_v8 = vpop.f32.mrb[12].mxu1  ;;  %v594_v9 = vpop.f32.mrb[13].mxu0 }
 0x100   : > { %835 = vst.msk [vmem:[%s1277_s4 + $0xb8] sm:$0xff] %vm264_vm2, %v803_v61  ;;  %817 = vst.msk [vmem:[%s1277_s4 + $0x28] sm:$0xff] %vm264_vm2, %v785_v62  ;;  %v751_v12 = vld [vmem:[#allocation2 + $0x50] sm:$0xff]  ;;  %v703_v13 = vadd.f32 %v1055_v8, %v327_v2  ;;  %v685_v14 = vadd.f32 %v594_v9, %v309_v3  ;;  %v658_v15 = vpop.f32.mrb[13].mxu1  ;;  %v1040_v16 = vpop.f32.mrb[14].mxu0 }
 0x101   : > { %833 = vst.msk [vmem:[%s1277_s4 + $0xa8] sm:$0xff] %vm264_vm2, %v801_v1  ;;  %v790_v18 = vadd.f32 %v1272_v50, %v751_v12  ;;  %v767_v19 = vld [vmem:[#allocation2 + $0xd0] sm:$0xff]  ;;  %v749_v20 = vld [vmem:[#allocation2 + $0x40] sm:$0xff]  ;;  %720 = vst.msk [vmem:[#allocation2 + $0x70] sm:$0xff] %vm264_vm2, %v687_v7  ;;  %v701_v21 = vadd.f32 %v658_v15, %v325_v5  ;;  %v688_v22 = vadd.f32 %v1040_v16, %v312_v6  ;;  %v1056_v23 = vpop.f32.mrb[14].mxu1  ;;  %v597_v24 = vpop.f32.mrb[15].mxu0 }
 0x102   : > { %v806_v25 = vadd.f32 %v1272_v50, %v767_v19  ;;  %v788_v26 = vadd.f32 %v1272_v50, %v749_v20  ;;  %v765_v27 = vld [vmem:[#allocation2 + $0xc0] sm:$0xff]  ;;  %736 = vst.msk [vmem:[#allocation2 + $0xf0] sm:$0xff] %vm264_vm2, %v703_v13  ;;  %718 = vst.msk [vmem:[#allocation2 + $0x60] sm:$0xff] %vm264_vm2, %v685_v14  ;;  %v704_v29 = vadd.f32 %v1056_v23, %v328_v10  ;;  %v661_v31 = vpop.f32.mrb[15].mxu1 }
 0x103   : > { %v752_v28 = vld [vmem:[#allocation2 + $0x58] sm:$0xff]  ;;  %v686_v30 = vadd.f32 %v597_v24, %v310_v11  ;;  %822 = vst.msk [vmem:[%s1277_s4 + $0x50] sm:$0xff] %vm264_vm2, %v790_v18  ;;  %v804_v32 = vadd.f32 %v1272_v50, %v765_v27  ;;  %734 = vst.msk [vmem:[#allocation2 + $0xe0] sm:$0xff] %vm264_vm2, %v701_v21  ;;  %v702_v36 = vadd.f32 %v661_v31, %v326_v17 }
 0x104   : > { %v791_v33 = vadd.f32 %v1272_v50, %v752_v28  ;;  %v768_v34 = vld [vmem:[#allocation2 + $0xd8] sm:$0xff]  ;;  %721 = vst.msk [vmem:[#allocation2 + $0x78] sm:$0xff] %vm264_vm2, %v688_v22  ;;  %838 = vst.msk [vmem:[%s1277_s4 + $0xd0] sm:$0xff] %vm264_vm2, %v806_v25 }
 0x105   : > { %v750_v35 = vld [vmem:[#allocation2 + $0x48] sm:$0xff]  ;;  %820 = vst.msk [vmem:[%s1277_s4 + $0x40] sm:$0xff] %vm264_vm2, %v788_v26  ;;  %v807_v37 = vadd.f32 %v1272_v50, %v768_v34  ;;  %737 = vst.msk [vmem:[#allocation2 + $0xf8] sm:$0xff] %vm264_vm2, %v704_v29 }
 0x106   : > { %v789_v38 = vadd.f32 %v1272_v50, %v750_v35  ;;  %v766_v39 = vld [vmem:[#allocation2 + $0xc8] sm:$0xff]  ;;  %719 = vst.msk [vmem:[#allocation2 + $0x68] sm:$0xff] %vm264_vm2, %v686_v30  ;;  %836 = vst.msk [vmem:[%s1277_s4 + $0xc0] sm:$0xff] %vm264_vm2, %v804_v32 }
 0x107   : > { %823 = vst.msk [vmem:[%s1277_s4 + $0x58] sm:$0xff] %vm264_vm2, %v791_v33  ;;  %v805_v40 = vadd.f32 %v1272_v50, %v766_v39  ;;  %735 = vst.msk [vmem:[#allocation2 + $0xe8] sm:$0xff] %vm264_vm2, %v702_v36 }
 0x108   : > { %839 = vst.msk [vmem:[%s1277_s4 + $0xd8] sm:$0xff] %vm264_vm2, %v807_v37  ;;  %821 = vst.msk [vmem:[%s1277_s4 + $0x48] sm:$0xff] %vm264_vm2, %v789_v38  ;;  %v755_v41 = vld [vmem:[#allocation2 + $0x70] sm:$0xff] }
 0x109   : > { %837 = vst.msk [vmem:[%s1277_s4 + $0xc8] sm:$0xff] %vm264_vm2, %v805_v40  ;;  %v794_v42 = vadd.f32 %v1272_v50, %v755_v41  ;;  %v771_v43 = vld [vmem:[#allocation2 + $0xf0] sm:$0xff]  ;;  %v753_v44 = vld [vmem:[#allocation2 + $0x60] sm:$0xff] }
 0x10a   : > { %v810_v45 = vadd.f32 %v1272_v50, %v771_v43  ;;  %v792_v46 = vadd.f32 %v1272_v50, %v753_v44  ;;  %v769_v47 = vld [vmem:[#allocation2 + $0xe0] sm:$0xff] }
 0x10b   : > { %v756_v48 = vld [vmem:[#allocation2 + $0x78] sm:$0xff]  ;;  %826 = vst.msk [vmem:[%s1277_s4 + $0x70] sm:$0xff] %vm264_vm2, %v794_v42  ;;  %v808_v49 = vadd.f32 %v1272_v50, %v769_v47 }
 0x10c   : > { %v795_v51 = vadd.f32 %v1272_v50, %v756_v48  ;;  %v772_v52 = vld [vmem:[#allocation2 + $0xf8] sm:$0xff]  ;;  %842 = vst.msk [vmem:[%s1277_s4 + $0xf0] sm:$0xff] %vm264_vm2, %v810_v45  ;;  %824 = vst.msk [vmem:[%s1277_s4 + $0x60] sm:$0xff] %vm264_vm2, %v792_v46 }
 0x10d   : > { %v754_v53 = vld [vmem:[#allocation2 + $0x68] sm:$0xff]  ;;  %v811_v54 = vadd.f32 %v1272_v50, %v772_v52  ;;  %840 = vst.msk [vmem:[%s1277_s4 + $0xe0] sm:$0xff] %vm264_vm2, %v808_v49 }
 0x10e   : > { %v793_v55 = vadd.f32 %v1272_v50, %v754_v53  ;;  %v770_v56 = vld [vmem:[#allocation2 + $0xe8] sm:$0xff]  ;;  %827 = vst.msk [vmem:[%s1277_s4 + $0x78] sm:$0xff] %vm264_vm2, %v795_v51 }
 0x10f   : > { %v809_v57 = vadd.f32 %v1272_v50, %v770_v56  ;;  %843 = vst.msk [vmem:[%s1277_s4 + $0xf8] sm:$0xff] %vm264_vm2, %v811_v54 }
 0x110   : > { %825 = vst.msk [vmem:[%s1277_s4 + $0x68] sm:$0xff] %vm264_vm2, %v793_v55 }
 0x111   : > { %841 = vst.msk [vmem:[%s1277_s4 + $0xe8] sm:$0xff] %vm264_vm2, %v809_v57 }
 0x112 PF: > { %s13_s14 = sadd.s32 1, %s1127_s14   ;;  %s1413_s12 = smov %s1123_s13 }
 0x113   : > { %p10_p5 = scmp.ge.s32.totalorder %s13_s14, 4   ;;  %s1414_s13 = smov %s1416_s15 }
 0x115   :  { %12 = sbr.rel (!%p10_p5) target bundleno = 2 (0x2), region = 76 }

// kernel: vqvae_forward.55
= control target key start
LH: loop header
LB: loop body
LE: loop exit
PB: predicated region body
PF: predicated region fallthrough
CT: control target
= control target key end

     0   :  { %s1871_s12 = smov 0   ;;  %s1873_s13 = smov 0   ;;  %s2234_s0 = inlined_call_operand.vmem [shape: bf16[512,288], index: 0, kind: input, shape index: {}]   ;;  %s2235_s1 = inlined_call_operand.vmem [shape: bf16[288,32], index: 1, kind: input, shape index: {}]   ;;  %s2236_s2 = inlined_call_operand.vmem [shape: f32[1,32], index: 2, kind: input, shape index: {}]   ;;  %s2237_s3 = inlined_call_operand.vmem [shape: f32[512,32], index: 3, kind: output, shape index: {}]  }
   0x1   :  { %s1875_s14 = smov 0  }
   0x2 LB: > { %s32_s15 = sadd.s32 1, %s1844_s13  ;;  %p1446_p0 = scmp.ge.s32.totalorder %s1848_s14, 1  ;;  %s1848_s14 = sphi %s1875_s14, %s13_s14   ;;  %s1844_s13 = sphi %s1873_s13, %s2239_s13   ;;  %s1840_s12 = sphi %s1871_s12, %s2238_s12  }
   0x3   : > { %p34_p1 = scmp.ge.s32.totalorder %s32_s15, 2  ;;  %p191_p2 = scmp.lt.s32.totalorder %s1848_s14, 3 }
   0x5   : > { %s2241_s15 = smov (%p34_p1, %s32_s15), 0  ;;  %p192_p3 = pnand %p1446_p0, %p191_p2 }
   0x6   : > { %v1744_v0 = vld [vmem:[%s2235_s1 + $0x40] sm:$0xff] (!%p192_p3)   ;;  %s1447_s18 = sshll.u32 (!%p192_p3), %s1840_s12, 5  ;;  %v1746_v2 = vld [vmem:[%s2235_s1 + $0x48] sm:$0xff] (!%p192_p3)   ;;  %v1748_v4 = vld [vmem:[%s2235_s1 + $0x50] sm:$0xff] (!%p192_p3)   ;;  %vm272_vm0 = vcmask (!%p192_p3), 261120  }
   0x7   : > { %195 = sbr.rel (%p192_p3) target bundleno = 360 (0x168), region = 32  ;;  %v1745_v1 = vld [vmem:[%s2235_s1] sm:$0xff] (!%p192_p3)   ;;  %1536 = vmatprep.subr.bf16.mxu0 (!%p192_p3), %v1744_v0  ;;  %1702 = vmatprep.subr.bf16.mxu1 (!%p192_p3), %v1744_v0  ;;  %p236_p4 = scmp.lt.s32.totalorder (!%p192_p3), %s1447_s18, 63  ;;  %v1747_v3 = vld [vmem:[%s2235_s1 + $0x8] sm:$0xff] (!%p192_p3)   ;;  %v1749_v5 = vld [vmem:[%s2235_s1 + $0x10] sm:$0xff] (!%p192_p3)  }
   0x8   : > { %1537 = vmatpush3.bf16.msra.mxu0 (!%p192_p3), %v1745_v1  ;;  %1710 = vmatpush3.bf16.msra.mxu1 (!%p192_p3), %v1745_v1  ;;  %v1750_v6 = vld [vmem:[%s2235_s1 + $0x58] sm:$0xff] (!%p192_p3)   ;;  %v1752_v8 = vld [vmem:[%s2235_s1 + $0x60] sm:$0xff] (!%p192_p3)   ;;  %v1754_v10 = vld [vmem:[%s2235_s1 + $0x68] sm:$0xff] (!%p192_p3)  }
   0x9   : > { %1538 = vmatprep.subr.bf16.mxu0 (!%p192_p3), %v1746_v2  ;;  %1703 = vmatprep.subr.bf16.mxu1 (!%p192_p3), %v1746_v2  ;;  %v1751_v7 = vld [vmem:[%s2235_s1 + $0x18] sm:$0xff] (!%p192_p3)   ;;  %v1753_v9 = vld [vmem:[%s2235_s1 + $0x20] sm:$0xff] (!%p192_p3)   ;;  %v1755_v13 = vld [vmem:[%s2235_s1 + $0x28] sm:$0xff] (!%p192_p3)   ;;  %v1850_v2 = vmov (!%p192_p3), 0.0  }
   0xa   : > { %v1756_v14 = vld [vmem:[%s2235_s1 + $0x70] sm:$0xff] (!%p192_p3)   ;;  %v1758_v16 = vld [vmem:[%s2235_s1 + $0x78] sm:$0xff] (!%p192_p3)   ;;  %v1766_v18 = vld [vmem:[%s2235_s1 + $0x80] sm:$0xff] (!%p192_p3)   ;;  %275 = vst.msk [vmem:[#allocation2 + $0x10] sm:$0xff] (!%p192_p3), %vm272_vm0, %v1850_v2 }
   0xb   : > { %v1757_v15 = vld [vmem:[%s2235_s1 + $0x30] sm:$0xff] (!%p192_p3)   ;;  %v1759_v17 = vld [vmem:[%s2235_s1 + $0x38] sm:$0xff] (!%p192_p3)   ;;  %v1779_v23 = vld [vmem:[%s2235_s1 + $0x88] sm:$0xff] (!%p192_p3)   ;;  %273 = vst.msk [vmem:[#allocation2] sm:$0xff] (!%p192_p3), %vm272_vm0, %v1850_v2 }
   0xc   : > { %1539 = vmatpush3.bf16.msra.mxu0 (!%p192_p3), %v1747_v3  ;;  %1711 = vmatpush3.bf16.msra.mxu1 (!%p192_p3), %v1747_v3  ;;  %274 = vst.msk [vmem:[#allocation2 + $0x8] sm:$0xff] (!%p192_p3), %vm272_vm0, %v1850_v2  ;;  %276 = vst.msk [vmem:[#allocation2 + $0x18] sm:$0xff] (!%p192_p3), %vm272_vm0, %v1850_v2 }
   0xd   : > { %1540 = vmatprep.subr.bf16.mxu0 (!%p192_p3), %v1748_v4  ;;  %1704 = vmatprep.subr.bf16.mxu1 (!%p192_p3), %v1748_v4  ;;  %277 = vst.msk [vmem:[#allocation2 + $0x20] sm:$0xff] (!%p192_p3), %vm272_vm0, %v1850_v2  ;;  %278 = vst.msk [vmem:[#allocation2 + $0x28] sm:$0xff] (!%p192_p3), %vm272_vm0, %v1850_v2 }
   0xe   : > { %s2243_s18 = smov (!%p236_p4, %s1447_s18), 63  ;;  %279 = vst.msk [vmem:[#allocation2 + $0x30] sm:$0xff] %vm272_vm0, %v1850_v2  ;;  %280 = vst.msk [vmem:[#allocation2 + $0x38] sm:$0xff] %vm272_vm0, %v1850_v2 }
   0xf   : > { %s1718_s4 = smul.u32 12, %s2243_s18  ;;  %281 = vst.msk [vmem:[#allocation2 + $0x40] sm:$0xff] %vm272_vm0, %v1850_v2  ;;  %282 = vst.msk [vmem:[#allocation2 + $0x48] sm:$0xff] %vm272_vm0, %v1850_v2  ;;  %s1450_s7 = sshll.u32 %s2243_s18, 3 }
  0x10   : > { %1541 = vmatpush3.bf16.msra.mxu0 %v1749_v5  ;;  %1712 = vmatpush3.bf16.msra.mxu1 %v1749_v5  ;;  %283 = vst.msk [vmem:[#allocation2 + $0x50] sm:$0xff] %vm272_vm0, %v1850_v2  ;;  %284 = vst.msk [vmem:[#allocation2 + $0x58] sm:$0xff] %vm272_vm0, %v1850_v2 }
  0x11   : > { %1542 = vmatprep.subr.bf16.mxu0 %v1750_v6  ;;  %1705 = vmatprep.subr.bf16.mxu1 %v1750_v6  ;;  %s1922_s11 = scalar_lea.vmem %s2234_s0, %s1718_s4  ;;  %285 = vst.msk [vmem:[#allocation2 + $0x60] sm:$0xff] %vm272_vm0, %v1850_v2  ;;  %286 = vst.msk [vmem:[#allocation2 + $0x68] sm:$0xff] %vm272_vm0, %v1850_v2 }
  0x12   : > { %v1762_v11 = vld [vmem:[%s1922_s11 + $0x4] ss:$12 sps:$4 sm:$0xff]   ;;  %v1760_v19 = vld [vmem:[%s1922_s11] ss:$12 sps:$4 sm:$0xff]   ;;  %v1767_v21 = vld [vmem:[%s1922_s11 + $0x1c] ss:$12 sps:$4 sm:$0xff]  }
  0x13   : > { %v1765_v12 = vld [vmem:[%s1922_s11 + $0x124] ss:$12 sps:$4 sm:$0xff]   ;;  %866 = vmatprep.mubr.bf16.mxu0 %v1762_v11  ;;  %v1763_v20 = vld [vmem:[%s1922_s11 + $0x120] ss:$12 sps:$4 sm:$0xff]   ;;  %v1769_v22 = vld [vmem:[%s1922_s11 + $0x13c] ss:$12 sps:$4 sm:$0xff]  }
  0x14   : > { %1543 = vmatpush3.bf16.msra.mxu0 %v1751_v7  ;;  %1713 = vmatpush3.bf16.msra.mxu1 %v1751_v7  ;;  %v1771_v24 = vld [vmem:[%s1922_s11 + $0x18] ss:$12 sps:$4 sm:$0xff]   ;;  %v1773_v26 = vld [vmem:[%s1922_s11 + $0x34] ss:$12 sps:$4 sm:$0xff]   ;;  %v1777_v28 = vld [vmem:[%s1922_s11 + $0x30] ss:$12 sps:$4 sm:$0xff]  }
  0x15   : > { %1544 = vmatprep.subr.bf16.mxu0 %v1752_v8  ;;  %1706 = vmatprep.subr.bf16.mxu1 %v1752_v8  ;;  %v1772_v25 = vld [vmem:[%s1922_s11 + $0x138] ss:$12 sps:$4 sm:$0xff]   ;;  %v1775_v27 = vld [vmem:[%s1922_s11 + $0x154] ss:$12 sps:$4 sm:$0xff]   ;;  %v1778_v29 = vld [vmem:[%s1922_s11 + $0x150] ss:$12 sps:$4 sm:$0xff]  }
  0x16   : > { %962 = vmatprep.mubr.bf16.mxu1 %v1765_v12  ;;  %v1780_v30 = vld [vmem:[%s1922_s11 + $0x4c] ss:$12 sps:$4 sm:$0xff]   ;;  %v1784_v32 = vld [vmem:[%s1922_s11 + $0x48] ss:$12 sps:$4 sm:$0xff]   ;;  %v1786_v34 = vld [vmem:[%s1922_s11 + $0x64] ss:$12 sps:$4 sm:$0xff]  }
  0x17   : > { %v1782_v31 = vld [vmem:[%s1922_s11 + $0x16c] ss:$12 sps:$4 sm:$0xff]   ;;  %v1785_v33 = vld [vmem:[%s1922_s11 + $0x168] ss:$12 sps:$4 sm:$0xff]   ;;  %v1795_v41 = vld [vmem:[%s1922_s11 + $0x50] ss:$12 sps:$4 sm:$0xff]  }
  0x18   : > { %1545 = vmatpush3.bf16.msra.mxu0 %v1753_v9  ;;  %1714 = vmatpush3.bf16.msra.mxu1 %v1753_v9  ;;  %v1788_v35 = vld [vmem:[%s1922_s11 + $0x8] ss:$12 sps:$4 sm:$0xff]   ;;  %v1789_v36 = vld [vmem:[%s1922_s11 + $0x60] ss:$12 sps:$4 sm:$0xff]   ;;  %v1793_v39 = vld [vmem:[%s1922_s11 + $0x38] ss:$12 sps:$4 sm:$0xff]  }
  0x19   : > { %1546 = vmatprep.subr.bf16.mxu0 %v1754_v10  ;;  %1707 = vmatprep.subr.bf16.mxu1 %v1754_v10  ;;  %v1790_v37 = vld [vmem:[%s1922_s11 + $0x20] ss:$12 sps:$4 sm:$0xff]   ;;  %v1791_v38 = vld [vmem:[%s1922_s11 + $0x7c] ss:$12 sps:$4 sm:$0xff]   ;;  %v1794_v40 = vld [vmem:[%s1922_s11 + $0x78] ss:$12 sps:$4 sm:$0xff]  }
  0x1a   : > { %v1796_v42 = vld [vmem:[%s1922_s11 + $0x94] ss:$12 sps:$4 sm:$0xff]   ;;  %v1799_v44 = vld [vmem:[%s1922_s11 + $0x90] ss:$12 sps:$4 sm:$0xff]   ;;  %v1801_v46 = vld [vmem:[%s1922_s11 + $0xac] ss:$12 sps:$4 sm:$0xff]  }
  0x1b   : > { %v1798_v43 = vld [vmem:[%s1922_s11 + $0x68] ss:$12 sps:$4 sm:$0xff]   ;;  %v1800_v45 = vld [vmem:[%s1922_s11 + $0x80] ss:$12 sps:$4 sm:$0xff]   ;;  %v1803_v47 = vld [vmem:[%s1922_s11 + $0x98] ss:$12 sps:$4 sm:$0xff]  }
  0x1c   : > { %1547 = vmatpush3.bf16.msra.mxu0 %v1755_v13  ;;  %1715 = vmatpush3.bf16.msra.mxu1 %v1755_v13  ;;  %v1804_v48 = vld [vmem:[%s1922_s11 + $0xa8] ss:$12 sps:$4 sm:$0xff]   ;;  %v1805_v49 = vld [vmem:[%s1922_s11 + $0xb0] ss:$12 sps:$4 sm:$0xff]   ;;  %v1809_v52 = vld [vmem:[%s1922_s11 + $0xc0] ss:$12 sps:$4 sm:$0xff]  }
  0x1d   : > { %1548 = vmatprep.subr.bf16.mxu0 %v1756_v14  ;;  %1708 = vmatprep.subr.bf16.mxu1 %v1756_v14  ;;  %v1806_v50 = vld [vmem:[%s1922_s11 + $0xc4] ss:$12 sps:$4 sm:$0xff]   ;;  %v1808_v51 = vld [vmem:[%s1922_s11 + $0xc8] ss:$12 sps:$4 sm:$0xff]   ;;  %v1810_v53 = vld [vmem:[%s1922_s11 + $0xe0] ss:$12 sps:$4 sm:$0xff]  }
  0x1e   : > { %v1811_v54 = vld [vmem:[%s1922_s11 + $0xdc] ss:$12 sps:$4 sm:$0xff]   ;;  %v1813_v55 = vld [vmem:[%s1922_s11 + $0xf8] ss:$12 sps:$4 sm:$0xff]   ;;  %v1816_v58 = vld [vmem:[%s1922_s11 + $0xf4] ss:$12 sps:$4 sm:$0xff]  }
  0x1f   : > { %v1814_v56 = vld [vmem:[%s1922_s11 + $0xd8] ss:$12 sps:$4 sm:$0xff]   ;;  %v1815_v57 = vld [vmem:[%s1922_s11 + $0x110] ss:$12 sps:$4 sm:$0xff]   ;;  %v1818_v59 = vld [vmem:[%s1922_s11 + $0x128] ss:$12 sps:$4 sm:$0xff]  }
  0x20   : > { %1549 = vmatpush3.bf16.msra.mxu0 %v1757_v15  ;;  %1716 = vmatpush3.bf16.msra.mxu1 %v1757_v15  ;;  %v1819_v60 = vld [vmem:[%s1922_s11 + $0xf0] ss:$12 sps:$4 sm:$0xff]   ;;  %v1820_v61 = vld [vmem:[%s1922_s11 + $0x140] ss:$12 sps:$4 sm:$0xff]   ;;  %v1823_v63 = vld [vmem:[%s1922_s11 + $0x158] ss:$12 sps:$4 sm:$0xff]  }
  0x21   : > { %1550 = vmatprep.subr.bf16.mxu0 %v1758_v16  ;;  %1709 = vmatprep.subr.bf16.mxu1 %v1758_v16  ;;  %v1821_v62 = vld [vmem:[%s1922_s11 + $0x10c] ss:$12 sps:$4 sm:$0xff]   ;;  %v1824_v0 = vld [vmem:[%s1922_s11 + $0x108] ss:$12 sps:$4 sm:$0xff]   ;;  %v1825_v1 = vld [vmem:[%s1922_s11 + $0x170] ss:$12 sps:$4 sm:$0xff]   ;;  %s2082_s11 = scalar_lea.vmem %s2237_s3, %s1450_s7 }
  0x22   : > { %287 = vst.msk [vmem:[#allocation2 + $0x70] sm:$0xff] %vm272_vm0, %v1850_v2  ;;  %288 = vst.msk [vmem:[#allocation2 + $0x78] sm:$0xff] %vm272_vm0, %v1850_v2 }
  0x23   : > { %289 = vst.msk [vmem:[#allocation2 + $0x80] sm:$0xff] %vm272_vm0, %v1850_v2  ;;  %290 = vst.msk [vmem:[#allocation2 + $0x88] sm:$0xff] %vm272_vm0, %v1850_v2 }
  0x24   : > { %1551 = vmatpush3.bf16.msra.mxu0 %v1759_v17  ;;  %1717 = vmatpush3.bf16.msra.mxu1 %v1759_v17  ;;  %291 = vst.msk [vmem:[#allocation2 + $0x90] sm:$0xff] %vm272_vm0, %v1850_v2  ;;  %292 = vst.msk [vmem:[#allocation2 + $0x98] sm:$0xff] %vm272_vm0, %v1850_v2 }
  0x25   : > { %1666 = vmatprep.subr.bf16.mxu1 %v1766_v18  ;;  %293 = vst.msk [vmem:[#allocation2 + $0xa0] sm:$0xff] %vm272_vm0, %v1850_v2  ;;  %294 = vst.msk [vmem:[#allocation2 + $0xa8] sm:$0xff] %vm272_vm0, %v1850_v2 }
  0x26   : > { %295 = vst.msk [vmem:[#allocation2 + $0xb0] sm:$0xff] %vm272_vm0, %v1850_v2  ;;  %296 = vst.msk [vmem:[#allocation2 + $0xb8] sm:$0xff] %vm272_vm0, %v1850_v2 }
  0x27   : > { %867 = vmatmul.mubr.bf16.vlgmr.msra.gmra.mrb[0].mxu0 %v1760_v19  ;;  %963 = vmatmul.mubr.bf16.vlgmr.msra.gmra.mrb[0].mxu1 %v1763_v20  ;;  %297 = vst.msk [vmem:[#allocation2 + $0xc0] sm:$0xff] %vm272_vm0, %v1850_v2  ;;  %298 = vst.msk [vmem:[#allocation2 + $0xc8] sm:$0xff] %vm272_vm0, %v1850_v2 }
  0x28   : > { %1667 = vmatpush3.bf16.msra.mxu1 %v1766_v18  ;;  %874 = vmatprep.mubr.bf16.mxu0 %v1767_v21  ;;  %299 = vst.msk [vmem:[#allocation2 + $0xd0] sm:$0xff] %vm272_vm0, %v1850_v2  ;;  %300 = vst.msk [vmem:[#allocation2 + $0xd8] sm:$0xff] %vm272_vm0, %v1850_v2 }
  0x29   : > { %970 = vmatprep.mubr.bf16.mxu1 %v1769_v22  ;;  %1668 = vmatprep.subr.bf16.mxu1 %v1779_v23  ;;  %301 = vst.msk [vmem:[#allocation2 + $0xe0] sm:$0xff] %vm272_vm0, %v1850_v2  ;;  %302 = vst.msk [vmem:[#allocation2 + $0xe8] sm:$0xff] %vm272_vm0, %v1850_v2 }
  0x2a   : > { %303 = vst.msk [vmem:[#allocation2 + $0xf0] sm:$0xff] %vm272_vm0, %v1850_v2  ;;  %304 = vst.msk [vmem:[#allocation2 + $0xf8] sm:$0xff] %vm272_vm0, %v1850_v2  ;;  %v306_v2 = vld [vmem:[#allocation2 + $0x8] sm:$0xff] }
  0x2c   : > { %1669 = vmatpush3.bf16.msra.mxu1 %v1779_v23 }
  0x2f   : > { %875 = vmatmul.mubr.bf16.gmra.mrb[4].mxu0 %v1771_v24  ;;  %971 = vmatmul.mubr.bf16.gmra.mrb[4].mxu1 %v1772_v25 }
  0x30   : > { %882 = vmatprep.mubr.bf16.mxu0 %v1773_v26  ;;  %978 = vmatprep.mubr.bf16.mxu1 %v1775_v27 }
  0x37   : > { %883 = vmatmul.mubr.bf16.gmra.mrb[8].mxu0 %v1777_v28  ;;  %979 = vmatmul.mubr.bf16.gmra.mrb[8].mxu1 %v1778_v29 }
  0x38   : > { %890 = vmatprep.mubr.bf16.mxu0 %v1780_v30  ;;  %986 = vmatprep.mubr.bf16.mxu1 %v1782_v31 }
  0x3f   : > { %891 = vmatmul.mubr.bf16.gmra.mrb[12].mxu0 %v1784_v32  ;;  %987 = vmatmul.mubr.bf16.gmra.mrb[12].mxu1 %v1785_v33 }
  0x40   : > { %898 = vmatprep.mubr.bf16.mxu0 %v1786_v34  ;;  %1670 = vmatprep.mubr.msk.bf16.mxu1 %vm272_vm0, %v1788_v35 }
  0x47   : > { %899 = vmatmul.mubr.bf16.gmra.mrb[16].mxu0 %v1789_v36  ;;  %1671 = vmatmul.mubr.msk.bf16.vlgmr.msra.gmra.mrb[16].mxu1 %vm272_vm0, %v1790_v37 }
  0x48   : > { %906 = vmatprep.mubr.bf16.mxu0 %v1791_v38  ;;  %1674 = vmatprep.mubr.msk.bf16.mxu1 %vm272_vm0, %v1793_v39 }
  0x4f   : > { %907 = vmatmul.mubr.bf16.gmra.mrb[20].mxu0 %v1794_v40  ;;  %1675 = vmatmul.mubr.msk.bf16.gmra.mrb[20].mxu1 %vm272_vm0, %v1795_v41 }
  0x50   : > { %914 = vmatprep.mubr.bf16.mxu0 %v1796_v42  ;;  %1678 = vmatprep.mubr.msk.bf16.mxu1 %vm272_vm0, %v1798_v43 }
  0x57   : > { %915 = vmatmul.mubr.bf16.gmra.mrb[24].mxu0 %v1799_v44  ;;  %1679 = vmatmul.mubr.msk.bf16.gmra.mrb[24].mxu1 %vm272_vm0, %v1800_v45 }
  0x58   : > { %922 = vmatprep.mubr.bf16.mxu0 %v1801_v46  ;;  %1682 = vmatprep.mubr.msk.bf16.mxu1 %vm272_vm0, %v1803_v47 }
  0x5f   : > { %923 = vmatmul.mubr.bf16.gmra.mrb[28].mxu0 %v1804_v48  ;;  %1683 = vmatmul.mubr.msk.bf16.gmra.mrb[28].mxu1 %vm272_vm0, %v1805_v49 }
  0x60   : > { %930 = vmatprep.mubr.bf16.mxu0 %v1806_v50  ;;  %1686 = vmatprep.mubr.msk.bf16.mxu1 %vm272_vm0, %v1808_v51 }
  0x67   : > { %931 = vmatmul.mubr.bf16.gmra.mrb[32].mxu0 %v1809_v52  ;;  %1687 = vmatmul.mubr.msk.bf16.gmra.mrb[32].mxu1 %vm272_vm0, %v1810_v53  ;;  %v307_v52 = vld [vmem:[#allocation2 + $0x10] sm:$0xff] }
  0x68   : > { %938 = vmatprep.mubr.bf16.mxu0 %v1811_v54  ;;  %1690 = vmatprep.mubr.msk.bf16.mxu1 %vm272_vm0, %v1813_v55 }
  0x6f   : > { %939 = vmatmul.mubr.bf16.gmra.mrb[36].mxu0 %v1814_v56  ;;  %1691 = vmatmul.mubr.msk.bf16.gmra.mrb[36].mxu1 %vm272_vm0, %v1815_v57  ;;  %v305_v56 = vld [vmem:[#allocation2] sm:$0xff] }
  0x70   : > { %946 = vmatprep.mubr.bf16.mxu0 %v1816_v58  ;;  %1694 = vmatprep.mubr.msk.bf16.mxu1 %vm272_vm0, %v1818_v59 }
  0x77   : > { %947 = vmatmul.mubr.bf16.gmra.mrb[40].mxu0 %v1819_v60  ;;  %1695 = vmatmul.mubr.msk.bf16.gmra.mrb[40].mxu1 %vm272_vm0, %v1820_v61  ;;  %v308_v61 = vld [vmem:[#allocation2 + $0x18] sm:$0xff] }
  0x78   : > { %954 = vmatprep.mubr.bf16.mxu0 %v1821_v62  ;;  %1698 = vmatprep.mubr.msk.bf16.mxu1 %vm272_vm0, %v1823_v63 }
  0x7f   : > { %955 = vmatmul.mubr.bf16.gmra.mrb[44].mxu0 %v1824_v0  ;;  %1699 = vmatmul.mubr.msk.bf16.gmra.mrb[44].mxu1 %vm272_vm0, %v1825_v1 }
  0xfa   : > { %v1552_v3 = vpop.f32.mrb[0].mxu0  ;;  %v1624_v4 = vpop.f32.mrb[0].mxu1 }
  0xfb   : > { %v1553_v5 = vpop.f32.mrb[1].mxu0  ;;  %v1625_v6 = vpop.f32.mrb[1].mxu1 }
  0xfc   : > { %v1554_v7 = vadd.f32 %v1553_v5, %v1552_v3  ;;  %v2047_v8 = vadd.f32 %v1625_v6, %v1624_v4  ;;  %v1555_v9 = vpop.f32.mrb[2].mxu0  ;;  %v1627_v10 = vpop.f32.mrb[2].mxu1 }
  0xfd   : > { %v1556_v11 = vpop.f32.mrb[3].mxu0  ;;  %v1628_v12 = vpop.f32.mrb[3].mxu1 }
  0xfe   : > { %v1557_v13 = vadd.f32 %v1556_v11, %v1555_v9  ;;  %v2049_v14 = vadd.f32 %v1628_v12, %v1627_v10  ;;  %v311_v11 = vld [vmem:[#allocation2 + $0x30] sm:$0xff] }
 0x102   : > { %v1558_v15 = vpop.f32.mrb[4].mxu0  ;;  %v1630_v16 = vpop.f32.mrb[4].mxu1 }
 0x103   : > { %v1559_v17 = vpop.f32.mrb[5].mxu0  ;;  %v1631_v18 = vpop.f32.mrb[5].mxu1 }
 0x104   : > { %v1560_v19 = vadd.f32 %v1559_v17, %v1558_v15  ;;  %v2051_v20 = vadd.f32 %v1631_v18, %v1630_v16  ;;  %v1561_v21 = vpop.f32.mrb[6].mxu0  ;;  %v1633_v22 = vpop.f32.mrb[6].mxu1  ;;  %v309_v17 = vld [vmem:[#allocation2 + $0x20] sm:$0xff] }
 0x105   : > { %v1562_v23 = vpop.f32.mrb[7].mxu0  ;;  %v1634_v24 = vpop.f32.mrb[7].mxu1 }
 0x106   : > { %v1563_v25 = vadd.f32 %v1562_v23, %v1561_v21  ;;  %v2053_v26 = vadd.f32 %v1634_v24, %v1633_v22  ;;  %v312_v23 = vld [vmem:[#allocation2 + $0x38] sm:$0xff] }
 0x10a   : > { %v1564_v27 = vpop.f32.mrb[8].mxu0  ;;  %v1636_v28 = vpop.f32.mrb[8].mxu1 }
 0x10b   : > { %v1565_v29 = vpop.f32.mrb[9].mxu0  ;;  %v1637_v30 = vpop.f32.mrb[9].mxu1 }
 0x10c   : > { %v1566_v31 = vadd.f32 %v1565_v29, %v1564_v27  ;;  %v2055_v32 = vadd.f32 %v1637_v30, %v1636_v28  ;;  %v1567_v33 = vpop.f32.mrb[10].mxu0  ;;  %v1639_v34 = vpop.f32.mrb[10].mxu1  ;;  %v310_v29 = vld [vmem:[#allocation2 + $0x28] sm:$0xff] }
 0x10d   : > { %v1568_v35 = vpop.f32.mrb[11].mxu0  ;;  %v1640_v36 = vpop.f32.mrb[11].mxu1 }
 0x10e   : > { %v2057_v37 = vadd.f32 %v1568_v35, %v1567_v33  ;;  %v2059_v38 = vadd.f32 %v1640_v36, %v1639_v34 }
 0x112   : > { %v1570_v39 = vpop.f32.mrb[12].mxu0  ;;  %v1642_v40 = vpop.f32.mrb[12].mxu1 }
 0x113   : > { %v1571_v41 = vpop.f32.mrb[13].mxu0  ;;  %v1643_v42 = vpop.f32.mrb[13].mxu1 }
 0x114   : > { %v1572_v43 = vadd.f32 %v1571_v41, %v1570_v39  ;;  %v2061_v44 = vadd.f32 %v1643_v42, %v1642_v40  ;;  %v1573_v45 = vpop.f32.mrb[14].mxu0  ;;  %v1645_v46 = vpop.f32.mrb[14].mxu1 }
 0x115   : > { %v1574_v47 = vpop.f32.mrb[15].mxu0  ;;  %v1646_v48 = vpop.f32.mrb[15].mxu1 }
 0x116   : > { %v1575_v49 = vadd.f32 %v1574_v47, %v1573_v45  ;;  %v2063_v50 = vadd.f32 %v1646_v48, %v1645_v46  ;;  %v315_v48 = vld [vmem:[#allocation2 + $0x50] sm:$0xff] }
 0x11a   : > { %v1576_v51 = vpop.f32.mrb[16].mxu0  ;;  %v1672_v53 = vpop.f32.mrb[16].mxu1 }
 0x11b   : > { %v1038_v54 = vadd.f32 %v1672_v53, %v1560_v19  ;;  %v1577_v55 = vpop.f32.mrb[17].mxu0  ;;  %v1029_v57 = vpop.f32.mrb[17].mxu1  ;;  %v313_v53 = vld [vmem:[#allocation2 + $0x40] sm:$0xff] }
 0x11c   : > { %v2065_v58 = vadd.f32 %v1577_v55, %v1576_v51  ;;  %v1030_v59 = vadd.f32 %v1554_v7, %v1029_v57  ;;  %v1579_v60 = vpop.f32.mrb[18].mxu0  ;;  %v1673_v62 = vpop.f32.mrb[18].mxu1 }
 0x11d   : > { %v1158_v63 = vadd.f32 %v1038_v54, %v307_v52  ;;  %v1041_v0 = vadd.f32 %v1673_v62, %v1563_v25  ;;  %v1580_v1 = vpop.f32.mrb[19].mxu0  ;;  %v1032_v3 = vpop.f32.mrb[19].mxu1 }
 0x11e   : > { %v1156_v4 = vadd.f32 %v1030_v59, %v305_v56  ;;  %v2067_v5 = vadd.f32 %v1580_v1, %v1579_v60  ;;  %v1033_v6 = vadd.f32 %v1557_v13, %v1032_v3  ;;  %v2077_v13 = vld [vmem:[%s2236_s2] ss:$0 sm:$0xff]  ;;  %v316_v59 = vld [vmem:[#allocation2 + $0x58] sm:$0xff] }
 0x11f   : > { %1190 = vst.msk [vmem:[#allocation2 + $0x10] sm:$0xff] %vm272_vm0, %v1158_v63  ;;  %v1159_v9 = vadd.f32 %v1041_v0, %v308_v61  ;;  %v314_v0 = vld [vmem:[#allocation2 + $0x48] sm:$0xff] }
 0x120   : > { %1188 = vst.msk [vmem:[#allocation2] sm:$0xff] %vm272_vm0, %v1156_v4  ;;  %v1157_v10 = vadd.f32 %v1033_v6, %v306_v2 }
 0x121   : > { %1191 = vst.msk [vmem:[#allocation2 + $0x18] sm:$0xff] %vm272_vm0, %v1159_v9 }
 0x122   : > { %1189 = vst.msk [vmem:[#allocation2 + $0x8] sm:$0xff] %vm272_vm0, %v1157_v10  ;;  %v1582_v7 = vpop.f32.mrb[20].mxu0  ;;  %v1676_v12 = vpop.f32.mrb[20].mxu1 }
 0x123   : > { %v1054_v15 = vadd.f32 %v1676_v12, %v1572_v43  ;;  %v1583_v16 = vpop.f32.mrb[21].mxu0  ;;  %v1045_v18 = vpop.f32.mrb[21].mxu1 }
 0x124   : > { %v1584_v19 = vadd.f32 %v1583_v16, %v1582_v7  ;;  %v1046_v21 = vadd.f32 %v1566_v31, %v1045_v18  ;;  %v1585_v22 = vpop.f32.mrb[22].mxu0  ;;  %v1677_v24 = vpop.f32.mrb[22].mxu1 }
 0x125   : > { %v1162_v25 = vadd.f32 %v1054_v15, %v311_v11  ;;  %v1057_v27 = vadd.f32 %v1677_v24, %v1575_v49  ;;  %v1586_v28 = vpop.f32.mrb[23].mxu0  ;;  %v1048_v30 = vpop.f32.mrb[23].mxu1 }
 0x126   : > { %v1225_v33 = vld [vmem:[#allocation2 + $0x10] sm:$0xff]  ;;  %v1160_v34 = vadd.f32 %v1046_v21, %v309_v17  ;;  %v1587_v35 = vadd.f32 %v1586_v28, %v1585_v22  ;;  %v1049_v31 = vadd.f32 %v2057_v37, %v1048_v30  ;;  %v317_v21 = vld [vmem:[#allocation2 + $0x60] sm:$0xff]  ;;  %v318_v30 = vld [vmem:[#allocation2 + $0x68] sm:$0xff] }
 0x127   : > { %v1264_v36 = vadd.f32 %v2077_v13, %v1225_v33  ;;  %v1223_v39 = vld [vmem:[#allocation2] sm:$0xff]  ;;  %1194 = vst.msk [vmem:[#allocation2 + $0x30] sm:$0xff] %vm272_vm0, %v1162_v25  ;;  %v1163_v40 = vadd.f32 %v1057_v27, %v312_v23  ;;  %v319_v28 = vld [vmem:[#allocation2 + $0x70] sm:$0xff] }
 0x128   : > { %v1262_v41 = vadd.f32 %v2077_v13, %v1223_v39  ;;  %v1226_v42 = vld [vmem:[#allocation2 + $0x18] sm:$0xff]  ;;  %1192 = vst.msk [vmem:[#allocation2 + $0x20] sm:$0xff] %vm272_vm0, %v1160_v34  ;;  %v1161_v43 = vadd.f32 %v1049_v31, %v310_v29 }
 0x129   : > { %1296 = vst.msk [vmem:[%s2082_s11 + $0x10] sm:$0xff] %vm272_vm0, %v1264_v36  ;;  %v1265_v45 = vadd.f32 %v2077_v13, %v1226_v42  ;;  %v1224_v46 = vld [vmem:[#allocation2 + $0x8] sm:$0xff]  ;;  %1195 = vst.msk [vmem:[#allocation2 + $0x38] sm:$0xff] %vm272_vm0, %v1163_v40  ;;  %v320_v42 = vld [vmem:[#allocation2 + $0x78] sm:$0xff] }
 0x12a   : > { %1294 = vst.msk [vmem:[%s2082_s11] sm:$0xff] %vm272_vm0, %v1262_v41  ;;  %v1263_v37 = vadd.f32 %v2077_v13, %v1224_v46  ;;  %1193 = vst.msk [vmem:[#allocation2 + $0x28] sm:$0xff] %vm272_vm0, %v1161_v43  ;;  %v1588_v47 = vpop.f32.mrb[24].mxu0  ;;  %v1680_v49 = vpop.f32.mrb[24].mxu1 }
 0x12b   : > { %1297 = vst.msk [vmem:[%s2082_s11 + $0x18] sm:$0xff] %vm272_vm0, %v1265_v45  ;;  %v1070_v51 = vadd.f32 %v1680_v49, %v1584_v19  ;;  %v1589_v52 = vpop.f32.mrb[25].mxu0  ;;  %v1061_v54 = vpop.f32.mrb[25].mxu1 }
 0x12c   : > { %1295 = vst.msk [vmem:[%s2082_s11 + $0x8] sm:$0xff] %vm272_vm0, %v1263_v37  ;;  %v1590_v55 = vadd.f32 %v1589_v52, %v1588_v47  ;;  %v1062_v56 = vadd.f32 %v2065_v58, %v1061_v54  ;;  %v1591_v57 = vpop.f32.mrb[26].mxu0  ;;  %v1681_v60 = vpop.f32.mrb[26].mxu1 }
 0x12d   : > { %v1166_v61 = vadd.f32 %v1070_v51, %v315_v48  ;;  %v1073_v62 = vadd.f32 %v1681_v60, %v1587_v35  ;;  %v1592_v63 = vpop.f32.mrb[27].mxu0  ;;  %v1064_v1 = vpop.f32.mrb[27].mxu1 }
 0x12e   : > { %v1229_v2 = vld [vmem:[#allocation2 + $0x30] sm:$0xff]  ;;  %v1164_v3 = vadd.f32 %v1062_v56, %v313_v53  ;;  %v1593_v4 = vadd.f32 %v1592_v63, %v1591_v57  ;;  %v1065_v6 = vadd.f32 %v2067_v5, %v1064_v1 }
 0x12f   : > { %v1268_v9 = vadd.f32 %v2077_v13, %v1229_v2  ;;  %v1227_v10 = vld [vmem:[#allocation2 + $0x20] sm:$0xff]  ;;  %1198 = vst.msk [vmem:[#allocation2 + $0x50] sm:$0xff] %vm272_vm0, %v1166_v61  ;;  %v1167_v58 = vadd.f32 %v1073_v62, %v316_v59 }
 0x130   : > { %v1266_v7 = vadd.f32 %v2077_v13, %v1227_v10  ;;  %v1230_v11 = vld [vmem:[#allocation2 + $0x38] sm:$0xff]  ;;  %1196 = vst.msk [vmem:[#allocation2 + $0x40] sm:$0xff] %vm272_vm0, %v1164_v3  ;;  %v1165_v12 = vadd.f32 %v1065_v6, %v314_v0  ;;  %v321_v61 = vld [vmem:[#allocation2 + $0x80] sm:$0xff]  ;;  %v322_v3 = vld [vmem:[#allocation2 + $0x88] sm:$0xff] }
 0x131   : > { %1300 = vst.msk [vmem:[%s2082_s11 + $0x30] sm:$0xff] %vm272_vm0, %v1268_v9  ;;  %v1269_v15 = vadd.f32 %v2077_v13, %v1230_v11  ;;  %v1228_v16 = vld [vmem:[#allocation2 + $0x28] sm:$0xff]  ;;  %1199 = vst.msk [vmem:[#allocation2 + $0x58] sm:$0xff] %vm272_vm0, %v1167_v58 }
 0x132   : > { %1298 = vst.msk [vmem:[%s2082_s11 + $0x20] sm:$0xff] %vm272_vm0, %v1266_v7  ;;  %v1267_v5 = vadd.f32 %v2077_v13, %v1228_v16  ;;  %1197 = vst.msk [vmem:[#allocation2 + $0x48] sm:$0xff] %vm272_vm0, %v1165_v12  ;;  %v1594_v17 = vpop.f32.mrb[28].mxu0  ;;  %v1684_v18 = vpop.f32.mrb[28].mxu1 }
 0x133   : > { %1301 = vst.msk [vmem:[%s2082_s11 + $0x38] sm:$0xff] %vm272_vm0, %v1269_v15  ;;  %v1595_v19 = vpop.f32.mrb[29].mxu0  ;;  %v1077_v22 = vpop.f32.mrb[29].mxu1 }
 0x134   : > { %1299 = vst.msk [vmem:[%s2082_s11 + $0x28] sm:$0xff] %vm272_vm0, %v1267_v5  ;;  %v1596_v23 = vadd.f32 %v1595_v19, %v1594_v17  ;;  %v1078_v24 = vadd.f32 %v1590_v55, %v1077_v22  ;;  %v1597_v25 = vpop.f32.mrb[30].mxu0  ;;  %v1685_v27 = vpop.f32.mrb[30].mxu1 }
 0x135   : > { %v1598_v29 = vpop.f32.mrb[31].mxu0  ;;  %v1080_v33 = vpop.f32.mrb[31].mxu1 }
 0x136   : > { %v1233_v34 = vld [vmem:[#allocation2 + $0x50] sm:$0xff]  ;;  %v1086_v35 = vadd.f32 %v1684_v18, %v1596_v23  ;;  %v1168_v31 = vadd.f32 %v1078_v24, %v317_v21  ;;  %v1599_v36 = vadd.f32 %v1598_v29, %v1597_v25  ;;  %v1081_v39 = vadd.f32 %v1593_v4, %v1080_v33 }
 0x137   : > { %v1272_v40 = vadd.f32 %v2077_v13, %v1233_v34  ;;  %v1231_v41 = vld [vmem:[#allocation2 + $0x40] sm:$0xff]  ;;  %v323_v24 = vld [vmem:[#allocation2 + $0x90] sm:$0xff] }
 0x138   : > { %v1270_v43 = vadd.f32 %v2077_v13, %v1231_v41  ;;  %v1234_v45 = vld [vmem:[#allocation2 + $0x58] sm:$0xff]  ;;  %v1170_v46 = vadd.f32 %v1086_v35, %v319_v28  ;;  %1200 = vst.msk [vmem:[#allocation2 + $0x60] sm:$0xff] %vm272_vm0, %v1168_v31  ;;  %v1089_v37 = vadd.f32 %v1685_v27, %v1599_v36  ;;  %v1169_v47 = vadd.f32 %v1081_v39, %v318_v30 }
 0x139   : > { %1304 = vst.msk [vmem:[%s2082_s11 + $0x50] sm:$0xff] %vm272_vm0, %v1272_v40  ;;  %v1273_v48 = vadd.f32 %v2077_v13, %v1234_v45  ;;  %v1232_v49 = vld [vmem:[#allocation2 + $0x48] sm:$0xff]  ;;  %v324_v30 = vld [vmem:[#allocation2 + $0x98] sm:$0xff]  ;;  %v331_v40 = vld [vmem:[#allocation2 + $0xd0] sm:$0xff] }
 0x13a   : > { %1302 = vst.msk [vmem:[%s2082_s11 + $0x40] sm:$0xff] %vm272_vm0, %v1270_v43  ;;  %v1271_v51 = vadd.f32 %v2077_v13, %v1232_v49  ;;  %1202 = vst.msk [vmem:[#allocation2 + $0x70] sm:$0xff] %vm272_vm0, %v1170_v46  ;;  %v1171_v52 = vadd.f32 %v1089_v37, %v320_v42  ;;  %v1600_v53 = vpop.f32.mrb[32].mxu0  ;;  %v1688_v54 = vpop.f32.mrb[32].mxu1  ;;  %v329_v46 = vld [vmem:[#allocation2 + $0xc0] sm:$0xff] }
 0x13b   : > { %1201 = vst.msk [vmem:[#allocation2 + $0x68] sm:$0xff] %vm272_vm0, %v1169_v47  ;;  %1305 = vst.msk [vmem:[%s2082_s11 + $0x58] sm:$0xff] %vm272_vm0, %v1273_v48  ;;  %v1601_v55 = vpop.f32.mrb[33].mxu0  ;;  %v1093_v56 = vpop.f32.mrb[33].mxu1 }
 0x13c   : > { %1303 = vst.msk [vmem:[%s2082_s11 + $0x48] sm:$0xff] %vm272_vm0, %v1271_v51  ;;  %1203 = vst.msk [vmem:[#allocation2 + $0x78] sm:$0xff] %vm272_vm0, %v1171_v52  ;;  %v1602_v57 = vadd.f32 %v1601_v55, %v1600_v53  ;;  %v1603_v59 = vpop.f32.mrb[34].mxu0  ;;  %v1689_v60 = vpop.f32.mrb[34].mxu1  ;;  %v332_v52 = vld [vmem:[#allocation2 + $0xd8] sm:$0xff]  ;;  %v325_v55 = vld [vmem:[#allocation2 + $0xa0] sm:$0xff] }
 0x13d   : > { %v1604_v62 = vpop.f32.mrb[35].mxu0  ;;  %v1096_v63 = vpop.f32.mrb[35].mxu1 }
 0x13e   : > { %v1094_v0 = vadd.f32 %v1602_v57, %v1093_v56  ;;  %v1605_v1 = vadd.f32 %v1604_v62, %v1603_v59  ;;  %v330_v57 = vld [vmem:[#allocation2 + $0xc8] sm:$0xff] }
 0x13f   : > { %v1235_v2 = vld [vmem:[#allocation2 + $0x60] sm:$0xff] }
 0x140   : > { %v1274_v4 = vadd.f32 %v2077_v13, %v1235_v2  ;;  %v1172_v6 = vadd.f32 %v1094_v0, %v321_v61  ;;  %v1097_v9 = vadd.f32 %v1605_v1, %v1096_v63  ;;  %v326_v0 = vld [vmem:[#allocation2 + $0xa8] sm:$0xff] }
 0x141   : > { %v1237_v10 = vld [vmem:[#allocation2 + $0x70] sm:$0xff] }
 0x142   : > { %v1236_v58 = vld [vmem:[#allocation2 + $0x68] sm:$0xff]  ;;  %v1276_v7 = vadd.f32 %v2077_v13, %v1237_v10  ;;  %1306 = vst.msk [vmem:[%s2082_s11 + $0x60] sm:$0xff] %vm272_vm0, %v1274_v4  ;;  %1204 = vst.msk [vmem:[#allocation2 + $0x80] sm:$0xff] %vm272_vm0, %v1172_v6  ;;  %v1173_v12 = vadd.f32 %v1097_v9, %v322_v3  ;;  %v1606_v15 = vpop.f32.mrb[36].mxu0  ;;  %v2141_v16 = vpop.f32.mrb[36].mxu1  ;;  %v335_v9 = vld [vmem:[#allocation2 + $0xf0] sm:$0xff] }
 0x143   : > { %v1275_v11 = vadd.f32 %v2077_v13, %v1236_v58  ;;  %v1238_v5 = vld [vmem:[#allocation2 + $0x78] sm:$0xff]  ;;  %v1607_v17 = vpop.f32.mrb[37].mxu0  ;;  %v1109_v18 = vpop.f32.mrb[37].mxu1 }
 0x144   : > { %1308 = vst.msk [vmem:[%s2082_s11 + $0x70] sm:$0xff] %vm272_vm0, %v1276_v7  ;;  %v1277_v19 = vadd.f32 %v2077_v13, %v1238_v5  ;;  %1205 = vst.msk [vmem:[#allocation2 + $0x88] sm:$0xff] %vm272_vm0, %v1173_v12  ;;  %v1608_v21 = vadd.f32 %v1607_v17, %v1606_v15  ;;  %v1609_v22 = vpop.f32.mrb[38].mxu0  ;;  %v2149_v23 = vpop.f32.mrb[38].mxu1  ;;  %v333_v12 = vld [vmem:[#allocation2 + $0xe0] sm:$0xff] }
 0x145   : > { %1307 = vst.msk [vmem:[%s2082_s11 + $0x68] sm:$0xff] %vm272_vm0, %v1275_v11  ;;  %v1610_v25 = vpop.f32.mrb[39].mxu0  ;;  %v1112_v27 = vpop.f32.mrb[39].mxu1 }
 0x146   : > { %1309 = vst.msk [vmem:[%s2082_s11 + $0x78] sm:$0xff] %vm272_vm0, %v1277_v19  ;;  %v1102_v28 = vadd.f32 %v1688_v54, %v1608_v21  ;;  %v1611_v29 = vadd.f32 %v1610_v25, %v1609_v22  ;;  %v336_v21 = vld [vmem:[#allocation2 + $0xf8] sm:$0xff]  ;;  %v327_v25 = vld [vmem:[#allocation2 + $0xb0] sm:$0xff] }
 0x148   : > { %v1174_v33 = vadd.f32 %v1102_v28, %v323_v24  ;;  %v1105_v34 = vadd.f32 %v1689_v60, %v1611_v29  ;;  %v334_v28 = vld [vmem:[#allocation2 + $0xe8] sm:$0xff] }
 0x149   : > { %v1239_v35 = vld [vmem:[#allocation2 + $0x80] sm:$0xff] }
 0x14a   : > { %v1278_v31 = vadd.f32 %v2077_v13, %v1239_v35  ;;  %1206 = vst.msk [vmem:[#allocation2 + $0x90] sm:$0xff] %vm272_vm0, %v1174_v33  ;;  %v1175_v36 = vadd.f32 %v1105_v34, %v324_v30  ;;  %v1612_v39 = vpop.f32.mrb[40].mxu0  ;;  %v1696_v41 = vpop.f32.mrb[40].mxu1 }
 0x14b   : > { %v1240_v42 = vld [vmem:[#allocation2 + $0x88] sm:$0xff]  ;;  %v1134_v43 = vadd.f32 %v1696_v41, %v2051_v20  ;;  %v1613_v45 = vpop.f32.mrb[41].mxu0  ;;  %v1125_v37 = vpop.f32.mrb[41].mxu1 }
 0x14c   : > { %1310 = vst.msk [vmem:[%s2082_s11 + $0x80] sm:$0xff] %vm272_vm0, %v1278_v31  ;;  %v1279_v47 = vadd.f32 %v2077_v13, %v1240_v42  ;;  %1207 = vst.msk [vmem:[#allocation2 + $0x98] sm:$0xff] %vm272_vm0, %v1175_v36  ;;  %v1614_v48 = vadd.f32 %v1613_v45, %v1612_v39  ;;  %v1126_v49 = vadd.f32 %v2047_v8, %v1125_v37  ;;  %v1615_v51 = vpop.f32.mrb[42].mxu0  ;;  %v1697_v53 = vpop.f32.mrb[42].mxu1  ;;  %v328_v39 = vld [vmem:[#allocation2 + $0xb8] sm:$0xff] }
 0x14d   : > { %v1182_v54 = vadd.f32 %v1134_v43, %v331_v40  ;;  %v1137_v20 = vadd.f32 %v1697_v53, %v2053_v26  ;;  %v1616_v56 = vpop.f32.mrb[43].mxu0  ;;  %v1128_v59 = vpop.f32.mrb[43].mxu1 }
 0x14e   : > { %1311 = vst.msk [vmem:[%s2082_s11 + $0x88] sm:$0xff] %vm272_vm0, %v1279_v47  ;;  %v1110_v60 = vadd.f32 %v1614_v48, %v1109_v18  ;;  %v1180_v61 = vadd.f32 %v1126_v49, %v329_v46  ;;  %v1617_v62 = vadd.f32 %v1616_v56, %v1615_v51  ;;  %v1129_v63 = vadd.f32 %v2049_v14, %v1128_v59 }
 0x14f   : > { %1214 = vst.msk [vmem:[#allocation2 + $0xd0] sm:$0xff] %vm272_vm0, %v1182_v54  ;;  %v1183_v8 = vadd.f32 %v1137_v20, %v332_v52 }
 0x150   : > { %v1176_v1 = vadd.f32 %v1110_v60, %v325_v55  ;;  %1212 = vst.msk [vmem:[#allocation2 + $0xc0] sm:$0xff] %vm272_vm0, %v1180_v61  ;;  %v1113_v2 = vadd.f32 %v1617_v62, %v1112_v27  ;;  %v1181_v26 = vadd.f32 %v1129_v63, %v330_v57 }
 0x151   : > { %v1241_v3 = vld [vmem:[#allocation2 + $0x90] sm:$0xff]  ;;  %1215 = vst.msk [vmem:[#allocation2 + $0xd8] sm:$0xff] %vm272_vm0, %v1183_v8 }
 0x152   : > { %v1280_v4 = vadd.f32 %v2077_v13, %v1241_v3  ;;  %1208 = vst.msk [vmem:[#allocation2 + $0xa0] sm:$0xff] %vm272_vm0, %v1176_v1  ;;  %v1177_v6 = vadd.f32 %v1113_v2, %v326_v0  ;;  %1213 = vst.msk [vmem:[#allocation2 + $0xc8] sm:$0xff] %vm272_vm0, %v1181_v26  ;;  %v1618_v14 = vpop.f32.mrb[44].mxu0  ;;  %v1700_v10 = vpop.f32.mrb[44].mxu1 }
 0x153   : > { %v1242_v58 = vld [vmem:[#allocation2 + $0x98] sm:$0xff]  ;;  %v1150_v7 = vadd.f32 %v1700_v10, %v2061_v44  ;;  %v1619_v11 = vpop.f32.mrb[45].mxu0  ;;  %v1141_v15 = vpop.f32.mrb[45].mxu1 }
 0x154   : > { %1312 = vst.msk [vmem:[%s2082_s11 + $0x90] sm:$0xff] %vm272_vm0, %v1280_v4  ;;  %v1281_v5 = vadd.f32 %v2077_v13, %v1242_v58  ;;  %1209 = vst.msk [vmem:[#allocation2 + $0xa8] sm:$0xff] %vm272_vm0, %v1177_v6  ;;  %v1620_v17 = vadd.f32 %v1619_v11, %v1618_v14  ;;  %v1142_v18 = vadd.f32 %v2055_v32, %v1141_v15  ;;  %v1621_v19 = vpop.f32.mrb[46].mxu0  ;;  %v1701_v22 = vpop.f32.mrb[46].mxu1 }
 0x155   : > { %v1186_v24 = vadd.f32 %v1150_v7, %v335_v9  ;;  %v1153_v44 = vadd.f32 %v1701_v22, %v2063_v50  ;;  %v1622_v27 = vpop.f32.mrb[47].mxu0  ;;  %v1144_v29 = vpop.f32.mrb[47].mxu1 }
 0x156   : > { %1313 = vst.msk [vmem:[%s2082_s11 + $0x98] sm:$0xff] %vm272_vm0, %v1281_v5  ;;  %v1249_v30 = vld [vmem:[#allocation2 + $0xd0] sm:$0xff]  ;;  %v1118_v33 = vadd.f32 %v2141_v16, %v1620_v17  ;;  %v1184_v34 = vadd.f32 %v1142_v18, %v333_v12  ;;  %v1623_v35 = vadd.f32 %v1622_v27, %v1621_v19  ;;  %v1145_v32 = vadd.f32 %v2059_v38, %v1144_v29 }
 0x157   : > { %v1288_v31 = vadd.f32 %v2077_v13, %v1249_v30  ;;  %v1247_v36 = vld [vmem:[#allocation2 + $0xc0] sm:$0xff]  ;;  %1218 = vst.msk [vmem:[#allocation2 + $0xf0] sm:$0xff] %vm272_vm0, %v1186_v24  ;;  %v1187_v50 = vadd.f32 %v1153_v44, %v336_v21 }
 0x158   : > { %v1286_v40 = vadd.f32 %v2077_v13, %v1247_v36  ;;  %v1250_v41 = vld [vmem:[#allocation2 + $0xd8] sm:$0xff]  ;;  %v1178_v42 = vadd.f32 %v1118_v33, %v327_v25  ;;  %1216 = vst.msk [vmem:[#allocation2 + $0xe0] sm:$0xff] %vm272_vm0, %v1184_v34  ;;  %v1121_v16 = vadd.f32 %v2149_v23, %v1623_v35  ;;  %v1185_v43 = vadd.f32 %v1145_v32, %v334_v28 }
 0x159   : > { %1320 = vst.msk [vmem:[%s2082_s11 + $0xd0] sm:$0xff] %vm272_vm0, %v1288_v31  ;;  %v1243_v38 = vld [vmem:[#allocation2 + $0xa0] sm:$0xff]  ;;  %v1289_v45 = vadd.f32 %v2077_v13, %v1250_v41  ;;  %v1248_v46 = vld [vmem:[#allocation2 + $0xc8] sm:$0xff]  ;;  %1219 = vst.msk [vmem:[#allocation2 + $0xf8] sm:$0xff] %vm272_vm0, %v1187_v50 }
 0x15a   : > { %v1282_v37 = vadd.f32 %v2077_v13, %v1243_v38  ;;  %1318 = vst.msk [vmem:[%s2082_s11 + $0xc0] sm:$0xff] %vm272_vm0, %v1286_v40  ;;  %v1287_v47 = vadd.f32 %v2077_v13, %v1248_v46  ;;  %1210 = vst.msk [vmem:[#allocation2 + $0xb0] sm:$0xff] %vm272_vm0, %v1178_v42  ;;  %v1179_v23 = vadd.f32 %v1121_v16, %v328_v39 }
 0x15b   : > { %1217 = vst.msk [vmem:[#allocation2 + $0xe8] sm:$0xff] %vm272_vm0, %v1185_v43  ;;  %1321 = vst.msk [vmem:[%s2082_s11 + $0xd8] sm:$0xff] %vm272_vm0, %v1289_v45  ;;  %v1244_v48 = vld [vmem:[#allocation2 + $0xa8] sm:$0xff] }
 0x15c   : > { %1314 = vst.msk [vmem:[%s2082_s11 + $0xa0] sm:$0xff] %vm272_vm0, %v1282_v37  ;;  %v1283_v49 = vadd.f32 %v2077_v13, %v1244_v48  ;;  %1319 = vst.msk [vmem:[%s2082_s11 + $0xc8] sm:$0xff] %vm272_vm0, %v1287_v47 }
 0x15d   : > { %1211 = vst.msk [vmem:[#allocation2 + $0xb8] sm:$0xff] %vm272_vm0, %v1179_v23 }
 0x15e   : > { %1315 = vst.msk [vmem:[%s2082_s11 + $0xa8] sm:$0xff] %vm272_vm0, %v1283_v49  ;;  %v1253_v51 = vld [vmem:[#allocation2 + $0xf0] sm:$0xff] }
 0x15f   : > { %v1292_v52 = vadd.f32 %v2077_v13, %v1253_v51  ;;  %v1251_v53 = vld [vmem:[#allocation2 + $0xe0] sm:$0xff] }
 0x160   : > { %v1290_v54 = vadd.f32 %v2077_v13, %v1251_v53  ;;  %v1254_v55 = vld [vmem:[#allocation2 + $0xf8] sm:$0xff] }
 0x161   : > { %1324 = vst.msk [vmem:[%s2082_s11 + $0xf0] sm:$0xff] %vm272_vm0, %v1292_v52  ;;  %v1245_v20 = vld [vmem:[#allocation2 + $0xb0] sm:$0xff]  ;;  %v1293_v56 = vadd.f32 %v2077_v13, %v1254_v55 }
 0x162   : > { %v1252_v57 = vld [vmem:[#allocation2 + $0xe8] sm:$0xff]  ;;  %v1284_v59 = vadd.f32 %v2077_v13, %v1245_v20  ;;  %1322 = vst.msk [vmem:[%s2082_s11 + $0xe0] sm:$0xff] %vm272_vm0, %v1290_v54 }
 0x163   : > { %v1291_v60 = vadd.f32 %v2077_v13, %v1252_v57  ;;  %1325 = vst.msk [vmem:[%s2082_s11 + $0xf8] sm:$0xff] %vm272_vm0, %v1293_v56 }
 0x164   : > { %v1246_v61 = vld [vmem:[#allocation2 + $0xb8] sm:$0xff]  ;;  %1316 = vst.msk [vmem:[%s2082_s11 + $0xb0] sm:$0xff] %vm272_vm0, %v1284_v59 }
 0x165   : > { %v1285_v62 = vadd.f32 %v2077_v13, %v1246_v61  ;;  %1323 = vst.msk [vmem:[%s2082_s11 + $0xe8] sm:$0xff] %vm272_vm0, %v1291_v60 }
 0x167   : > { %1317 = vst.msk [vmem:[%s2082_s11 + $0xb8] sm:$0xff] %vm272_vm0, %v1285_v62 }
 0x168 PF: > { %s13_s14 = sadd.s32 1, %s1848_s14   ;;  %s2238_s12 = smov %s1844_s13 }
 0x169   : > { %p10_p5 = scmp.ge.s32.totalorder %s13_s14, 4   ;;  %s2239_s13 = smov %s2241_s15 }
 0x16b   :  { %12 = sbr.rel (!%p10_p5) target bundleno = 2 (0x2), region = 76 }

// kernel: vqvae_forward.57
= control target key start
LH: loop header
LB: loop body
LE: loop exit
PB: predicated region body
PF: predicated region fallthrough
CT: control target
= control target key end

     0   :  { %s2017_s15 = smov 0   ;;  %s2019_s16 = smov 0   ;;  %s2421_s0 = inlined_call_operand.vmem [shape: bf16[512,288], index: 0, kind: input, shape index: {}]   ;;  %s2422_s1 = inlined_call_operand.vmem [shape: bf16[288,32], index: 1, kind: input, shape index: {}]   ;;  %s2423_s2 = inlined_call_operand.vmem [shape: f32[1,32], index: 2, kind: input, shape index: {}]   ;;  %s2424_s3 = inlined_call_operand.vmem [shape: f32[512,32], index: 3, kind: input, shape index: {}]   ;;  %s2425_s4 = inlined_call_operand.vmem [shape: f32[512,32], index: 4, kind: output, shape index: {}]  }
   0x1   :  { %s2021_s17 = smov 0  }
   0x2 LB: > { %s33_s18 = sadd.s32 1, %s1985_s16  ;;  %p1585_p0 = scmp.ge.s32.totalorder %s1989_s17, 1  ;;  %s1989_s17 = sphi %s2021_s17, %s14_s17   ;;  %s1985_s16 = sphi %s2019_s16, %s2427_s16   ;;  %s1981_s15 = sphi %s2017_s15, %s2426_s15  }
   0x3   : > { %p35_p1 = scmp.ge.s32.totalorder %s33_s18, 2  ;;  %p232_p2 = scmp.lt.s32.totalorder %s1989_s17, 3 }
   0x5   : > { %s2429_s18 = smov (%p35_p1, %s33_s18), 0  ;;  %p233_p3 = pnand %p1585_p0, %p232_p2 }
   0x6   : > { %v1885_v0 = vld [vmem:[%s2422_s1 + $0x40] sm:$0xff] (!%p233_p3)   ;;  %s1586_s21 = sshll.u32 (!%p233_p3), %s1981_s15, 5  ;;  %v1887_v2 = vld [vmem:[%s2422_s1 + $0x48] sm:$0xff] (!%p233_p3)   ;;  %v1889_v4 = vld [vmem:[%s2422_s1 + $0x50] sm:$0xff] (!%p233_p3)   ;;  %vm332_vm0 = vcmask (!%p233_p3), 261120  }
   0x7   : > { %236 = sbr.rel (%p233_p3) target bundleno = 361 (0x169), region = 36  ;;  %v1886_v1 = vld [vmem:[%s2422_s1] sm:$0xff] (!%p233_p3)   ;;  %1677 = vmatprep.subr.bf16.mxu0 (!%p233_p3), %v1885_v0  ;;  %1843 = vmatprep.subr.bf16.mxu1 (!%p233_p3), %v1885_v0  ;;  %p287_p4 = scmp.lt.s32.totalorder (!%p233_p3), %s1586_s21, 63  ;;  %v1888_v3 = vld [vmem:[%s2422_s1 + $0x8] sm:$0xff] (!%p233_p3)   ;;  %v1890_v5 = vld [vmem:[%s2422_s1 + $0x10] sm:$0xff] (!%p233_p3)  }
   0x8   : > { %1678 = vmatpush3.bf16.msra.mxu0 (!%p233_p3), %v1886_v1  ;;  %1851 = vmatpush3.bf16.msra.mxu1 (!%p233_p3), %v1886_v1  ;;  %v1891_v6 = vld [vmem:[%s2422_s1 + $0x58] sm:$0xff] (!%p233_p3)   ;;  %v1893_v8 = vld [vmem:[%s2422_s1 + $0x60] sm:$0xff] (!%p233_p3)   ;;  %v1895_v10 = vld [vmem:[%s2422_s1 + $0x68] sm:$0xff] (!%p233_p3)  }
   0x9   : > { %1679 = vmatprep.subr.bf16.mxu0 (!%p233_p3), %v1887_v2  ;;  %1844 = vmatprep.subr.bf16.mxu1 (!%p233_p3), %v1887_v2  ;;  %v1892_v7 = vld [vmem:[%s2422_s1 + $0x18] sm:$0xff] (!%p233_p3)   ;;  %v1894_v9 = vld [vmem:[%s2422_s1 + $0x20] sm:$0xff] (!%p233_p3)   ;;  %v1896_v13 = vld [vmem:[%s2422_s1 + $0x28] sm:$0xff] (!%p233_p3)   ;;  %v1991_v2 = vmov (!%p233_p3), 0.0  }
   0xa   : > { %v1897_v14 = vld [vmem:[%s2422_s1 + $0x70] sm:$0xff] (!%p233_p3)   ;;  %v1899_v16 = vld [vmem:[%s2422_s1 + $0x78] sm:$0xff] (!%p233_p3)   ;;  %v1907_v18 = vld [vmem:[%s2422_s1 + $0x80] sm:$0xff] (!%p233_p3)   ;;  %335 = vst.msk [vmem:[#allocation2 + $0x10] sm:$0xff] (!%p233_p3), %vm332_vm0, %v1991_v2 }
   0xb   : > { %v1898_v15 = vld [vmem:[%s2422_s1 + $0x30] sm:$0xff] (!%p233_p3)   ;;  %v1900_v17 = vld [vmem:[%s2422_s1 + $0x38] sm:$0xff] (!%p233_p3)   ;;  %v1920_v23 = vld [vmem:[%s2422_s1 + $0x88] sm:$0xff] (!%p233_p3)   ;;  %333 = vst.msk [vmem:[#allocation2] sm:$0xff] (!%p233_p3), %vm332_vm0, %v1991_v2 }
   0xc   : > { %1680 = vmatpush3.bf16.msra.mxu0 (!%p233_p3), %v1888_v3  ;;  %1852 = vmatpush3.bf16.msra.mxu1 (!%p233_p3), %v1888_v3  ;;  %334 = vst.msk [vmem:[#allocation2 + $0x8] sm:$0xff] (!%p233_p3), %vm332_vm0, %v1991_v2  ;;  %336 = vst.msk [vmem:[#allocation2 + $0x18] sm:$0xff] (!%p233_p3), %vm332_vm0, %v1991_v2 }
   0xd   : > { %1681 = vmatprep.subr.bf16.mxu0 (!%p233_p3), %v1889_v4  ;;  %1845 = vmatprep.subr.bf16.mxu1 (!%p233_p3), %v1889_v4  ;;  %337 = vst.msk [vmem:[#allocation2 + $0x20] sm:$0xff] (!%p233_p3), %vm332_vm0, %v1991_v2  ;;  %338 = vst.msk [vmem:[#allocation2 + $0x28] sm:$0xff] (!%p233_p3), %vm332_vm0, %v1991_v2 }
   0xe   : > { %s2431_s21 = smov (!%p287_p4, %s1586_s21), 63  ;;  %339 = vst.msk [vmem:[#allocation2 + $0x30] sm:$0xff] %vm332_vm0, %v1991_v2  ;;  %340 = vst.msk [vmem:[#allocation2 + $0x38] sm:$0xff] %vm332_vm0, %v1991_v2 }
   0xf   : > { %s1859_s8 = smul.u32 12, %s2431_s21  ;;  %341 = vst.msk [vmem:[#allocation2 + $0x40] sm:$0xff] %vm332_vm0, %v1991_v2  ;;  %342 = vst.msk [vmem:[#allocation2 + $0x48] sm:$0xff] %vm332_vm0, %v1991_v2  ;;  %s1589_s12 = sshll.u32 %s2431_s21, 3 }
  0x10   : > { %1682 = vmatpush3.bf16.msra.mxu0 %v1890_v5  ;;  %1853 = vmatpush3.bf16.msra.mxu1 %v1890_v5  ;;  %343 = vst.msk [vmem:[#allocation2 + $0x50] sm:$0xff] %vm332_vm0, %v1991_v2  ;;  %344 = vst.msk [vmem:[#allocation2 + $0x58] sm:$0xff] %vm332_vm0, %v1991_v2  ;;  %s2242_s24 = scalar_lea.vmem %s2425_s4, %s1589_s12 }
  0x11   : > { %1683 = vmatprep.subr.bf16.mxu0 %v1891_v6  ;;  %1846 = vmatprep.subr.bf16.mxu1 %v1891_v6  ;;  %s2068_s15 = scalar_lea.vmem %s2421_s0, %s1859_s8  ;;  %345 = vst.msk [vmem:[#allocation2 + $0x60] sm:$0xff] %vm332_vm0, %v1991_v2  ;;  %346 = vst.msk [vmem:[#allocation2 + $0x68] sm:$0xff] %vm332_vm0, %v1991_v2 }
  0x12   : > { %v1903_v11 = vld [vmem:[%s2068_s15 + $0x4] ss:$12 sps:$4 sm:$0xff]   ;;  %v1901_v19 = vld [vmem:[%s2068_s15] ss:$12 sps:$4 sm:$0xff]   ;;  %v1908_v21 = vld [vmem:[%s2068_s15 + $0x1c] ss:$12 sps:$4 sm:$0xff]  }
  0x13   : > { %v1906_v12 = vld [vmem:[%s2068_s15 + $0x124] ss:$12 sps:$4 sm:$0xff]   ;;  %926 = vmatprep.mubr.bf16.mxu0 %v1903_v11  ;;  %v1904_v20 = vld [vmem:[%s2068_s15 + $0x120] ss:$12 sps:$4 sm:$0xff]   ;;  %v1910_v22 = vld [vmem:[%s2068_s15 + $0x13c] ss:$12 sps:$4 sm:$0xff]  }
  0x14   : > { %1684 = vmatpush3.bf16.msra.mxu0 %v1892_v7  ;;  %1854 = vmatpush3.bf16.msra.mxu1 %v1892_v7  ;;  %v1912_v24 = vld [vmem:[%s2068_s15 + $0x18] ss:$12 sps:$4 sm:$0xff]   ;;  %v1914_v26 = vld [vmem:[%s2068_s15 + $0x34] ss:$12 sps:$4 sm:$0xff]   ;;  %v1918_v28 = vld [vmem:[%s2068_s15 + $0x30] ss:$12 sps:$4 sm:$0xff]  }
  0x15   : > { %1685 = vmatprep.subr.bf16.mxu0 %v1893_v8  ;;  %1847 = vmatprep.subr.bf16.mxu1 %v1893_v8  ;;  %v1913_v25 = vld [vmem:[%s2068_s15 + $0x138] ss:$12 sps:$4 sm:$0xff]   ;;  %v1916_v27 = vld [vmem:[%s2068_s15 + $0x154] ss:$12 sps:$4 sm:$0xff]   ;;  %v1919_v29 = vld [vmem:[%s2068_s15 + $0x150] ss:$12 sps:$4 sm:$0xff]  }
  0x16   : > { %1022 = vmatprep.mubr.bf16.mxu1 %v1906_v12  ;;  %v1921_v30 = vld [vmem:[%s2068_s15 + $0x4c] ss:$12 sps:$4 sm:$0xff]   ;;  %v1925_v32 = vld [vmem:[%s2068_s15 + $0x48] ss:$12 sps:$4 sm:$0xff]   ;;  %v1927_v34 = vld [vmem:[%s2068_s15 + $0x64] ss:$12 sps:$4 sm:$0xff]  }
  0x17   : > { %v1923_v31 = vld [vmem:[%s2068_s15 + $0x16c] ss:$12 sps:$4 sm:$0xff]   ;;  %v1926_v33 = vld [vmem:[%s2068_s15 + $0x168] ss:$12 sps:$4 sm:$0xff]   ;;  %v1936_v41 = vld [vmem:[%s2068_s15 + $0x50] ss:$12 sps:$4 sm:$0xff]  }
  0x18   : > { %1686 = vmatpush3.bf16.msra.mxu0 %v1894_v9  ;;  %1855 = vmatpush3.bf16.msra.mxu1 %v1894_v9  ;;  %v1929_v35 = vld [vmem:[%s2068_s15 + $0x8] ss:$12 sps:$4 sm:$0xff]   ;;  %v1930_v36 = vld [vmem:[%s2068_s15 + $0x60] ss:$12 sps:$4 sm:$0xff]   ;;  %v1934_v39 = vld [vmem:[%s2068_s15 + $0x38] ss:$12 sps:$4 sm:$0xff]  }
  0x19   : > { %1687 = vmatprep.subr.bf16.mxu0 %v1895_v10  ;;  %1848 = vmatprep.subr.bf16.mxu1 %v1895_v10  ;;  %v1931_v37 = vld [vmem:[%s2068_s15 + $0x20] ss:$12 sps:$4 sm:$0xff]   ;;  %v1932_v38 = vld [vmem:[%s2068_s15 + $0x7c] ss:$12 sps:$4 sm:$0xff]   ;;  %v1935_v40 = vld [vmem:[%s2068_s15 + $0x78] ss:$12 sps:$4 sm:$0xff]  }
  0x1a   : > { %v1937_v42 = vld [vmem:[%s2068_s15 + $0x94] ss:$12 sps:$4 sm:$0xff]   ;;  %v1940_v44 = vld [vmem:[%s2068_s15 + $0x90] ss:$12 sps:$4 sm:$0xff]   ;;  %v1942_v46 = vld [vmem:[%s2068_s15 + $0xac] ss:$12 sps:$4 sm:$0xff]  }
  0x1b   : > { %v1939_v43 = vld [vmem:[%s2068_s15 + $0x68] ss:$12 sps:$4 sm:$0xff]   ;;  %v1941_v45 = vld [vmem:[%s2068_s15 + $0x80] ss:$12 sps:$4 sm:$0xff]   ;;  %v1944_v47 = vld [vmem:[%s2068_s15 + $0x98] ss:$12 sps:$4 sm:$0xff]  }
  0x1c   : > { %1688 = vmatpush3.bf16.msra.mxu0 %v1896_v13  ;;  %1856 = vmatpush3.bf16.msra.mxu1 %v1896_v13  ;;  %v1945_v48 = vld [vmem:[%s2068_s15 + $0xa8] ss:$12 sps:$4 sm:$0xff]   ;;  %v1946_v49 = vld [vmem:[%s2068_s15 + $0xb0] ss:$12 sps:$4 sm:$0xff]   ;;  %v1950_v52 = vld [vmem:[%s2068_s15 + $0xc0] ss:$12 sps:$4 sm:$0xff]  }
  0x1d   : > { %1689 = vmatprep.subr.bf16.mxu0 %v1897_v14  ;;  %1849 = vmatprep.subr.bf16.mxu1 %v1897_v14  ;;  %v1947_v50 = vld [vmem:[%s2068_s15 + $0xc4] ss:$12 sps:$4 sm:$0xff]   ;;  %v1949_v51 = vld [vmem:[%s2068_s15 + $0xc8] ss:$12 sps:$4 sm:$0xff]   ;;  %v1951_v53 = vld [vmem:[%s2068_s15 + $0xe0] ss:$12 sps:$4 sm:$0xff]  }
  0x1e   : > { %v1952_v54 = vld [vmem:[%s2068_s15 + $0xdc] ss:$12 sps:$4 sm:$0xff]   ;;  %v1954_v55 = vld [vmem:[%s2068_s15 + $0xf8] ss:$12 sps:$4 sm:$0xff]   ;;  %v1957_v58 = vld [vmem:[%s2068_s15 + $0xf4] ss:$12 sps:$4 sm:$0xff]  }
  0x1f   : > { %v1955_v56 = vld [vmem:[%s2068_s15 + $0xd8] ss:$12 sps:$4 sm:$0xff]   ;;  %v1956_v57 = vld [vmem:[%s2068_s15 + $0x110] ss:$12 sps:$4 sm:$0xff]   ;;  %v1959_v59 = vld [vmem:[%s2068_s15 + $0x128] ss:$12 sps:$4 sm:$0xff]  }
  0x20   : > { %1690 = vmatpush3.bf16.msra.mxu0 %v1898_v15  ;;  %1857 = vmatpush3.bf16.msra.mxu1 %v1898_v15  ;;  %v1960_v60 = vld [vmem:[%s2068_s15 + $0xf0] ss:$12 sps:$4 sm:$0xff]   ;;  %v1961_v61 = vld [vmem:[%s2068_s15 + $0x140] ss:$12 sps:$4 sm:$0xff]   ;;  %v1964_v63 = vld [vmem:[%s2068_s15 + $0x158] ss:$12 sps:$4 sm:$0xff]  }
  0x21   : > { %1691 = vmatprep.subr.bf16.mxu0 %v1899_v16  ;;  %1850 = vmatprep.subr.bf16.mxu1 %v1899_v16  ;;  %v1962_v62 = vld [vmem:[%s2068_s15 + $0x10c] ss:$12 sps:$4 sm:$0xff]   ;;  %v1965_v0 = vld [vmem:[%s2068_s15 + $0x108] ss:$12 sps:$4 sm:$0xff]   ;;  %v1966_v1 = vld [vmem:[%s2068_s15 + $0x170] ss:$12 sps:$4 sm:$0xff]   ;;  %s2225_s15 = scalar_lea.vmem %s2424_s3, %s1589_s12 }
  0x22   : > { %347 = vst.msk [vmem:[#allocation2 + $0x70] sm:$0xff] %vm332_vm0, %v1991_v2  ;;  %348 = vst.msk [vmem:[#allocation2 + $0x78] sm:$0xff] %vm332_vm0, %v1991_v2 }
  0x23   : > { %349 = vst.msk [vmem:[#allocation2 + $0x80] sm:$0xff] %vm332_vm0, %v1991_v2  ;;  %350 = vst.msk [vmem:[#allocation2 + $0x88] sm:$0xff] %vm332_vm0, %v1991_v2 }
  0x24   : > { %1692 = vmatpush3.bf16.msra.mxu0 %v1900_v17  ;;  %1858 = vmatpush3.bf16.msra.mxu1 %v1900_v17  ;;  %351 = vst.msk [vmem:[#allocation2 + $0x90] sm:$0xff] %vm332_vm0, %v1991_v2  ;;  %352 = vst.msk [vmem:[#allocation2 + $0x98] sm:$0xff] %vm332_vm0, %v1991_v2 }
  0x25   : > { %1807 = vmatprep.subr.bf16.mxu1 %v1907_v18  ;;  %353 = vst.msk [vmem:[#allocation2 + $0xa0] sm:$0xff] %vm332_vm0, %v1991_v2  ;;  %354 = vst.msk [vmem:[#allocation2 + $0xa8] sm:$0xff] %vm332_vm0, %v1991_v2 }
  0x26   : > { %355 = vst.msk [vmem:[#allocation2 + $0xb0] sm:$0xff] %vm332_vm0, %v1991_v2  ;;  %356 = vst.msk [vmem:[#allocation2 + $0xb8] sm:$0xff] %vm332_vm0, %v1991_v2 }
  0x27   : > { %927 = vmatmul.mubr.bf16.vlgmr.msra.gmra.mrb[0].mxu0 %v1901_v19  ;;  %1023 = vmatmul.mubr.bf16.vlgmr.msra.gmra.mrb[0].mxu1 %v1904_v20  ;;  %357 = vst.msk [vmem:[#allocation2 + $0xc0] sm:$0xff] %vm332_vm0, %v1991_v2  ;;  %358 = vst.msk [vmem:[#allocation2 + $0xc8] sm:$0xff] %vm332_vm0, %v1991_v2 }
  0x28   : > { %1808 = vmatpush3.bf16.msra.mxu1 %v1907_v18  ;;  %934 = vmatprep.mubr.bf16.mxu0 %v1908_v21  ;;  %359 = vst.msk [vmem:[#allocation2 + $0xd0] sm:$0xff] %vm332_vm0, %v1991_v2  ;;  %360 = vst.msk [vmem:[#allocation2 + $0xd8] sm:$0xff] %vm332_vm0, %v1991_v2 }
  0x29   : > { %1030 = vmatprep.mubr.bf16.mxu1 %v1910_v22  ;;  %1809 = vmatprep.subr.bf16.mxu1 %v1920_v23  ;;  %361 = vst.msk [vmem:[#allocation2 + $0xe0] sm:$0xff] %vm332_vm0, %v1991_v2  ;;  %362 = vst.msk [vmem:[#allocation2 + $0xe8] sm:$0xff] %vm332_vm0, %v1991_v2 }
  0x2a   : > { %363 = vst.msk [vmem:[#allocation2 + $0xf0] sm:$0xff] %vm332_vm0, %v1991_v2  ;;  %364 = vst.msk [vmem:[#allocation2 + $0xf8] sm:$0xff] %vm332_vm0, %v1991_v2  ;;  %v366_v2 = vld [vmem:[#allocation2 + $0x8] sm:$0xff] }
  0x2c   : > { %1810 = vmatpush3.bf16.msra.mxu1 %v1920_v23 }
  0x2f   : > { %935 = vmatmul.mubr.bf16.gmra.mrb[4].mxu0 %v1912_v24  ;;  %1031 = vmatmul.mubr.bf16.gmra.mrb[4].mxu1 %v1913_v25 }
  0x30   : > { %942 = vmatprep.mubr.bf16.mxu0 %v1914_v26  ;;  %1038 = vmatprep.mubr.bf16.mxu1 %v1916_v27 }
  0x37   : > { %943 = vmatmul.mubr.bf16.gmra.mrb[8].mxu0 %v1918_v28  ;;  %1039 = vmatmul.mubr.bf16.gmra.mrb[8].mxu1 %v1919_v29 }
  0x38   : > { %950 = vmatprep.mubr.bf16.mxu0 %v1921_v30  ;;  %1046 = vmatprep.mubr.bf16.mxu1 %v1923_v31 }
  0x3f   : > { %951 = vmatmul.mubr.bf16.gmra.mrb[12].mxu0 %v1925_v32  ;;  %1047 = vmatmul.mubr.bf16.gmra.mrb[12].mxu1 %v1926_v33 }
  0x40   : > { %958 = vmatprep.mubr.bf16.mxu0 %v1927_v34  ;;  %1811 = vmatprep.mubr.msk.bf16.mxu1 %vm332_vm0, %v1929_v35 }
  0x47   : > { %959 = vmatmul.mubr.bf16.gmra.mrb[16].mxu0 %v1930_v36  ;;  %1812 = vmatmul.mubr.msk.bf16.vlgmr.msra.gmra.mrb[16].mxu1 %vm332_vm0, %v1931_v37 }
  0x48   : > { %966 = vmatprep.mubr.bf16.mxu0 %v1932_v38  ;;  %1815 = vmatprep.mubr.msk.bf16.mxu1 %vm332_vm0, %v1934_v39 }
  0x4f   : > { %967 = vmatmul.mubr.bf16.gmra.mrb[20].mxu0 %v1935_v40  ;;  %1816 = vmatmul.mubr.msk.bf16.gmra.mrb[20].mxu1 %vm332_vm0, %v1936_v41 }
  0x50   : > { %974 = vmatprep.mubr.bf16.mxu0 %v1937_v42  ;;  %1819 = vmatprep.mubr.msk.bf16.mxu1 %vm332_vm0, %v1939_v43 }
  0x57   : > { %975 = vmatmul.mubr.bf16.gmra.mrb[24].mxu0 %v1940_v44  ;;  %1820 = vmatmul.mubr.msk.bf16.gmra.mrb[24].mxu1 %vm332_vm0, %v1941_v45 }
  0x58   : > { %982 = vmatprep.mubr.bf16.mxu0 %v1942_v46  ;;  %1823 = vmatprep.mubr.msk.bf16.mxu1 %vm332_vm0, %v1944_v47 }
  0x5f   : > { %983 = vmatmul.mubr.bf16.gmra.mrb[28].mxu0 %v1945_v48  ;;  %1824 = vmatmul.mubr.msk.bf16.gmra.mrb[28].mxu1 %vm332_vm0, %v1946_v49 }
  0x60   : > { %990 = vmatprep.mubr.bf16.mxu0 %v1947_v50  ;;  %1827 = vmatprep.mubr.msk.bf16.mxu1 %vm332_vm0, %v1949_v51 }
  0x67   : > { %991 = vmatmul.mubr.bf16.gmra.mrb[32].mxu0 %v1950_v52  ;;  %1828 = vmatmul.mubr.msk.bf16.gmra.mrb[32].mxu1 %vm332_vm0, %v1951_v53  ;;  %v367_v52 = vld [vmem:[#allocation2 + $0x10] sm:$0xff] }
  0x68   : > { %998 = vmatprep.mubr.bf16.mxu0 %v1952_v54  ;;  %1831 = vmatprep.mubr.msk.bf16.mxu1 %vm332_vm0, %v1954_v55 }
  0x6f   : > { %999 = vmatmul.mubr.bf16.gmra.mrb[36].mxu0 %v1955_v56  ;;  %1832 = vmatmul.mubr.msk.bf16.gmra.mrb[36].mxu1 %vm332_vm0, %v1956_v57  ;;  %v365_v56 = vld [vmem:[#allocation2] sm:$0xff] }
  0x70   : > { %1006 = vmatprep.mubr.bf16.mxu0 %v1957_v58  ;;  %1835 = vmatprep.mubr.msk.bf16.mxu1 %vm332_vm0, %v1959_v59 }
  0x77   : > { %1007 = vmatmul.mubr.bf16.gmra.mrb[40].mxu0 %v1960_v60  ;;  %1836 = vmatmul.mubr.msk.bf16.gmra.mrb[40].mxu1 %vm332_vm0, %v1961_v61  ;;  %v368_v61 = vld [vmem:[#allocation2 + $0x18] sm:$0xff] }
  0x78   : > { %1014 = vmatprep.mubr.bf16.mxu0 %v1962_v62  ;;  %1839 = vmatprep.mubr.msk.bf16.mxu1 %vm332_vm0, %v1964_v63 }
  0x7f   : > { %1015 = vmatmul.mubr.bf16.gmra.mrb[44].mxu0 %v1965_v0  ;;  %1840 = vmatmul.mubr.msk.bf16.gmra.mrb[44].mxu1 %vm332_vm0, %v1966_v1 }
  0xfa   : > { %v1693_v3 = vpop.f32.mrb[0].mxu0  ;;  %v1765_v4 = vpop.f32.mrb[0].mxu1 }
  0xfb   : > { %v1694_v5 = vpop.f32.mrb[1].mxu0  ;;  %v1766_v6 = vpop.f32.mrb[1].mxu1 }
  0xfc   : > { %v1695_v7 = vadd.f32 %v1694_v5, %v1693_v3  ;;  %v2193_v8 = vadd.f32 %v1766_v6, %v1765_v4  ;;  %v1696_v9 = vpop.f32.mrb[2].mxu0  ;;  %v1768_v10 = vpop.f32.mrb[2].mxu1 }
  0xfd   : > { %v1697_v11 = vpop.f32.mrb[3].mxu0  ;;  %v1769_v12 = vpop.f32.mrb[3].mxu1 }
  0xfe   : > { %v1698_v13 = vadd.f32 %v1697_v11, %v1696_v9  ;;  %v2195_v14 = vadd.f32 %v1769_v12, %v1768_v10  ;;  %v371_v11 = vld [vmem:[#allocation2 + $0x30] sm:$0xff] }
 0x102   : > { %v1699_v15 = vpop.f32.mrb[4].mxu0  ;;  %v1771_v16 = vpop.f32.mrb[4].mxu1 }
 0x103   : > { %v1700_v17 = vpop.f32.mrb[5].mxu0  ;;  %v1772_v18 = vpop.f32.mrb[5].mxu1 }
 0x104   : > { %v1701_v19 = vadd.f32 %v1700_v17, %v1699_v15  ;;  %v2197_v20 = vadd.f32 %v1772_v18, %v1771_v16  ;;  %v1702_v21 = vpop.f32.mrb[6].mxu0  ;;  %v1774_v22 = vpop.f32.mrb[6].mxu1  ;;  %v369_v16 = vld [vmem:[#allocation2 + $0x20] sm:$0xff] }
 0x105   : > { %v1703_v23 = vpop.f32.mrb[7].mxu0  ;;  %v1775_v24 = vpop.f32.mrb[7].mxu1  ;;  %v2230_v18 = vld [vmem:[%s2423_s2] ss:$0 sm:$0xff] }
 0x106   : > { %v1704_v25 = vadd.f32 %v1703_v23, %v1702_v21  ;;  %v2199_v26 = vadd.f32 %v1775_v24, %v1774_v22  ;;  %v372_v23 = vld [vmem:[#allocation2 + $0x38] sm:$0xff] }
 0x10a   : > { %v1705_v27 = vpop.f32.mrb[8].mxu0  ;;  %v1777_v28 = vpop.f32.mrb[8].mxu1 }
 0x10b   : > { %v1706_v29 = vpop.f32.mrb[9].mxu0  ;;  %v1778_v30 = vpop.f32.mrb[9].mxu1 }
 0x10c   : > { %v1707_v31 = vadd.f32 %v1706_v29, %v1705_v27  ;;  %v2201_v32 = vadd.f32 %v1778_v30, %v1777_v28  ;;  %v1708_v33 = vpop.f32.mrb[10].mxu0  ;;  %v1780_v34 = vpop.f32.mrb[10].mxu1  ;;  %v370_v29 = vld [vmem:[#allocation2 + $0x28] sm:$0xff] }
 0x10d   : > { %v1709_v35 = vpop.f32.mrb[11].mxu0  ;;  %v1781_v36 = vpop.f32.mrb[11].mxu1 }
 0x10e   : > { %v2203_v37 = vadd.f32 %v1709_v35, %v1708_v33  ;;  %v2205_v38 = vadd.f32 %v1781_v36, %v1780_v34  ;;  %v1356_v34 = vld [vmem:[%s2225_s15 + $0x10] sm:$0xff] }
 0x112   : > { %v1711_v39 = vpop.f32.mrb[12].mxu0  ;;  %v1783_v40 = vpop.f32.mrb[12].mxu1 }
 0x113   : > { %v1712_v41 = vpop.f32.mrb[13].mxu0  ;;  %v1784_v42 = vpop.f32.mrb[13].mxu1 }
 0x114   : > { %v1713_v43 = vadd.f32 %v1712_v41, %v1711_v39  ;;  %v2207_v44 = vadd.f32 %v1784_v42, %v1783_v40  ;;  %v1714_v45 = vpop.f32.mrb[14].mxu0  ;;  %v1786_v46 = vpop.f32.mrb[14].mxu1  ;;  %v1354_v41 = vld [vmem:[%s2225_s15] sm:$0xff] }
 0x115   : > { %v1715_v47 = vpop.f32.mrb[15].mxu0  ;;  %v1787_v48 = vpop.f32.mrb[15].mxu1 }
 0x116   : > { %v1716_v49 = vadd.f32 %v1715_v47, %v1714_v45  ;;  %v2209_v50 = vadd.f32 %v1787_v48, %v1786_v46  ;;  %v1357_v46 = vld [vmem:[%s2225_s15 + $0x18] sm:$0xff] }
 0x11a   : > { %v1717_v51 = vpop.f32.mrb[16].mxu0  ;;  %v1813_v53 = vpop.f32.mrb[16].mxu1 }
 0x11b   : > { %v1098_v54 = vadd.f32 %v1813_v53, %v1701_v19  ;;  %v1718_v55 = vpop.f32.mrb[17].mxu0  ;;  %v1089_v57 = vpop.f32.mrb[17].mxu1 }
 0x11c   : > { %v2211_v58 = vadd.f32 %v1718_v55, %v1717_v51  ;;  %v1090_v59 = vadd.f32 %v1695_v7, %v1089_v57  ;;  %v1720_v60 = vpop.f32.mrb[18].mxu0  ;;  %v1814_v62 = vpop.f32.mrb[18].mxu1  ;;  %v1355_v51 = vld [vmem:[%s2225_s15 + $0x8] sm:$0xff]  ;;  %v375_v55 = vld [vmem:[#allocation2 + $0x50] sm:$0xff] }
 0x11d   : > { %v1218_v63 = vadd.f32 %v1098_v54, %v367_v52  ;;  %v1101_v0 = vadd.f32 %v1814_v62, %v1704_v25  ;;  %v1721_v1 = vpop.f32.mrb[19].mxu0  ;;  %v1092_v3 = vpop.f32.mrb[19].mxu1 }
 0x11e   : > { %v1216_v4 = vadd.f32 %v1090_v59, %v365_v56  ;;  %v2213_v5 = vadd.f32 %v1721_v1, %v1720_v60  ;;  %v1093_v6 = vadd.f32 %v1698_v13, %v1092_v3  ;;  %v376_v3 = vld [vmem:[#allocation2 + $0x58] sm:$0xff] }
 0x11f   : > { %1250 = vst.msk [vmem:[#allocation2 + $0x10] sm:$0xff] %vm332_vm0, %v1218_v63  ;;  %v1219_v9 = vadd.f32 %v1101_v0, %v368_v61  ;;  %v373_v61 = vld [vmem:[#allocation2 + $0x40] sm:$0xff] }
 0x120   : > { %1248 = vst.msk [vmem:[#allocation2] sm:$0xff] %vm332_vm0, %v1216_v4  ;;  %v1217_v7 = vadd.f32 %v1093_v6, %v366_v2 }
 0x121   : > { %1251 = vst.msk [vmem:[#allocation2 + $0x18] sm:$0xff] %vm332_vm0, %v1219_v9 }
 0x122   : > { %1249 = vst.msk [vmem:[#allocation2 + $0x8] sm:$0xff] %vm332_vm0, %v1217_v7  ;;  %v1723_v10 = vpop.f32.mrb[20].mxu0  ;;  %v1817_v12 = vpop.f32.mrb[20].mxu1 }
 0x123   : > { %v1114_v13 = vadd.f32 %v1817_v12, %v1713_v43  ;;  %v1724_v15 = vpop.f32.mrb[21].mxu0  ;;  %v1105_v17 = vpop.f32.mrb[21].mxu1 }
 0x124   : > { %v1725_v19 = vadd.f32 %v1724_v15, %v1723_v10  ;;  %v1106_v21 = vadd.f32 %v1707_v31, %v1105_v17  ;;  %v1726_v22 = vpop.f32.mrb[22].mxu0  ;;  %v1818_v24 = vpop.f32.mrb[22].mxu1  ;;  %v374_v10 = vld [vmem:[#allocation2 + $0x48] sm:$0xff] }
 0x125   : > { %v1222_v25 = vadd.f32 %v1114_v13, %v371_v11  ;;  %v1117_v27 = vadd.f32 %v1818_v24, %v1716_v49  ;;  %v1727_v28 = vpop.f32.mrb[23].mxu0  ;;  %v1108_v30 = vpop.f32.mrb[23].mxu1  ;;  %v1360_v13 = vld [vmem:[%s2225_s15 + $0x30] sm:$0xff] }
 0x126   : > { %v1285_v33 = vld [vmem:[#allocation2 + $0x10] sm:$0xff]  ;;  %v1220_v35 = vadd.f32 %v1106_v21, %v369_v16  ;;  %v1728_v36 = vadd.f32 %v1727_v28, %v1726_v22  ;;  %v1109_v39 = vadd.f32 %v2203_v37, %v1108_v30  ;;  %v1358_v21 = vld [vmem:[%s2225_s15 + $0x20] sm:$0xff]  ;;  %v1359_v30 = vld [vmem:[%s2225_s15 + $0x28] sm:$0xff] }
 0x127   : > { %v1324_v31 = vadd.f32 %v2230_v18, %v1285_v33  ;;  %v1283_v40 = vld [vmem:[#allocation2] sm:$0xff]  ;;  %1254 = vst.msk [vmem:[#allocation2 + $0x30] sm:$0xff] %vm332_vm0, %v1222_v25  ;;  %v1223_v42 = vadd.f32 %v1117_v27, %v372_v23  ;;  %v1361_v25 = vld [vmem:[%s2225_s15 + $0x38] sm:$0xff] }
 0x128   : > { %v1322_v43 = vadd.f32 %v2230_v18, %v1283_v40  ;;  %v1286_v45 = vld [vmem:[#allocation2 + $0x18] sm:$0xff]  ;;  %1252 = vst.msk [vmem:[#allocation2 + $0x20] sm:$0xff] %vm332_vm0, %v1220_v35  ;;  %v1221_v37 = vadd.f32 %v1109_v39, %v370_v29  ;;  %v377_v40 = vld [vmem:[#allocation2 + $0x60] sm:$0xff] }
 0x129   : > { %v1388_v47 = vadd.f32 %v1356_v34, %v1324_v31  ;;  %v1325_v48 = vadd.f32 %v2230_v18, %v1286_v45  ;;  %v1284_v49 = vld [vmem:[#allocation2 + $0x8] sm:$0xff]  ;;  %1255 = vst.msk [vmem:[#allocation2 + $0x38] sm:$0xff] %vm332_vm0, %v1223_v42 }
 0x12a   : > { %v1386_v52 = vadd.f32 %v1354_v41, %v1322_v43  ;;  %v1323_v53 = vadd.f32 %v2230_v18, %v1284_v49  ;;  %1253 = vst.msk [vmem:[#allocation2 + $0x28] sm:$0xff] %vm332_vm0, %v1221_v37  ;;  %v1729_v54 = vpop.f32.mrb[24].mxu0  ;;  %v1821_v56 = vpop.f32.mrb[24].mxu1  ;;  %v378_v49 = vld [vmem:[#allocation2 + $0x68] sm:$0xff] }
 0x12b   : > { %1420 = vst.msk [vmem:[%s2242_s24 + $0x10] sm:$0xff] %vm332_vm0, %v1388_v47  ;;  %v1389_v57 = vadd.f32 %v1357_v46, %v1325_v48  ;;  %v1130_v59 = vadd.f32 %v1821_v56, %v1725_v19  ;;  %v1730_v60 = vpop.f32.mrb[25].mxu0  ;;  %v1121_v62 = vpop.f32.mrb[25].mxu1  ;;  %v379_v47 = vld [vmem:[#allocation2 + $0x70] sm:$0xff] }
 0x12c   : > { %1418 = vst.msk [vmem:[%s2242_s24] sm:$0xff] %vm332_vm0, %v1386_v52  ;;  %v1387_v63 = vadd.f32 %v1355_v51, %v1323_v53  ;;  %v1731_v0 = vadd.f32 %v1730_v60, %v1729_v54  ;;  %v1122_v1 = vadd.f32 %v2211_v58, %v1121_v62  ;;  %v1732_v2 = vpop.f32.mrb[26].mxu0  ;;  %v1822_v4 = vpop.f32.mrb[26].mxu1  ;;  %v1364_v53 = vld [vmem:[%s2225_s15 + $0x50] sm:$0xff]  ;;  %v380_v62 = vld [vmem:[#allocation2 + $0x78] sm:$0xff] }
 0x12d   : > { %1421 = vst.msk [vmem:[%s2242_s24 + $0x18] sm:$0xff] %vm332_vm0, %v1389_v57  ;;  %v1226_v6 = vadd.f32 %v1130_v59, %v375_v55  ;;  %v1133_v9 = vadd.f32 %v1822_v4, %v1728_v36  ;;  %v1733_v7 = vpop.f32.mrb[27].mxu0  ;;  %v1124_v11 = vpop.f32.mrb[27].mxu1 }
 0x12e   : > { %1419 = vst.msk [vmem:[%s2242_s24 + $0x8] sm:$0xff] %vm332_vm0, %v1387_v63  ;;  %v1289_v12 = vld [vmem:[#allocation2 + $0x30] sm:$0xff]  ;;  %v1224_v15 = vadd.f32 %v1122_v1, %v373_v61  ;;  %v1734_v16 = vadd.f32 %v1733_v7, %v1732_v2  ;;  %v1125_v58 = vadd.f32 %v2213_v5, %v1124_v11  ;;  %v1362_v61 = vld [vmem:[%s2225_s15 + $0x40] sm:$0xff]  ;;  %v1365_v1 = vld [vmem:[%s2225_s15 + $0x58] sm:$0xff] }
 0x12f   : > { %v1328_v17 = vadd.f32 %v2230_v18, %v1289_v12  ;;  %v1287_v19 = vld [vmem:[#allocation2 + $0x20] sm:$0xff]  ;;  %1258 = vst.msk [vmem:[#allocation2 + $0x50] sm:$0xff] %vm332_vm0, %v1226_v6  ;;  %v1227_v22 = vadd.f32 %v1133_v9, %v376_v3 }
 0x130   : > { %v1326_v23 = vadd.f32 %v2230_v18, %v1287_v19  ;;  %v1290_v24 = vld [vmem:[#allocation2 + $0x38] sm:$0xff]  ;;  %1256 = vst.msk [vmem:[#allocation2 + $0x40] sm:$0xff] %vm332_vm0, %v1224_v15  ;;  %v1225_v27 = vadd.f32 %v1125_v58, %v374_v10  ;;  %v1363_v10 = vld [vmem:[%s2225_s15 + $0x48] sm:$0xff] }
 0x131   : > { %v1392_v28 = vadd.f32 %v1360_v13, %v1328_v17  ;;  %v1329_v29 = vadd.f32 %v2230_v18, %v1290_v24  ;;  %v1288_v5 = vld [vmem:[#allocation2 + $0x28] sm:$0xff]  ;;  %1259 = vst.msk [vmem:[#allocation2 + $0x58] sm:$0xff] %vm332_vm0, %v1227_v22 }
 0x132   : > { %v1390_v33 = vadd.f32 %v1358_v21, %v1326_v23  ;;  %v1327_v34 = vadd.f32 %v2230_v18, %v1288_v5  ;;  %1257 = vst.msk [vmem:[#allocation2 + $0x48] sm:$0xff] %vm332_vm0, %v1225_v27  ;;  %v1735_v35 = vpop.f32.mrb[28].mxu0  ;;  %v1825_v36 = vpop.f32.mrb[28].mxu1 }
 0x133   : > { %1424 = vst.msk [vmem:[%s2242_s24 + $0x30] sm:$0xff] %vm332_vm0, %v1392_v28  ;;  %v1393_v39 = vadd.f32 %v1361_v25, %v1329_v29  ;;  %v1736_v31 = vpop.f32.mrb[29].mxu0  ;;  %v1137_v41 = vpop.f32.mrb[29].mxu1  ;;  %v381_v25 = vld [vmem:[#allocation2 + $0x80] sm:$0xff] }
 0x134   : > { %1422 = vst.msk [vmem:[%s2242_s24 + $0x20] sm:$0xff] %vm332_vm0, %v1390_v33  ;;  %v1391_v42 = vadd.f32 %v1359_v30, %v1327_v34  ;;  %v1737_v43 = vadd.f32 %v1736_v31, %v1735_v35  ;;  %v1138_v45 = vadd.f32 %v1731_v0, %v1137_v41  ;;  %v1738_v46 = vpop.f32.mrb[30].mxu0  ;;  %v1826_v37 = vpop.f32.mrb[30].mxu1  ;;  %v1366_v33 = vld [vmem:[%s2225_s15 + $0x60] sm:$0xff]  ;;  %v382_v34 = vld [vmem:[#allocation2 + $0x88] sm:$0xff]  ;;  %v1368_v35 = vld [vmem:[%s2225_s15 + $0x70] sm:$0xff] }
 0x135   : > { %1425 = vst.msk [vmem:[%s2242_s24 + $0x38] sm:$0xff] %vm332_vm0, %v1393_v39  ;;  %v1739_v48 = vpop.f32.mrb[31].mxu0  ;;  %v1140_v51 = vpop.f32.mrb[31].mxu1 }
 0x136   : > { %1423 = vst.msk [vmem:[%s2242_s24 + $0x28] sm:$0xff] %vm332_vm0, %v1391_v42  ;;  %v1293_v52 = vld [vmem:[#allocation2 + $0x50] sm:$0xff]  ;;  %v1146_v54 = vadd.f32 %v1825_v36, %v1737_v43  ;;  %v1228_v55 = vadd.f32 %v1138_v45, %v377_v40  ;;  %v1740_v56 = vadd.f32 %v1739_v48, %v1738_v46  ;;  %v1141_v57 = vadd.f32 %v1734_v16, %v1140_v51  ;;  %v1367_v42 = vld [vmem:[%s2225_s15 + $0x68] sm:$0xff]  ;;  %v1369_v51 = vld [vmem:[%s2225_s15 + $0x78] sm:$0xff] }
 0x137   : > { %v1332_v59 = vadd.f32 %v2230_v18, %v1293_v52  ;;  %v1291_v60 = vld [vmem:[#allocation2 + $0x40] sm:$0xff] }
 0x138   : > { %v1330_v63 = vadd.f32 %v2230_v18, %v1291_v60  ;;  %v1294_v0 = vld [vmem:[#allocation2 + $0x58] sm:$0xff]  ;;  %v1230_v2 = vadd.f32 %v1146_v54, %v379_v47  ;;  %1260 = vst.msk [vmem:[#allocation2 + $0x60] sm:$0xff] %vm332_vm0, %v1228_v55  ;;  %v1149_v3 = vadd.f32 %v1826_v37, %v1740_v56  ;;  %v1229_v4 = vadd.f32 %v1141_v57, %v378_v49 }
 0x139   : > { %v1396_v6 = vadd.f32 %v1364_v53, %v1332_v59  ;;  %v1333_v9 = vadd.f32 %v2230_v18, %v1294_v0  ;;  %v1292_v7 = vld [vmem:[#allocation2 + $0x48] sm:$0xff] }
 0x13a   : > { %v1394_v11 = vadd.f32 %v1362_v61, %v1330_v63  ;;  %v1331_v12 = vadd.f32 %v2230_v18, %v1292_v7  ;;  %1262 = vst.msk [vmem:[#allocation2 + $0x70] sm:$0xff] %vm332_vm0, %v1230_v2  ;;  %v1231_v13 = vadd.f32 %v1149_v3, %v380_v62  ;;  %1261 = vst.msk [vmem:[#allocation2 + $0x68] sm:$0xff] %vm332_vm0, %v1229_v4  ;;  %v1741_v15 = vpop.f32.mrb[32].mxu0  ;;  %v1829_v16 = vpop.f32.mrb[32].mxu1  ;;  %v383_v61 = vld [vmem:[#allocation2 + $0x90] sm:$0xff]  ;;  %v384_v3 = vld [vmem:[#allocation2 + $0x98] sm:$0xff] }
 0x13b   : > { %1428 = vst.msk [vmem:[%s2242_s24 + $0x50] sm:$0xff] %vm332_vm0, %v1396_v6  ;;  %v1397_v58 = vadd.f32 %v1365_v1, %v1333_v9  ;;  %v1742_v17 = vpop.f32.mrb[33].mxu0  ;;  %v1153_v19 = vpop.f32.mrb[33].mxu1  ;;  %v1370_v7 = vld [vmem:[%s2225_s15 + $0x80] sm:$0xff] }
 0x13c   : > { %1426 = vst.msk [vmem:[%s2242_s24 + $0x40] sm:$0xff] %vm332_vm0, %v1394_v11  ;;  %v1395_v21 = vadd.f32 %v1363_v10, %v1331_v12  ;;  %1263 = vst.msk [vmem:[#allocation2 + $0x78] sm:$0xff] %vm332_vm0, %v1231_v13  ;;  %v1743_v22 = vadd.f32 %v1742_v17, %v1741_v15  ;;  %v1744_v23 = vpop.f32.mrb[34].mxu0  ;;  %v1830_v24 = vpop.f32.mrb[34].mxu1  ;;  %v391_v13 = vld [vmem:[#allocation2 + $0xd0] sm:$0xff]  ;;  %v1371_v17 = vld [vmem:[%s2225_s15 + $0x88] sm:$0xff] }
 0x13d   : > { %1429 = vst.msk [vmem:[%s2242_s24 + $0x58] sm:$0xff] %vm332_vm0, %v1397_v58  ;;  %v1745_v27 = vpop.f32.mrb[35].mxu0  ;;  %v1156_v28 = vpop.f32.mrb[35].mxu1 }
 0x13e   : > { %1427 = vst.msk [vmem:[%s2242_s24 + $0x48] sm:$0xff] %vm332_vm0, %v1395_v21  ;;  %v1154_v29 = vadd.f32 %v1743_v22, %v1153_v19  ;;  %v1746_v5 = vadd.f32 %v1745_v27, %v1744_v23  ;;  %v389_v21 = vld [vmem:[#allocation2 + $0xc0] sm:$0xff] }
 0x13f   : > { %v1295_v30 = vld [vmem:[#allocation2 + $0x60] sm:$0xff] }
 0x140   : > { %v1334_v36 = vadd.f32 %v2230_v18, %v1295_v30  ;;  %v1232_v39 = vadd.f32 %v1154_v29, %v381_v25  ;;  %v1157_v31 = vadd.f32 %v1746_v5, %v1156_v28  ;;  %v392_v29 = vld [vmem:[#allocation2 + $0xd8] sm:$0xff] }
 0x141   : > { %v1297_v40 = vld [vmem:[#allocation2 + $0x70] sm:$0xff]  ;;  %v1296_v41 = vld [vmem:[#allocation2 + $0x68] sm:$0xff] }
 0x142   : > { %v1336_v43 = vadd.f32 %v2230_v18, %v1297_v40  ;;  %v1398_v45 = vadd.f32 %v1366_v33, %v1334_v36  ;;  %v1335_v46 = vadd.f32 %v2230_v18, %v1296_v41  ;;  %1264 = vst.msk [vmem:[#allocation2 + $0x80] sm:$0xff] %vm332_vm0, %v1232_v39  ;;  %v1233_v37 = vadd.f32 %v1157_v31, %v382_v34  ;;  %v1747_v47 = vpop.f32.mrb[36].mxu0  ;;  %v2309_v48 = vpop.f32.mrb[36].mxu1  ;;  %v385_v33 = vld [vmem:[#allocation2 + $0xa0] sm:$0xff]  ;;  %v390_v41 = vld [vmem:[#allocation2 + $0xc8] sm:$0xff] }
 0x143   : > { %v1298_v49 = vld [vmem:[#allocation2 + $0x78] sm:$0xff]  ;;  %v1748_v52 = vpop.f32.mrb[37].mxu0  ;;  %v1169_v53 = vpop.f32.mrb[37].mxu1 }
 0x144   : > { %v1400_v54 = vadd.f32 %v1368_v35, %v1336_v43  ;;  %1430 = vst.msk [vmem:[%s2242_s24 + $0x60] sm:$0xff] %vm332_vm0, %v1398_v45  ;;  %v1337_v55 = vadd.f32 %v2230_v18, %v1298_v49  ;;  %v1399_v56 = vadd.f32 %v1367_v42, %v1335_v46  ;;  %1265 = vst.msk [vmem:[#allocation2 + $0x88] sm:$0xff] %vm332_vm0, %v1233_v37  ;;  %v1750_v59 = vpop.f32.mrb[38].mxu0  ;;  %v2316_v60 = vpop.f32.mrb[38].mxu1  ;;  %v386_v42 = vld [vmem:[#allocation2 + $0xa8] sm:$0xff]  ;;  %v1372_v37 = vld [vmem:[%s2225_s15 + $0x90] sm:$0xff] }
 0x145   : > { %v1749_v57 = vadd.f32 %v1748_v52, %v1747_v47  ;;  %v1751_v62 = vpop.f32.mrb[39].mxu0  ;;  %v1172_v63 = vpop.f32.mrb[39].mxu1 }
 0x146   : > { %1432 = vst.msk [vmem:[%s2242_s24 + $0x70] sm:$0xff] %vm332_vm0, %v1400_v54  ;;  %v1401_v0 = vadd.f32 %v1369_v51, %v1337_v55  ;;  %1431 = vst.msk [vmem:[%s2242_s24 + $0x68] sm:$0xff] %vm332_vm0, %v1399_v56  ;;  %v1752_v2 = vadd.f32 %v1751_v62, %v1750_v59  ;;  %v1373_v55 = vld [vmem:[%s2225_s15 + $0x98] sm:$0xff]  ;;  %v393_v59 = vld [vmem:[#allocation2 + $0xe0] sm:$0xff] }
 0x147   : > { %v1162_v1 = vadd.f32 %v1829_v16, %v1749_v57 }
 0x148   : > { %1433 = vst.msk [vmem:[%s2242_s24 + $0x78] sm:$0xff] %vm332_vm0, %v1401_v0  ;;  %v1165_v6 = vadd.f32 %v1830_v24, %v1752_v2 }
 0x149   : > { %v1234_v4 = vadd.f32 %v1162_v1, %v383_v61  ;;  %v1299_v9 = vld [vmem:[#allocation2 + $0x80] sm:$0xff] }
 0x14a   : > { %v1338_v10 = vadd.f32 %v2230_v18, %v1299_v9  ;;  %v1235_v11 = vadd.f32 %v1165_v6, %v384_v3  ;;  %v1753_v12 = vpop.f32.mrb[40].mxu0  ;;  %v1837_v15 = vpop.f32.mrb[40].mxu1  ;;  %v396_v3 = vld [vmem:[#allocation2 + $0xf8] sm:$0xff]  ;;  %v387_v9 = vld [vmem:[#allocation2 + $0xb0] sm:$0xff] }
 0x14b   : > { %1266 = vst.msk [vmem:[#allocation2 + $0x90] sm:$0xff] %vm332_vm0, %v1234_v4  ;;  %v1300_v58 = vld [vmem:[#allocation2 + $0x88] sm:$0xff]  ;;  %v1194_v16 = vadd.f32 %v1837_v15, %v2197_v20  ;;  %v1754_v19 = vpop.f32.mrb[41].mxu0  ;;  %v1185_v22 = vpop.f32.mrb[41].mxu1 }
 0x14c   : > { %v1402_v23 = vadd.f32 %v1370_v7, %v1338_v10  ;;  %v1339_v24 = vadd.f32 %v2230_v18, %v1300_v58  ;;  %1267 = vst.msk [vmem:[#allocation2 + $0x98] sm:$0xff] %vm332_vm0, %v1235_v11  ;;  %v1755_v25 = vadd.f32 %v1754_v19, %v1753_v12  ;;  %v1186_v27 = vadd.f32 %v2193_v8, %v1185_v22  ;;  %v1756_v28 = vpop.f32.mrb[42].mxu0  ;;  %v1838_v5 = vpop.f32.mrb[42].mxu1  ;;  %v388_v22 = vld [vmem:[#allocation2 + $0xb8] sm:$0xff] }
 0x14d   : > { %v1242_v30 = vadd.f32 %v1194_v16, %v391_v13  ;;  %v1197_v20 = vadd.f32 %v1838_v5, %v2199_v26  ;;  %v1757_v34 = vpop.f32.mrb[43].mxu0  ;;  %v1188_v35 = vpop.f32.mrb[43].mxu1  ;;  %v1380_v13 = vld [vmem:[%s2225_s15 + $0xd0] sm:$0xff] }
 0x14e   : > { %1434 = vst.msk [vmem:[%s2242_s24 + $0x80] sm:$0xff] %vm332_vm0, %v1402_v23  ;;  %v1403_v36 = vadd.f32 %v1371_v17, %v1339_v24  ;;  %v1170_v39 = vadd.f32 %v1755_v25, %v1169_v53  ;;  %v1240_v31 = vadd.f32 %v1186_v27, %v389_v21  ;;  %v1758_v40 = vadd.f32 %v1757_v34, %v1756_v28  ;;  %v395_v53 = vld [vmem:[#allocation2 + $0xf0] sm:$0xff]  ;;  %v394_v17 = vld [vmem:[#allocation2 + $0xe8] sm:$0xff]  ;;  %v1378_v21 = vld [vmem:[%s2225_s15 + $0xc0] sm:$0xff] }
 0x14f   : > { %1274 = vst.msk [vmem:[#allocation2 + $0xd0] sm:$0xff] %vm332_vm0, %v1242_v30  ;;  %v1243_v8 = vadd.f32 %v1197_v20, %v392_v29  ;;  %v1189_v43 = vadd.f32 %v2195_v14, %v1188_v35  ;;  %v1381_v25 = vld [vmem:[%s2225_s15 + $0xd8] sm:$0xff]  ;;  %v1374_v30 = vld [vmem:[%s2225_s15 + $0xa0] sm:$0xff] }
 0x150   : > { %1435 = vst.msk [vmem:[%s2242_s24 + $0x88] sm:$0xff] %vm332_vm0, %v1403_v36  ;;  %v1236_v26 = vadd.f32 %v1170_v39, %v385_v33  ;;  %1272 = vst.msk [vmem:[#allocation2 + $0xc0] sm:$0xff] %vm332_vm0, %v1240_v31  ;;  %v1173_v45 = vadd.f32 %v1758_v40, %v1172_v63  ;;  %v1379_v36 = vld [vmem:[%s2225_s15 + $0xc8] sm:$0xff] }
 0x151   : > { %1275 = vst.msk [vmem:[#allocation2 + $0xd8] sm:$0xff] %vm332_vm0, %v1243_v8  ;;  %v1241_v47 = vadd.f32 %v1189_v43, %v390_v41  ;;  %v1375_v40 = vld [vmem:[%s2225_s15 + $0xa8] sm:$0xff] }
 0x152   : > { %v1301_v46 = vld [vmem:[#allocation2 + $0x90] sm:$0xff]  ;;  %1268 = vst.msk [vmem:[#allocation2 + $0xa0] sm:$0xff] %vm332_vm0, %v1236_v26  ;;  %v1237_v51 = vadd.f32 %v1173_v45, %v386_v42  ;;  %v1759_v52 = vpop.f32.mrb[44].mxu0  ;;  %v1841_v14 = vpop.f32.mrb[44].mxu1 }
 0x153   : > { %v1340_v49 = vadd.f32 %v2230_v18, %v1301_v46  ;;  %v1302_v54 = vld [vmem:[#allocation2 + $0x98] sm:$0xff]  ;;  %1273 = vst.msk [vmem:[#allocation2 + $0xc8] sm:$0xff] %vm332_vm0, %v1241_v47  ;;  %v1210_v56 = vadd.f32 %v1841_v14, %v2207_v44  ;;  %v1760_v57 = vpop.f32.mrb[45].mxu0  ;;  %v1201_v61 = vpop.f32.mrb[45].mxu1  ;;  %v1384_v46 = vld [vmem:[%s2225_s15 + $0xf0] sm:$0xff] }
 0x154   : > { %v1341_v63 = vadd.f32 %v2230_v18, %v1302_v54  ;;  %1269 = vst.msk [vmem:[#allocation2 + $0xa8] sm:$0xff] %vm332_vm0, %v1237_v51  ;;  %v1761_v0 = vadd.f32 %v1760_v57, %v1759_v52  ;;  %v1202_v1 = vadd.f32 %v2201_v32, %v1201_v61  ;;  %v1762_v2 = vpop.f32.mrb[46].mxu0  ;;  %v1842_v4 = vpop.f32.mrb[46].mxu1 }
 0x155   : > { %v1404_v62 = vadd.f32 %v1372_v37, %v1340_v49  ;;  %v1246_v6 = vadd.f32 %v1210_v56, %v395_v53  ;;  %v1213_v44 = vadd.f32 %v1842_v4, %v2209_v50  ;;  %v1763_v7 = vpop.f32.mrb[47].mxu0  ;;  %v1204_v10 = vpop.f32.mrb[47].mxu1  ;;  %v1382_v49 = vld [vmem:[%s2225_s15 + $0xe0] sm:$0xff]  ;;  %v1385_v53 = vld [vmem:[%s2225_s15 + $0xf8] sm:$0xff] }
 0x156   : > { %v1405_v11 = vadd.f32 %v1373_v55, %v1341_v63  ;;  %v1309_v12 = vld [vmem:[#allocation2 + $0xd0] sm:$0xff]  ;;  %v1178_v15 = vadd.f32 %v2309_v48, %v1761_v0  ;;  %v1244_v32 = vadd.f32 %v1202_v1, %v393_v59  ;;  %v1764_v58 = vadd.f32 %v1763_v7, %v1762_v2  ;;  %v1377_v1 = vld [vmem:[%s2225_s15 + $0xb8] sm:$0xff] }
 0x157   : > { %1436 = vst.msk [vmem:[%s2242_s24 + $0x90] sm:$0xff] %vm332_vm0, %v1404_v62  ;;  %v1348_v16 = vadd.f32 %v2230_v18, %v1309_v12  ;;  %v1307_v19 = vld [vmem:[#allocation2 + $0xc0] sm:$0xff]  ;;  %1278 = vst.msk [vmem:[#allocation2 + $0xf0] sm:$0xff] %vm332_vm0, %v1246_v6  ;;  %v1247_v50 = vadd.f32 %v1213_v44, %v396_v3  ;;  %v1205_v23 = vadd.f32 %v2205_v38, %v1204_v10  ;;  %v1376_v55 = vld [vmem:[%s2225_s15 + $0xb0] sm:$0xff] }
 0x158   : > { %1437 = vst.msk [vmem:[%s2242_s24 + $0x98] sm:$0xff] %vm332_vm0, %v1405_v11  ;;  %v1346_v24 = vadd.f32 %v2230_v18, %v1307_v19  ;;  %v1310_v48 = vld [vmem:[#allocation2 + $0xd8] sm:$0xff]  ;;  %v1238_v27 = vadd.f32 %v1178_v15, %v387_v9  ;;  %1276 = vst.msk [vmem:[#allocation2 + $0xe0] sm:$0xff] %vm332_vm0, %v1244_v32  ;;  %v1181_v28 = vadd.f32 %v2316_v60, %v1764_v58  ;;  %v1383_v62 = vld [vmem:[%s2225_s15 + $0xe8] sm:$0xff] }
 0x159   : > { %v1412_v29 = vadd.f32 %v1380_v13, %v1348_v16  ;;  %v1303_v5 = vld [vmem:[#allocation2 + $0xa0] sm:$0xff]  ;;  %v1349_v33 = vadd.f32 %v2230_v18, %v1310_v48  ;;  %1279 = vst.msk [vmem:[#allocation2 + $0xf8] sm:$0xff] %vm332_vm0, %v1247_v50  ;;  %v1245_v38 = vadd.f32 %v1205_v23, %v394_v17 }
 0x15a   : > { %v1342_v20 = vadd.f32 %v2230_v18, %v1303_v5  ;;  %v1410_v34 = vadd.f32 %v1378_v21, %v1346_v24  ;;  %v1308_v35 = vld [vmem:[#allocation2 + $0xc8] sm:$0xff]  ;;  %1270 = vst.msk [vmem:[#allocation2 + $0xb0] sm:$0xff] %vm332_vm0, %v1238_v27  ;;  %v1239_v60 = vadd.f32 %v1181_v28, %v388_v22 }
 0x15b   : > { %1444 = vst.msk [vmem:[%s2242_s24 + $0xd0] sm:$0xff] %vm332_vm0, %v1412_v29  ;;  %v1413_v39 = vadd.f32 %v1381_v25, %v1349_v33  ;;  %v1304_v31 = vld [vmem:[#allocation2 + $0xa8] sm:$0xff]  ;;  %v1347_v41 = vadd.f32 %v2230_v18, %v1308_v35  ;;  %1277 = vst.msk [vmem:[#allocation2 + $0xe8] sm:$0xff] %vm332_vm0, %v1245_v38 }
 0x15c   : > { %v1406_v8 = vadd.f32 %v1374_v30, %v1342_v20  ;;  %1442 = vst.msk [vmem:[%s2242_s24 + $0xc0] sm:$0xff] %vm332_vm0, %v1410_v34  ;;  %v1343_v42 = vadd.f32 %v2230_v18, %v1304_v31  ;;  %1271 = vst.msk [vmem:[#allocation2 + $0xb8] sm:$0xff] %vm332_vm0, %v1239_v60 }
 0x15d   : > { %1445 = vst.msk [vmem:[%s2242_s24 + $0xd8] sm:$0xff] %vm332_vm0, %v1413_v39  ;;  %v1411_v43 = vadd.f32 %v1379_v36, %v1347_v41 }
 0x15e   : > { %1438 = vst.msk [vmem:[%s2242_s24 + $0xa0] sm:$0xff] %vm332_vm0, %v1406_v8  ;;  %v1407_v26 = vadd.f32 %v1375_v40, %v1343_v42  ;;  %v1313_v45 = vld [vmem:[#allocation2 + $0xf0] sm:$0xff] }
 0x15f   : > { %1443 = vst.msk [vmem:[%s2242_s24 + $0xc8] sm:$0xff] %vm332_vm0, %v1411_v43  ;;  %v1352_v37 = vadd.f32 %v2230_v18, %v1313_v45  ;;  %v1311_v47 = vld [vmem:[#allocation2 + $0xe0] sm:$0xff] }
 0x160   : > { %1439 = vst.msk [vmem:[%s2242_s24 + $0xa8] sm:$0xff] %vm332_vm0, %v1407_v26  ;;  %v1350_v51 = vadd.f32 %v2230_v18, %v1311_v47  ;;  %v1314_v52 = vld [vmem:[#allocation2 + $0xf8] sm:$0xff] }
 0x161   : > { %v1416_v14 = vadd.f32 %v1384_v46, %v1352_v37  ;;  %v1305_v54 = vld [vmem:[#allocation2 + $0xb0] sm:$0xff]  ;;  %v1353_v56 = vadd.f32 %v2230_v18, %v1314_v52 }
 0x162   : > { %v1344_v57 = vadd.f32 %v2230_v18, %v1305_v54  ;;  %v1414_v59 = vadd.f32 %v1382_v49, %v1350_v51  ;;  %v1312_v61 = vld [vmem:[#allocation2 + $0xe8] sm:$0xff] }
 0x163   : > { %1448 = vst.msk [vmem:[%s2242_s24 + $0xf0] sm:$0xff] %vm332_vm0, %v1416_v14  ;;  %v1417_v63 = vadd.f32 %v1385_v53, %v1353_v56  ;;  %v1306_v0 = vld [vmem:[#allocation2 + $0xb8] sm:$0xff]  ;;  %v1351_v2 = vadd.f32 %v2230_v18, %v1312_v61 }
 0x164   : > { %v1408_v3 = vadd.f32 %v1376_v55, %v1344_v57  ;;  %1446 = vst.msk [vmem:[%s2242_s24 + $0xe0] sm:$0xff] %vm332_vm0, %v1414_v59  ;;  %v1345_v4 = vadd.f32 %v2230_v18, %v1306_v0 }
 0x165   : > { %1449 = vst.msk [vmem:[%s2242_s24 + $0xf8] sm:$0xff] %vm332_vm0, %v1417_v63  ;;  %v1415_v6 = vadd.f32 %v1383_v62, %v1351_v2 }
 0x166   : > { %1440 = vst.msk [vmem:[%s2242_s24 + $0xb0] sm:$0xff] %vm332_vm0, %v1408_v3  ;;  %v1409_v9 = vadd.f32 %v1377_v1, %v1345_v4 }
 0x167   : > { %1447 = vst.msk [vmem:[%s2242_s24 + $0xe8] sm:$0xff] %vm332_vm0, %v1415_v6 }
 0x168   : > { %1441 = vst.msk [vmem:[%s2242_s24 + $0xb8] sm:$0xff] %vm332_vm0, %v1409_v9 }
 0x169 PF: > { %s14_s17 = sadd.s32 1, %s1989_s17   ;;  %s2426_s15 = smov %s1985_s16 }
 0x16a   : > { %p11_p5 = scmp.ge.s32.totalorder %s14_s17, 4   ;;  %s2427_s16 = smov %s2429_s18 }
 0x16c   :  { %13 = sbr.rel (!%p11_p5) target bundleno = 2 (0x2), region = 83 }

// kernel: vqvae_forward.59
= control target key start
LH: loop header
LB: loop body
LE: loop exit
PB: predicated region body
PF: predicated region fallthrough
CT: control target
= control target key end

     0   :  { %s493_s12 = smov 0   ;;  %s547_s0 = inlined_call_operand.vmem [shape: f32[2,64,32], index: 0, kind: input, shape index: {}]   ;;  %s548_s1 = inlined_call_operand.vmem [shape: f32[1,32], index: 1, kind: input, shape index: {}]   ;;  %s549_s2 = inlined_call_operand.vmem [shape: f32[1,32], index: 2, kind: input, shape index: {}]   ;;  %s550_s3 = inlined_call_operand.vmem [shape: f32[2,64,32], index: 3, kind: output, shape index: {}]  }
   0x1 LB: > { %s400_s13 = sadd.s32 4294967295, %s471_s12   ;;  %p404_p0 = scmp.ge.s32.totalorder %s471_s12, 1  ;;  %s471_s12 = sphi %s493_s12, %s13_s12  }
   0x2   : > { %p137_p1 = scmp.lt.s32.totalorder %s471_s12, 3 }
   0x4   : > { %p138_p2 = pnand %p404_p0, %p137_p1 }
   0x5   : > { %p161_p3 = scmp.lt.s32.totalorder (!%p138_p2), %s400_s13, 1  ;;  %vm179_vm0 = vcmask (!%p138_p2), 261120  }
   0x6   : > { %141 = sbr.rel (%p138_p2) target bundleno = 134 (0x86), region = 32 }
   0xd   : > { %s552_s13 = smov (!%p161_p3, %s400_s13), 1 }
   0xe   : > { %s421_s14 = sshll.u32 %s552_s13, 6 }
   0xf   : > { %s165_s17 = scalar_lea.vmem %s547_s0, %s421_s14  ;;  %s170_s24 = scalar_lea.vmem %s550_s3, %s421_s14 }
  0x10   : > { %v171_v0 = vld [vmem:[%s165_s17] sm:$0xff]  ;;  %v172_v1 = vld [vmem:[%s165_s17 + $0x8] sm:$0xff]  ;;  %v173_v2 = vld [vmem:[%s165_s17 + $0x10] sm:$0xff] }
  0x11   : > { %v174_v3 = vld [vmem:[%s165_s17 + $0x18] sm:$0xff]  ;;  %v180_v4 = vsel %vm179_vm0, %v171_v0, 0.0  ;;  %v181_v5 = vsel %vm179_vm0, %v172_v1, 0.0  ;;  %v183_v6 = vsel %vm179_vm0, %v173_v2, 0.0  ;;  %v175_v7 = vld [vmem:[%s165_s17 + $0x20] sm:$0xff]  ;;  %v176_v10 = vld [vmem:[%s165_s17 + $0x28] sm:$0xff] }
  0x12   : > { %v182_v8 = vadd.f32 %v181_v5, %v180_v4  ;;  %v185_v9 = vsel %vm179_vm0, %v174_v3, 0.0  ;;  %v187_v12 = vsel %vm179_vm0, %v175_v7, 0.0  ;;  %v177_v13 = vld [vmem:[%s165_s17 + $0x30] sm:$0xff]  ;;  %v189_v15 = vsel %vm179_vm0, %v176_v10, 0.0  ;;  %v178_v16 = vld [vmem:[%s165_s17 + $0x38] sm:$0xff] }
  0x13   : > { %v191_v18 = vsel %vm179_vm0, %v177_v13, 0.0  ;;  %v193_v20 = vsel %vm179_vm0, %v178_v16, 0.0 }
  0x14   : > { %v184_v11 = vadd.f32 %v183_v6, %v182_v8  ;;  %v409_v6 = vld [vmem:[%s548_s1] ss:$0 sm:$0xff] }
  0x16   : > { %v186_v14 = vadd.f32 %v185_v9, %v184_v11  ;;  %v410_v11 = vld [vmem:[%s549_s2] ss:$0 sm:$0xff] }
  0x18   : > { %v188_v17 = vadd.f32 %v187_v12, %v186_v14 }
  0x1a   : > { %v190_v19 = vadd.f32 %v189_v15, %v188_v17 }
  0x1c   : > { %v192_v21 = vadd.f32 %v191_v18, %v190_v19 }
  0x1e   : > { %v194_v22 = vadd.f32 %v193_v20, %v192_v21 }
  0x20   : > { %v195_v23 = vrot.slane %v194_v22, 4 }
  0x22   : > { %v196_v24 = vadd.f32 %v195_v23, %v194_v22 }
  0x24   : > { %v197_v25 = vrot.slane %v196_v24, 2 }
  0x26   : > { %v198_v26 = vadd.f32 %v197_v25, %v196_v24 }
  0x28   : > { %v199_v27 = vrot.slane %v198_v26, 1 }
  0x2a   : > { %v200_v28 = vadd.f32 %v199_v27, %v198_v26 }
  0x2c   : > { %v202_v29 = vmul.f32 0.015625, %v200_v28 }
  0x2e   : > { %v203_v30 = vsub.f32 %v171_v0, %v202_v29  ;;  %v204_v31 = vsub.f32 %v172_v1, %v202_v29  ;;  %v205_v32 = vsub.f32 %v173_v2, %v202_v29  ;;  %v206_v33 = vsub.f32 %v174_v3, %v202_v29 }
  0x2f   : > { %v207_v34 = vsub.f32 %v175_v7, %v202_v29  ;;  %v208_v35 = vsub.f32 %v176_v10, %v202_v29  ;;  %v209_v40 = vsub.f32 %v177_v13, %v202_v29  ;;  %v210_v46 = vsub.f32 %v178_v16, %v202_v29 }
  0x30   : > { %v211_v36 = vmul.f32 %v203_v30, %v203_v30  ;;  %v212_v37 = vmul.f32 %v204_v31, %v204_v31  ;;  %v213_v38 = vmul.f32 %v205_v32, %v205_v32  ;;  %v214_v39 = vmul.f32 %v206_v33, %v206_v33 }
  0x31   : > { %v215_v41 = vmul.f32 %v207_v34, %v207_v34  ;;  %v216_v47 = vmul.f32 %v208_v35, %v208_v35  ;;  %v217_v50 = vmul.f32 %v209_v40, %v209_v40  ;;  %v218_v53 = vmul.f32 %v210_v46, %v210_v46 }
  0x32   : > { %v219_v42 = vsel %vm179_vm0, %v211_v36, 0.0  ;;  %v220_v43 = vsel %vm179_vm0, %v212_v37, 0.0  ;;  %v222_v44 = vsel %vm179_vm0, %v213_v38, 0.0  ;;  %v224_v48 = vsel %vm179_vm0, %v214_v39, 0.0 }
  0x33   : > { %v221_v45 = vadd.f32 %v220_v43, %v219_v42  ;;  %v226_v51 = vsel %vm179_vm0, %v215_v41, 0.0  ;;  %v228_v54 = vsel %vm179_vm0, %v216_v47, 0.0  ;;  %v230_v56 = vsel %vm179_vm0, %v217_v50, 0.0 }
  0x34   : > { %v232_v58 = vsel %vm179_vm0, %v218_v53, 0.0 }
  0x35   : > { %v223_v49 = vadd.f32 %v222_v44, %v221_v45 }
  0x37   : > { %v225_v52 = vadd.f32 %v224_v48, %v223_v49 }
  0x39   : > { %v227_v55 = vadd.f32 %v226_v51, %v225_v52 }
  0x3b   : > { %v229_v57 = vadd.f32 %v228_v54, %v227_v55 }
  0x3d   : > { %v231_v59 = vadd.f32 %v230_v56, %v229_v57 }
  0x3f   : > { %v233_v60 = vadd.f32 %v232_v58, %v231_v59 }
  0x41   : > { %v234_v61 = vrot.slane %v233_v60, 4 }
  0x43   : > { %v235_v62 = vadd.f32 %v234_v61, %v233_v60 }
  0x45   : > { %v236_v63 = vrot.slane %v235_v62, 2 }
  0x47   : > { %v237_v0 = vadd.f32 %v236_v63, %v235_v62 }
  0x49   : > { %v238_v1 = vrot.slane %v237_v0, 1 }
  0x4b   : > { %v239_v2 = vadd.f32 %v238_v1, %v237_v0 }
  0x4d   : > { %v240_v3 = vmul.f32 0.015625, %v239_v2 }
  0x4f   : > { %v241_v4 = vadd.f32 1e-06, %v240_v3 }
  0x51   : > { %431 = vrsqrt.f32 %v241_v4 }
  0x5b   : > { %v432_v5 = vpop.eup %431 }
  0x5c   : > { %v243_v7 = vmul.f32 %v432_v5, %v203_v30  ;;  %v244_v8 = vmul.f32 %v432_v5, %v204_v31  ;;  %v245_v9 = vmul.f32 %v432_v5, %v205_v32  ;;  %v246_v10 = vmul.f32 %v432_v5, %v206_v33 }
  0x5d   : > { %v247_v12 = vmul.f32 %v432_v5, %v207_v34  ;;  %v248_v13 = vmul.f32 %v432_v5, %v208_v35  ;;  %v249_v14 = vmul.f32 %v432_v5, %v209_v40  ;;  %v250_v15 = vmul.f32 %v432_v5, %v210_v46 }
  0x5e   : > { %v258_v16 = vmul.f32 %v409_v6, %v243_v7  ;;  %v259_v17 = vmul.f32 %v409_v6, %v244_v8  ;;  %v260_v18 = vmul.f32 %v409_v6, %v245_v9  ;;  %v261_v19 = vmul.f32 %v409_v6, %v246_v10 }
  0x5f   : > { %v262_v20 = vmul.f32 %v409_v6, %v247_v12  ;;  %v263_v21 = vmul.f32 %v409_v6, %v248_v13  ;;  %v264_v22 = vmul.f32 %v409_v6, %v249_v14  ;;  %v265_v23 = vmul.f32 %v409_v6, %v250_v15 }
  0x60   : > { %v273_v24 = vadd.f32 %v410_v11, %v258_v16  ;;  %v274_v25 = vadd.f32 %v410_v11, %v259_v17  ;;  %v275_v26 = vadd.f32 %v410_v11, %v260_v18  ;;  %v276_v27 = vadd.f32 %v410_v11, %v261_v19 }
  0x61   : > { %v277_v28 = vadd.f32 %v410_v11, %v262_v20  ;;  %v278_v29 = vadd.f32 %v410_v11, %v263_v21  ;;  %v279_v33 = vadd.f32 %v410_v11, %v264_v22  ;;  %v280_v35 = vadd.f32 %v410_v11, %v265_v23 }
  0x62   : > { %v411_v30 = vmul.f32 -1.442695, %v273_v24  ;;  %v412_v31 = vmul.f32 -1.442695, %v274_v25  ;;  %v413_v32 = vmul.f32 -1.442695, %v275_v26 }
  0x63   : > { %v414_v34 = vmul.f32 -1.442695, %v276_v27  ;;  %v415_v36 = vmul.f32 -1.442695, %v277_v28  ;;  %v416_v37 = vmul.f32 -1.442695, %v278_v29 }
  0x64   : > { %433 = vpow2.f32 %v411_v30  ;;  %v417_v38 = vmul.f32 -1.442695, %v279_v33  ;;  %v418_v39 = vmul.f32 -1.442695, %v280_v35 }
  0x65   : > { %435 = vpow2.f32 %v412_v31 }
  0x66   : > { %437 = vpow2.f32 %v413_v32 }
  0x67   : > { %439 = vpow2.f32 %v414_v34 }
  0x68   : > { %441 = vpow2.f32 %v415_v36 }
  0x69   : > { %443 = vpow2.f32 %v416_v37 }
  0x6a   : > { %445 = vpow2.f32 %v417_v38 }
  0x6b   : > { %447 = vpow2.f32 %v418_v39 }
  0x6e   : > { %v434_v40 = vpop.eup %433 }
  0x6f   : > { %v436_v41 = vpop.eup %435  ;;  %v305_v42 = vadd.f32 1.0, %v434_v40 }
  0x70   : > { %v438_v43 = vpop.eup %437  ;;  %v306_v44 = vadd.f32 1.0, %v436_v41 }
  0x71   : > { %v440_v45 = vpop.eup %439  ;;  %449 = vrcp.f32 %v305_v42  ;;  %v307_v46 = vadd.f32 1.0, %v438_v43 }
  0x72   : > { %v442_v47 = vpop.eup %441  ;;  %451 = vrcp.f32 %v306_v44  ;;  %v308_v48 = vadd.f32 1.0, %v440_v45 }
  0x73   : > { %v444_v49 = vpop.eup %443  ;;  %453 = vrcp.f32 %v307_v46  ;;  %v309_v50 = vadd.f32 1.0, %v442_v47 }
  0x74   : > { %v446_v51 = vpop.eup %445  ;;  %455 = vrcp.f32 %v308_v48  ;;  %v310_v52 = vadd.f32 1.0, %v444_v49 }
  0x75   : > { %v448_v53 = vpop.eup %447  ;;  %457 = vrcp.f32 %v309_v50  ;;  %v311_v54 = vadd.f32 1.0, %v446_v51 }
  0x76   : > { %459 = vrcp.f32 %v310_v52  ;;  %v312_v55 = vadd.f32 1.0, %v448_v53 }
  0x77   : > { %461 = vrcp.f32 %v311_v54 }
  0x78   : > { %463 = vrcp.f32 %v312_v55 }
  0x7b   : > { %v450_v56 = vpop.eup %449 }
  0x7c   : > { %v452_v57 = vpop.eup %451  ;;  %v329_v58 = vmul.f32 %v450_v56, %v273_v24 }
  0x7d   : > { %v454_v59 = vpop.eup %453  ;;  %v330_v60 = vmul.f32 %v452_v57, %v274_v25 }
  0x7e   : > { %v456_v61 = vpop.eup %455  ;;  %337 = vst.msk [vmem:[%s170_s24] sm:$0xff] %vm179_vm0, %v329_v58  ;;  %v331_v62 = vmul.f32 %v454_v59, %v275_v26 }
  0x7f   : > { %v458_v63 = vpop.eup %457  ;;  %338 = vst.msk [vmem:[%s170_s24 + $0x8] sm:$0xff] %vm179_vm0, %v330_v60  ;;  %v332_v0 = vmul.f32 %v456_v61, %v276_v27 }
  0x80   : > { %v460_v1 = vpop.eup %459  ;;  %339 = vst.msk [vmem:[%s170_s24 + $0x10] sm:$0xff] %vm179_vm0, %v331_v62  ;;  %v333_v2 = vmul.f32 %v458_v63, %v277_v28 }
  0x81   : > { %v462_v3 = vpop.eup %461  ;;  %340 = vst.msk [vmem:[%s170_s24 + $0x18] sm:$0xff] %vm179_vm0, %v332_v0  ;;  %v334_v4 = vmul.f32 %v460_v1, %v278_v29 }
  0x82   : > { %v464_v5 = vpop.eup %463  ;;  %341 = vst.msk [vmem:[%s170_s24 + $0x20] sm:$0xff] %vm179_vm0, %v333_v2  ;;  %v335_v6 = vmul.f32 %v462_v3, %v279_v33 }
  0x83   : > { %342 = vst.msk [vmem:[%s170_s24 + $0x28] sm:$0xff] %vm179_vm0, %v334_v4  ;;  %v336_v7 = vmul.f32 %v464_v5, %v280_v35 }
  0x84   : > { %343 = vst.msk [vmem:[%s170_s24 + $0x30] sm:$0xff] %vm179_vm0, %v335_v6 }
  0x85   : > { %344 = vst.msk [vmem:[%s170_s24 + $0x38] sm:$0xff] %vm179_vm0, %v336_v7 }
  0x86 PF: > { %s13_s12 = sadd.s32 1, %s471_s12  }
  0x87   : > { %p10_p4 = scmp.ge.s32.totalorder %s13_s12, 4  }
  0x89   :  { %12 = sbr.rel (!%p10_p4) target bundleno = 1 (0x1), region = 62 }

// kernel: vqvae_forward.58
= control target key start
LH: loop header
LB: loop body
LE: loop exit
PB: predicated region body
PF: predicated region fallthrough
CT: control target
= control target key end

     0   :  { %vm19_vm0 = vcmask 261120   ;;  %v873_v42 = vmov 0.0   ;;  %s1157_s1 = inlined_call_operand.vmem [shape: bf16[288,32], index: 1, kind: input, shape index: {}]   ;;  %s1158_s0 = inlined_call_operand.vmem [shape: bf16[128,288], index: 0, kind: input, shape index: {}]   ;;  %s1159_s2 = inlined_call_operand.vmem [shape: f32[1,32], index: 2, kind: input, shape index: {}]   ;;  %s1160_s3 = inlined_call_operand.vmem [shape: f32[128,32], index: 3, kind: output, shape index: {}]  }
   0x1   :  { %v823_v0 = vld [vmem:[%s1157_s1 + $0x40] sm:$0xff]   ;;  %v825_v2 = vld [vmem:[%s1157_s1 + $0x48] sm:$0xff]   ;;  %v827_v4 = vld [vmem:[%s1157_s1 + $0x50] sm:$0xff]   ;;  %22 = vst.msk [vmem:[#allocation2 + $0x10] sm:$0xff] %vm19_vm0, %v873_v42 }
   0x2   :  { %v824_v1 = vld [vmem:[%s1157_s1] sm:$0xff]   ;;  %712 = vmatprep.subr.bf16.mxu0 %v823_v0  ;;  %806 = vmatprep.subr.bf16.mxu1 %v823_v0  ;;  %v826_v3 = vld [vmem:[%s1157_s1 + $0x8] sm:$0xff]   ;;  %v828_v5 = vld [vmem:[%s1157_s1 + $0x10] sm:$0xff]   ;;  %20 = vst.msk [vmem:[#allocation2] sm:$0xff] %vm19_vm0, %v873_v42 }
   0x3   :  { %713 = vmatpush3.bf16.msra.mxu0 %v824_v1  ;;  %814 = vmatpush3.bf16.msra.mxu1 %v824_v1  ;;  %v829_v6 = vld [vmem:[%s1157_s1 + $0x58] sm:$0xff]   ;;  %v831_v8 = vld [vmem:[%s1157_s1 + $0x60] sm:$0xff]   ;;  %v833_v10 = vld [vmem:[%s1157_s1 + $0x68] sm:$0xff]   ;;  %21 = vst.msk [vmem:[#allocation2 + $0x8] sm:$0xff] %vm19_vm0, %v873_v42 }
   0x4   :  { %714 = vmatprep.subr.bf16.mxu0 %v825_v2  ;;  %807 = vmatprep.subr.bf16.mxu1 %v825_v2  ;;  %v830_v7 = vld [vmem:[%s1157_s1 + $0x18] sm:$0xff]   ;;  %v832_v9 = vld [vmem:[%s1157_s1 + $0x20] sm:$0xff]   ;;  %v834_v13 = vld [vmem:[%s1157_s1 + $0x28] sm:$0xff]   ;;  %23 = vst.msk [vmem:[#allocation2 + $0x18] sm:$0xff] %vm19_vm0, %v873_v42 }
   0x5   :  { %v841_v11 = vld [vmem:[%s1158_s0 + $0x4] ss:$12 sps:$4 sm:$0xff]   ;;  %v844_v12 = vld [vmem:[%s1158_s0 + $0x94] ss:$12 sps:$4 sm:$0xff]   ;;  %v837_v16 = vld [vmem:[%s1157_s1 + $0x78] sm:$0xff]   ;;  %24 = vst.msk [vmem:[#allocation2 + $0x20] sm:$0xff] %vm19_vm0, %v873_v42 }
   0x6   :  { %v835_v14 = vld [vmem:[%s1157_s1 + $0x70] sm:$0xff]   ;;  %405 = vmatprep.mubr.bf16.mxu0 %v841_v11  ;;  %453 = vmatprep.mubr.bf16.mxu1 %v844_v12  ;;  %v838_v17 = vld [vmem:[%s1157_s1 + $0x38] sm:$0xff]   ;;  %v839_v18 = vld [vmem:[%s1158_s0] ss:$12 sps:$4 sm:$0xff]   ;;  %25 = vst.msk [vmem:[#allocation2 + $0x28] sm:$0xff] %vm19_vm0, %v873_v42 }
   0x7   :  { %715 = vmatpush3.bf16.msra.mxu0 %v826_v3  ;;  %815 = vmatpush3.bf16.msra.mxu1 %v826_v3  ;;  %v836_v15 = vld [vmem:[%s1157_s1 + $0x30] sm:$0xff]   ;;  %v845_v19 = vld [vmem:[%s1157_s1 + $0x80] sm:$0xff]   ;;  %v846_v21 = vld [vmem:[%s1158_s0 + $0x1c] ss:$12 sps:$4 sm:$0xff]   ;;  %26 = vst.msk [vmem:[#allocation2 + $0x30] sm:$0xff] %vm19_vm0, %v873_v42 }
   0x8   :  { %716 = vmatprep.subr.bf16.mxu0 %v827_v4  ;;  %808 = vmatprep.subr.bf16.mxu1 %v827_v4  ;;  %v842_v20 = vld [vmem:[%s1158_s0 + $0x90] ss:$12 sps:$4 sm:$0xff]   ;;  %v848_v22 = vld [vmem:[%s1158_s0 + $0xac] ss:$12 sps:$4 sm:$0xff]   ;;  %v851_v25 = vld [vmem:[%s1158_s0 + $0xa8] ss:$12 sps:$4 sm:$0xff]  }
   0x9   :  { %v852_v23 = vld [vmem:[%s1157_s1 + $0x88] sm:$0xff]   ;;  %v850_v24 = vld [vmem:[%s1158_s0 + $0x18] ss:$12 sps:$4 sm:$0xff]   ;;  %v853_v26 = vld [vmem:[%s1158_s0 + $0x34] ss:$12 sps:$4 sm:$0xff]   ;;  %27 = vst.msk [vmem:[#allocation2 + $0x38] sm:$0xff] %vm19_vm0, %v873_v42 }
   0xa   :  { %v855_v27 = vld [vmem:[%s1158_s0 + $0x8] ss:$12 sps:$4 sm:$0xff]   ;;  %v856_v28 = vld [vmem:[%s1158_s0 + $0x30] ss:$12 sps:$4 sm:$0xff]   ;;  %v857_v29 = vld [vmem:[%s1158_s0 + $0x20] ss:$12 sps:$4 sm:$0xff]  }
   0xb   :  { %717 = vmatpush3.bf16.msra.mxu0 %v828_v5  ;;  %816 = vmatpush3.bf16.msra.mxu1 %v828_v5  ;;  %v858_v30 = vld [vmem:[%s1158_s0 + $0x4c] ss:$12 sps:$4 sm:$0xff]   ;;  %v861_v32 = vld [vmem:[%s1158_s0 + $0x48] ss:$12 sps:$4 sm:$0xff]   ;;  %v862_v33 = vld [vmem:[%s1158_s0 + $0x50] ss:$12 sps:$4 sm:$0xff]  }
   0xc   :  { %718 = vmatprep.subr.bf16.mxu0 %v829_v6  ;;  %809 = vmatprep.subr.bf16.mxu1 %v829_v6  ;;  %v860_v31 = vld [vmem:[%s1158_s0 + $0x38] ss:$12 sps:$4 sm:$0xff]   ;;  %v865_v35 = vld [vmem:[%s1158_s0 + $0x68] ss:$12 sps:$4 sm:$0xff]   ;;  %v866_v36 = vld [vmem:[%s1158_s0 + $0x60] ss:$12 sps:$4 sm:$0xff]  }
   0xd   :  { %v863_v34 = vld [vmem:[%s1158_s0 + $0x64] ss:$12 sps:$4 sm:$0xff]   ;;  %v867_v37 = vld [vmem:[%s1158_s0 + $0x80] ss:$12 sps:$4 sm:$0xff]   ;;  %v868_v38 = vld [vmem:[%s1158_s0 + $0x7c] ss:$12 sps:$4 sm:$0xff]  }
   0xe   :  { %v870_v39 = vld [vmem:[%s1158_s0 + $0x98] ss:$12 sps:$4 sm:$0xff]   ;;  %v872_v41 = vld [vmem:[%s1158_s0 + $0xb0] ss:$12 sps:$4 sm:$0xff]   ;;  %28 = vst.msk [vmem:[#allocation2 + $0x40] sm:$0xff] %vm19_vm0, %v873_v42  ;;  %29 = vst.msk [vmem:[#allocation2 + $0x48] sm:$0xff] %vm19_vm0, %v873_v42 }
   0xf   :  { %719 = vmatpush3.bf16.msra.mxu0 %v830_v7  ;;  %817 = vmatpush3.bf16.msra.mxu1 %v830_v7  ;;  %v871_v40 = vld [vmem:[%s1158_s0 + $0x78] ss:$12 sps:$4 sm:$0xff]   ;;  %30 = vst.msk [vmem:[#allocation2 + $0x50] sm:$0xff] %vm19_vm0, %v873_v42  ;;  %31 = vst.msk [vmem:[#allocation2 + $0x58] sm:$0xff] %vm19_vm0, %v873_v42  ;;  %v38_v4 = vld [vmem:[#allocation2 + $0x10] sm:$0xff] }
  0x10   :  { %720 = vmatprep.subr.bf16.mxu0 %v831_v8  ;;  %810 = vmatprep.subr.bf16.mxu1 %v831_v8  ;;  %32 = vst.msk [vmem:[#allocation2 + $0x60] sm:$0xff] %vm19_vm0, %v873_v42  ;;  %33 = vst.msk [vmem:[#allocation2 + $0x68] sm:$0xff] %vm19_vm0, %v873_v42  ;;  %v36_v8 = vld [vmem:[#allocation2] sm:$0xff] }
  0x11   :  { %34 = vst.msk [vmem:[#allocation2 + $0x70] sm:$0xff] %vm19_vm0, %v873_v42  ;;  %35 = vst.msk [vmem:[#allocation2 + $0x78] sm:$0xff] %vm19_vm0, %v873_v42 }
  0x13   :  { %721 = vmatpush3.bf16.msra.mxu0 %v832_v9  ;;  %818 = vmatpush3.bf16.msra.mxu1 %v832_v9 }
  0x14   :  { %722 = vmatprep.subr.bf16.mxu0 %v833_v10  ;;  %811 = vmatprep.subr.bf16.mxu1 %v833_v10 }
  0x17   :  { %723 = vmatpush3.bf16.msra.mxu0 %v834_v13  ;;  %819 = vmatpush3.bf16.msra.mxu1 %v834_v13  ;;  %v39_v13 = vld [vmem:[#allocation2 + $0x18] sm:$0xff] }
  0x18   :  { %724 = vmatprep.subr.bf16.mxu0 %v835_v14  ;;  %812 = vmatprep.subr.bf16.mxu1 %v835_v14 }
  0x1b   :  { %725 = vmatpush3.bf16.msra.mxu0 %v836_v15  ;;  %820 = vmatpush3.bf16.msra.mxu1 %v836_v15 }
  0x1c   :  { %726 = vmatprep.subr.bf16.mxu0 %v837_v16  ;;  %813 = vmatprep.subr.bf16.mxu1 %v837_v16 }
  0x1f   :  { %727 = vmatpush3.bf16.msra.mxu0 %v838_v17  ;;  %821 = vmatpush3.bf16.msra.mxu1 %v838_v17 }
  0x20   :  { %786 = vmatprep.subr.bf16.mxu1 %v845_v19 }
  0x22   :  { %406 = vmatmul.mubr.bf16.vlgmr.msra.gmra.mrb[0].mxu0 %v839_v18  ;;  %454 = vmatmul.mubr.bf16.vlgmr.msra.gmra.mrb[0].mxu1 %v842_v20  ;;  %v37_v18 = vld [vmem:[#allocation2 + $0x8] sm:$0xff] }
  0x23   :  { %787 = vmatpush3.bf16.msra.mxu1 %v845_v19  ;;  %413 = vmatprep.mubr.bf16.mxu0 %v846_v21 }
  0x24   :  { %461 = vmatprep.mubr.bf16.mxu1 %v848_v22  ;;  %788 = vmatprep.subr.bf16.mxu1 %v852_v23 }
  0x27   :  { %789 = vmatpush3.bf16.msra.mxu1 %v852_v23 }
  0x2a   :  { %414 = vmatmul.mubr.bf16.gmra.mrb[4].mxu0 %v850_v24  ;;  %462 = vmatmul.mubr.bf16.gmra.mrb[4].mxu1 %v851_v25 }
  0x2b   :  { %421 = vmatprep.mubr.bf16.mxu0 %v853_v26  ;;  %790 = vmatprep.mubr.msk.bf16.mxu1 %vm19_vm0, %v855_v27 }
  0x32   :  { %422 = vmatmul.mubr.bf16.gmra.mrb[8].mxu0 %v856_v28  ;;  %791 = vmatmul.mubr.msk.bf16.vlgmr.msra.gmra.mrb[8].mxu1 %vm19_vm0, %v857_v29  ;;  %v40_v28 = vld [vmem:[#allocation2 + $0x20] sm:$0xff] }
  0x33   :  { %429 = vmatprep.mubr.bf16.mxu0 %v858_v30  ;;  %794 = vmatprep.mubr.msk.bf16.mxu1 %vm19_vm0, %v860_v31  ;;  %v1059_v30 = vld [vmem:[%s1159_s2] ss:$0 sm:$0xff] }
  0x3a   :  { %430 = vmatmul.mubr.bf16.gmra.mrb[12].mxu0 %v861_v32  ;;  %795 = vmatmul.mubr.msk.bf16.gmra.mrb[12].mxu1 %vm19_vm0, %v862_v33 }
  0x3b   :  { %437 = vmatprep.mubr.bf16.mxu0 %v863_v34  ;;  %798 = vmatprep.mubr.msk.bf16.mxu1 %vm19_vm0, %v865_v35  ;;  %v42_v35 = vld [vmem:[#allocation2 + $0x30] sm:$0xff] }
  0x42   :  { %438 = vmatmul.mubr.bf16.gmra.mrb[16].mxu0 %v866_v36  ;;  %799 = vmatmul.mubr.msk.bf16.gmra.mrb[16].mxu1 %vm19_vm0, %v867_v37  ;;  %v41_v37 = vld [vmem:[#allocation2 + $0x28] sm:$0xff] }
  0x43   :  { %445 = vmatprep.mubr.bf16.mxu0 %v868_v38  ;;  %802 = vmatprep.mubr.msk.bf16.mxu1 %vm19_vm0, %v870_v39 }
  0x4a   :  { %446 = vmatmul.mubr.bf16.gmra.mrb[20].mxu0 %v871_v40  ;;  %803 = vmatmul.mubr.msk.bf16.gmra.mrb[20].mxu1 %vm19_vm0, %v872_v41 }
  0xf5   :  { %v728_v43 = vpop.f32.mrb[0].mxu0  ;;  %v764_v44 = vpop.f32.mrb[0].mxu1 }
  0xf6   :  { %v729_v45 = vpop.f32.mrb[1].mxu0  ;;  %v765_v46 = vpop.f32.mrb[1].mxu1 }
  0xf7   :  { %v730_v47 = vadd.f32 %v729_v45, %v728_v43  ;;  %v1044_v48 = vadd.f32 %v765_v46, %v764_v44  ;;  %v731_v49 = vpop.f32.mrb[2].mxu0  ;;  %v767_v50 = vpop.f32.mrb[2].mxu1  ;;  %v43_v46 = vld [vmem:[#allocation2 + $0x38] sm:$0xff] }
  0xf8   :  { %v732_v51 = vpop.f32.mrb[3].mxu0  ;;  %v768_v52 = vpop.f32.mrb[3].mxu1 }
  0xf9   :  { %v733_v53 = vadd.f32 %v732_v51, %v731_v49  ;;  %v1046_v54 = vadd.f32 %v768_v52, %v767_v50 }
  0xfd   :  { %v734_v55 = vpop.f32.mrb[4].mxu0  ;;  %v770_v56 = vpop.f32.mrb[4].mxu1 }
  0xfe   :  { %v735_v57 = vpop.f32.mrb[5].mxu0  ;;  %v771_v58 = vpop.f32.mrb[5].mxu1 }
  0xff   :  { %v736_v59 = vadd.f32 %v735_v57, %v734_v55  ;;  %v1048_v60 = vadd.f32 %v771_v58, %v770_v56  ;;  %v737_v61 = vpop.f32.mrb[6].mxu0  ;;  %v773_v62 = vpop.f32.mrb[6].mxu1 }
 0x100   :  { %v738_v63 = vpop.f32.mrb[7].mxu0  ;;  %v774_v0 = vpop.f32.mrb[7].mxu1 }
 0x101   :  { %v739_v1 = vadd.f32 %v738_v63, %v737_v61  ;;  %v1050_v2 = vadd.f32 %v774_v0, %v773_v62 }
 0x105   :  { %v740_v3 = vpop.f32.mrb[8].mxu0  ;;  %v792_v5 = vpop.f32.mrb[8].mxu1 }
 0x106   :  { %v513_v6 = vadd.f32 %v792_v5, %v736_v59  ;;  %v741_v7 = vpop.f32.mrb[9].mxu0  ;;  %v504_v9 = vpop.f32.mrb[9].mxu1 }
 0x107   :  { %v742_v10 = vadd.f32 %v741_v7, %v740_v3  ;;  %v505_v11 = vadd.f32 %v730_v47, %v504_v9  ;;  %v743_v12 = vpop.f32.mrb[10].mxu0  ;;  %v793_v14 = vpop.f32.mrb[10].mxu1  ;;  %v44_v3 = vld [vmem:[#allocation2 + $0x40] sm:$0xff]  ;;  %v45_v9 = vld [vmem:[#allocation2 + $0x48] sm:$0xff] }
 0x108   :  { %v569_v15 = vadd.f32 %v513_v6, %v38_v4  ;;  %v516_v16 = vadd.f32 %v793_v14, %v739_v1  ;;  %v744_v17 = vpop.f32.mrb[11].mxu0  ;;  %v507_v19 = vpop.f32.mrb[11].mxu1 }
 0x109   :  { %v567_v20 = vadd.f32 %v505_v11, %v36_v8  ;;  %v745_v21 = vadd.f32 %v744_v17, %v743_v12  ;;  %v508_v22 = vadd.f32 %v733_v53, %v507_v19  ;;  %v50_v19 = vld [vmem:[#allocation2 + $0x70] sm:$0xff] }
 0x10a   :  { %585 = vst.msk [vmem:[#allocation2 + $0x10] sm:$0xff] %vm19_vm0, %v569_v15  ;;  %v570_v23 = vadd.f32 %v516_v16, %v39_v13 }
 0x10b   :  { %583 = vst.msk [vmem:[#allocation2] sm:$0xff] %vm19_vm0, %v567_v20  ;;  %v568_v24 = vadd.f32 %v508_v22, %v37_v18 }
 0x10c   :  { %586 = vst.msk [vmem:[#allocation2 + $0x18] sm:$0xff] %vm19_vm0, %v570_v23 }
 0x10d   :  { %584 = vst.msk [vmem:[#allocation2 + $0x8] sm:$0xff] %vm19_vm0, %v568_v24  ;;  %v746_v25 = vpop.f32.mrb[12].mxu0  ;;  %v796_v26 = vpop.f32.mrb[12].mxu1  ;;  %v48_v24 = vld [vmem:[#allocation2 + $0x60] sm:$0xff] }
 0x10e   :  { %v747_v27 = vpop.f32.mrb[13].mxu0  ;;  %v520_v29 = vpop.f32.mrb[13].mxu1 }
 0x10f   :  { %v748_v31 = vadd.f32 %v747_v27, %v746_v25  ;;  %v521_v32 = vadd.f32 %v742_v10, %v520_v29  ;;  %v749_v33 = vpop.f32.mrb[14].mxu0  ;;  %v797_v34 = vpop.f32.mrb[14].mxu1  ;;  %v51_v29 = vld [vmem:[#allocation2 + $0x78] sm:$0xff] }
 0x110   :  { %v750_v36 = vpop.f32.mrb[15].mxu0  ;;  %v523_v38 = vpop.f32.mrb[15].mxu1 }
 0x111   :  { %v604_v39 = vld [vmem:[#allocation2 + $0x10] sm:$0xff]  ;;  %v529_v40 = vadd.f32 %v796_v26, %v748_v31  ;;  %v571_v41 = vadd.f32 %v521_v32, %v40_v28  ;;  %v751_v42 = vadd.f32 %v750_v36, %v749_v33  ;;  %v524_v43 = vadd.f32 %v745_v21, %v523_v38  ;;  %v49_v36 = vld [vmem:[#allocation2 + $0x68] sm:$0xff] }
 0x112   :  { %v627_v44 = vadd.f32 %v1059_v30, %v604_v39  ;;  %v602_v45 = vld [vmem:[#allocation2] sm:$0xff]  ;;  %v46_v33 = vld [vmem:[#allocation2 + $0x50] sm:$0xff] }
 0x113   :  { %v625_v47 = vadd.f32 %v1059_v30, %v602_v45  ;;  %v605_v49 = vld [vmem:[#allocation2 + $0x18] sm:$0xff]  ;;  %v573_v50 = vadd.f32 %v529_v40, %v42_v35  ;;  %587 = vst.msk [vmem:[#allocation2 + $0x20] sm:$0xff] %vm19_vm0, %v571_v41  ;;  %v532_v51 = vadd.f32 %v797_v34, %v751_v42  ;;  %v572_v52 = vadd.f32 %v524_v43, %v41_v37 }
 0x114   :  { %643 = vst.msk [vmem:[%s1160_s3 + $0x10] sm:$0xff] %vm19_vm0, %v627_v44  ;;  %v628_v53 = vadd.f32 %v1059_v30, %v605_v49  ;;  %v603_v55 = vld [vmem:[#allocation2 + $0x8] sm:$0xff]  ;;  %v47_v42 = vld [vmem:[#allocation2 + $0x58] sm:$0xff] }
 0x115   :  { %641 = vst.msk [vmem:[%s1160_s3] sm:$0xff] %vm19_vm0, %v625_v47  ;;  %v626_v56 = vadd.f32 %v1059_v30, %v603_v55  ;;  %589 = vst.msk [vmem:[#allocation2 + $0x30] sm:$0xff] %vm19_vm0, %v573_v50  ;;  %v574_v57 = vadd.f32 %v532_v51, %v43_v46  ;;  %v752_v58 = vpop.f32.mrb[16].mxu0  ;;  %v800_v59 = vpop.f32.mrb[16].mxu1 }
 0x116   :  { %588 = vst.msk [vmem:[#allocation2 + $0x28] sm:$0xff] %vm19_vm0, %v572_v52  ;;  %644 = vst.msk [vmem:[%s1160_s3 + $0x18] sm:$0xff] %vm19_vm0, %v628_v53  ;;  %v753_v61 = vpop.f32.mrb[17].mxu0  ;;  %v536_v62 = vpop.f32.mrb[17].mxu1 }
 0x117   :  { %642 = vst.msk [vmem:[%s1160_s3 + $0x8] sm:$0xff] %vm19_vm0, %v626_v56  ;;  %590 = vst.msk [vmem:[#allocation2 + $0x38] sm:$0xff] %vm19_vm0, %v574_v57  ;;  %v754_v63 = vadd.f32 %v753_v61, %v752_v58  ;;  %v755_v0 = vpop.f32.mrb[18].mxu0  ;;  %v801_v1 = vpop.f32.mrb[18].mxu1 }
 0x118   :  { %v756_v4 = vpop.f32.mrb[19].mxu0  ;;  %v539_v5 = vpop.f32.mrb[19].mxu1 }
 0x119   :  { %v537_v6 = vadd.f32 %v754_v63, %v536_v62  ;;  %v757_v7 = vadd.f32 %v756_v4, %v755_v0 }
 0x11a   :  { %v606_v8 = vld [vmem:[#allocation2 + $0x20] sm:$0xff] }
 0x11b   :  { %v629_v10 = vadd.f32 %v1059_v30, %v606_v8  ;;  %v575_v11 = vadd.f32 %v537_v6, %v44_v3  ;;  %v540_v12 = vadd.f32 %v757_v7, %v539_v5 }
 0x11c   :  { %v608_v13 = vld [vmem:[#allocation2 + $0x30] sm:$0xff] }
 0x11d   :  { %v607_v14 = vld [vmem:[#allocation2 + $0x28] sm:$0xff]  ;;  %v631_v15 = vadd.f32 %v1059_v30, %v608_v13  ;;  %645 = vst.msk [vmem:[%s1160_s3 + $0x20] sm:$0xff] %vm19_vm0, %v629_v10  ;;  %591 = vst.msk [vmem:[#allocation2 + $0x40] sm:$0xff] %vm19_vm0, %v575_v11  ;;  %v576_v17 = vadd.f32 %v540_v12, %v45_v9  ;;  %v758_v18 = vpop.f32.mrb[20].mxu0  ;;  %v804_v20 = vpop.f32.mrb[20].mxu1 }
 0x11e   :  { %v630_v16 = vadd.f32 %v1059_v30, %v607_v14  ;;  %v609_v21 = vld [vmem:[#allocation2 + $0x38] sm:$0xff]  ;;  %v561_v22 = vadd.f32 %v804_v20, %v1048_v60  ;;  %v759_v23 = vpop.f32.mrb[21].mxu0  ;;  %v552_v25 = vpop.f32.mrb[21].mxu1 }
 0x11f   :  { %647 = vst.msk [vmem:[%s1160_s3 + $0x30] sm:$0xff] %vm19_vm0, %v631_v15  ;;  %v632_v26 = vadd.f32 %v1059_v30, %v609_v21  ;;  %592 = vst.msk [vmem:[#allocation2 + $0x48] sm:$0xff] %vm19_vm0, %v576_v17  ;;  %v760_v27 = vadd.f32 %v759_v23, %v758_v18  ;;  %v553_v60 = vadd.f32 %v1044_v48, %v552_v25  ;;  %v761_v28 = vpop.f32.mrb[22].mxu0  ;;  %v805_v31 = vpop.f32.mrb[22].mxu1 }
 0x120   :  { %646 = vst.msk [vmem:[%s1160_s3 + $0x28] sm:$0xff] %vm19_vm0, %v630_v16  ;;  %v581_v32 = vadd.f32 %v561_v22, %v50_v19  ;;  %v564_v34 = vadd.f32 %v805_v31, %v1050_v2  ;;  %v762_v35 = vpop.f32.mrb[23].mxu0  ;;  %v555_v37 = vpop.f32.mrb[23].mxu1 }
 0x121   :  { %648 = vst.msk [vmem:[%s1160_s3 + $0x38] sm:$0xff] %vm19_vm0, %v632_v26  ;;  %v545_v38 = vadd.f32 %v800_v59, %v760_v27  ;;  %v579_v39 = vadd.f32 %v553_v60, %v48_v24  ;;  %v763_v40 = vadd.f32 %v762_v35, %v761_v28  ;;  %v556_v48 = vadd.f32 %v1046_v54, %v555_v37 }
 0x122   :  { %597 = vst.msk [vmem:[#allocation2 + $0x70] sm:$0xff] %vm19_vm0, %v581_v32  ;;  %v582_v41 = vadd.f32 %v564_v34, %v51_v29 }
 0x123   :  { %v577_v43 = vadd.f32 %v545_v38, %v46_v33  ;;  %595 = vst.msk [vmem:[#allocation2 + $0x60] sm:$0xff] %vm19_vm0, %v579_v39  ;;  %v548_v2 = vadd.f32 %v801_v1, %v763_v40  ;;  %v580_v44 = vadd.f32 %v556_v48, %v49_v36 }
 0x124   :  { %v610_v45 = vld [vmem:[#allocation2 + $0x40] sm:$0xff]  ;;  %598 = vst.msk [vmem:[#allocation2 + $0x78] sm:$0xff] %vm19_vm0, %v582_v41 }
 0x125   :  { %v633_v46 = vadd.f32 %v1059_v30, %v610_v45  ;;  %593 = vst.msk [vmem:[#allocation2 + $0x50] sm:$0xff] %vm19_vm0, %v577_v43  ;;  %v578_v47 = vadd.f32 %v548_v2, %v47_v42  ;;  %596 = vst.msk [vmem:[#allocation2 + $0x68] sm:$0xff] %vm19_vm0, %v580_v44 }
 0x126   :  { %v611_v54 = vld [vmem:[#allocation2 + $0x48] sm:$0xff] }
 0x127   :  { %649 = vst.msk [vmem:[%s1160_s3 + $0x40] sm:$0xff] %vm19_vm0, %v633_v46  ;;  %v634_v49 = vadd.f32 %v1059_v30, %v611_v54  ;;  %594 = vst.msk [vmem:[#allocation2 + $0x58] sm:$0xff] %vm19_vm0, %v578_v47 }
 0x129   :  { %650 = vst.msk [vmem:[%s1160_s3 + $0x48] sm:$0xff] %vm19_vm0, %v634_v49  ;;  %v616_v50 = vld [vmem:[#allocation2 + $0x70] sm:$0xff] }
 0x12a   :  { %v639_v51 = vadd.f32 %v1059_v30, %v616_v50  ;;  %v614_v52 = vld [vmem:[#allocation2 + $0x60] sm:$0xff] }
 0x12b   :  { %v637_v53 = vadd.f32 %v1059_v30, %v614_v52  ;;  %v617_v55 = vld [vmem:[#allocation2 + $0x78] sm:$0xff] }
 0x12c   :  { %655 = vst.msk [vmem:[%s1160_s3 + $0x70] sm:$0xff] %vm19_vm0, %v639_v51  ;;  %v612_v56 = vld [vmem:[#allocation2 + $0x50] sm:$0xff]  ;;  %v640_v57 = vadd.f32 %v1059_v30, %v617_v55  ;;  %v615_v58 = vld [vmem:[#allocation2 + $0x68] sm:$0xff] }
 0x12d   :  { %v635_v59 = vadd.f32 %v1059_v30, %v612_v56  ;;  %653 = vst.msk [vmem:[%s1160_s3 + $0x60] sm:$0xff] %vm19_vm0, %v637_v53  ;;  %v638_v61 = vadd.f32 %v1059_v30, %v615_v58 }
 0x12e   :  { %656 = vst.msk [vmem:[%s1160_s3 + $0x78] sm:$0xff] %vm19_vm0, %v640_v57  ;;  %v613_v62 = vld [vmem:[#allocation2 + $0x58] sm:$0xff] }
 0x12f   :  { %651 = vst.msk [vmem:[%s1160_s3 + $0x50] sm:$0xff] %vm19_vm0, %v635_v59  ;;  %v636_v63 = vadd.f32 %v1059_v30, %v613_v62  ;;  %654 = vst.msk [vmem:[%s1160_s3 + $0x68] sm:$0xff] %vm19_vm0, %v638_v61 }
 0x131   :  { %652 = vst.msk [vmem:[%s1160_s3 + $0x58] sm:$0xff] %vm19_vm0, %v636_v63 }

// kernel: vqvae_forward.62
= control target key start
LH: loop header
LB: loop body
LE: loop exit
PB: predicated region body
PF: predicated region fallthrough
CT: control target
= control target key end

     0   :  { %vm22_vm0 = vcmask 261120   ;;  %v908_v42 = vmov 0.0   ;;  %s1245_s1 = inlined_call_operand.vmem [shape: bf16[288,32], index: 1, kind: input, shape index: {}]   ;;  %s1246_s0 = inlined_call_operand.vmem [shape: bf16[128,288], index: 0, kind: input, shape index: {}]   ;;  %s1247_s2 = inlined_call_operand.vmem [shape: f32[1,32], index: 2, kind: input, shape index: {}]   ;;  %s1248_s3 = inlined_call_operand.vmem [shape: f32[128,32], index: 3, kind: input, shape index: {}]   ;;  %s1249_s4 = inlined_call_operand.vmem [shape: f32[128,32], index: 4, kind: output, shape index: {}]  }
   0x1   :  { %v858_v0 = vld [vmem:[%s1245_s1 + $0x40] sm:$0xff]   ;;  %v860_v2 = vld [vmem:[%s1245_s1 + $0x48] sm:$0xff]   ;;  %v862_v4 = vld [vmem:[%s1245_s1 + $0x50] sm:$0xff]   ;;  %25 = vst.msk [vmem:[#allocation2 + $0x10] sm:$0xff] %vm22_vm0, %v908_v42 }
   0x2   :  { %v859_v1 = vld [vmem:[%s1245_s1] sm:$0xff]   ;;  %747 = vmatprep.subr.bf16.mxu0 %v858_v0  ;;  %841 = vmatprep.subr.bf16.mxu1 %v858_v0  ;;  %v861_v3 = vld [vmem:[%s1245_s1 + $0x8] sm:$0xff]   ;;  %v863_v5 = vld [vmem:[%s1245_s1 + $0x10] sm:$0xff]   ;;  %23 = vst.msk [vmem:[#allocation2] sm:$0xff] %vm22_vm0, %v908_v42 }
   0x3   :  { %748 = vmatpush3.bf16.msra.mxu0 %v859_v1  ;;  %849 = vmatpush3.bf16.msra.mxu1 %v859_v1  ;;  %v864_v6 = vld [vmem:[%s1245_s1 + $0x58] sm:$0xff]   ;;  %v866_v8 = vld [vmem:[%s1245_s1 + $0x60] sm:$0xff]   ;;  %v868_v10 = vld [vmem:[%s1245_s1 + $0x68] sm:$0xff]   ;;  %24 = vst.msk [vmem:[#allocation2 + $0x8] sm:$0xff] %vm22_vm0, %v908_v42 }
   0x4   :  { %749 = vmatprep.subr.bf16.mxu0 %v860_v2  ;;  %842 = vmatprep.subr.bf16.mxu1 %v860_v2  ;;  %v865_v7 = vld [vmem:[%s1245_s1 + $0x18] sm:$0xff]   ;;  %v867_v9 = vld [vmem:[%s1245_s1 + $0x20] sm:$0xff]   ;;  %v869_v13 = vld [vmem:[%s1245_s1 + $0x28] sm:$0xff]   ;;  %26 = vst.msk [vmem:[#allocation2 + $0x18] sm:$0xff] %vm22_vm0, %v908_v42 }
   0x5   :  { %v876_v11 = vld [vmem:[%s1246_s0 + $0x4] ss:$12 sps:$4 sm:$0xff]   ;;  %v879_v12 = vld [vmem:[%s1246_s0 + $0x94] ss:$12 sps:$4 sm:$0xff]   ;;  %v872_v16 = vld [vmem:[%s1245_s1 + $0x78] sm:$0xff]   ;;  %27 = vst.msk [vmem:[#allocation2 + $0x20] sm:$0xff] %vm22_vm0, %v908_v42 }
   0x6   :  { %v870_v14 = vld [vmem:[%s1245_s1 + $0x70] sm:$0xff]   ;;  %408 = vmatprep.mubr.bf16.mxu0 %v876_v11  ;;  %456 = vmatprep.mubr.bf16.mxu1 %v879_v12  ;;  %v873_v17 = vld [vmem:[%s1245_s1 + $0x38] sm:$0xff]   ;;  %v874_v18 = vld [vmem:[%s1246_s0] ss:$12 sps:$4 sm:$0xff]   ;;  %28 = vst.msk [vmem:[#allocation2 + $0x28] sm:$0xff] %vm22_vm0, %v908_v42 }
   0x7   :  { %750 = vmatpush3.bf16.msra.mxu0 %v861_v3  ;;  %850 = vmatpush3.bf16.msra.mxu1 %v861_v3  ;;  %v871_v15 = vld [vmem:[%s1245_s1 + $0x30] sm:$0xff]   ;;  %v880_v19 = vld [vmem:[%s1245_s1 + $0x80] sm:$0xff]   ;;  %v881_v21 = vld [vmem:[%s1246_s0 + $0x1c] ss:$12 sps:$4 sm:$0xff]   ;;  %29 = vst.msk [vmem:[#allocation2 + $0x30] sm:$0xff] %vm22_vm0, %v908_v42 }
   0x8   :  { %751 = vmatprep.subr.bf16.mxu0 %v862_v4  ;;  %843 = vmatprep.subr.bf16.mxu1 %v862_v4  ;;  %v877_v20 = vld [vmem:[%s1246_s0 + $0x90] ss:$12 sps:$4 sm:$0xff]   ;;  %v883_v22 = vld [vmem:[%s1246_s0 + $0xac] ss:$12 sps:$4 sm:$0xff]   ;;  %v886_v25 = vld [vmem:[%s1246_s0 + $0xa8] ss:$12 sps:$4 sm:$0xff]  }
   0x9   :  { %v887_v23 = vld [vmem:[%s1245_s1 + $0x88] sm:$0xff]   ;;  %v885_v24 = vld [vmem:[%s1246_s0 + $0x18] ss:$12 sps:$4 sm:$0xff]   ;;  %v888_v26 = vld [vmem:[%s1246_s0 + $0x34] ss:$12 sps:$4 sm:$0xff]   ;;  %30 = vst.msk [vmem:[#allocation2 + $0x38] sm:$0xff] %vm22_vm0, %v908_v42 }
   0xa   :  { %v890_v27 = vld [vmem:[%s1246_s0 + $0x8] ss:$12 sps:$4 sm:$0xff]   ;;  %v891_v28 = vld [vmem:[%s1246_s0 + $0x30] ss:$12 sps:$4 sm:$0xff]   ;;  %v892_v29 = vld [vmem:[%s1246_s0 + $0x20] ss:$12 sps:$4 sm:$0xff]  }
   0xb   :  { %752 = vmatpush3.bf16.msra.mxu0 %v863_v5  ;;  %851 = vmatpush3.bf16.msra.mxu1 %v863_v5  ;;  %v893_v30 = vld [vmem:[%s1246_s0 + $0x4c] ss:$12 sps:$4 sm:$0xff]   ;;  %v896_v32 = vld [vmem:[%s1246_s0 + $0x48] ss:$12 sps:$4 sm:$0xff]   ;;  %v897_v33 = vld [vmem:[%s1246_s0 + $0x50] ss:$12 sps:$4 sm:$0xff]  }
   0xc   :  { %753 = vmatprep.subr.bf16.mxu0 %v864_v6  ;;  %844 = vmatprep.subr.bf16.mxu1 %v864_v6  ;;  %v895_v31 = vld [vmem:[%s1246_s0 + $0x38] ss:$12 sps:$4 sm:$0xff]   ;;  %v900_v35 = vld [vmem:[%s1246_s0 + $0x68] ss:$12 sps:$4 sm:$0xff]   ;;  %v901_v36 = vld [vmem:[%s1246_s0 + $0x60] ss:$12 sps:$4 sm:$0xff]  }
   0xd   :  { %v898_v34 = vld [vmem:[%s1246_s0 + $0x64] ss:$12 sps:$4 sm:$0xff]   ;;  %v902_v37 = vld [vmem:[%s1246_s0 + $0x80] ss:$12 sps:$4 sm:$0xff]   ;;  %v903_v38 = vld [vmem:[%s1246_s0 + $0x7c] ss:$12 sps:$4 sm:$0xff]  }
   0xe   :  { %v905_v39 = vld [vmem:[%s1246_s0 + $0x98] ss:$12 sps:$4 sm:$0xff]   ;;  %v907_v41 = vld [vmem:[%s1246_s0 + $0xb0] ss:$12 sps:$4 sm:$0xff]   ;;  %31 = vst.msk [vmem:[#allocation2 + $0x40] sm:$0xff] %vm22_vm0, %v908_v42  ;;  %32 = vst.msk [vmem:[#allocation2 + $0x48] sm:$0xff] %vm22_vm0, %v908_v42 }
   0xf   :  { %754 = vmatpush3.bf16.msra.mxu0 %v865_v7  ;;  %852 = vmatpush3.bf16.msra.mxu1 %v865_v7  ;;  %v906_v40 = vld [vmem:[%s1246_s0 + $0x78] ss:$12 sps:$4 sm:$0xff]   ;;  %33 = vst.msk [vmem:[#allocation2 + $0x50] sm:$0xff] %vm22_vm0, %v908_v42  ;;  %34 = vst.msk [vmem:[#allocation2 + $0x58] sm:$0xff] %vm22_vm0, %v908_v42  ;;  %v41_v4 = vld [vmem:[#allocation2 + $0x10] sm:$0xff] }
  0x10   :  { %755 = vmatprep.subr.bf16.mxu0 %v866_v8  ;;  %845 = vmatprep.subr.bf16.mxu1 %v866_v8  ;;  %35 = vst.msk [vmem:[#allocation2 + $0x60] sm:$0xff] %vm22_vm0, %v908_v42  ;;  %36 = vst.msk [vmem:[#allocation2 + $0x68] sm:$0xff] %vm22_vm0, %v908_v42  ;;  %v39_v8 = vld [vmem:[#allocation2] sm:$0xff] }
  0x11   :  { %37 = vst.msk [vmem:[#allocation2 + $0x70] sm:$0xff] %vm22_vm0, %v908_v42  ;;  %38 = vst.msk [vmem:[#allocation2 + $0x78] sm:$0xff] %vm22_vm0, %v908_v42 }
  0x13   :  { %756 = vmatpush3.bf16.msra.mxu0 %v867_v9  ;;  %853 = vmatpush3.bf16.msra.mxu1 %v867_v9 }
  0x14   :  { %757 = vmatprep.subr.bf16.mxu0 %v868_v10  ;;  %846 = vmatprep.subr.bf16.mxu1 %v868_v10 }
  0x17   :  { %758 = vmatpush3.bf16.msra.mxu0 %v869_v13  ;;  %854 = vmatpush3.bf16.msra.mxu1 %v869_v13  ;;  %v42_v13 = vld [vmem:[#allocation2 + $0x18] sm:$0xff] }
  0x18   :  { %759 = vmatprep.subr.bf16.mxu0 %v870_v14  ;;  %847 = vmatprep.subr.bf16.mxu1 %v870_v14 }
  0x1b   :  { %760 = vmatpush3.bf16.msra.mxu0 %v871_v15  ;;  %855 = vmatpush3.bf16.msra.mxu1 %v871_v15 }
  0x1c   :  { %761 = vmatprep.subr.bf16.mxu0 %v872_v16  ;;  %848 = vmatprep.subr.bf16.mxu1 %v872_v16 }
  0x1f   :  { %762 = vmatpush3.bf16.msra.mxu0 %v873_v17  ;;  %856 = vmatpush3.bf16.msra.mxu1 %v873_v17 }
  0x20   :  { %821 = vmatprep.subr.bf16.mxu1 %v880_v19 }
  0x22   :  { %409 = vmatmul.mubr.bf16.vlgmr.msra.gmra.mrb[0].mxu0 %v874_v18  ;;  %457 = vmatmul.mubr.bf16.vlgmr.msra.gmra.mrb[0].mxu1 %v877_v20  ;;  %v40_v18 = vld [vmem:[#allocation2 + $0x8] sm:$0xff] }
  0x23   :  { %822 = vmatpush3.bf16.msra.mxu1 %v880_v19  ;;  %416 = vmatprep.mubr.bf16.mxu0 %v881_v21 }
  0x24   :  { %464 = vmatprep.mubr.bf16.mxu1 %v883_v22  ;;  %823 = vmatprep.subr.bf16.mxu1 %v887_v23 }
  0x27   :  { %824 = vmatpush3.bf16.msra.mxu1 %v887_v23 }
  0x2a   :  { %417 = vmatmul.mubr.bf16.gmra.mrb[4].mxu0 %v885_v24  ;;  %465 = vmatmul.mubr.bf16.gmra.mrb[4].mxu1 %v886_v25 }
  0x2b   :  { %424 = vmatprep.mubr.bf16.mxu0 %v888_v26  ;;  %825 = vmatprep.mubr.msk.bf16.mxu1 %vm22_vm0, %v890_v27 }
  0x32   :  { %425 = vmatmul.mubr.bf16.gmra.mrb[8].mxu0 %v891_v28  ;;  %826 = vmatmul.mubr.msk.bf16.vlgmr.msra.gmra.mrb[8].mxu1 %vm22_vm0, %v892_v29  ;;  %v43_v28 = vld [vmem:[#allocation2 + $0x20] sm:$0xff] }
  0x33   :  { %432 = vmatprep.mubr.bf16.mxu0 %v893_v30  ;;  %829 = vmatprep.mubr.msk.bf16.mxu1 %vm22_vm0, %v895_v31  ;;  %v1099_v30 = vld [vmem:[%s1247_s2] ss:$0 sm:$0xff] }
  0x3a   :  { %433 = vmatmul.mubr.bf16.gmra.mrb[12].mxu0 %v896_v32  ;;  %830 = vmatmul.mubr.msk.bf16.gmra.mrb[12].mxu1 %vm22_vm0, %v897_v33 }
  0x3b   :  { %440 = vmatprep.mubr.bf16.mxu0 %v898_v34  ;;  %833 = vmatprep.mubr.msk.bf16.mxu1 %vm22_vm0, %v900_v35  ;;  %v45_v35 = vld [vmem:[#allocation2 + $0x30] sm:$0xff] }
  0x42   :  { %441 = vmatmul.mubr.bf16.gmra.mrb[16].mxu0 %v901_v36  ;;  %834 = vmatmul.mubr.msk.bf16.gmra.mrb[16].mxu1 %vm22_vm0, %v902_v37  ;;  %v44_v37 = vld [vmem:[#allocation2 + $0x28] sm:$0xff] }
  0x43   :  { %448 = vmatprep.mubr.bf16.mxu0 %v903_v38  ;;  %837 = vmatprep.mubr.msk.bf16.mxu1 %vm22_vm0, %v905_v39 }
  0x4a   :  { %449 = vmatmul.mubr.bf16.gmra.mrb[20].mxu0 %v906_v40  ;;  %838 = vmatmul.mubr.msk.bf16.gmra.mrb[20].mxu1 %vm22_vm0, %v907_v41  ;;  %v646_v40 = vld [vmem:[%s1248_s3 + $0x10] sm:$0xff] }
  0xf5   :  { %v763_v43 = vpop.f32.mrb[0].mxu0  ;;  %v799_v44 = vpop.f32.mrb[0].mxu1 }
  0xf6   :  { %v764_v45 = vpop.f32.mrb[1].mxu0  ;;  %v800_v46 = vpop.f32.mrb[1].mxu1 }
  0xf7   :  { %v765_v47 = vadd.f32 %v764_v45, %v763_v43  ;;  %v1084_v48 = vadd.f32 %v800_v46, %v799_v44  ;;  %v766_v49 = vpop.f32.mrb[2].mxu0  ;;  %v802_v50 = vpop.f32.mrb[2].mxu1 }
  0xf8   :  { %v767_v51 = vpop.f32.mrb[3].mxu0  ;;  %v803_v52 = vpop.f32.mrb[3].mxu1 }
  0xf9   :  { %v768_v53 = vadd.f32 %v767_v51, %v766_v49  ;;  %v1086_v54 = vadd.f32 %v803_v52, %v802_v50  ;;  %v46_v49 = vld [vmem:[#allocation2 + $0x38] sm:$0xff] }
  0xfa   :  { %v647_v52 = vld [vmem:[%s1248_s3 + $0x18] sm:$0xff] }
  0xfd   :  { %v769_v55 = vpop.f32.mrb[4].mxu0  ;;  %v805_v56 = vpop.f32.mrb[4].mxu1 }
  0xfe   :  { %v770_v57 = vpop.f32.mrb[5].mxu0  ;;  %v806_v58 = vpop.f32.mrb[5].mxu1 }
  0xff   :  { %v771_v59 = vadd.f32 %v770_v57, %v769_v55  ;;  %v1088_v60 = vadd.f32 %v806_v58, %v805_v56  ;;  %v772_v61 = vpop.f32.mrb[6].mxu0  ;;  %v808_v62 = vpop.f32.mrb[6].mxu1 }
 0x100   :  { %v773_v63 = vpop.f32.mrb[7].mxu0  ;;  %v809_v0 = vpop.f32.mrb[7].mxu1 }
 0x101   :  { %v774_v1 = vadd.f32 %v773_v63, %v772_v61  ;;  %v1090_v2 = vadd.f32 %v809_v0, %v808_v62  ;;  %v645_v61 = vld [vmem:[%s1248_s3 + $0x8] sm:$0xff] }
 0x105   :  { %v775_v3 = vpop.f32.mrb[8].mxu0  ;;  %v827_v5 = vpop.f32.mrb[8].mxu1 }
 0x106   :  { %v516_v6 = vadd.f32 %v827_v5, %v771_v59  ;;  %v776_v7 = vpop.f32.mrb[9].mxu0  ;;  %v507_v9 = vpop.f32.mrb[9].mxu1 }
 0x107   :  { %v777_v10 = vadd.f32 %v776_v7, %v775_v3  ;;  %v508_v11 = vadd.f32 %v765_v47, %v507_v9  ;;  %v778_v12 = vpop.f32.mrb[10].mxu0  ;;  %v828_v14 = vpop.f32.mrb[10].mxu1  ;;  %v644_v47 = vld [vmem:[%s1248_s3] sm:$0xff] }
 0x108   :  { %v572_v15 = vadd.f32 %v516_v6, %v41_v4  ;;  %v519_v16 = vadd.f32 %v828_v14, %v774_v1  ;;  %v779_v17 = vpop.f32.mrb[11].mxu0  ;;  %v510_v19 = vpop.f32.mrb[11].mxu1 }
 0x109   :  { %v570_v20 = vadd.f32 %v508_v11, %v39_v8  ;;  %v780_v21 = vadd.f32 %v779_v17, %v778_v12  ;;  %v511_v22 = vadd.f32 %v768_v53, %v510_v19  ;;  %v47_v11 = vld [vmem:[#allocation2 + $0x40] sm:$0xff]  ;;  %v650_v19 = vld [vmem:[%s1248_s3 + $0x30] sm:$0xff] }
 0x10a   :  { %588 = vst.msk [vmem:[#allocation2 + $0x10] sm:$0xff] %vm22_vm0, %v572_v15  ;;  %v573_v23 = vadd.f32 %v519_v16, %v42_v13  ;;  %v648_v17 = vld [vmem:[%s1248_s3 + $0x20] sm:$0xff] }
 0x10b   :  { %586 = vst.msk [vmem:[#allocation2] sm:$0xff] %vm22_vm0, %v570_v20  ;;  %v571_v24 = vadd.f32 %v511_v22, %v40_v18  ;;  %v48_v18 = vld [vmem:[#allocation2 + $0x48] sm:$0xff] }
 0x10c   :  { %589 = vst.msk [vmem:[#allocation2 + $0x18] sm:$0xff] %vm22_vm0, %v573_v23 }
 0x10d   :  { %587 = vst.msk [vmem:[#allocation2 + $0x8] sm:$0xff] %vm22_vm0, %v571_v24  ;;  %v781_v25 = vpop.f32.mrb[12].mxu0  ;;  %v831_v26 = vpop.f32.mrb[12].mxu1 }
 0x10e   :  { %v782_v27 = vpop.f32.mrb[13].mxu0  ;;  %v523_v29 = vpop.f32.mrb[13].mxu1 }
 0x10f   :  { %v783_v31 = vadd.f32 %v782_v27, %v781_v25  ;;  %v524_v32 = vadd.f32 %v777_v10, %v523_v29  ;;  %v784_v33 = vpop.f32.mrb[14].mxu0  ;;  %v832_v34 = vpop.f32.mrb[14].mxu1  ;;  %v649_v25 = vld [vmem:[%s1248_s3 + $0x28] sm:$0xff] }
 0x110   :  { %v785_v36 = vpop.f32.mrb[15].mxu0  ;;  %v526_v38 = vpop.f32.mrb[15].mxu1 }
 0x111   :  { %v607_v39 = vld [vmem:[#allocation2 + $0x10] sm:$0xff]  ;;  %v532_v41 = vadd.f32 %v831_v26, %v783_v31  ;;  %v574_v42 = vadd.f32 %v524_v32, %v43_v28  ;;  %v786_v43 = vadd.f32 %v785_v36, %v784_v33  ;;  %v527_v44 = vadd.f32 %v780_v21, %v526_v38 }
 0x112   :  { %v630_v45 = vadd.f32 %v1099_v30, %v607_v39  ;;  %v605_v46 = vld [vmem:[#allocation2] sm:$0xff]  ;;  %v53_v32 = vld [vmem:[#allocation2 + $0x70] sm:$0xff] }
 0x113   :  { %v628_v50 = vadd.f32 %v1099_v30, %v605_v46  ;;  %v608_v51 = vld [vmem:[#allocation2 + $0x18] sm:$0xff]  ;;  %v576_v53 = vadd.f32 %v532_v41, %v45_v35  ;;  %590 = vst.msk [vmem:[#allocation2 + $0x20] sm:$0xff] %vm22_vm0, %v574_v42  ;;  %v535_v55 = vadd.f32 %v832_v34, %v786_v43  ;;  %v575_v56 = vadd.f32 %v527_v44, %v44_v37  ;;  %v51_v43 = vld [vmem:[#allocation2 + $0x60] sm:$0xff] }
 0x114   :  { %v662_v57 = vadd.f32 %v646_v40, %v630_v45  ;;  %v631_v58 = vadd.f32 %v1099_v30, %v608_v51  ;;  %v606_v59 = vld [vmem:[#allocation2 + $0x8] sm:$0xff]  ;;  %v651_v35 = vld [vmem:[%s1248_s3 + $0x38] sm:$0xff] }
 0x115   :  { %v660_v62 = vadd.f32 %v644_v47, %v628_v50  ;;  %v629_v63 = vadd.f32 %v1099_v30, %v606_v59  ;;  %592 = vst.msk [vmem:[#allocation2 + $0x30] sm:$0xff] %vm22_vm0, %v576_v53  ;;  %v577_v0 = vadd.f32 %v535_v55, %v46_v49  ;;  %591 = vst.msk [vmem:[#allocation2 + $0x28] sm:$0xff] %vm22_vm0, %v575_v56  ;;  %v787_v1 = vpop.f32.mrb[16].mxu0  ;;  %v835_v3 = vpop.f32.mrb[16].mxu1  ;;  %v54_v45 = vld [vmem:[#allocation2 + $0x78] sm:$0xff] }
 0x116   :  { %678 = vst.msk [vmem:[%s1249_s4 + $0x10] sm:$0xff] %vm22_vm0, %v662_v57  ;;  %v663_v4 = vadd.f32 %v647_v52, %v631_v58  ;;  %v788_v5 = vpop.f32.mrb[17].mxu0  ;;  %v539_v6 = vpop.f32.mrb[17].mxu1  ;;  %v52_v52 = vld [vmem:[#allocation2 + $0x68] sm:$0xff]  ;;  %v50_v59 = vld [vmem:[#allocation2 + $0x58] sm:$0xff] }
 0x117   :  { %676 = vst.msk [vmem:[%s1249_s4] sm:$0xff] %vm22_vm0, %v660_v62  ;;  %v661_v7 = vadd.f32 %v645_v61, %v629_v63  ;;  %593 = vst.msk [vmem:[#allocation2 + $0x38] sm:$0xff] %vm22_vm0, %v577_v0  ;;  %v789_v8 = vadd.f32 %v788_v5, %v787_v1  ;;  %v790_v9 = vpop.f32.mrb[18].mxu0  ;;  %v836_v10 = vpop.f32.mrb[18].mxu1  ;;  %v652_v1 = vld [vmem:[%s1248_s3 + $0x40] sm:$0xff]  ;;  %v653_v5 = vld [vmem:[%s1248_s3 + $0x48] sm:$0xff] }
 0x118   :  { %679 = vst.msk [vmem:[%s1249_s4 + $0x18] sm:$0xff] %vm22_vm0, %v663_v4  ;;  %v791_v12 = vpop.f32.mrb[19].mxu0  ;;  %v542_v13 = vpop.f32.mrb[19].mxu1 }
 0x119   :  { %677 = vst.msk [vmem:[%s1249_s4 + $0x8] sm:$0xff] %vm22_vm0, %v661_v7  ;;  %v540_v14 = vadd.f32 %v789_v8, %v539_v6  ;;  %v792_v15 = vadd.f32 %v791_v12, %v790_v9  ;;  %v654_v12 = vld [vmem:[%s1248_s3 + $0x50] sm:$0xff] }
 0x11a   :  { %v609_v16 = vld [vmem:[#allocation2 + $0x20] sm:$0xff] }
 0x11b   :  { %v632_v20 = vadd.f32 %v1099_v30, %v609_v16  ;;  %v578_v21 = vadd.f32 %v540_v14, %v47_v11  ;;  %v543_v22 = vadd.f32 %v792_v15, %v542_v13  ;;  %v656_v13 = vld [vmem:[%s1248_s3 + $0x60] sm:$0xff]  ;;  %v659_v16 = vld [vmem:[%s1248_s3 + $0x78] sm:$0xff] }
 0x11c   :  { %v611_v23 = vld [vmem:[#allocation2 + $0x30] sm:$0xff]  ;;  %v610_v24 = vld [vmem:[#allocation2 + $0x28] sm:$0xff] }
 0x11d   :  { %v634_v26 = vadd.f32 %v1099_v30, %v611_v23  ;;  %v664_v27 = vadd.f32 %v648_v17, %v632_v20  ;;  %v633_v28 = vadd.f32 %v1099_v30, %v610_v24  ;;  %594 = vst.msk [vmem:[#allocation2 + $0x40] sm:$0xff] %vm22_vm0, %v578_v21  ;;  %v579_v29 = vadd.f32 %v543_v22, %v48_v18  ;;  %v793_v31 = vpop.f32.mrb[20].mxu0  ;;  %v839_v33 = vpop.f32.mrb[20].mxu1  ;;  %v657_v22 = vld [vmem:[%s1248_s3 + $0x68] sm:$0xff] }
 0x11e   :  { %v612_v34 = vld [vmem:[#allocation2 + $0x38] sm:$0xff]  ;;  %v564_v36 = vadd.f32 %v839_v33, %v1088_v60  ;;  %v794_v37 = vpop.f32.mrb[21].mxu0  ;;  %v555_v38 = vpop.f32.mrb[21].mxu1  ;;  %v49_v60 = vld [vmem:[#allocation2 + $0x50] sm:$0xff] }
 0x11f   :  { %v666_v39 = vadd.f32 %v650_v19, %v634_v26  ;;  %680 = vst.msk [vmem:[%s1249_s4 + $0x20] sm:$0xff] %vm22_vm0, %v664_v27  ;;  %v635_v40 = vadd.f32 %v1099_v30, %v612_v34  ;;  %v665_v41 = vadd.f32 %v649_v25, %v633_v28  ;;  %595 = vst.msk [vmem:[#allocation2 + $0x48] sm:$0xff] %vm22_vm0, %v579_v29  ;;  %v796_v44 = vpop.f32.mrb[22].mxu0  ;;  %v840_v46 = vpop.f32.mrb[22].mxu1  ;;  %v655_v28 = vld [vmem:[%s1248_s3 + $0x58] sm:$0xff] }
 0x120   :  { %v795_v42 = vadd.f32 %v794_v37, %v793_v31  ;;  %v584_v47 = vadd.f32 %v564_v36, %v53_v32  ;;  %v556_v49 = vadd.f32 %v1084_v48, %v555_v38  ;;  %v567_v50 = vadd.f32 %v840_v46, %v1090_v2  ;;  %v797_v51 = vpop.f32.mrb[23].mxu0  ;;  %v558_v53 = vpop.f32.mrb[23].mxu1 }
 0x121   :  { %682 = vst.msk [vmem:[%s1249_s4 + $0x30] sm:$0xff] %vm22_vm0, %v666_v39  ;;  %v667_v55 = vadd.f32 %v651_v35, %v635_v40  ;;  %681 = vst.msk [vmem:[%s1249_s4 + $0x28] sm:$0xff] %vm22_vm0, %v665_v41  ;;  %v798_v57 = vadd.f32 %v797_v51, %v796_v44  ;;  %v559_v48 = vadd.f32 %v1086_v54, %v558_v53 }
 0x122   :  { %v548_v56 = vadd.f32 %v835_v3, %v795_v42  ;;  %600 = vst.msk [vmem:[#allocation2 + $0x70] sm:$0xff] %vm22_vm0, %v584_v47  ;;  %v582_v2 = vadd.f32 %v556_v49, %v51_v43  ;;  %v585_v58 = vadd.f32 %v567_v50, %v54_v45 }
 0x123   :  { %683 = vst.msk [vmem:[%s1249_s4 + $0x38] sm:$0xff] %vm22_vm0, %v667_v55  ;;  %v551_v62 = vadd.f32 %v836_v10, %v798_v57  ;;  %v583_v63 = vadd.f32 %v559_v48, %v52_v52  ;;  %v658_v10 = vld [vmem:[%s1248_s3 + $0x70] sm:$0xff] }
 0x124   :  { %v580_v61 = vadd.f32 %v548_v56, %v49_v60  ;;  %v613_v0 = vld [vmem:[#allocation2 + $0x40] sm:$0xff]  ;;  %598 = vst.msk [vmem:[#allocation2 + $0x60] sm:$0xff] %vm22_vm0, %v582_v2  ;;  %601 = vst.msk [vmem:[#allocation2 + $0x78] sm:$0xff] %vm22_vm0, %v585_v58 }
 0x125   :  { %v636_v54 = vadd.f32 %v1099_v30, %v613_v0  ;;  %v581_v3 = vadd.f32 %v551_v62, %v50_v59  ;;  %599 = vst.msk [vmem:[#allocation2 + $0x68] sm:$0xff] %vm22_vm0, %v583_v63 }
 0x126   :  { %596 = vst.msk [vmem:[#allocation2 + $0x50] sm:$0xff] %vm22_vm0, %v580_v61  ;;  %v614_v4 = vld [vmem:[#allocation2 + $0x48] sm:$0xff] }
 0x127   :  { %v668_v6 = vadd.f32 %v652_v1, %v636_v54  ;;  %v637_v7 = vadd.f32 %v1099_v30, %v614_v4  ;;  %597 = vst.msk [vmem:[#allocation2 + $0x58] sm:$0xff] %vm22_vm0, %v581_v3 }
 0x129   :  { %684 = vst.msk [vmem:[%s1249_s4 + $0x40] sm:$0xff] %vm22_vm0, %v668_v6  ;;  %v669_v8 = vadd.f32 %v653_v5, %v637_v7  ;;  %v619_v9 = vld [vmem:[#allocation2 + $0x70] sm:$0xff] }
 0x12a   :  { %v642_v11 = vadd.f32 %v1099_v30, %v619_v9 }
 0x12b   :  { %685 = vst.msk [vmem:[%s1249_s4 + $0x48] sm:$0xff] %vm22_vm0, %v669_v8  ;;  %v617_v14 = vld [vmem:[#allocation2 + $0x60] sm:$0xff]  ;;  %v620_v15 = vld [vmem:[#allocation2 + $0x78] sm:$0xff] }
 0x12c   :  { %v674_v17 = vadd.f32 %v658_v10, %v642_v11  ;;  %v640_v19 = vadd.f32 %v1099_v30, %v617_v14  ;;  %v643_v20 = vadd.f32 %v1099_v30, %v620_v15  ;;  %v618_v21 = vld [vmem:[#allocation2 + $0x68] sm:$0xff] }
 0x12d   :  { %v615_v18 = vld [vmem:[#allocation2 + $0x50] sm:$0xff]  ;;  %v641_v24 = vadd.f32 %v1099_v30, %v618_v21 }
 0x12e   :  { %v638_v23 = vadd.f32 %v1099_v30, %v615_v18  ;;  %690 = vst.msk [vmem:[%s1249_s4 + $0x70] sm:$0xff] %vm22_vm0, %v674_v17  ;;  %v672_v25 = vadd.f32 %v656_v13, %v640_v19  ;;  %v675_v26 = vadd.f32 %v659_v16, %v643_v20  ;;  %v616_v27 = vld [vmem:[#allocation2 + $0x58] sm:$0xff] }
 0x12f   :  { %v639_v31 = vadd.f32 %v1099_v30, %v616_v27  ;;  %v673_v32 = vadd.f32 %v657_v22, %v641_v24 }
 0x130   :  { %v670_v29 = vadd.f32 %v654_v12, %v638_v23  ;;  %688 = vst.msk [vmem:[%s1249_s4 + $0x60] sm:$0xff] %vm22_vm0, %v672_v25  ;;  %691 = vst.msk [vmem:[%s1249_s4 + $0x78] sm:$0xff] %vm22_vm0, %v675_v26 }
 0x131   :  { %v671_v33 = vadd.f32 %v655_v28, %v639_v31  ;;  %689 = vst.msk [vmem:[%s1249_s4 + $0x68] sm:$0xff] %vm22_vm0, %v673_v32 }
 0x132   :  { %686 = vst.msk [vmem:[%s1249_s4 + $0x50] sm:$0xff] %vm22_vm0, %v670_v29 }
 0x133   :  { %687 = vst.msk [vmem:[%s1249_s4 + $0x58] sm:$0xff] %vm22_vm0, %v671_v33 }

// kernel: vqvae_forward.63
= control target key start
LH: loop header
LB: loop body
LE: loop exit
PB: predicated region body
PF: predicated region fallthrough
CT: control target
= control target key end

     0   :  { %vm19_vm0 = vcmask 261120   ;;  %v443_v24 = vmov 0.0   ;;  %s565_s1 = inlined_call_operand.vmem [shape: bf16[288,32], index: 1, kind: input, shape index: {}]   ;;  %s566_s0 = inlined_call_operand.vmem [shape: bf16[32,288], index: 0, kind: input, shape index: {}]   ;;  %s567_s2 = inlined_call_operand.vmem [shape: f32[1,32], index: 2, kind: input, shape index: {}]   ;;  %s568_s3 = inlined_call_operand.vmem [shape: f32[32,32], index: 3, kind: output, shape index: {}]  }
   0x1   :  { %v417_v0 = vld [vmem:[%s565_s1 + $0x40] sm:$0xff]   ;;  %v419_v2 = vld [vmem:[%s565_s1 + $0x48] sm:$0xff]   ;;  %v421_v4 = vld [vmem:[%s565_s1 + $0x50] sm:$0xff]   ;;  %20 = vst.msk [vmem:[#allocation2] sm:$0xff] %vm19_vm0, %v443_v24 }
   0x2   :  { %v418_v1 = vld [vmem:[%s565_s1] sm:$0xff]   ;;  %376 = vmatprep.subr.bf16.mxu0 %v417_v0  ;;  %v420_v3 = vld [vmem:[%s565_s1 + $0x8] sm:$0xff]   ;;  %v422_v5 = vld [vmem:[%s565_s1 + $0x10] sm:$0xff]   ;;  %21 = vst.msk [vmem:[#allocation2 + $0x8] sm:$0xff] %vm19_vm0, %v443_v24 }
   0x3   :  { %377 = vmatpush3.bf16.msra.mxu0 %v418_v1  ;;  %v423_v6 = vld [vmem:[%s565_s1 + $0x58] sm:$0xff]   ;;  %v425_v8 = vld [vmem:[%s565_s1 + $0x60] sm:$0xff]   ;;  %v427_v11 = vld [vmem:[%s565_s1 + $0x68] sm:$0xff]   ;;  %22 = vst.msk [vmem:[#allocation2 + $0x10] sm:$0xff] %vm19_vm0, %v443_v24 }
   0x4   :  { %378 = vmatprep.subr.bf16.mxu0 %v419_v2  ;;  %v424_v7 = vld [vmem:[%s565_s1 + $0x18] sm:$0xff]   ;;  %v431_v9 = vld [vmem:[%s565_s1 + $0x80] sm:$0xff]   ;;  %v428_v12 = vld [vmem:[%s565_s1 + $0x28] sm:$0xff]   ;;  %23 = vst.msk [vmem:[#allocation2 + $0x18] sm:$0xff] %vm19_vm0, %v443_v24 }
   0x5   :  { %v426_v10 = vld [vmem:[%s565_s1 + $0x20] sm:$0xff]   ;;  %408 = vmatprep.subr.bf16.mxu1 %v431_v9  ;;  %v434_v13 = vld [vmem:[%s565_s1 + $0x88] sm:$0xff]   ;;  %v429_v14 = vld [vmem:[%s565_s1 + $0x70] sm:$0xff]  }
   0x6   :  { %409 = vmatpush3.bf16.msra.mxu1 %v431_v9  ;;  %v437_v15 = vld [vmem:[%s566_s0 + $0x4] ss:$12 sps:$4 sm:$0xff]   ;;  %v438_v16 = vld [vmem:[%s566_s0 + $0x8] ss:$12 sps:$4 sm:$0xff]   ;;  %v439_v17 = vld [vmem:[%s566_s0 + $0x20] ss:$12 sps:$4 sm:$0xff]  }
   0x7   :  { %379 = vmatpush3.bf16.msra.mxu0 %v420_v3  ;;  %410 = vmatprep.subr.bf16.mxu1 %v434_v13  ;;  %v430_v18 = vld [vmem:[%s565_s1 + $0x30] sm:$0xff]   ;;  %v432_v19 = vld [vmem:[%s565_s1 + $0x78] sm:$0xff]   ;;  %v435_v21 = vld [vmem:[%s566_s0] ss:$12 sps:$4 sm:$0xff]  }
   0x8   :  { %380 = vmatprep.subr.bf16.mxu0 %v421_v4  ;;  %249 = vmatprep.mubr.bf16.mxu0 %v437_v15  ;;  %v433_v20 = vld [vmem:[%s565_s1 + $0x38] sm:$0xff]   ;;  %v24_v34 = vld [vmem:[#allocation2] sm:$0xff] }
   0x9   :  { %412 = vmatprep.mubr.msk.bf16.mxu1 %vm19_vm0, %v438_v16  ;;  %v440_v22 = vld [vmem:[%s566_s0 + $0x1c] ss:$12 sps:$4 sm:$0xff]   ;;  %v442_v23 = vld [vmem:[%s566_s0 + $0x18] ss:$12 sps:$4 sm:$0xff]   ;;  %v375_v49 = vld [vmem:[%s567_s2] ss:$0 sm:$0xff] }
   0xa   :  { %411 = vmatpush3.bf16.msra.mxu1 %v434_v13  ;;  %v25_v37 = vld [vmem:[#allocation2 + $0x8] sm:$0xff]  ;;  %v26_v45 = vld [vmem:[#allocation2 + $0x10] sm:$0xff] }
   0xb   :  { %381 = vmatpush3.bf16.msra.mxu0 %v422_v5  ;;  %v27_v50 = vld [vmem:[#allocation2 + $0x18] sm:$0xff] }
   0xc   :  { %382 = vmatprep.subr.bf16.mxu0 %v423_v6 }
   0xd   :  { %413 = vmatmul.mubr.msk.bf16.vlgmr.msra.gmra.mrb[0].mxu1 %vm19_vm0, %v439_v17 }
   0xf   :  { %383 = vmatpush3.bf16.msra.mxu0 %v424_v7 }
  0x10   :  { %384 = vmatprep.subr.bf16.mxu0 %v425_v8 }
  0x13   :  { %385 = vmatpush3.bf16.msra.mxu0 %v426_v10 }
  0x14   :  { %386 = vmatprep.subr.bf16.mxu0 %v427_v11 }
  0x17   :  { %387 = vmatpush3.bf16.msra.mxu0 %v428_v12 }
  0x18   :  { %388 = vmatprep.subr.bf16.mxu0 %v429_v14 }
  0x1b   :  { %389 = vmatpush3.bf16.msra.mxu0 %v430_v18 }
  0x1c   :  { %390 = vmatprep.subr.bf16.mxu0 %v432_v19 }
  0x1f   :  { %391 = vmatpush3.bf16.msra.mxu0 %v433_v20 }
  0x22   :  { %250 = vmatmul.mubr.bf16.vlgmr.msra.gmra.mrb[0].mxu0 %v435_v21 }
  0x23   :  { %257 = vmatprep.mubr.bf16.mxu0 %v440_v22 }
  0x2a   :  { %258 = vmatmul.mubr.bf16.gmra.mrb[4].mxu0 %v442_v23 }
  0xe0   :  { %v414_v25 = vpop.f32.mrb[0].mxu1 }
  0xe1   :  { %v300_v26 = vpop.f32.mrb[1].mxu1 }
  0xe2   :  { %v415_v27 = vpop.f32.mrb[2].mxu1 }
  0xe3   :  { %v303_v28 = vpop.f32.mrb[3].mxu1 }
  0xf5   :  { %v392_v29 = vpop.f32.mrb[0].mxu0 }
  0xf6   :  { %v393_v30 = vpop.f32.mrb[1].mxu0 }
  0xf7   :  { %v394_v31 = vadd.f32 %v393_v30, %v392_v29  ;;  %v395_v32 = vpop.f32.mrb[2].mxu0 }
  0xf8   :  { %v396_v33 = vpop.f32.mrb[3].mxu0 }
  0xf9   :  { %v397_v35 = vadd.f32 %v396_v33, %v395_v32  ;;  %v301_v36 = vadd.f32 %v394_v31, %v300_v26 }
  0xfb   :  { %v315_v38 = vadd.f32 %v301_v36, %v24_v34  ;;  %v304_v39 = vadd.f32 %v397_v35, %v303_v28 }
  0xfd   :  { %319 = vst.msk [vmem:[#allocation2] sm:$0xff] %vm19_vm0, %v315_v38  ;;  %v316_v40 = vadd.f32 %v304_v39, %v25_v37  ;;  %v398_v41 = vpop.f32.mrb[4].mxu0 }
  0xfe   :  { %v399_v42 = vpop.f32.mrb[5].mxu0 }
  0xff   :  { %320 = vst.msk [vmem:[#allocation2 + $0x8] sm:$0xff] %vm19_vm0, %v316_v40  ;;  %v400_v43 = vadd.f32 %v399_v42, %v398_v41  ;;  %v401_v44 = vpop.f32.mrb[6].mxu0 }
 0x100   :  { %v402_v46 = vpop.f32.mrb[7].mxu0 }
 0x101   :  { %v309_v47 = vadd.f32 %v414_v25, %v400_v43  ;;  %v403_v48 = vadd.f32 %v402_v46, %v401_v44 }
 0x103   :  { %v317_v51 = vadd.f32 %v309_v47, %v26_v45  ;;  %v312_v52 = vadd.f32 %v415_v27, %v403_v48 }
 0x104   :  { %v326_v53 = vld [vmem:[#allocation2] sm:$0xff] }
 0x105   :  { %v337_v54 = vadd.f32 %v375_v49, %v326_v53  ;;  %321 = vst.msk [vmem:[#allocation2 + $0x10] sm:$0xff] %vm19_vm0, %v317_v51  ;;  %v318_v55 = vadd.f32 %v312_v52, %v27_v50 }
 0x106   :  { %v327_v56 = vld [vmem:[#allocation2 + $0x8] sm:$0xff] }
 0x107   :  { %341 = vst.msk [vmem:[%s568_s3] sm:$0xff] %vm19_vm0, %v337_v54  ;;  %v338_v57 = vadd.f32 %v375_v49, %v327_v56  ;;  %322 = vst.msk [vmem:[#allocation2 + $0x18] sm:$0xff] %vm19_vm0, %v318_v55 }
 0x109   :  { %342 = vst.msk [vmem:[%s568_s3 + $0x8] sm:$0xff] %vm19_vm0, %v338_v57 }
 0x10c   :  { %v328_v58 = vld [vmem:[#allocation2 + $0x10] sm:$0xff] }
 0x10d   :  { %v339_v59 = vadd.f32 %v375_v49, %v328_v58 }
 0x10e   :  { %v329_v60 = vld [vmem:[#allocation2 + $0x18] sm:$0xff] }
 0x10f   :  { %343 = vst.msk [vmem:[%s568_s3 + $0x10] sm:$0xff] %vm19_vm0, %v339_v59  ;;  %v340_v61 = vadd.f32 %v375_v49, %v329_v60 }
 0x111   :  { %344 = vst.msk [vmem:[%s568_s3 + $0x18] sm:$0xff] %vm19_vm0, %v340_v61 }

// kernel: vqvae_forward.64
= control target key start
LH: loop header
LB: loop body
LE: loop exit
PB: predicated region body
PF: predicated region fallthrough
CT: control target
= control target key end

     0   :  { %s355_s12 = smov 0   ;;  %s391_s0 = inlined_call_operand.vmem [shape: f32[2,16,32], index: 0, kind: input, shape index: {}]   ;;  %s392_s1 = inlined_call_operand.vmem [shape: f32[1,32], index: 1, kind: input, shape index: {}]   ;;  %s393_s2 = inlined_call_operand.vmem [shape: f32[1,32], index: 2, kind: input, shape index: {}]   ;;  %s394_s3 = inlined_call_operand.vmem [shape: f32[2,16,32], index: 3, kind: output, shape index: {}]  }
   0x1 LB: > { %s292_s13 = sadd.s32 4294967295, %s333_s12   ;;  %p296_p0 = scmp.ge.s32.totalorder %s333_s12, 1  ;;  %s333_s12 = sphi %s355_s12, %s13_s12  }
   0x2   : > { %p137_p1 = scmp.lt.s32.totalorder %s333_s12, 3 }
   0x4   : > { %p138_p2 = pnand %p296_p0, %p137_p1 }
   0x5   : > { %p161_p3 = scmp.lt.s32.totalorder (!%p138_p2), %s292_s13, 1  ;;  %vm173_vm0 = vcmask (!%p138_p2), 261120   ;;  %v301_v28 = vld [vmem:[%s392_s1] ss:$0 sm:$0xff] (!%p138_p2) }
   0x6   : > { %141 = sbr.rel (%p138_p2) target bundleno = 104 (0x68), region = 32  ;;  %v302_v31 = vld [vmem:[%s393_s2] ss:$0 sm:$0xff] (!%p138_p2) }
   0xd   : > { %s396_s13 = smov (!%p161_p3, %s292_s13), 1 }
   0xe   : > { %s307_s14 = sshll.u32 %s396_s13, 4 }
   0xf   : > { %s165_s17 = scalar_lea.vmem %s391_s0, %s307_s14  ;;  %s170_s24 = scalar_lea.vmem %s394_s3, %s307_s14 }
  0x10   : > { %v171_v0 = vld [vmem:[%s165_s17] sm:$0xff]  ;;  %v172_v1 = vld [vmem:[%s165_s17 + $0x8] sm:$0xff] }
  0x11   : > { %v174_v2 = vsel %vm173_vm0, %v171_v0, 0.0  ;;  %v175_v3 = vsel %vm173_vm0, %v172_v1, 0.0 }
  0x12   : > { %v176_v4 = vadd.f32 %v175_v3, %v174_v2 }
  0x14   : > { %v177_v5 = vrot.slane %v176_v4, 4 }
  0x16   : > { %v178_v6 = vadd.f32 %v177_v5, %v176_v4 }
  0x18   : > { %v179_v7 = vrot.slane %v178_v6, 2 }
  0x1a   : > { %v180_v8 = vadd.f32 %v179_v7, %v178_v6 }
  0x1c   : > { %v181_v9 = vrot.slane %v180_v8, 1 }
  0x1e   : > { %v182_v10 = vadd.f32 %v181_v9, %v180_v8 }
  0x20   : > { %v184_v11 = vmul.f32 0.0625, %v182_v10 }
  0x22   : > { %v185_v12 = vsub.f32 %v171_v0, %v184_v11  ;;  %v186_v13 = vsub.f32 %v172_v1, %v184_v11 }
  0x24   : > { %v187_v14 = vmul.f32 %v185_v12, %v185_v12  ;;  %v188_v15 = vmul.f32 %v186_v13, %v186_v13 }
  0x26   : > { %v189_v16 = vsel %vm173_vm0, %v187_v14, 0.0  ;;  %v190_v17 = vsel %vm173_vm0, %v188_v15, 0.0 }
  0x27   : > { %v191_v18 = vadd.f32 %v190_v17, %v189_v16 }
  0x29   : > { %v192_v19 = vrot.slane %v191_v18, 4 }
  0x2b   : > { %v193_v20 = vadd.f32 %v192_v19, %v191_v18 }
  0x2d   : > { %v194_v21 = vrot.slane %v193_v20, 2 }
  0x2f   : > { %v195_v22 = vadd.f32 %v194_v21, %v193_v20 }
  0x31   : > { %v196_v23 = vrot.slane %v195_v22, 1 }
  0x33   : > { %v197_v24 = vadd.f32 %v196_v23, %v195_v22 }
  0x35   : > { %v198_v25 = vmul.f32 0.0625, %v197_v24 }
  0x37   : > { %v199_v26 = vadd.f32 1e-06, %v198_v25 }
  0x39   : > { %317 = vrsqrt.f32 %v199_v26 }
  0x43   : > { %v318_v27 = vpop.eup %317 }
  0x44   : > { %v201_v29 = vmul.f32 %v318_v27, %v185_v12  ;;  %v202_v30 = vmul.f32 %v318_v27, %v186_v13 }
  0x46   : > { %v210_v32 = vmul.f32 %v301_v28, %v201_v29  ;;  %v211_v33 = vmul.f32 %v301_v28, %v202_v30 }
  0x48   : > { %v219_v34 = vadd.f32 %v302_v31, %v210_v32  ;;  %v220_v35 = vadd.f32 %v302_v31, %v211_v33 }
  0x4a   : > { %v303_v36 = vmul.f32 -1.442695, %v219_v34  ;;  %v304_v37 = vmul.f32 -1.442695, %v220_v35 }
  0x4c   : > { %319 = vpow2.f32 %v303_v36 }
  0x4d   : > { %321 = vpow2.f32 %v304_v37 }
  0x56   : > { %v320_v38 = vpop.eup %319 }
  0x57   : > { %v322_v39 = vpop.eup %321  ;;  %v227_v40 = vadd.f32 1.0, %v320_v38 }
  0x58   : > { %v228_v41 = vadd.f32 1.0, %v322_v39 }
  0x59   : > { %323 = vrcp.f32 %v227_v40 }
  0x5a   : > { %325 = vrcp.f32 %v228_v41 }
  0x63   : > { %v324_v42 = vpop.eup %323 }
  0x64   : > { %v326_v43 = vpop.eup %325  ;;  %v233_v44 = vmul.f32 %v324_v42, %v219_v34 }
  0x65   : > { %v234_v45 = vmul.f32 %v326_v43, %v220_v35 }
  0x66   : > { %235 = vst.msk [vmem:[%s170_s24] sm:$0xff] %vm173_vm0, %v233_v44 }
  0x67   : > { %236 = vst.msk [vmem:[%s170_s24 + $0x8] sm:$0xff] %vm173_vm0, %v234_v45 }
  0x68 PF: > { %s13_s12 = sadd.s32 1, %s333_s12  }
  0x69   : > { %p10_p4 = scmp.ge.s32.totalorder %s13_s12, 4  }
  0x6b   :  { %12 = sbr.rel (!%p10_p4) target bundleno = 1 (0x1), region = 62 }

// kernel: vqvae_forward.68
= control target key start
LH: loop header
LB: loop body
LE: loop exit
PB: predicated region body
PF: predicated region fallthrough
CT: control target
= control target key end

     0   :  { %vm18_vm0 = vcmask 261120   ;;  %s174_s0 = inlined_call_operand.vmem [shape: f32[32,32], index: 0, kind: input, shape index: {}]   ;;  %s175_s1 = inlined_call_operand.vmem [shape: f32[1,32], index: 1, kind: input, shape index: {}]   ;;  %s176_s2 = inlined_call_operand.vmem [shape: f32[1,32], index: 2, kind: input, shape index: {}]   ;;  %s177_s3 = inlined_call_operand.vmem [shape: f32[32,32], index: 3, kind: output, shape index: {}]  }
   0x1   :  { %v14_v0 = vld [vmem:[%s174_s0] sm:$0xff]  ;;  %v16_v1 = vld [vmem:[%s174_s0 + $0x10] sm:$0xff]  ;;  %v15_v2 = vld [vmem:[%s174_s0 + $0x8] sm:$0xff] }
   0x2   :  { %v19_v3 = vsel %vm18_vm0, %v14_v0, 0.0  ;;  %v25_v4 = vsel %vm18_vm0, %v16_v1, 0.0  ;;  %v17_v5 = vld [vmem:[%s174_s0 + $0x18] sm:$0xff]  ;;  %v22_v6 = vsel %vm18_vm0, %v15_v2, 0.0  ;;  %v102_v41 = vld [vmem:[%s175_s1] ss:$0 sm:$0xff] }
   0x3   :  { %20 = vadd.xlane.f32.xlu0 %v19_v3  ;;  %26 = vadd.xlane.f32.xlu1 %v25_v4  ;;  %v28_v7 = vsel %vm18_vm0, %v17_v5, 0.0  ;;  %v103_v43 = vld [vmem:[%s176_s2] ss:$0 sm:$0xff] }
   0x7   :  { %23 = vadd.xlane.f32.xlu0 %v22_v6  ;;  %29 = vadd.xlane.f32.xlu1 %v28_v7 }
  0x90   :  { %v21_v8 = vpop.xlane.xlu0 %20  ;;  %v27_v9 = vpop.xlane.xlu1 %26 }
  0x91   :  { %v32_v10 = vmul.f32 0.03125, %v21_v8  ;;  %v34_v11 = vmul.f32 0.03125, %v27_v9 }
  0x93   :  { %v36_v12 = vsub.f32 %v14_v0, %v32_v10  ;;  %v38_v13 = vsub.f32 %v16_v1, %v34_v11 }
  0x94   :  { %v24_v14 = vpop.xlane.xlu0 %23  ;;  %v30_v15 = vpop.xlane.xlu1 %29 }
  0x95   :  { %v33_v16 = vmul.f32 0.03125, %v24_v14  ;;  %v35_v17 = vmul.f32 0.03125, %v30_v15  ;;  %v40_v18 = vmul.f32 %v36_v12, %v36_v12  ;;  %v42_v19 = vmul.f32 %v38_v13, %v38_v13 }
  0x97   :  { %v37_v20 = vsub.f32 %v15_v2, %v33_v16  ;;  %v39_v21 = vsub.f32 %v17_v5, %v35_v17  ;;  %v44_v22 = vsel %vm18_vm0, %v40_v18, 0.0  ;;  %v50_v23 = vsel %vm18_vm0, %v42_v19, 0.0 }
  0x98   :  { %45 = vadd.xlane.f32.xlu0 %v44_v22 }
  0x99   :  { %v41_v24 = vmul.f32 %v37_v20, %v37_v20  ;;  %v43_v25 = vmul.f32 %v39_v21, %v39_v21 }
  0x9b   :  { %v47_v26 = vsel %vm18_vm0, %v41_v24, 0.0  ;;  %v53_v27 = vsel %vm18_vm0, %v43_v25, 0.0 }
  0x9c   :  { %51 = vadd.xlane.f32.xlu0 %v50_v23  ;;  %48 = vadd.xlane.f32.xlu1 %v47_v26 }
  0xa0   :  { %54 = vadd.xlane.f32.xlu1 %v53_v27 }
 0x125   :  { %v46_v28 = vpop.xlane.xlu0 %45 }
 0x126   :  { %v56_v29 = vmul.f32 0.03125, %v46_v28 }
 0x128   :  { %v60_v30 = vadd.f32 1e-06, %v56_v29 }
 0x129   :  { %v49_v31 = vpop.xlane.xlu1 %48  ;;  %v52_v32 = vpop.xlane.xlu0 %51 }
 0x12a   :  { %104 = vrsqrt.f32 %v60_v30  ;;  %v57_v33 = vmul.f32 0.03125, %v49_v31  ;;  %v58_v34 = vmul.f32 0.03125, %v52_v32 }
 0x12c   :  { %v61_v35 = vadd.f32 1e-06, %v57_v33  ;;  %v62_v36 = vadd.f32 1e-06, %v58_v34 }
 0x12d   :  { %v55_v37 = vpop.xlane.xlu1 %54 }
 0x12e   :  { %106 = vrsqrt.f32 %v61_v35  ;;  %v59_v38 = vmul.f32 0.03125, %v55_v37 }
 0x12f   :  { %108 = vrsqrt.f32 %v62_v36 }
 0x130   :  { %v63_v39 = vadd.f32 1e-06, %v59_v38 }
 0x132   :  { %110 = vrsqrt.f32 %v63_v39 }
 0x134   :  { %v105_v40 = vpop.eup %104 }
 0x135   :  { %v68_v42 = vmul.f32 %v105_v40, %v36_v12 }
 0x137   :  { %v79_v44 = vmul.f32 %v102_v41, %v68_v42 }
 0x138   :  { %v107_v45 = vpop.eup %106 }
 0x139   :  { %v109_v46 = vpop.eup %108  ;;  %v90_v47 = vadd.f32 %v103_v43, %v79_v44  ;;  %v69_v48 = vmul.f32 %v107_v45, %v37_v20 }
 0x13a   :  { %v70_v49 = vmul.f32 %v109_v46, %v38_v13 }
 0x13b   :  { %94 = vst.msk [vmem:[%s177_s3] sm:$0xff] %vm18_vm0, %v90_v47  ;;  %v80_v50 = vmul.f32 %v102_v41, %v69_v48 }
 0x13c   :  { %v111_v51 = vpop.eup %110  ;;  %v81_v52 = vmul.f32 %v102_v41, %v70_v49 }
 0x13d   :  { %v91_v53 = vadd.f32 %v103_v43, %v80_v50  ;;  %v71_v54 = vmul.f32 %v111_v51, %v39_v21 }
 0x13e   :  { %v92_v55 = vadd.f32 %v103_v43, %v81_v52 }
 0x13f   :  { %95 = vst.msk [vmem:[%s177_s3 + $0x8] sm:$0xff] %vm18_vm0, %v91_v53  ;;  %v82_v56 = vmul.f32 %v102_v41, %v71_v54 }
 0x140   :  { %96 = vst.msk [vmem:[%s177_s3 + $0x10] sm:$0xff] %vm18_vm0, %v92_v55 }
 0x141   :  { %v93_v57 = vadd.f32 %v103_v43, %v82_v56 }
 0x143   :  { %97 = vst.msk [vmem:[%s177_s3 + $0x18] sm:$0xff] %vm18_vm0, %v93_v57 }

// kernel: vqvae_forward.67
= control target key start
LH: loop header
LB: loop body
LE: loop exit
PB: predicated region body
PF: predicated region fallthrough
CT: control target
= control target key end

     0   :  { %vm22_vm0 = vcmask 261120   ;;  %v454_v24 = vmov 0.0   ;;  %s593_s1 = inlined_call_operand.vmem [shape: bf16[288,32], index: 1, kind: input, shape index: {}]   ;;  %s594_s0 = inlined_call_operand.vmem [shape: bf16[32,288], index: 0, kind: input, shape index: {}]   ;;  %s595_s2 = inlined_call_operand.vmem [shape: f32[1,32], index: 2, kind: input, shape index: {}]   ;;  %s596_s3 = inlined_call_operand.vmem [shape: f32[32,32], index: 3, kind: input, shape index: {}]   ;;  %s597_s4 = inlined_call_operand.vmem [shape: f32[32,32], index: 4, kind: output, shape index: {}]  }
   0x1   :  { %v428_v0 = vld [vmem:[%s593_s1 + $0x40] sm:$0xff]   ;;  %v430_v2 = vld [vmem:[%s593_s1 + $0x48] sm:$0xff]   ;;  %v432_v4 = vld [vmem:[%s593_s1 + $0x50] sm:$0xff]   ;;  %23 = vst.msk [vmem:[#allocation2] sm:$0xff] %vm22_vm0, %v454_v24 }
   0x2   :  { %v429_v1 = vld [vmem:[%s593_s1] sm:$0xff]   ;;  %387 = vmatprep.subr.bf16.mxu0 %v428_v0  ;;  %v431_v3 = vld [vmem:[%s593_s1 + $0x8] sm:$0xff]   ;;  %v433_v5 = vld [vmem:[%s593_s1 + $0x10] sm:$0xff]   ;;  %24 = vst.msk [vmem:[#allocation2 + $0x8] sm:$0xff] %vm22_vm0, %v454_v24 }
   0x3   :  { %388 = vmatpush3.bf16.msra.mxu0 %v429_v1  ;;  %v434_v6 = vld [vmem:[%s593_s1 + $0x58] sm:$0xff]   ;;  %v436_v8 = vld [vmem:[%s593_s1 + $0x60] sm:$0xff]   ;;  %v438_v11 = vld [vmem:[%s593_s1 + $0x68] sm:$0xff]   ;;  %25 = vst.msk [vmem:[#allocation2 + $0x10] sm:$0xff] %vm22_vm0, %v454_v24 }
   0x4   :  { %389 = vmatprep.subr.bf16.mxu0 %v430_v2  ;;  %v435_v7 = vld [vmem:[%s593_s1 + $0x18] sm:$0xff]   ;;  %v442_v9 = vld [vmem:[%s593_s1 + $0x80] sm:$0xff]   ;;  %v439_v12 = vld [vmem:[%s593_s1 + $0x28] sm:$0xff]   ;;  %26 = vst.msk [vmem:[#allocation2 + $0x18] sm:$0xff] %vm22_vm0, %v454_v24 }
   0x5   :  { %v437_v10 = vld [vmem:[%s593_s1 + $0x20] sm:$0xff]   ;;  %419 = vmatprep.subr.bf16.mxu1 %v442_v9  ;;  %v445_v13 = vld [vmem:[%s593_s1 + $0x88] sm:$0xff]   ;;  %v440_v14 = vld [vmem:[%s593_s1 + $0x70] sm:$0xff]  }
   0x6   :  { %420 = vmatpush3.bf16.msra.mxu1 %v442_v9  ;;  %v448_v15 = vld [vmem:[%s594_s0 + $0x4] ss:$12 sps:$4 sm:$0xff]   ;;  %v449_v16 = vld [vmem:[%s594_s0 + $0x8] ss:$12 sps:$4 sm:$0xff]   ;;  %v450_v17 = vld [vmem:[%s594_s0 + $0x20] ss:$12 sps:$4 sm:$0xff]  }
   0x7   :  { %390 = vmatpush3.bf16.msra.mxu0 %v431_v3  ;;  %421 = vmatprep.subr.bf16.mxu1 %v445_v13  ;;  %v441_v18 = vld [vmem:[%s593_s1 + $0x30] sm:$0xff]   ;;  %v443_v19 = vld [vmem:[%s593_s1 + $0x78] sm:$0xff]   ;;  %v446_v21 = vld [vmem:[%s594_s0] ss:$12 sps:$4 sm:$0xff]  }
   0x8   :  { %391 = vmatprep.subr.bf16.mxu0 %v432_v4  ;;  %252 = vmatprep.mubr.bf16.mxu0 %v448_v15  ;;  %v444_v20 = vld [vmem:[%s593_s1 + $0x38] sm:$0xff]   ;;  %v27_v34 = vld [vmem:[#allocation2] sm:$0xff]  ;;  %v345_v58 = vld [vmem:[%s596_s3 + $0x8] sm:$0xff] }
   0x9   :  { %423 = vmatprep.mubr.msk.bf16.mxu1 %vm22_vm0, %v449_v16  ;;  %v451_v22 = vld [vmem:[%s594_s0 + $0x1c] ss:$12 sps:$4 sm:$0xff]   ;;  %v453_v23 = vld [vmem:[%s594_s0 + $0x18] ss:$12 sps:$4 sm:$0xff]   ;;  %v386_v49 = vld [vmem:[%s595_s2] ss:$0 sm:$0xff] }
   0xa   :  { %422 = vmatpush3.bf16.msra.mxu1 %v445_v13  ;;  %v28_v37 = vld [vmem:[#allocation2 + $0x8] sm:$0xff]  ;;  %v29_v45 = vld [vmem:[#allocation2 + $0x10] sm:$0xff]  ;;  %v344_v54 = vld [vmem:[%s596_s3] sm:$0xff] }
   0xb   :  { %392 = vmatpush3.bf16.msra.mxu0 %v433_v5  ;;  %v30_v50 = vld [vmem:[#allocation2 + $0x18] sm:$0xff]  ;;  %v346_v63 = vld [vmem:[%s596_s3 + $0x10] sm:$0xff] }
   0xc   :  { %393 = vmatprep.subr.bf16.mxu0 %v434_v6  ;;  %v347_v2 = vld [vmem:[%s596_s3 + $0x18] sm:$0xff] }
   0xd   :  { %424 = vmatmul.mubr.msk.bf16.vlgmr.msra.gmra.mrb[0].mxu1 %vm22_vm0, %v450_v17 }
   0xf   :  { %394 = vmatpush3.bf16.msra.mxu0 %v435_v7 }
  0x10   :  { %395 = vmatprep.subr.bf16.mxu0 %v436_v8 }
  0x13   :  { %396 = vmatpush3.bf16.msra.mxu0 %v437_v10 }
  0x14   :  { %397 = vmatprep.subr.bf16.mxu0 %v438_v11 }
  0x17   :  { %398 = vmatpush3.bf16.msra.mxu0 %v439_v12 }
  0x18   :  { %399 = vmatprep.subr.bf16.mxu0 %v440_v14 }
  0x1b   :  { %400 = vmatpush3.bf16.msra.mxu0 %v441_v18 }
  0x1c   :  { %401 = vmatprep.subr.bf16.mxu0 %v443_v19 }
  0x1f   :  { %402 = vmatpush3.bf16.msra.mxu0 %v444_v20 }
  0x22   :  { %253 = vmatmul.mubr.bf16.vlgmr.msra.gmra.mrb[0].mxu0 %v446_v21 }
  0x23   :  { %260 = vmatprep.mubr.bf16.mxu0 %v451_v22 }
  0x2a   :  { %261 = vmatmul.mubr.bf16.gmra.mrb[4].mxu0 %v453_v23 }
  0xe0   :  { %v425_v25 = vpop.f32.mrb[0].mxu1 }
  0xe1   :  { %v303_v26 = vpop.f32.mrb[1].mxu1 }
  0xe2   :  { %v426_v27 = vpop.f32.mrb[2].mxu1 }
  0xe3   :  { %v306_v28 = vpop.f32.mrb[3].mxu1 }
  0xf5   :  { %v403_v29 = vpop.f32.mrb[0].mxu0 }
  0xf6   :  { %v404_v30 = vpop.f32.mrb[1].mxu0 }
  0xf7   :  { %v405_v31 = vadd.f32 %v404_v30, %v403_v29  ;;  %v406_v32 = vpop.f32.mrb[2].mxu0 }
  0xf8   :  { %v407_v33 = vpop.f32.mrb[3].mxu0 }
  0xf9   :  { %v408_v35 = vadd.f32 %v407_v33, %v406_v32  ;;  %v304_v36 = vadd.f32 %v405_v31, %v303_v26 }
  0xfb   :  { %v318_v38 = vadd.f32 %v304_v36, %v27_v34  ;;  %v307_v39 = vadd.f32 %v408_v35, %v306_v28 }
  0xfd   :  { %322 = vst.msk [vmem:[#allocation2] sm:$0xff] %vm22_vm0, %v318_v38  ;;  %v319_v40 = vadd.f32 %v307_v39, %v28_v37  ;;  %v409_v41 = vpop.f32.mrb[4].mxu0 }
  0xfe   :  { %v410_v42 = vpop.f32.mrb[5].mxu0 }
  0xff   :  { %323 = vst.msk [vmem:[#allocation2 + $0x8] sm:$0xff] %vm22_vm0, %v319_v40  ;;  %v411_v43 = vadd.f32 %v410_v42, %v409_v41  ;;  %v412_v44 = vpop.f32.mrb[6].mxu0 }
 0x100   :  { %v413_v46 = vpop.f32.mrb[7].mxu0 }
 0x101   :  { %v312_v47 = vadd.f32 %v425_v25, %v411_v43  ;;  %v414_v48 = vadd.f32 %v413_v46, %v412_v44 }
 0x103   :  { %v320_v51 = vadd.f32 %v312_v47, %v29_v45  ;;  %v315_v52 = vadd.f32 %v426_v27, %v414_v48 }
 0x104   :  { %v329_v53 = vld [vmem:[#allocation2] sm:$0xff] }
 0x105   :  { %v340_v55 = vadd.f32 %v386_v49, %v329_v53  ;;  %324 = vst.msk [vmem:[#allocation2 + $0x10] sm:$0xff] %vm22_vm0, %v320_v51  ;;  %v321_v56 = vadd.f32 %v315_v52, %v30_v50 }
 0x106   :  { %v330_v57 = vld [vmem:[#allocation2 + $0x8] sm:$0xff] }
 0x107   :  { %v348_v59 = vadd.f32 %v344_v54, %v340_v55  ;;  %v341_v60 = vadd.f32 %v386_v49, %v330_v57  ;;  %325 = vst.msk [vmem:[#allocation2 + $0x18] sm:$0xff] %vm22_vm0, %v321_v56 }
 0x109   :  { %352 = vst.msk [vmem:[%s597_s4] sm:$0xff] %vm22_vm0, %v348_v59  ;;  %v349_v61 = vadd.f32 %v345_v58, %v341_v60 }
 0x10b   :  { %353 = vst.msk [vmem:[%s597_s4 + $0x8] sm:$0xff] %vm22_vm0, %v349_v61 }
 0x10c   :  { %v331_v62 = vld [vmem:[#allocation2 + $0x10] sm:$0xff] }
 0x10d   :  { %v342_v0 = vadd.f32 %v386_v49, %v331_v62 }
 0x10e   :  { %v332_v1 = vld [vmem:[#allocation2 + $0x18] sm:$0xff] }
 0x10f   :  { %v350_v3 = vadd.f32 %v346_v63, %v342_v0  ;;  %v343_v4 = vadd.f32 %v386_v49, %v332_v1 }
 0x111   :  { %354 = vst.msk [vmem:[%s597_s4 + $0x10] sm:$0xff] %vm22_vm0, %v350_v3  ;;  %v351_v5 = vadd.f32 %v347_v2, %v343_v4 }
 0x113   :  { %355 = vst.msk [vmem:[%s597_s4 + $0x18] sm:$0xff] %vm22_vm0, %v351_v5 }

// kernel: vqvae_forward.69
= control target key start
LH: loop header
LB: loop body
LE: loop exit
PB: predicated region body
PF: predicated region fallthrough
CT: control target
= control target key end

     0   :  { %s754_s12 = smov 0   ;;  %s756_s13 = smov 0   ;;  %s858_s0 = inlined_call_operand.vmem [shape: bf16[32,32], index: 0, kind: input, shape index: {}]   ;;  %s859_s1 = inlined_call_operand.vmem [shape: bf16[32,1536], index: 1, kind: input, shape index: {}]   ;;  %s860_s2 = inlined_call_operand.vmem [shape: f32[1,1536], index: 2, kind: input, shape index: {}]   ;;  %s861_s3 = inlined_call_operand.vmem [shape: f32[32,1536], index: 3, kind: output, shape index: {}]  }
   0x1   :  { %s758_s14 = smov 0   ;;  %s760_s15 = smov 0  }
   0x2   :  { %s762_s16 = smov 0  }
   0x3 LB: > { %s28_s17 = sadd.s32 1, %s727_s15  ;;  %s613_s18 = sadd.s32 4294967295, %s731_s16   ;;  %s731_s16 = sphi %s762_s16, %s13_s16   ;;  %s727_s15 = sphi %s760_s15, %s866_s15   ;;  %s723_s14 = sphi %s758_s14, %s865_s14   ;;  %s719_s13 = sphi %s756_s13, %s864_s13   ;;  %s715_s12 = sphi %s754_s12, %s863_s12  }
   0x4   : > { %p30_p0 = scmp.ge.s32.totalorder %s28_s17, 6  ;;  %p76_p1 = scmp.ne.s32.totalorder %s719_s13, %s715_s12 }
   0x5   : > { %p77_p2 = scmp.eq.s32.totalorder %s731_s16, 0  ;;  %p134_p4 = scmp.eq.s32.totalorder %s613_s18, 5 }
   0x6   : > { %s868_s17 = smov (%p30_p0, %s28_s17), 0  ;;  %s69_s20 = sadd.s32 1, %s719_s13 }
   0x7   : > { %p78_p3 = por %p77_p2, %p76_p1  ;;  %s65_s19 = ssub.s32 %s727_s15, %s868_s17 }
   0x8   : > { %p67_p5 = scmp.eq.s32.totalorder %s65_s19, 0  ;;  %p789_p6 = por %p134_p4, %p76_p1 }
   0x9   : > { %p617_p7 = scmp.ge.s32.totalorder %s731_s16, 6 }
   0xa   : > { %s794_s22 = scalar_select %p67_p5, %s719_s13, %s69_s20  }
   0xb   : > { %168 = sbr.rel (%p617_p7) target bundleno = 25 (0x19), region = 20 }
  0x12   : > { %171 = sbr.rel (!%p78_p3) target bundleno = 25 (0x19), region = 24  ;;  %s173_s23 = sand.u32 (%p78_p3), 1, %s719_s13  }
  0x13   : > { %s638_s24 = sshll.u32 (%p78_p3), %s727_s15, 3  ;;  %s618_s25 = sshll.u32 (%p78_p3), %s173_s23, 5 }
  0x14   : > { %s181_s28 = scalar_lea.vmem (%p78_p3), %s859_s1, %s638_s24  ;;  %s175_s29 = scalar_lea.vmem (%p78_p3), [#allocation3], %s618_s25 }
  0x15   : > { %v215_v0 = vld [vmem:[%s181_s28] sm:$0xff] (%p78_p3)  ;;  %v217_v1 = vld [vmem:[%s181_s28 + $0x30] sm:$0xff] (%p78_p3) }
  0x16   : > { %v219_v2 = vld [vmem:[%s181_s28 + $0x60] sm:$0xff] (%p78_p3)  ;;  %216 = vst [vmem:[%s175_s29] sm:$0xff] (%p78_p3), %v215_v0  ;;  %218 = vst [vmem:[%s175_s29 + $0x8] sm:$0xff] (%p78_p3), %v217_v1  ;;  %v221_v3 = vld [vmem:[%s181_s28 + $0x90] sm:$0xff] (%p78_p3) }
  0x17   : > { %220 = vst [vmem:[%s175_s29 + $0x10] sm:$0xff] (%p78_p3), %v219_v2  ;;  %222 = vst [vmem:[%s175_s29 + $0x18] sm:$0xff] (%p78_p3), %v221_v3 }
  0x19 PF: > { %p621_p8 = scmp.ge.s32.totalorder %s731_s16, 1  ;;  %p235_p9 = scmp.lt.s32.totalorder %s731_s16, 7 }
  0x1b   : > { %p236_p10 = pnand %p621_p8, %p235_p9 }
  0x1c   : > { %s242_s30 = sand.u32 (!%p236_p10), 1, %s715_s12   ;;  %v733_v4 = vmov (!%p236_p10), 0   ;;  %v691_v9 = vld [vmem:[%s858_s0] sm:$0xff] (!%p236_p10)   ;;  %v692_v10 = vld [vmem:[%s858_s0 + $0x8] sm:$0xff] (!%p236_p10)   ;;  %vm353_vm0 = vcmask (!%p236_p10), 261120   ;;  %s624_s10 = sshll.u32 (!%p236_p10), %s723_s14, 1  ;;  %v442_v11 = vlaneseq (!%p236_p10) }
  0x1d   : > { %239 = sbr.rel (%p236_p10) target bundleno = 267 (0x10b), region = 66  ;;  %s622_s4 = sshll.u32 (!%p236_p10), %s242_s30, 5  ;;  %392 = vmatprep.mubr.bf16.mxu0 (!%p236_p10), %v733_v4  ;;  %402 = vmatprep.mubr.bf16.mxu1 (!%p236_p10), %v733_v4 }
  0x1e   : > { %s244_s5 = scalar_lea.vmem (!%p236_p10), [#allocation3], %s622_s4  ;;  %p288_p11 = scmp.lt.s32.totalorder (!%p236_p10), %s624_s10, 11  ;;  %v443_v12 = vshrl.u32 (!%p236_p10), %v442_v11, 7 }
  0x1f   : > { %v685_v5 = vld [vmem:[%s244_s5 + $0x4] ss:$8 sps:$4 sm:$0xff] (!%p236_p10)   ;;  %v687_v6 = vld [vmem:[%s244_s5] ss:$8 sps:$4 sm:$0xff] (!%p236_p10)   ;;  %v688_v7 = vld [vmem:[%s244_s5 + $0x14] ss:$8 sps:$4 sm:$0xff] (!%p236_p10)  }
  0x20   : > { %360 = vmatprep.subr.bf16.mxu0 (!%p236_p10), %v685_v5  ;;  %640 = vmatprep.subr.bf16.mxu1 (!%p236_p10), %v685_v5  ;;  %v690_v8 = vld [vmem:[%s244_s5 + $0x10] ss:$8 sps:$4 sm:$0xff] (!%p236_p10)   ;;  %v444_v13 = vsub.s32 (!%p236_p10), 0, %v443_v12  ;;  %v448_v15 = vsub.s32 (!%p236_p10), 1, %v443_v12  ;;  %s623_s20 = sshll.u32 (!%p236_p10), %s242_s30, 6 }
  0x21   : > { %361 = vmatpush1.bf16.msra.mxu0 (!%p236_p10), %v687_v6  ;;  %642 = vmatpush1.bf16.msra.mxu1 (!%p236_p10), %v687_v6  ;;  %s819_s23 = scalar_lea.vmem (!%p236_p10), [#allocation4], %s623_s20 }
  0x22   : > { %362 = vmatprep.subr.bf16.mxu0 (!%p236_p10), %v688_v7  ;;  %641 = vmatprep.subr.bf16.mxu1 (!%p236_p10), %v688_v7 }
  0x24   : > { %s870_s10 = smov (!%p288_p11, %s624_s10), 11  ;;  %s639_s12 = sshll.u32 (%p789_p6), %s723_s14, 4 }
  0x25   : > { %363 = vmatpush1.bf16.msra.mxu0 %v690_v8  ;;  %643 = vmatpush1.bf16.msra.mxu1 %v690_v8  ;;  %s290_s19 = scalar_lea.vmem %s860_s2, %s870_s10  ;;  %s480_s26 = scalar_lea.vmem (%p789_p6), %s861_s3, %s639_s12 }
  0x26   : > { %v440_v14 = vld [vmem:[%s290_s19] sm:$0x3] }
  0x27   : > { %v445_v16 = vrot.slane %v440_v14, %v444_v13  ;;  %v449_v17 = vrot.slane %v440_v14, %v448_v15 }
  0x28   : > { %631 = vmatmul.mubr.msk.bf16.vlgmr.msra.gmra.mrb[0].mxu0 %vm353_vm0, %v691_v9  ;;  %632 = vmatmul.mubr.msk.bf16.vlgmr.msra.gmra.mrb[0].mxu1 %vm353_vm0, %v692_v10 }
  0xfb   : > { %v394_v18 = vpop.f32.mrb[0].mxu0  ;;  %v404_v19 = vpop.f32.mrb[0].mxu1  ;;  %474 = sbr.rel (!%p789_p6) target bundleno = 267 (0x10b), region = 82 }
  0xfc   : > { %v452_v20 = vadd.f32 %v445_v16, %v394_v18  ;;  %v456_v21 = vadd.f32 %v445_v16, %v404_v19  ;;  %v396_v22 = vpop.f32.mrb[1].mxu0  ;;  %v406_v23 = vpop.f32.mrb[1].mxu1 }
  0xfd   : > { %v453_v24 = vadd.f32 %v449_v17, %v396_v22  ;;  %v457_v25 = vadd.f32 %v449_v17, %v406_v23  ;;  %v398_v26 = vpop.f32.mrb[2].mxu0  ;;  %v408_v27 = vpop.f32.mrb[2].mxu1 }
  0xfe   : > { %460 = vst [vmem:[%s819_s23] sm:$0xff] %v452_v20  ;;  %464 = vst [vmem:[%s819_s23 + $0x20] sm:$0xff] %v456_v21  ;;  %v454_v28 = vadd.f32 %v445_v16, %v398_v26  ;;  %v458_v29 = vadd.f32 %v445_v16, %v408_v27  ;;  %v400_v30 = vpop.f32.mrb[3].mxu0  ;;  %v410_v31 = vpop.f32.mrb[3].mxu1 }
  0xff   : > { %461 = vst [vmem:[%s819_s23 + $0x8] sm:$0xff] %v453_v24  ;;  %465 = vst [vmem:[%s819_s23 + $0x28] sm:$0xff] %v457_v25  ;;  %v455_v32 = vadd.f32 %v449_v17, %v400_v30  ;;  %v459_v33 = vadd.f32 %v449_v17, %v410_v31 }
 0x100   : > { %462 = vst [vmem:[%s819_s23 + $0x10] sm:$0xff] %v454_v28  ;;  %466 = vst [vmem:[%s819_s23 + $0x30] sm:$0xff] %v458_v29 }
 0x101   : > { %463 = vst [vmem:[%s819_s23 + $0x18] sm:$0xff] %v455_v32  ;;  %467 = vst [vmem:[%s819_s23 + $0x38] sm:$0xff] %v459_v33 }
 0x105   : > { %v493_v34 = vld [vmem:[%s819_s23] sm:$0xff] }
 0x106   : > { %v495_v35 = vld [vmem:[%s819_s23 + $0x8] sm:$0xff]  ;;  %v501_v38 = vld [vmem:[%s819_s23 + $0x20] sm:$0xff]  ;;  %494 = vst [vmem:[%s480_s26] sm:$0xff] %v493_v34 }
 0x107   : > { %v497_v36 = vld [vmem:[%s819_s23 + $0x10] sm:$0xff]  ;;  %v503_v39 = vld [vmem:[%s819_s23 + $0x28] sm:$0xff]  ;;  %496 = vst [vmem:[%s480_s26 + $0x8] sm:$0xff] %v495_v35  ;;  %502 = vst [vmem:[%s480_s26 + $0xc0] sm:$0xff] %v501_v38 }
 0x108   : > { %v499_v37 = vld [vmem:[%s819_s23 + $0x18] sm:$0xff]  ;;  %498 = vst [vmem:[%s480_s26 + $0x60] sm:$0xff] %v497_v36  ;;  %504 = vst [vmem:[%s480_s26 + $0xc8] sm:$0xff] %v503_v39  ;;  %v505_v40 = vld [vmem:[%s819_s23 + $0x30] sm:$0xff] }
 0x109   : > { %500 = vst [vmem:[%s480_s26 + $0x68] sm:$0xff] %v499_v37  ;;  %v507_v41 = vld [vmem:[%s819_s23 + $0x38] sm:$0xff]  ;;  %506 = vst [vmem:[%s480_s26 + $0x120] sm:$0xff] %v505_v40 }
 0x10a   : > { %508 = vst [vmem:[%s480_s26 + $0x128] sm:$0xff] %v507_v41 }
 0x10b PF: > { %s13_s16 = sadd.s32 1, %s731_s16   ;;  %s863_s12 = smov %s719_s13 }
 0x10c   : > { %p10_p12 = scmp.ge.s32.totalorder %s13_s16, 8   ;;  %s864_s13 = smov %s794_s22 }
 0x10d   : > { %s865_s14 = smov %s727_s15  ;;  %s866_s15 = smov %s868_s17 }
 0x10e   :  { %12 = sbr.rel (!%p10_p12) target bundleno = 3 (0x3), region = 142 }

// kernel: vqvae_forward.70
= control target key start
LH: loop header
LB: loop body
LE: loop exit
PB: predicated region body
PF: predicated region fallthrough
CT: control target
= control target key end

     0   :  { %s2315_s12 = smov 0   ;;  %s2662_s0 = inlined_call_operand.vmem [shape: f32[2,8,16,64], index: 0, kind: input, shape index: {}]   ;;  %s2663_s1 = inlined_call_operand.vmem [shape: f32[2,8,16,64], index: 1, kind: input, shape index: {}]   ;;  %s2664_s2 = inlined_call_operand.vmem [shape: f32[2,8,16,64], index: 2, kind: input, shape index: {}]   ;;  %s2665_s3 = inlined_call_operand.vmem [shape: f32[2,8,16,64], index: 3, kind: output, shape index: {}]  }
   0x1 LB: > { %s1892_s13 = sadd.s32 4294967295, %s2293_s12   ;;  %p1896_p0 = scmp.ge.s32.totalorder %s2293_s12, 1  ;;  %s2293_s12 = sphi %s2315_s12, %s13_s12  }
   0x2   : > { %p157_p1 = scmp.lt.s32.totalorder %s2293_s12, 3 }
   0x4   : > { %p158_p2 = pnand %p1896_p0, %p157_p1 }
   0x5   : > { %p191_p3 = scmp.lt.s32.totalorder (!%p158_p2), %s1892_s13, 1  ;;  %vm259_vm0 = vcmask (!%p158_p2), 523264   ;;  %vm972_vm2 = vcmask (!%p158_p2), 130048  }
   0x6   : > { %161 = sbr.rel (%p158_p2) target bundleno = 801 (0x321), region = 32  ;;  %vm2333_vm1 = vmpackc.low (!%p158_p2), %vm259_vm0, %vm259_vm0 }
   0xd   : > { %s2669_s13 = smov (!%p191_p3, %s1892_s13), 1 }
   0xe   : > { %s2323_s14 = sshll.u32 %s2669_s13, 7 }
   0xf   : > { %s2329_s17 = scalar_lea.vmem %s2663_s1, %s2323_s14  ;;  %s2341_s20 = scalar_lea.vmem %s2662_s0, %s2323_s14 }
  0x10   : > { %v227_v1 = vld [vmem:[%s2329_s17] sm:$0xff]  ;;  %v228_v2 = vld [vmem:[%s2329_s17 + $0x8] sm:$0xff]  ;;  %v229_v3 = vld [vmem:[%s2329_s17 + $0x10] sm:$0xff]  ;;  %s2561_s23 = scalar_lea.vmem %s2664_s2, %s2323_s14  ;;  %s2625_s26 = scalar_lea.vmem %s2665_s3, %s2323_s14 }
  0x11   : > { %v2135_v4 = vpack.c.bf16 %v228_v2, %v227_v1  ;;  %v230_v5 = vld [vmem:[%s2329_s17 + $0x18] sm:$0xff]  ;;  %v211_v6 = vld [vmem:[%s2341_s20] sm:$0xff]  ;;  %v213_v8 = vld [vmem:[%s2341_s20 + $0x10] sm:$0xff] }
  0x12   : > { %v2141_v7 = vpack.c.bf16 %v230_v5, %v229_v3  ;;  %2027 = vmatprep.mubr.msk.f32.mxu0 %vm259_vm0, %v211_v6  ;;  %v231_v9 = vld [vmem:[%s2329_s17 + $0x20] sm:$0xff]  ;;  %v232_v10 = vld [vmem:[%s2329_s17 + $0x28] sm:$0xff]  ;;  %2034 = vmatprep.mubr.msk.f32.mxu1 %vm259_vm0, %v213_v8  ;;  %v233_v12 = vld [vmem:[%s2329_s17 + $0x30] sm:$0xff] }
  0x13   : > { %2137 = vmatprep.subr.msk.bf16.mxu0 %vm2333_vm1, %v2135_v4  ;;  %v2147_v11 = vpack.c.bf16 %v232_v10, %v231_v9  ;;  %v234_v13 = vld [vmem:[%s2329_s17 + $0x38] sm:$0xff]  ;;  %v235_v15 = vld [vmem:[%s2329_s17 + $0x40] sm:$0xff]  ;;  %v236_v16 = vld [vmem:[%s2329_s17 + $0x48] sm:$0xff] }
  0x14   : > { %2143 = vmatprep.subr.msk.bf16.mxu1 %vm2333_vm1, %v2141_v7  ;;  %2140 = vmatpush3.bf16.xpose.msk.msra.mxu0 %vm2333_vm1, %v2135_v4  ;;  %v2153_v14 = vpack.c.bf16 %v234_v13, %v233_v12  ;;  %v212_v17 = vld [vmem:[%s2341_s20 + $0x8] sm:$0xff]  ;;  %v237_v18 = vld [vmem:[%s2329_s17 + $0x50] sm:$0xff]  ;;  %v238_v19 = vld [vmem:[%s2329_s17 + $0x58] sm:$0xff]  ;;  %v2159_v22 = vpack.c.bf16 %v236_v16, %v235_v15 }
  0x15   : > { %2146 = vmatpush3.bf16.xpose.msk.msra.mxu1 %vm2333_vm1, %v2141_v7  ;;  %2149 = vmatprep.subr.msk.bf16.mxu0 %vm2333_vm1, %v2147_v11  ;;  %v214_v20 = vld [vmem:[%s2341_s20 + $0x18] sm:$0xff]  ;;  %v217_v21 = vld [vmem:[%s2341_s20 + $0x30] sm:$0xff]  ;;  %v215_v23 = vld [vmem:[%s2341_s20 + $0x20] sm:$0xff]  ;;  %v2165_v24 = vpack.c.bf16 %v238_v19, %v237_v18 }
  0x16   : > { %2155 = vmatprep.subr.msk.bf16.mxu1 %vm2333_vm1, %v2153_v14  ;;  %v239_v25 = vld [vmem:[%s2329_s17 + $0x60] sm:$0xff]  ;;  %v240_v26 = vld [vmem:[%s2329_s17 + $0x68] sm:$0xff]  ;;  %v241_v28 = vld [vmem:[%s2329_s17 + $0x70] sm:$0xff] }
  0x17   : > { %v216_v27 = vld [vmem:[%s2341_s20 + $0x28] sm:$0xff]  ;;  %v242_v29 = vld [vmem:[%s2329_s17 + $0x78] sm:$0xff]  ;;  %v221_v31 = vld [vmem:[%s2341_s20 + $0x50] sm:$0xff]  ;;  %v2171_v32 = vpack.c.bf16 %v240_v26, %v239_v25 }
  0x18   : > { %v218_v30 = vld [vmem:[%s2341_s20 + $0x38] sm:$0xff]  ;;  %v219_v33 = vld [vmem:[%s2341_s20 + $0x40] sm:$0xff]  ;;  %v2177_v34 = vpack.c.bf16 %v242_v29, %v241_v28  ;;  %v220_v35 = vld [vmem:[%s2341_s20 + $0x48] sm:$0xff] }
  0x19   : > { %v222_v36 = vld [vmem:[%s2341_s20 + $0x58] sm:$0xff]  ;;  %v223_v37 = vld [vmem:[%s2341_s20 + $0x60] sm:$0xff]  ;;  %v225_v38 = vld [vmem:[%s2341_s20 + $0x70] sm:$0xff] }
  0x1a   : > { %v224_v39 = vld [vmem:[%s2341_s20 + $0x68] sm:$0xff]  ;;  %v226_v40 = vld [vmem:[%s2341_s20 + $0x78] sm:$0xff] }
  0x1b   : > { %2028 = vmatmul.mubr.msk.f32.vlgmr.msra.gmra.mrb[0].mxu0 %vm259_vm0, %v212_v17 }
  0x1c   : > { %2035 = vmatmul.mubr.msk.f32.vlgmr.msra.gmra.mrb[0].mxu1 %vm259_vm0, %v214_v20  ;;  %2152 = vmatpush3.bf16.xpose.msk.msra.mxu0 %vm2333_vm1, %v2147_v11 }
  0x1d   : > { %2158 = vmatpush3.bf16.xpose.msk.msra.mxu1 %vm2333_vm1, %v2153_v14  ;;  %2048 = vmatprep.mubr.msk.f32.mxu1 %vm259_vm0, %v217_v21 }
  0x1e   : > { %2041 = vmatprep.mubr.msk.f32.mxu0 %vm259_vm0, %v215_v23  ;;  %2161 = vmatprep.subr.msk.bf16.mxu0 %vm2333_vm1, %v2159_v22 }
  0x1f   : > { %2167 = vmatprep.subr.msk.bf16.mxu1 %vm2333_vm1, %v2165_v24 }
  0x23   : > { %2042 = vmatmul.mubr.msk.f32.vlgmr.msra.gmra.mrb[2].mxu0 %vm259_vm0, %v216_v27 }
  0x24   : > { %2049 = vmatmul.mubr.msk.f32.vlgmr.msra.gmra.mrb[2].mxu1 %vm259_vm0, %v218_v30  ;;  %2164 = vmatpush3.bf16.xpose.msk.msra.mxu0 %vm2333_vm1, %v2159_v22 }
  0x25   : > { %2170 = vmatpush3.bf16.xpose.msk.msra.mxu1 %vm2333_vm1, %v2165_v24  ;;  %2062 = vmatprep.mubr.msk.f32.mxu1 %vm259_vm0, %v221_v31 }
  0x26   : > { %2055 = vmatprep.mubr.msk.f32.mxu0 %vm259_vm0, %v219_v33  ;;  %2173 = vmatprep.subr.msk.bf16.mxu0 %vm2333_vm1, %v2171_v32 }
  0x27   : > { %2179 = vmatprep.subr.msk.bf16.mxu1 %vm2333_vm1, %v2177_v34 }
  0x2b   : > { %2056 = vmatmul.mubr.msk.f32.vlgmr.msra.gmra.mrb[4].mxu0 %vm259_vm0, %v220_v35 }
  0x2c   : > { %2063 = vmatmul.mubr.msk.f32.vlgmr.msra.gmra.mrb[4].mxu1 %vm259_vm0, %v222_v36  ;;  %2176 = vmatpush3.bf16.xpose.msk.msra.mxu0 %vm2333_vm1, %v2171_v32 }
  0x2d   : > { %2182 = vmatpush3.bf16.xpose.msk.msra.mxu1 %vm2333_vm1, %v2177_v34  ;;  %2069 = vmatprep.mubr.msk.f32.mxu0 %vm259_vm0, %v223_v37 }
  0x2e   : > { %2076 = vmatprep.mubr.msk.f32.mxu1 %vm259_vm0, %v225_v38 }
  0x33   : > { %2070 = vmatmul.mubr.msk.f32.vlgmr.msra.gmra.mrb[6].mxu0 %vm259_vm0, %v224_v39 }
  0x34   : > { %2077 = vmatmul.mubr.msk.f32.vlgmr.msra.gmra.mrb[6].mxu1 %vm259_vm0, %v226_v40 }
  0xee   : > { %v2029_v41 = vpop.f32.mrb[0].mxu0 }
  0xef   : > { %v2423_v42 = vmul.f32 0.125, %v2029_v41  ;;  %v338_v43 = vpop.f32.mrb[1].mxu0  ;;  %v2036_v44 = vpop.f32.mrb[0].mxu1 }
  0xf0   : > { %v2425_v45 = vmul.f32 0.125, %v338_v43  ;;  %v2427_v46 = vmul.f32 0.125, %v2036_v44  ;;  %v425_v47 = vpop.f32.mrb[1].mxu1 }
  0xf1   : > { %v2429_v48 = vmul.f32 0.125, %v425_v47  ;;  %v976_v49 = vsel %vm972_vm2, %v2423_v42, -inf }
  0xf2   : > { %977 = vmax.xlane.f32.xlu1 %v976_v49  ;;  %v973_v50 = vsel %vm972_vm2, %v2425_v45, -inf  ;;  %v982_v51 = vsel %vm972_vm2, %v2427_v46, -inf }
  0xf3   : > { %974 = vmax.xlane.f32.xlu0 %v973_v50  ;;  %v979_v52 = vsel %vm972_vm2, %v2429_v48, -inf }
  0xf6   : > { %983 = vmax.xlane.f32.xlu1 %v982_v51  ;;  %v2043_v53 = vpop.f32.mrb[2].mxu0 }
  0xf7   : > { %v2050_v54 = vpop.f32.mrb[2].mxu1  ;;  %980 = vmax.xlane.f32.xlu0 %v979_v52  ;;  %v2439_v55 = vmul.f32 0.125, %v2043_v53  ;;  %v512_v56 = vpop.f32.mrb[3].mxu0 }
  0xf8   : > { %v2441_v57 = vmul.f32 0.125, %v2050_v54  ;;  %v599_v58 = vpop.f32.mrb[3].mxu1  ;;  %v2443_v59 = vmul.f32 0.125, %v512_v56 }
  0xf9   : > { %v2445_v60 = vmul.f32 0.125, %v599_v58  ;;  %v988_v61 = vsel %vm972_vm2, %v2439_v55, -inf }
  0xfa   : > { %v994_v62 = vsel %vm972_vm2, %v2441_v57, -inf  ;;  %v985_v0 = vsel %vm972_vm2, %v2443_v59, -inf }
  0xfb   : > { %995 = vmax.xlane.f32.xlu1 %v994_v62  ;;  %989 = vmax.xlane.f32.xlu0 %v988_v61  ;;  %v991_v63 = vsel %vm972_vm2, %v2445_v60, -inf }
  0xfe   : > { %v2057_v1 = vpop.f32.mrb[4].mxu0 }
  0xff   : > { %v2064_v2 = vpop.f32.mrb[4].mxu1  ;;  %992 = vmax.xlane.f32.xlu1 %v991_v63  ;;  %986 = vmax.xlane.f32.xlu0 %v985_v0  ;;  %v2455_v3 = vmul.f32 0.125, %v2057_v1  ;;  %v686_v4 = vpop.f32.mrb[5].mxu0 }
 0x100   : > { %v2457_v5 = vmul.f32 0.125, %v2064_v2  ;;  %v773_v6 = vpop.f32.mrb[5].mxu1  ;;  %v2459_v7 = vmul.f32 0.125, %v686_v4 }
 0x101   : > { %v2461_v8 = vmul.f32 0.125, %v773_v6  ;;  %v1000_v9 = vsel %vm972_vm2, %v2455_v3, -inf }
 0x102   : > { %v1006_v10 = vsel %vm972_vm2, %v2457_v5, -inf  ;;  %v997_v12 = vsel %vm972_vm2, %v2459_v7, -inf }
 0x103   : > { %1007 = vmax.xlane.f32.xlu1 %v1006_v10  ;;  %1001 = vmax.xlane.f32.xlu0 %v1000_v9  ;;  %v1003_v11 = vsel %vm972_vm2, %v2461_v8, -inf }
 0x106   : > { %v2071_v13 = vpop.f32.mrb[6].mxu0 }
 0x107   : > { %v2078_v14 = vpop.f32.mrb[6].mxu1  ;;  %1004 = vmax.xlane.f32.xlu1 %v1003_v11  ;;  %998 = vmax.xlane.f32.xlu0 %v997_v12  ;;  %v860_v15 = vpop.f32.mrb[7].mxu0  ;;  %v2475_v19 = vmul.f32 0.125, %v2071_v13 }
 0x108   : > { %v947_v16 = vpop.f32.mrb[7].mxu1  ;;  %v2471_v17 = vmul.f32 0.125, %v860_v15  ;;  %v2479_v21 = vmul.f32 0.125, %v2078_v14 }
 0x109   : > { %v2473_v18 = vmul.f32 0.125, %v947_v16  ;;  %v1012_v23 = vsel %vm972_vm2, %v2475_v19, -inf }
 0x10a   : > { %v1009_v20 = vsel %vm972_vm2, %v2471_v17, -inf  ;;  %v1018_v24 = vsel %vm972_vm2, %v2479_v21, -inf }
 0x10b   : > { %v1015_v22 = vsel %vm972_vm2, %v2473_v18, -inf  ;;  %1010 = vmax.xlane.f32.xlu0 %v1009_v20 }
 0x10c   : > { %1016 = vmax.xlane.f32.xlu1 %v1015_v22 }
 0x10f   : > { %1013 = vmax.xlane.f32.xlu0 %v1012_v23 }
 0x110   : > { %1019 = vmax.xlane.f32.xlu1 %v1018_v24 }
 0x17f   : > { %v978_v25 = vpop.xlane.xlu1 %977 }
 0x180   : > { %v1022_v26 = vsub.f32 %v2423_v42, %v978_v25  ;;  %v975_v27 = vpop.xlane.xlu0 %974 }
 0x181   : > { %v1021_v28 = vsub.f32 %v2425_v45, %v975_v27 }
 0x182   : > { %v1039_v29 = vmul.f32 1.442695, %v1022_v26 }
 0x183   : > { %v1037_v30 = vmul.f32 1.442695, %v1021_v28  ;;  %v984_v31 = vpop.xlane.xlu1 %983 }
 0x184   : > { %2223 = vpow2.f32 %v1039_v29  ;;  %v1024_v32 = vsub.f32 %v2427_v46, %v984_v31  ;;  %v981_v33 = vpop.xlane.xlu0 %980 }
 0x185   : > { %v1023_v34 = vsub.f32 %v2429_v48, %v981_v33  ;;  %2225 = vpow2.f32 %v1037_v30 }
 0x186   : > { %v1043_v35 = vmul.f32 1.442695, %v1024_v32 }
 0x187   : > { %v1041_v36 = vmul.f32 1.442695, %v1023_v34 }
 0x188   : > { %2227 = vpow2.f32 %v1043_v35  ;;  %v996_v37 = vpop.xlane.xlu1 %995  ;;  %v990_v38 = vpop.xlane.xlu0 %989 }
 0x189   : > { %v1028_v39 = vsub.f32 %v2441_v57, %v996_v37  ;;  %v1026_v40 = vsub.f32 %v2439_v55, %v990_v38  ;;  %2229 = vpow2.f32 %v1041_v36  ;;  %v243_v36 = vld [vmem:[%s2561_s23] sm:$0xff]  ;;  %v244_v37 = vld [vmem:[%s2561_s23 + $0x8] sm:$0xff] }
 0x18b   : > { %v1051_v41 = vmul.f32 1.442695, %v1028_v39  ;;  %v1047_v42 = vmul.f32 1.442695, %v1026_v40  ;;  %v2183_v40 = vpack.c.bf16 %v244_v37, %v243_v36 }
 0x18c   : > { %v993_v43 = vpop.xlane.xlu1 %992  ;;  %v987_v44 = vpop.xlane.xlu0 %986 }
 0x18d   : > { %2231 = vpow2.f32 %v1051_v41  ;;  %v1027_v45 = vsub.f32 %v2445_v60, %v993_v43  ;;  %v1025_v46 = vsub.f32 %v2443_v59, %v987_v44  ;;  %2184 = vmatprep.subr.bf16.mxu0 %v2183_v40  ;;  %v245_v43 = vld [vmem:[%s2561_s23 + $0x10] sm:$0xff]  ;;  %v246_v44 = vld [vmem:[%s2561_s23 + $0x18] sm:$0xff] }
 0x18e   : > { %v2495_v47 = vpop.eup %2223  ;;  %2233 = vpow2.f32 %v1047_v42  ;;  %2186 = vmatpush3.bf16.msra.mxu0 %v2183_v40 }
 0x18f   : > { %v1049_v48 = vmul.f32 1.442695, %v1027_v45  ;;  %v1045_v49 = vmul.f32 1.442695, %v1025_v46  ;;  %v1072_v50 = vsel %vm972_vm2, %v2495_v47, 0.0  ;;  %v2499_v51 = vpop.eup %2225  ;;  %v2187_v46 = vpack.c.bf16 %v246_v44, %v245_v43 }
 0x190   : > { %v1008_v52 = vpop.xlane.xlu1 %1007  ;;  %v1002_v53 = vpop.xlane.xlu0 %1001  ;;  %1073 = vadd.xlane.f32.xlu0 %v1072_v50  ;;  %v1069_v60 = vsel %vm972_vm2, %v2499_v51, 0.0 }
 0x191   : > { %2235 = vpow2.f32 %v1049_v48  ;;  %v1032_v54 = vsub.f32 %v2457_v5, %v1008_v52  ;;  %v1030_v55 = vsub.f32 %v2455_v3, %v1002_v53  ;;  %2188 = vmatprep.subr.bf16.mxu1 %v2187_v46  ;;  %v247_v48 = vld [vmem:[%s2561_s23 + $0x20] sm:$0xff]  ;;  %v249_v52 = vld [vmem:[%s2561_s23 + $0x30] sm:$0xff]  ;;  %v250_v53 = vld [vmem:[%s2561_s23 + $0x38] sm:$0xff] }
 0x192   : > { %v2503_v56 = vpop.eup %2227  ;;  %2237 = vpow2.f32 %v1045_v49  ;;  %2190 = vmatpush3.bf16.msra.mxu1 %v2187_v46  ;;  %v248_v49 = vld [vmem:[%s2561_s23 + $0x28] sm:$0xff] }
 0x193   : > { %v1059_v57 = vmul.f32 1.442695, %v1032_v54  ;;  %v1055_v58 = vmul.f32 1.442695, %v1030_v55  ;;  %v1078_v59 = vsel %vm972_vm2, %v2503_v56, 0.0  ;;  %v2509_v61 = vpop.eup %2229  ;;  %v2191_v50 = vpack.c.bf16 %v248_v49, %v247_v48 }
 0x194   : > { %v1005_v62 = vpop.xlane.xlu1 %1004  ;;  %1079 = vadd.xlane.f32.xlu1 %v1078_v59  ;;  %v999_v63 = vpop.xlane.xlu0 %998  ;;  %1070 = vadd.xlane.f32.xlu0 %v1069_v60  ;;  %v1075_v5 = vsel %vm972_vm2, %v2509_v61, 0.0  ;;  %v2195_v54 = vpack.c.bf16 %v250_v53, %v249_v52 }
 0x195   : > { %2239 = vpow2.f32 %v1059_v57  ;;  %v1031_v0 = vsub.f32 %v2461_v8, %v1005_v62  ;;  %v1029_v1 = vsub.f32 %v2459_v7, %v999_v63  ;;  %2192 = vmatprep.subr.bf16.mxu0 %v2191_v50 }
 0x196   : > { %2241 = vpow2.f32 %v1055_v58  ;;  %2196 = vmatprep.subr.bf16.mxu1 %v2195_v54 }
 0x197   : > { %v2513_v2 = vpop.eup %2231  ;;  %v1057_v3 = vmul.f32 1.442695, %v1031_v0  ;;  %v1053_v4 = vmul.f32 1.442695, %v1029_v1  ;;  %v251_v1 = vld [vmem:[%s2561_s23 + $0x40] sm:$0xff] }
 0x198   : > { %v2517_v6 = vpop.eup %2233  ;;  %1076 = vadd.xlane.f32.xlu1 %v1075_v5  ;;  %v1011_v9 = vpop.xlane.xlu0 %1010  ;;  %v1090_v14 = vsel %vm972_vm2, %v2513_v2, 0.0 }
 0x199   : > { %2243 = vpow2.f32 %v1057_v3  ;;  %v1017_v10 = vpop.xlane.xlu1 %1016  ;;  %v1033_v11 = vsub.f32 %v2471_v17, %v1011_v9  ;;  %v1084_v8 = vsel %vm972_vm2, %v2517_v6, 0.0  ;;  %v252_v3 = vld [vmem:[%s2561_s23 + $0x48] sm:$0xff] }
 0x19a   : > { %2245 = vpow2.f32 %v1053_v4  ;;  %v1035_v7 = vsub.f32 %v2473_v18, %v1017_v10  ;;  %1085 = vadd.xlane.f32.xlu0 %v1084_v8 }
 0x19b   : > { %v2523_v12 = vpop.eup %2235  ;;  %v1061_v13 = vmul.f32 1.442695, %v1033_v11 }
 0x19c   : > { %v2527_v15 = vpop.eup %2237  ;;  %v1065_v16 = vmul.f32 1.442695, %v1035_v7  ;;  %1091 = vadd.xlane.f32.xlu1 %v1090_v14  ;;  %v1014_v20 = vpop.xlane.xlu0 %1013  ;;  %v1087_v26 = vsel %vm972_vm2, %v2523_v12, 0.0  ;;  %v2199_v7 = vpack.c.bf16 %v252_v3, %v251_v1  ;;  %v254_v14 = vld [vmem:[%s2561_s23 + $0x58] sm:$0xff] }
 0x19d   : > { %2247 = vpow2.f32 %v1061_v13  ;;  %v1020_v17 = vpop.xlane.xlu1 %1019  ;;  %v1034_v22 = vsub.f32 %v2475_v19, %v1014_v20  ;;  %v1081_v23 = vsel %vm972_vm2, %v2527_v15, 0.0  ;;  %v253_v13 = vld [vmem:[%s2561_s23 + $0x50] sm:$0xff] }
 0x19e   : > { %2249 = vpow2.f32 %v1065_v16  ;;  %v1036_v18 = vsub.f32 %v2479_v21, %v1020_v17  ;;  %1082 = vadd.xlane.f32.xlu0 %v1081_v23 }
 0x19f   : > { %v2533_v24 = vpop.eup %2239  ;;  %v1063_v25 = vmul.f32 1.442695, %v1034_v22 }
 0x1a0   : > { %v2537_v27 = vpop.eup %2241  ;;  %v1067_v28 = vmul.f32 1.442695, %v1036_v18  ;;  %1088 = vadd.xlane.f32.xlu1 %v1087_v26  ;;  %v1102_v21 = vsel %vm972_vm2, %v2533_v24, 0.0 }
 0x1a1   : > { %2251 = vpow2.f32 %v1063_v25  ;;  %v1096_v19 = vsel %vm972_vm2, %v2537_v27, 0.0  ;;  %v255_v25 = vld [vmem:[%s2561_s23 + $0x60] sm:$0xff] }
 0x1a2   : > { %2253 = vpow2.f32 %v1067_v28  ;;  %1097 = vadd.xlane.f32.xlu0 %v1096_v19 }
 0x1a3   : > { %v2541_v29 = vpop.eup %2243 }
 0x1a4   : > { %v2545_v30 = vpop.eup %2245  ;;  %1103 = vadd.xlane.f32.xlu1 %v1102_v21  ;;  %v1099_v33 = vsel %vm972_vm2, %v2541_v29, 0.0  ;;  %v257_v21 = vld [vmem:[%s2561_s23 + $0x70] sm:$0xff] }
 0x1a5   : > { %v1093_v31 = vsel %vm972_vm2, %v2545_v30, 0.0 }
 0x1a6   : > { %1094 = vadd.xlane.f32.xlu0 %v1093_v31  ;;  %v258_v31 = vld [vmem:[%s2561_s23 + $0x78] sm:$0xff] }
 0x1a7   : > { %v2549_v32 = vpop.eup %2247 }
 0x1a8   : > { %v2553_v34 = vpop.eup %2249  ;;  %1100 = vadd.xlane.f32.xlu1 %v1099_v33  ;;  %v1105_v35 = vsel %vm972_vm2, %v2549_v32, 0.0 }
 0x1a9   : > { %v1111_v39 = vsel %vm972_vm2, %v2553_v34, 0.0 }
 0x1aa   : > { %1106 = vadd.xlane.f32.xlu0 %v1105_v35 }
 0x1ab   : > { %v2565_v38 = vpop.eup %2251 }
 0x1ac   : > { %v2569_v41 = vpop.eup %2253  ;;  %1112 = vadd.xlane.f32.xlu1 %v1111_v39  ;;  %v1108_v42 = vsel %vm972_vm2, %v2565_v38, 0.0 }
 0x1ad   : > { %v1114_v45 = vsel %vm972_vm2, %v2569_v41, 0.0 }
 0x1ae   : > { %1109 = vadd.xlane.f32.xlu0 %v1108_v42  ;;  %v2211_v42 = vpack.c.bf16 %v258_v31, %v257_v21 }
 0x1b0   : > { %1115 = vadd.xlane.f32.xlu1 %v1114_v45 }
 0x21d   : > { %v1074_v55 = vpop.xlane.xlu0 %1073 }
 0x21e   : > { %2255 = vrcp.f32 %v1074_v55 }
 0x221   : > { %v1080_v57 = vpop.xlane.xlu1 %1079  ;;  %v1071_v58 = vpop.xlane.xlu0 %1070 }
 0x222   : > { %2257 = vrcp.f32 %v1071_v58 }
 0x223   : > { %2259 = vrcp.f32 %v1080_v57 }
 0x225   : > { %v1077_v59 = vpop.xlane.xlu1 %1076 }
 0x226   : > { %2261 = vrcp.f32 %v1077_v59 }
 0x227   : > { %v1086_v60 = vpop.xlane.xlu0 %1085 }
 0x228   : > { %2263 = vrcp.f32 %v1086_v60  ;;  %v2256_v0 = vpop.eup %2255 }
 0x229   : > { %v1092_v62 = vpop.xlane.xlu1 %1091  ;;  %v1134_v11 = vmul.f32 %v2256_v0, %v2495_v47 }
 0x22b   : > { %v1083_v63 = vpop.xlane.xlu0 %1082 }
 0x22c   : > { %2265 = vrcp.f32 %v1083_v63  ;;  %v2258_v4 = vpop.eup %2257 }
 0x22d   : > { %2267 = vrcp.f32 %v1092_v62  ;;  %v1089_v5 = vpop.xlane.xlu1 %1088  ;;  %v1133_v9 = vmul.f32 %v2258_v4, %v2499_v51  ;;  %v2260_v10 = vpop.eup %2259  ;;  %v2203_v51 = vpack.c.bf16 %v254_v14, %v253_v13 }
 0x22e   : > { %2269 = vrcp.f32 %v1089_v5  ;;  %v1136_v22 = vmul.f32 %v2260_v10, %v2503_v56 }
 0x22f   : > { %v1098_v8 = vpop.xlane.xlu0 %1097  ;;  %2083 = vmatprep.mubr.msk.f32.mxu0 %vm972_vm2, %v1133_v9 }
 0x230   : > { %v2262_v16 = vpop.eup %2261  ;;  %2084 = vmatmul.mubr.msk.f32.vlgmr.msra.gmra.mrb[8].mxu0 %vm972_vm2, %v1134_v11  ;;  %2271 = vrcp.f32 %v1098_v8 }
 0x231   : > { %v1104_v20 = vpop.xlane.xlu1 %1103  ;;  %v1135_v17 = vmul.f32 %v2262_v16, %v2509_v61  ;;  %2194 = vmatpush3.bf16.msra.mxu0 %v2191_v50  ;;  %v256_v61 = vld [vmem:[%s2561_s23 + $0x68] sm:$0xff] }
 0x232   : > { %2200 = vmatprep.subr.bf16.mxu0 %v2199_v7  ;;  %v2264_v23 = vpop.eup %2263  ;;  %v2207_v36 = vpack.c.bf16 %v256_v61, %v255_v25 }
 0x233   : > { %v1095_v47 = vpop.xlane.xlu0 %1094  ;;  %2090 = vmatprep.mubr.msk.f32.mxu1 %vm972_vm2, %v1135_v17  ;;  %v1138_v35 = vmul.f32 %v2264_v23, %v2517_v6 }
 0x234   : > { %2273 = vrcp.f32 %v1095_v47  ;;  %2091 = vmatmul.mubr.msk.f32.vlgmr.msra.gmra.mrb[8].mxu1 %vm972_vm2, %v1136_v22 }
 0x235   : > { %2275 = vrcp.f32 %v1104_v20  ;;  %v1101_v18 = vpop.xlane.xlu1 %1100  ;;  %2198 = vmatpush3.bf16.msra.mxu1 %v2195_v54 }
 0x236   : > { %v2266_v26 = vpop.eup %2265  ;;  %2277 = vrcp.f32 %v1101_v18  ;;  %2204 = vmatprep.subr.bf16.mxu1 %v2203_v51 }
 0x237   : > { %v2268_v56 = vpop.eup %2267  ;;  %v1107_v28 = vpop.xlane.xlu0 %1106  ;;  %v1137_v19 = vmul.f32 %v2266_v26, %v2527_v15 }
 0x238   : > { %v2270_v33 = vpop.eup %2269  ;;  %2279 = vrcp.f32 %v1107_v28  ;;  %v1140_v40 = vmul.f32 %v2268_v56, %v2513_v2 }
 0x239   : > { %2097 = vmatprep.mubr.msk.f32.mxu0 %vm972_vm2, %v1137_v19  ;;  %v1113_v37 = vpop.xlane.xlu1 %1112  ;;  %v1139_v39 = vmul.f32 %v2270_v33, %v2523_v12 }
 0x23a   : > { %2281 = vrcp.f32 %v1113_v37  ;;  %2098 = vmatmul.mubr.msk.f32.vlgmr.msra.gmra.mrb[10].mxu0 %vm972_vm2, %v1138_v35  ;;  %v2272_v6 = vpop.eup %2271 }
 0x23b   : > { %v1110_v43 = vpop.xlane.xlu0 %1109  ;;  %2104 = vmatprep.mubr.msk.f32.mxu1 %vm972_vm2, %v1139_v39  ;;  %2202 = vmatpush3.bf16.msra.mxu0 %v2199_v7  ;;  %v1142_v46 = vmul.f32 %v2272_v6, %v2537_v27 }
 0x23c   : > { %2283 = vrcp.f32 %v1110_v43  ;;  %2105 = vmatmul.mubr.msk.f32.vlgmr.msra.gmra.mrb[10].mxu1 %vm972_vm2, %v1140_v40  ;;  %2208 = vmatprep.subr.bf16.mxu0 %v2207_v36 }
 0x23d   : > { %v1116_v15 = vpop.xlane.xlu1 %1115  ;;  %2206 = vmatpush3.bf16.msra.mxu1 %v2203_v51 }
 0x23e   : > { %v2274_v44 = vpop.eup %2273  ;;  %2285 = vrcp.f32 %v1116_v15  ;;  %2212 = vmatprep.subr.bf16.mxu1 %v2211_v42 }
 0x23f   : > { %v2276_v12 = vpop.eup %2275  ;;  %v1141_v2 = vmul.f32 %v2274_v44, %v2545_v30 }
 0x240   : > { %v2278_v45 = vpop.eup %2277  ;;  %v1144_v50 = vmul.f32 %v2276_v12, %v2533_v24 }
 0x241   : > { %2111 = vmatprep.mubr.msk.f32.mxu0 %vm972_vm2, %v1141_v2  ;;  %v1143_v48 = vmul.f32 %v2278_v45, %v2541_v29 }
 0x242   : > { %v2280_v49 = vpop.eup %2279  ;;  %2112 = vmatmul.mubr.msk.f32.vlgmr.msra.gmra.mrb[12].mxu0 %vm972_vm2, %v1142_v46 }
 0x243   : > { %2118 = vmatprep.mubr.msk.f32.mxu1 %vm972_vm2, %v1143_v48  ;;  %v1145_v52 = vmul.f32 %v2280_v49, %v2549_v32  ;;  %2210 = vmatpush3.bf16.msra.mxu0 %v2207_v36 }
 0x244   : > { %v2282_v53 = vpop.eup %2281  ;;  %2119 = vmatmul.mubr.msk.f32.vlgmr.msra.gmra.mrb[12].mxu1 %vm972_vm2, %v1144_v50 }
 0x245   : > { %2125 = vmatprep.mubr.msk.f32.mxu0 %vm972_vm2, %v1145_v52  ;;  %2214 = vmatpush3.bf16.msra.mxu1 %v2211_v42  ;;  %v1147_v27 = vmul.f32 %v2282_v53, %v2553_v34 }
 0x246   : > { %v2284_v29 = vpop.eup %2283 }
 0x247   : > { %v1146_v30 = vmul.f32 %v2284_v29, %v2565_v38  ;;  %2132 = vmatprep.mubr.msk.f32.mxu1 %vm972_vm2, %v1147_v27 }
 0x248   : > { %v2286_v24 = vpop.eup %2285 }
 0x249   : > { %v1148_v54 = vmul.f32 %v2286_v24, %v2569_v41  ;;  %2126 = vmatmul.mubr.msk.f32.vlgmr.msra.gmra.mrb[14].mxu0 %vm972_vm2, %v1146_v30 }
 0x24b   : > { %2133 = vmatmul.mubr.msk.f32.vlgmr.msra.gmra.mrb[14].mxu1 %vm972_vm2, %v1148_v54 }
 0x303   : > { %v2085_v32 = vpop.f32.mrb[8].mxu0 }
 0x304   : > { %1798 = vst.msk [vmem:[%s2625_s26 + $0x8] sm:$0xff] %vm259_vm0, %v2085_v32  ;;  %v1221_v34 = vpop.f32.mrb[9].mxu0 }
 0x305   : > { %1797 = vst.msk [vmem:[%s2625_s26] sm:$0xff] %vm259_vm0, %v1221_v34 }
 0x307   : > { %v2092_v38 = vpop.f32.mrb[8].mxu1 }
 0x308   : > { %1800 = vst.msk [vmem:[%s2625_s26 + $0x18] sm:$0xff] %vm259_vm0, %v2092_v38  ;;  %v1302_v41 = vpop.f32.mrb[9].mxu1 }
 0x309   : > { %1799 = vst.msk [vmem:[%s2625_s26 + $0x10] sm:$0xff] %vm259_vm0, %v1302_v41 }
 0x30d   : > { %v2099_v55 = vpop.f32.mrb[10].mxu0 }
 0x30e   : > { %1802 = vst.msk [vmem:[%s2625_s26 + $0x28] sm:$0xff] %vm259_vm0, %v2099_v55  ;;  %v1383_v57 = vpop.f32.mrb[11].mxu0 }
 0x30f   : > { %1801 = vst.msk [vmem:[%s2625_s26 + $0x20] sm:$0xff] %vm259_vm0, %v1383_v57  ;;  %v2106_v58 = vpop.f32.mrb[10].mxu1 }
 0x310   : > { %1804 = vst.msk [vmem:[%s2625_s26 + $0x38] sm:$0xff] %vm259_vm0, %v2106_v58  ;;  %v1464_v59 = vpop.f32.mrb[11].mxu1 }
 0x311   : > { %1803 = vst.msk [vmem:[%s2625_s26 + $0x30] sm:$0xff] %vm259_vm0, %v1464_v59 }
 0x315   : > { %v2113_v60 = vpop.f32.mrb[12].mxu0 }
 0x316   : > { %1806 = vst.msk [vmem:[%s2625_s26 + $0x48] sm:$0xff] %vm259_vm0, %v2113_v60  ;;  %v1545_v62 = vpop.f32.mrb[13].mxu0 }
 0x317   : > { %1805 = vst.msk [vmem:[%s2625_s26 + $0x40] sm:$0xff] %vm259_vm0, %v1545_v62  ;;  %v2120_v63 = vpop.f32.mrb[12].mxu1 }
 0x318   : > { %1808 = vst.msk [vmem:[%s2625_s26 + $0x58] sm:$0xff] %vm259_vm0, %v2120_v63  ;;  %v1626_v0 = vpop.f32.mrb[13].mxu1 }
 0x319   : > { %1807 = vst.msk [vmem:[%s2625_s26 + $0x50] sm:$0xff] %vm259_vm0, %v1626_v0 }
 0x31c   : > { %v2127_v1 = vpop.f32.mrb[14].mxu0 }
 0x31d   : > { %1810 = vst.msk [vmem:[%s2625_s26 + $0x68] sm:$0xff] %vm259_vm0, %v2127_v1  ;;  %v1707_v3 = vpop.f32.mrb[15].mxu0 }
 0x31e   : > { %1809 = vst.msk [vmem:[%s2625_s26 + $0x60] sm:$0xff] %vm259_vm0, %v1707_v3  ;;  %v2134_v4 = vpop.f32.mrb[14].mxu1 }
 0x31f   : > { %1812 = vst.msk [vmem:[%s2625_s26 + $0x78] sm:$0xff] %vm259_vm0, %v2134_v4  ;;  %v1788_v5 = vpop.f32.mrb[15].mxu1 }
 0x320   : > { %1811 = vst.msk [vmem:[%s2625_s26 + $0x70] sm:$0xff] %vm259_vm0, %v1788_v5 }
 0x321 PF: > { %s13_s12 = sadd.s32 1, %s2293_s12  }
 0x322   : > { %p10_p4 = scmp.ge.s32.totalorder %s13_s12, 4  }
 0x324   :  { %12 = sbr.rel (!%p10_p4) target bundleno = 1 (0x1), region = 68 }

// kernel: vqvae_forward.77
= control target key start
LH: loop header
LB: loop body
LE: loop exit
PB: predicated region body
PF: predicated region fallthrough
CT: control target
= control target key end

     0   :  { %vm210_vm0 = vcmask 261120   ;;  %vm19_vm1 = vcmask 31744   ;;  %v444_v24 = vmov 0.0   ;;  %s564_s1 = inlined_call_operand.vmem [shape: bf16[288,4], index: 1, kind: input, shape index: {}]   ;;  %s565_s0 = inlined_call_operand.vmem [shape: bf16[32,288], index: 0, kind: input, shape index: {}]   ;;  %s566_s2 = inlined_call_operand.vmem [shape: f32[1,4], index: 2, kind: input, shape index: {}]   ;;  %s567_s3 = inlined_call_operand.vmem [shape: f32[32,4], index: 3, kind: output, shape index: {}]  }
   0x1   :  { %v418_v0 = vld [vmem:[%s564_s1 + $0x40] sm:$0xff]   ;;  %v420_v2 = vld [vmem:[%s564_s1 + $0x48] sm:$0xff]   ;;  %v422_v4 = vld [vmem:[%s564_s1 + $0x50] sm:$0xff]   ;;  %20 = vst.msk [vmem:[#allocation2] sm:$0xff] %vm19_vm1, %v444_v24 }
   0x2   :  { %v419_v1 = vld [vmem:[%s564_s1] sm:$0xff]   ;;  %377 = vmatprep.subr.bf16.mxu0 %v418_v0  ;;  %v421_v3 = vld [vmem:[%s564_s1 + $0x8] sm:$0xff]   ;;  %v423_v5 = vld [vmem:[%s564_s1 + $0x10] sm:$0xff]   ;;  %21 = vst.msk [vmem:[#allocation2 + $0x8] sm:$0xff] %vm19_vm1, %v444_v24 }
   0x3   :  { %378 = vmatpush3.bf16.msra.mxu0 %v419_v1  ;;  %v424_v6 = vld [vmem:[%s564_s1 + $0x58] sm:$0xff]   ;;  %v426_v8 = vld [vmem:[%s564_s1 + $0x60] sm:$0xff]   ;;  %v428_v11 = vld [vmem:[%s564_s1 + $0x68] sm:$0xff]   ;;  %22 = vst.msk [vmem:[#allocation2 + $0x10] sm:$0xff] %vm19_vm1, %v444_v24 }
   0x4   :  { %379 = vmatprep.subr.bf16.mxu0 %v420_v2  ;;  %v425_v7 = vld [vmem:[%s564_s1 + $0x18] sm:$0xff]   ;;  %v432_v9 = vld [vmem:[%s564_s1 + $0x80] sm:$0xff]   ;;  %v429_v12 = vld [vmem:[%s564_s1 + $0x28] sm:$0xff]   ;;  %23 = vst.msk [vmem:[#allocation2 + $0x18] sm:$0xff] %vm19_vm1, %v444_v24 }
   0x5   :  { %v427_v10 = vld [vmem:[%s564_s1 + $0x20] sm:$0xff]   ;;  %409 = vmatprep.subr.bf16.mxu1 %v432_v9  ;;  %v435_v13 = vld [vmem:[%s564_s1 + $0x88] sm:$0xff]   ;;  %v430_v14 = vld [vmem:[%s564_s1 + $0x70] sm:$0xff]  }
   0x6   :  { %410 = vmatpush3.bf16.msra.mxu1 %v432_v9  ;;  %v438_v15 = vld [vmem:[%s565_s0 + $0x4] ss:$12 sps:$4 sm:$0xff]   ;;  %v439_v16 = vld [vmem:[%s565_s0 + $0x8] ss:$12 sps:$4 sm:$0xff]   ;;  %v440_v17 = vld [vmem:[%s565_s0 + $0x20] ss:$12 sps:$4 sm:$0xff]  }
   0x7   :  { %380 = vmatpush3.bf16.msra.mxu0 %v421_v3  ;;  %411 = vmatprep.subr.bf16.mxu1 %v435_v13  ;;  %v431_v18 = vld [vmem:[%s564_s1 + $0x30] sm:$0xff]   ;;  %v433_v19 = vld [vmem:[%s564_s1 + $0x78] sm:$0xff]   ;;  %v436_v21 = vld [vmem:[%s565_s0] ss:$12 sps:$4 sm:$0xff]  }
   0x8   :  { %381 = vmatprep.subr.bf16.mxu0 %v422_v4  ;;  %249 = vmatprep.mubr.bf16.mxu0 %v438_v15  ;;  %v434_v20 = vld [vmem:[%s564_s1 + $0x38] sm:$0xff]   ;;  %v24_v34 = vld [vmem:[#allocation2] sm:$0xff] }
   0x9   :  { %413 = vmatprep.mubr.msk.bf16.mxu1 %vm210_vm0, %v439_v16  ;;  %v441_v22 = vld [vmem:[%s565_s0 + $0x1c] ss:$12 sps:$4 sm:$0xff]   ;;  %v443_v23 = vld [vmem:[%s565_s0 + $0x18] ss:$12 sps:$4 sm:$0xff]   ;;  %v376_v49 = vld [vmem:[%s566_s2] ss:$0 sm:$0xff] }
   0xa   :  { %412 = vmatpush3.bf16.msra.mxu1 %v435_v13  ;;  %v25_v37 = vld [vmem:[#allocation2 + $0x8] sm:$0xff]  ;;  %v26_v45 = vld [vmem:[#allocation2 + $0x10] sm:$0xff] }
   0xb   :  { %382 = vmatpush3.bf16.msra.mxu0 %v423_v5  ;;  %v27_v50 = vld [vmem:[#allocation2 + $0x18] sm:$0xff] }
   0xc   :  { %383 = vmatprep.subr.bf16.mxu0 %v424_v6 }
   0xd   :  { %414 = vmatmul.mubr.msk.bf16.vlgmr.msra.gmra.mrb[0].mxu1 %vm210_vm0, %v440_v17 }
   0xf   :  { %384 = vmatpush3.bf16.msra.mxu0 %v425_v7 }
  0x10   :  { %385 = vmatprep.subr.bf16.mxu0 %v426_v8 }
  0x13   :  { %386 = vmatpush3.bf16.msra.mxu0 %v427_v10 }
  0x14   :  { %387 = vmatprep.subr.bf16.mxu0 %v428_v11 }
  0x17   :  { %388 = vmatpush3.bf16.msra.mxu0 %v429_v12 }
  0x18   :  { %389 = vmatprep.subr.bf16.mxu0 %v430_v14 }
  0x1b   :  { %390 = vmatpush3.bf16.msra.mxu0 %v431_v18 }
  0x1c   :  { %391 = vmatprep.subr.bf16.mxu0 %v433_v19 }
  0x1f   :  { %392 = vmatpush3.bf16.msra.mxu0 %v434_v20 }
  0x22   :  { %250 = vmatmul.mubr.bf16.vlgmr.msra.gmra.mrb[0].mxu0 %v436_v21 }
  0x23   :  { %257 = vmatprep.mubr.bf16.mxu0 %v441_v22 }
  0x2a   :  { %258 = vmatmul.mubr.bf16.gmra.mrb[4].mxu0 %v443_v23 }
  0xe0   :  { %v415_v25 = vpop.f32.mrb[0].mxu1 }
  0xe1   :  { %v300_v26 = vpop.f32.mrb[1].mxu1 }
  0xe2   :  { %v416_v27 = vpop.f32.mrb[2].mxu1 }
  0xe3   :  { %v303_v28 = vpop.f32.mrb[3].mxu1 }
  0xf5   :  { %v393_v29 = vpop.f32.mrb[0].mxu0 }
  0xf6   :  { %v394_v30 = vpop.f32.mrb[1].mxu0 }
  0xf7   :  { %v395_v31 = vadd.f32 %v394_v30, %v393_v29  ;;  %v396_v32 = vpop.f32.mrb[2].mxu0 }
  0xf8   :  { %v397_v33 = vpop.f32.mrb[3].mxu0 }
  0xf9   :  { %v398_v35 = vadd.f32 %v397_v33, %v396_v32  ;;  %v301_v36 = vadd.f32 %v395_v31, %v300_v26 }
  0xfb   :  { %v315_v38 = vadd.f32 %v301_v36, %v24_v34  ;;  %v304_v39 = vadd.f32 %v398_v35, %v303_v28 }
  0xfd   :  { %320 = vst.msk [vmem:[#allocation2] sm:$0xff] %vm19_vm1, %v315_v38  ;;  %v316_v40 = vadd.f32 %v304_v39, %v25_v37  ;;  %v399_v41 = vpop.f32.mrb[4].mxu0 }
  0xfe   :  { %v400_v42 = vpop.f32.mrb[5].mxu0 }
  0xff   :  { %321 = vst.msk [vmem:[#allocation2 + $0x8] sm:$0xff] %vm19_vm1, %v316_v40  ;;  %v401_v43 = vadd.f32 %v400_v42, %v399_v41  ;;  %v402_v44 = vpop.f32.mrb[6].mxu0 }
 0x100   :  { %v403_v46 = vpop.f32.mrb[7].mxu0 }
 0x101   :  { %v309_v47 = vadd.f32 %v415_v25, %v401_v43  ;;  %v404_v48 = vadd.f32 %v403_v46, %v402_v44 }
 0x103   :  { %v317_v51 = vadd.f32 %v309_v47, %v26_v45  ;;  %v312_v52 = vadd.f32 %v416_v27, %v404_v48 }
 0x104   :  { %v327_v53 = vld [vmem:[#allocation2] sm:$0xff] }
 0x105   :  { %v338_v54 = vadd.f32 %v376_v49, %v327_v53  ;;  %322 = vst.msk [vmem:[#allocation2 + $0x10] sm:$0xff] %vm19_vm1, %v317_v51  ;;  %v318_v55 = vadd.f32 %v312_v52, %v27_v50 }
 0x106   :  { %v328_v56 = vld [vmem:[#allocation2 + $0x8] sm:$0xff] }
 0x107   :  { %342 = vst.msk [vmem:[%s567_s3] sm:$0xff] %vm19_vm1, %v338_v54  ;;  %v339_v57 = vadd.f32 %v376_v49, %v328_v56  ;;  %323 = vst.msk [vmem:[#allocation2 + $0x18] sm:$0xff] %vm19_vm1, %v318_v55 }
 0x109   :  { %343 = vst.msk [vmem:[%s567_s3 + $0x8] sm:$0xff] %vm19_vm1, %v339_v57 }
 0x10c   :  { %v329_v58 = vld [vmem:[#allocation2 + $0x10] sm:$0xff] }
 0x10d   :  { %v340_v59 = vadd.f32 %v376_v49, %v329_v58 }
 0x10e   :  { %v330_v60 = vld [vmem:[#allocation2 + $0x18] sm:$0xff] }
 0x10f   :  { %344 = vst.msk [vmem:[%s567_s3 + $0x10] sm:$0xff] %vm19_vm1, %v340_v59  ;;  %v341_v61 = vadd.f32 %v376_v49, %v330_v60 }
 0x111   :  { %345 = vst.msk [vmem:[%s567_s3 + $0x18] sm:$0xff] %vm19_vm1, %v341_v61 }

// kernel: vqvae_forward.71
= control target key start
LH: loop header
LB: loop body
LE: loop exit
PB: predicated region body
PF: predicated region fallthrough
CT: control target
= control target key end

     0   :  { %vm22_vm0 = vcmask 261120   ;;  %v618_v40 = vmov 0.0   ;;  %s803_s1 = inlined_call_operand.vmem [shape: bf16[512,32], index: 1, kind: input, shape index: {}]   ;;  %s804_s0 = inlined_call_operand.vmem [shape: bf16[32,512], index: 0, kind: input, shape index: {}]   ;;  %s805_s2 = inlined_call_operand.vmem [shape: f32[1,32], index: 2, kind: input, shape index: {}]   ;;  %s806_s3 = inlined_call_operand.vmem [shape: f32[32,32], index: 3, kind: input, shape index: {}]   ;;  %s807_s4 = inlined_call_operand.vmem [shape: f32[32,32], index: 4, kind: output, shape index: {}]  }
   0x1   :  { %v574_v0 = vld [vmem:[%s803_s1 + $0x40] sm:$0xff]   ;;  %v578_v4 = vld [vmem:[%s803_s1 + $0x48] sm:$0xff]   ;;  %v582_v8 = vld [vmem:[%s803_s1 + $0x50] sm:$0xff]   ;;  %23 = vst.msk [vmem:[#allocation2] sm:$0xff] %vm22_vm0, %v618_v40 }
   0x2   :  { %v575_v1 = vld [vmem:[%s803_s1 + $0xc0] sm:$0xff]   ;;  %517 = vmatprep.subr.bf16.mxu0 %v574_v0  ;;  %v579_v5 = vld [vmem:[%s803_s1 + $0xc8] sm:$0xff]   ;;  %v583_v9 = vld [vmem:[%s803_s1 + $0xd0] sm:$0xff]   ;;  %24 = vst.msk [vmem:[#allocation2 + $0x8] sm:$0xff] %vm22_vm0, %v618_v40 }
   0x3   :  { %v576_v2 = vld [vmem:[%s803_s1] sm:$0xff]   ;;  %545 = vmatprep.subr.bf16.mxu1 %v575_v1  ;;  %v580_v6 = vld [vmem:[%s803_s1 + $0x8] sm:$0xff]   ;;  %v584_v10 = vld [vmem:[%s803_s1 + $0x10] sm:$0xff]   ;;  %25 = vst.msk [vmem:[#allocation2 + $0x10] sm:$0xff] %vm22_vm0, %v618_v40 }
   0x4   :  { %v577_v3 = vld [vmem:[%s803_s1 + $0x80] sm:$0xff]   ;;  %518 = vmatpush3.bf16.msra.mxu0 %v576_v2  ;;  %v581_v7 = vld [vmem:[%s803_s1 + $0x88] sm:$0xff]   ;;  %v585_v11 = vld [vmem:[%s803_s1 + $0x90] sm:$0xff]   ;;  %26 = vst.msk [vmem:[#allocation2 + $0x18] sm:$0xff] %vm22_vm0, %v618_v40 }
   0x5   :  { %546 = vmatpush3.bf16.msra.mxu1 %v577_v3  ;;  %519 = vmatprep.subr.bf16.mxu0 %v578_v4  ;;  %v586_v12 = vld [vmem:[%s803_s1 + $0x58] sm:$0xff]   ;;  %v590_v16 = vld [vmem:[%s803_s1 + $0x60] sm:$0xff]   ;;  %v594_v20 = vld [vmem:[%s803_s1 + $0x68] sm:$0xff]  }
   0x6   :  { %547 = vmatprep.subr.bf16.mxu1 %v579_v5  ;;  %v587_v13 = vld [vmem:[%s803_s1 + $0xd8] sm:$0xff]   ;;  %v591_v17 = vld [vmem:[%s803_s1 + $0xe0] sm:$0xff]   ;;  %v595_v21 = vld [vmem:[%s803_s1 + $0xe8] sm:$0xff]  }
   0x7   :  { %v588_v14 = vld [vmem:[%s803_s1 + $0x18] sm:$0xff]   ;;  %v592_v18 = vld [vmem:[%s803_s1 + $0x20] sm:$0xff]   ;;  %v596_v22 = vld [vmem:[%s803_s1 + $0x28] sm:$0xff]  }
   0x8   :  { %520 = vmatpush3.bf16.msra.mxu0 %v580_v6  ;;  %v589_v15 = vld [vmem:[%s803_s1 + $0x98] sm:$0xff]   ;;  %v593_v19 = vld [vmem:[%s803_s1 + $0xa0] sm:$0xff]   ;;  %v597_v23 = vld [vmem:[%s803_s1 + $0xa8] sm:$0xff]  }
   0x9   :  { %548 = vmatpush3.bf16.msra.mxu1 %v581_v7  ;;  %521 = vmatprep.subr.bf16.mxu0 %v582_v8  ;;  %v598_v24 = vld [vmem:[%s803_s1 + $0x70] sm:$0xff]   ;;  %v602_v28 = vld [vmem:[%s803_s1 + $0x78] sm:$0xff]   ;;  %v27_v50 = vld [vmem:[#allocation2] sm:$0xff] }
   0xa   :  { %549 = vmatprep.subr.bf16.mxu1 %v583_v9  ;;  %v599_v25 = vld [vmem:[%s803_s1 + $0xf0] sm:$0xff]   ;;  %v603_v29 = vld [vmem:[%s803_s1 + $0xf8] sm:$0xff]   ;;  %v28_v55 = vld [vmem:[#allocation2 + $0x8] sm:$0xff] }
   0xb   :  { %v600_v26 = vld [vmem:[%s803_s1 + $0x30] sm:$0xff]   ;;  %v604_v30 = vld [vmem:[%s803_s1 + $0x38] sm:$0xff]   ;;  %v516_v9 = vld [vmem:[%s805_s2] ss:$0 sm:$0xff] }
   0xc   :  { %522 = vmatpush3.bf16.msra.mxu0 %v584_v10  ;;  %v601_v27 = vld [vmem:[%s803_s1 + $0xb0] sm:$0xff]   ;;  %v605_v31 = vld [vmem:[%s803_s1 + $0xb8] sm:$0xff]  }
   0xd   :  { %550 = vmatpush3.bf16.msra.mxu1 %v585_v11  ;;  %523 = vmatprep.subr.bf16.mxu0 %v586_v12  ;;  %v606_v32 = vld [vmem:[%s804_s0] ss:$16 sps:$4 sm:$0xff]   ;;  %v608_v33 = vld [vmem:[%s804_s0 + $0x4] ss:$16 sps:$4 sm:$0xff]   ;;  %v609_v34 = vld [vmem:[%s804_s0 + $0x8] ss:$16 sps:$4 sm:$0xff]  }
   0xe   :  { %551 = vmatprep.subr.bf16.mxu1 %v587_v13  ;;  %v611_v35 = vld [vmem:[%s804_s0 + $0xc] ss:$16 sps:$4 sm:$0xff]   ;;  %367 = vmatprep.mubr.bf16.mxu0 %v608_v33  ;;  %v612_v36 = vld [vmem:[%s804_s0 + $0x24] ss:$16 sps:$4 sm:$0xff]   ;;  %v616_v38 = vld [vmem:[%s804_s0 + $0x20] ss:$16 sps:$4 sm:$0xff]  }
   0xf   :  { %416 = vmatprep.mubr.bf16.mxu1 %v611_v35  ;;  %v614_v37 = vld [vmem:[%s804_s0 + $0x2c] ss:$16 sps:$4 sm:$0xff]   ;;  %v617_v39 = vld [vmem:[%s804_s0 + $0x28] ss:$16 sps:$4 sm:$0xff]   ;;  %v29_v4 = vld [vmem:[#allocation2 + $0x10] sm:$0xff] }
  0x10   :  { %524 = vmatpush3.bf16.msra.mxu0 %v588_v14  ;;  %v30_v10 = vld [vmem:[#allocation2 + $0x18] sm:$0xff]  ;;  %v460_v14 = vld [vmem:[%s806_s3] sm:$0xff] }
  0x11   :  { %552 = vmatpush3.bf16.msra.mxu1 %v589_v15  ;;  %525 = vmatprep.subr.bf16.mxu0 %v590_v16 }
  0x12   :  { %553 = vmatprep.subr.bf16.mxu1 %v591_v17 }
  0x14   :  { %526 = vmatpush3.bf16.msra.mxu0 %v592_v18  ;;  %v461_v18 = vld [vmem:[%s806_s3 + $0x8] sm:$0xff] }
  0x15   :  { %554 = vmatpush3.bf16.msra.mxu1 %v593_v19  ;;  %527 = vmatprep.subr.bf16.mxu0 %v594_v20 }
  0x16   :  { %555 = vmatprep.subr.bf16.mxu1 %v595_v21 }
  0x18   :  { %528 = vmatpush3.bf16.msra.mxu0 %v596_v22 }
  0x19   :  { %556 = vmatpush3.bf16.msra.mxu1 %v597_v23  ;;  %529 = vmatprep.subr.bf16.mxu0 %v598_v24  ;;  %v462_v23 = vld [vmem:[%s806_s3 + $0x10] sm:$0xff] }
  0x1a   :  { %557 = vmatprep.subr.bf16.mxu1 %v599_v25 }
  0x1c   :  { %530 = vmatpush3.bf16.msra.mxu0 %v600_v26  ;;  %v463_v26 = vld [vmem:[%s806_s3 + $0x18] sm:$0xff] }
  0x1d   :  { %558 = vmatpush3.bf16.msra.mxu1 %v601_v27  ;;  %531 = vmatprep.subr.bf16.mxu0 %v602_v28 }
  0x1e   :  { %559 = vmatprep.subr.bf16.mxu1 %v603_v29 }
  0x20   :  { %532 = vmatpush3.bf16.msra.mxu0 %v604_v30 }
  0x21   :  { %560 = vmatpush3.bf16.msra.mxu1 %v605_v31 }
  0x23   :  { %368 = vmatmul.mubr.bf16.vlgmr.msra.gmra.mrb[0].mxu0 %v606_v32 }
  0x24   :  { %417 = vmatmul.mubr.bf16.vlgmr.msra.gmra.mrb[0].mxu1 %v609_v34  ;;  %375 = vmatprep.mubr.bf16.mxu0 %v612_v36 }
  0x25   :  { %424 = vmatprep.mubr.bf16.mxu1 %v614_v37 }
  0x2b   :  { %376 = vmatmul.mubr.bf16.gmra.mrb[4].mxu0 %v616_v38 }
  0x2c   :  { %425 = vmatmul.mubr.bf16.gmra.mrb[4].mxu1 %v617_v39 }
  0xf6   :  { %v533_v41 = vpop.f32.mrb[0].mxu0 }
  0xf7   :  { %v561_v42 = vpop.f32.mrb[0].mxu1  ;;  %v534_v43 = vpop.f32.mrb[1].mxu0 }
  0xf8   :  { %v535_v44 = vadd.f32 %v534_v43, %v533_v41  ;;  %v562_v45 = vpop.f32.mrb[1].mxu1  ;;  %v536_v46 = vpop.f32.mrb[2].mxu0 }
  0xf9   :  { %v563_v47 = vadd.f32 %v562_v45, %v561_v42  ;;  %v564_v48 = vpop.f32.mrb[2].mxu1  ;;  %v537_v49 = vpop.f32.mrb[3].mxu0 }
  0xfa   :  { %v538_v51 = vadd.f32 %v537_v49, %v536_v46  ;;  %v565_v52 = vpop.f32.mrb[3].mxu1 }
  0xfb   :  { %v419_v53 = vadd.f32 %v563_v47, %v535_v44  ;;  %v566_v54 = vadd.f32 %v565_v52, %v564_v48 }
  0xfd   :  { %v433_v56 = vadd.f32 %v419_v53, %v27_v50  ;;  %v422_v57 = vadd.f32 %v566_v54, %v538_v51 }
  0xfe   :  { %v539_v58 = vpop.f32.mrb[4].mxu0 }
  0xff   :  { %438 = vst.msk [vmem:[#allocation2] sm:$0xff] %vm22_vm0, %v433_v56  ;;  %v434_v59 = vadd.f32 %v422_v57, %v28_v55  ;;  %v567_v60 = vpop.f32.mrb[4].mxu1  ;;  %v540_v61 = vpop.f32.mrb[5].mxu0 }
 0x100   :  { %v541_v62 = vadd.f32 %v540_v61, %v539_v58  ;;  %v568_v63 = vpop.f32.mrb[5].mxu1  ;;  %v542_v0 = vpop.f32.mrb[6].mxu0 }
 0x101   :  { %439 = vst.msk [vmem:[#allocation2 + $0x8] sm:$0xff] %vm22_vm0, %v434_v59  ;;  %v569_v1 = vadd.f32 %v568_v63, %v567_v60  ;;  %v570_v2 = vpop.f32.mrb[6].mxu1  ;;  %v543_v3 = vpop.f32.mrb[7].mxu0 }
 0x102   :  { %v544_v5 = vadd.f32 %v543_v3, %v542_v0  ;;  %v571_v6 = vpop.f32.mrb[7].mxu1 }
 0x103   :  { %v427_v7 = vadd.f32 %v569_v1, %v541_v62  ;;  %v572_v8 = vadd.f32 %v571_v6, %v570_v2 }
 0x105   :  { %v435_v11 = vadd.f32 %v427_v7, %v29_v4  ;;  %v430_v12 = vadd.f32 %v572_v8, %v544_v5 }
 0x106   :  { %v445_v13 = vld [vmem:[#allocation2] sm:$0xff] }
 0x107   :  { %v456_v15 = vadd.f32 %v516_v9, %v445_v13  ;;  %440 = vst.msk [vmem:[#allocation2 + $0x10] sm:$0xff] %vm22_vm0, %v435_v11  ;;  %v436_v16 = vadd.f32 %v430_v12, %v30_v10 }
 0x108   :  { %v446_v17 = vld [vmem:[#allocation2 + $0x8] sm:$0xff] }
 0x109   :  { %v464_v19 = vadd.f32 %v460_v14, %v456_v15  ;;  %v457_v20 = vadd.f32 %v516_v9, %v446_v17  ;;  %441 = vst.msk [vmem:[#allocation2 + $0x18] sm:$0xff] %vm22_vm0, %v436_v16 }
 0x10b   :  { %468 = vst.msk [vmem:[%s807_s4] sm:$0xff] %vm22_vm0, %v464_v19  ;;  %v465_v21 = vadd.f32 %v461_v18, %v457_v20 }
 0x10d   :  { %469 = vst.msk [vmem:[%s807_s4 + $0x8] sm:$0xff] %vm22_vm0, %v465_v21 }
 0x10e   :  { %v447_v22 = vld [vmem:[#allocation2 + $0x10] sm:$0xff] }
 0x10f   :  { %v458_v24 = vadd.f32 %v516_v9, %v447_v22 }
 0x110   :  { %v448_v25 = vld [vmem:[#allocation2 + $0x18] sm:$0xff] }
 0x111   :  { %v466_v27 = vadd.f32 %v462_v23, %v458_v24  ;;  %v459_v28 = vadd.f32 %v516_v9, %v448_v25 }
 0x113   :  { %470 = vst.msk [vmem:[%s807_s4 + $0x10] sm:$0xff] %vm22_vm0, %v466_v27  ;;  %v467_v29 = vadd.f32 %v463_v26, %v459_v28 }
 0x115   :  { %471 = vst.msk [vmem:[%s807_s4 + $0x18] sm:$0xff] %vm22_vm0, %v467_v29 }

// kernel: vqvae_forward.78
= control target key start
LH: loop header
LB: loop body
LE: loop exit
PB: predicated region body
PF: predicated region fallthrough
CT: control target
= control target key end

     0   :  { %vm50_vm0 = vcmask 1041408   ;;  %vm19_vm1 = vcmask 31744   ;;  %v155_v1 = vmov 0.0   ;;  %s214_s1 = inlined_call_operand.vmem [shape: bf16[4,4], index: 1, kind: input, shape index: {}]   ;;  %s215_s0 = inlined_call_operand.vmem [shape: bf16[32,4], index: 0, kind: input, shape index: {}]   ;;  %s216_s2 = inlined_call_operand.vmem [shape: f32[1,4], index: 2, kind: input, shape index: {}]   ;;  %s217_s3 = inlined_call_operand.vmem [shape: f32[32,4], index: 3, kind: output, shape index: {}]  }
   0x1   :  { %v32_v0 = vld [vmem:[%s214_s1] sm:$0x3]  ;;  %22 = vst.msk [vmem:[#allocation2 + $0x10] sm:$0xff] %vm19_vm1, %v155_v1  ;;  %20 = vst.msk [vmem:[#allocation2] sm:$0xff] %vm19_vm1, %v155_v1  ;;  %v154_v4 = vld [vmem:[%s215_s0 + $0x8] sm:$0xff]  }
   0x2   :  { %21 = vst.msk [vmem:[#allocation2 + $0x8] sm:$0xff] %vm19_vm1, %v155_v1  ;;  %23 = vst.msk [vmem:[#allocation2 + $0x18] sm:$0xff] %vm19_vm1, %v155_v1  ;;  %151 = vmatprep.subr.msk.bf16.mxu0 %vm50_vm0, %v32_v0  ;;  %v52_v2 = vsel %vm50_vm0, %v32_v0, 0  ;;  %v153_v3 = vld [vmem:[%s215_s0] sm:$0xff]  }
   0x3   :  { %146 = vmatpush3.bf16.msra.mxu0 %v52_v2  ;;  %147 = vmatprep.mubr.msk.bf16.mxu0 %vm19_vm1, %v153_v3  ;;  %v141_v17 = vld [vmem:[%s216_s2] ss:$0 sm:$0xff] }
   0x6   :  { %148 = vmatmul.mubr.msk.bf16.vlgmr.msra.gmra.mrb[0].mxu0 %vm19_vm1, %v154_v4 }
   0x8   :  { %v26_v5 = vld [vmem:[#allocation2 + $0x10] sm:$0xff]  ;;  %v24_v6 = vld [vmem:[#allocation2] sm:$0xff] }
   0x9   :  { %v27_v8 = vld [vmem:[#allocation2 + $0x18] sm:$0xff]  ;;  %v25_v11 = vld [vmem:[#allocation2 + $0x8] sm:$0xff] }
  0xd9   :  { %v149_v7 = vpop.f32.mrb[0].mxu0 }
  0xda   :  { %v105_v9 = vadd.f32 %v149_v7, %v26_v5  ;;  %v88_v10 = vpop.f32.mrb[1].mxu0 }
  0xdb   :  { %v103_v12 = vadd.f32 %v88_v10, %v24_v6  ;;  %v150_v13 = vpop.f32.mrb[2].mxu0 }
  0xdc   :  { %109 = vst.msk [vmem:[#allocation2 + $0x10] sm:$0xff] %vm19_vm1, %v105_v9  ;;  %v106_v14 = vadd.f32 %v150_v13, %v27_v8  ;;  %v91_v15 = vpop.f32.mrb[3].mxu0 }
  0xdd   :  { %107 = vst.msk [vmem:[#allocation2] sm:$0xff] %vm19_vm1, %v103_v12  ;;  %v104_v16 = vadd.f32 %v91_v15, %v25_v11 }
  0xde   :  { %110 = vst.msk [vmem:[#allocation2 + $0x18] sm:$0xff] %vm19_vm1, %v106_v14 }
  0xdf   :  { %108 = vst.msk [vmem:[#allocation2 + $0x8] sm:$0xff] %vm19_vm1, %v104_v16 }
  0xe3   :  { %v116_v18 = vld [vmem:[#allocation2 + $0x10] sm:$0xff] }
  0xe4   :  { %v127_v19 = vadd.f32 %v141_v17, %v116_v18  ;;  %v114_v20 = vld [vmem:[#allocation2] sm:$0xff] }
  0xe5   :  { %v125_v21 = vadd.f32 %v141_v17, %v114_v20  ;;  %v117_v22 = vld [vmem:[#allocation2 + $0x18] sm:$0xff] }
  0xe6   :  { %131 = vst.msk [vmem:[%s217_s3 + $0x10] sm:$0xff] %vm19_vm1, %v127_v19  ;;  %v128_v23 = vadd.f32 %v141_v17, %v117_v22  ;;  %v115_v24 = vld [vmem:[#allocation2 + $0x8] sm:$0xff] }
  0xe7   :  { %129 = vst.msk [vmem:[%s217_s3] sm:$0xff] %vm19_vm1, %v125_v21  ;;  %v126_v25 = vadd.f32 %v141_v17, %v115_v24 }
  0xe8   :  { %132 = vst.msk [vmem:[%s217_s3 + $0x18] sm:$0xff] %vm19_vm1, %v128_v23 }
  0xe9   :  { %130 = vst.msk [vmem:[%s217_s3 + $0x8] sm:$0xff] %vm19_vm1, %v126_v25 }

// kernel: vqvae_forward.79
= control target key start
LH: loop header
LB: loop body
LE: loop exit
PB: predicated region body
PF: predicated region fallthrough
CT: control target
= control target key end

     0   :  { %vm43_vm0 = vcmask 1043456   ;;  %vm30_vm1 = vcmask 31744   ;;  %vm167_vm2 = vcmask 523264   ;;  %v180_v38 = vlaneseq  ;;  %s567_s1 = inlined_call_operand.vmem [shape: f32[4,64], index: 1, kind: input, shape index: {}]   ;;  %s568_s0 = inlined_call_operand.vmem [shape: f32[32,4], index: 0, kind: input, shape index: {}]   ;;  %s569_s3 = inlined_call_operand.vmem [shape: f32[1,64], index: 3, kind: input, shape index: {}]   ;;  %s570_s2 = inlined_call_operand.vmem [shape: f32[64,4], index: 2, kind: input, shape index: {}]   ;;  %s571_s4 = inlined_call_operand.vmem [shape: f32[32,4], index: 4, kind: output, shape index: {}]  }
   0x1   :  { %v21_v0 = vld [vmem:[%s567_s1] sm:$0xf]  ;;  %v18_v2 = vld [vmem:[%s568_s0 + $0x8] sm:$0xff]  ;;  %v19_v4 = vld [vmem:[%s568_s0 + $0x10] sm:$0xff] }
   0x2   :  { %v17_v1 = vld [vmem:[%s568_s0] sm:$0xff]  ;;  %398 = vmatprep.subr.msk.mxu0 %vm43_vm0, %v21_v0  ;;  %v20_v5 = vld [vmem:[%s568_s0 + $0x18] sm:$0xff]  ;;  %v133_v6 = vmul.f32 %v18_v2, %v18_v2  ;;  %v134_v8 = vmul.f32 %v19_v4, %v19_v4  ;;  %v509_v39 = vand.u32 127, %v180_v38  ;;  %v23_v61 = vld [vmem:[%s570_s2 + $0x8] sm:$0xff]  ;;  %v453_v38 = vmov 0.0  }
   0x3   :  { %400 = vmatprep.mubr.msk.f32.mxu0 %vm30_vm1, %v17_v1  ;;  %v132_v3 = vmul.f32 %v17_v1, %v17_v1  ;;  %399 = vmatpush3.msk.msra.mxu0 %vm43_vm0, %v21_v0  ;;  %v135_v7 = vmul.f32 %v20_v5, %v20_v5  ;;  %v372_v19 = vld [vmem:[%s569_s3] ss:$0 sm:$0xff]  ;;  %v24_v62 = vld [vmem:[%s570_s2 + $0x10] sm:$0xff]  ;;  %v25_v0 = vld [vmem:[%s570_s2 + $0x18] sm:$0xff] }
   0x4   :  { %401 = vmatmul.mubr.msk.f32.vlgmr.msra.gmra.mrb[0].mxu0 %vm30_vm1, %v18_v2  ;;  %v139_v9 = vsel %vm30_vm1, %v133_v6, 0.0  ;;  %v142_v12 = vsel %vm30_vm1, %v134_v8, 0.0  ;;  %v22_v60 = vld [vmem:[%s570_s2] sm:$0xff]  ;;  %v432_v1 = vpack.c.bf16 %v25_v0, %v24_v62 }
   0x5   :  { %v136_v10 = vsel %vm30_vm1, %v132_v3, 0.0  ;;  %403 = vmatprep.mubr.msk.f32.mxu0 %vm30_vm1, %v19_v4  ;;  %140 = vadd.xlane.f32.xlu1 %v139_v9  ;;  %v145_v11 = vsel %vm30_vm1, %v135_v7, 0.0  ;;  %v428_v63 = vpack.c.bf16 %v23_v61, %v22_v60 }
   0x6   :  { %137 = vadd.xlane.f32.xlu0 %v136_v10 }
   0x7   :  { %429 = vmatprep.subr.bf16.mxu0 %v428_v63  ;;  %444 = vmatprep.subr.bf16.mxu1 %v428_v63 }
   0x8   :  { %404 = vmatmul.mubr.msk.f32.gmra.mrb[2].mxu0 %vm30_vm1, %v20_v5  ;;  %448 = vmatpush3.bf16.msra.mxu1 %v428_v63 }
   0x9   :  { %146 = vadd.xlane.f32.xlu1 %v145_v11  ;;  %431 = vmatpush3.bf16.msra.mxu0 %v428_v63 }
   0xa   :  { %143 = vadd.xlane.f32.xlu0 %v142_v12  ;;  %433 = vmatprep.subr.bf16.mxu0 %v432_v1 }
   0xb   :  { %445 = vmatprep.subr.bf16.mxu1 %v432_v1 }
   0xc   :  { %449 = vmatpush3.bf16.msra.mxu1 %v432_v1 }
   0xd   :  { %435 = vmatpush3.bf16.msra.mxu0 %v432_v1 }
  0x92   :  { %v141_v13 = vpop.xlane.xlu1 %140 }
  0x93   :  { %v138_v14 = vpop.xlane.xlu0 %137 }
  0x96   :  { %v147_v23 = vpop.xlane.xlu1 %146 }
  0x97   :  { %v144_v26 = vpop.xlane.xlu0 %143 }
  0xd7   :  { %v402_v15 = vpop.f32.mrb[0].mxu0 }
  0xd8   :  { %v149_v16 = vmul.f32 2.0, %v402_v15  ;;  %v113_v17 = vpop.f32.mrb[1].mxu0 }
  0xd9   :  { %v148_v18 = vmul.f32 2.0, %v113_v17 }
  0xda   :  { %v153_v20 = vsub.f32 %v141_v13, %v149_v16 }
  0xdb   :  { %v152_v21 = vsub.f32 %v138_v14, %v148_v18  ;;  %v405_v22 = vpop.f32.mrb[2].mxu0  ;;  %v26_v18 = vld [vmem:[%s570_s2 + $0x20] sm:$0xff] }
  0xdc   :  { %v151_v24 = vmul.f32 2.0, %v405_v22  ;;  %v123_v25 = vpop.f32.mrb[3].mxu0  ;;  %v164_v32 = vadd.f32 %v372_v19, %v153_v20  ;;  %v29_v22 = vld [vmem:[%s570_s2 + $0x38] sm:$0xff] }
  0xdd   :  { %v150_v27 = vmul.f32 2.0, %v123_v25  ;;  %v163_v28 = vadd.f32 %v372_v19, %v152_v21  ;;  %v28_v21 = vld [vmem:[%s570_s2 + $0x30] sm:$0xff] }
  0xde   :  { %v155_v29 = vsub.f32 %v147_v23, %v151_v24  ;;  %v171_v34 = vsel %vm167_vm2, %v164_v32, inf  ;;  %v440_v23 = vpack.c.bf16 %v29_v22, %v28_v21 }
  0xdf   :  { %v154_v30 = vsub.f32 %v144_v26, %v150_v27  ;;  %v168_v31 = vsel %vm167_vm2, %v163_v28, inf }
  0xe0   :  { %169 = vmin.xlane.f32.xlu0 %v168_v31  ;;  %v166_v36 = vadd.f32 %v372_v19, %v155_v29 }
  0xe1   :  { %v165_v33 = vadd.f32 %v372_v19, %v154_v30  ;;  %v27_v19 = vld [vmem:[%s570_s2 + $0x28] sm:$0xff] }
  0xe2   :  { %v177_v37 = vsel %vm167_vm2, %v166_v36, inf  ;;  %v436_v20 = vpack.c.bf16 %v27_v19, %v26_v18 }
  0xe3   :  { %v174_v35 = vsel %vm167_vm2, %v165_v33, inf }
  0xe4   :  { %172 = vmin.xlane.f32.xlu0 %v171_v34  ;;  %175 = vmin.xlane.f32.xlu1 %v174_v35 }
  0xe5   :  { %437 = vmatprep.subr.bf16.mxu0 %v436_v20  ;;  %446 = vmatprep.subr.bf16.mxu1 %v436_v20 }
  0xe6   :  { %439 = vmatpush3.bf16.msra.mxu0 %v436_v20  ;;  %450 = vmatpush3.bf16.msra.mxu1 %v436_v20 }
  0xe7   :  { %441 = vmatprep.subr.bf16.mxu0 %v440_v23  ;;  %447 = vmatprep.subr.bf16.mxu1 %v440_v23 }
  0xe8   :  { %178 = vmin.xlane.f32.xlu1 %v177_v37 }
  0xea   :  { %443 = vmatpush3.bf16.msra.mxu0 %v440_v23  ;;  %451 = vmatpush3.bf16.msra.mxu1 %v440_v23 }
 0x16d   :  { %v170_v40 = vpop.xlane.xlu0 %169 }
 0x16e   :  { %vm182_vm3 = vcmp.le.f32.partialorder %v163_v28, %v170_v40 }
 0x16f   :  { %v186_v41 = vsel %vm182_vm3, %v509_v39, 64 }
 0x170   :  { %v190_v42 = vsel %vm167_vm2, %v186_v41, 2147483647 }
 0x171   :  { %v173_v43 = vpop.xlane.xlu0 %172  ;;  %v176_v44 = vpop.xlane.xlu1 %175  ;;  %v192_v45 = vshra.s32 %v190_v42, 16  ;;  %v191_v2 = vand.u32 65535, %v190_v42 }
 0x172   :  { %vm183_vm4 = vcmp.le.f32.partialorder %v164_v32, %v173_v43  ;;  %vm184_vm5 = vcmp.le.f32.partialorder %v165_v33, %v176_v44 }
 0x173   :  { %v187_v46 = vsel %vm183_vm4, %v509_v39, 64  ;;  %v188_v47 = vsel %vm184_vm5, %v509_v39, 64  ;;  %v194_v48 = vcvt.s32.f32 %v192_v45  ;;  %v193_v4 = vcvt.s32.f32 %v191_v2 }
 0x174   :  { %v205_v49 = vsel %vm167_vm2, %v187_v46, 2147483647  ;;  %v220_v50 = vsel %vm167_vm2, %v188_v47, 2147483647 }
 0x175   :  { %195 = vmin.xlane.f32.xlu0 %v194_v48  ;;  %v179_v51 = vpop.xlane.xlu1 %178  ;;  %v207_v52 = vshra.s32 %v205_v49, 16  ;;  %v222_v53 = vshra.s32 %v220_v50, 16  ;;  %v206_v5 = vand.u32 65535, %v205_v49  ;;  %v221_v6 = vand.u32 65535, %v220_v50 }
 0x176   :  { %vm185_vm6 = vcmp.le.f32.partialorder %v166_v36, %v179_v51 }
 0x177   :  { %v189_v54 = vsel %vm185_vm6, %v509_v39, 64  ;;  %v209_v55 = vcvt.s32.f32 %v207_v52  ;;  %v224_v56 = vcvt.s32.f32 %v222_v53  ;;  %v208_v10 = vcvt.s32.f32 %v206_v5 }
 0x178   :  { %v235_v57 = vsel %vm167_vm2, %v189_v54, 2147483647  ;;  %v223_v11 = vcvt.s32.f32 %v221_v6 }
 0x179   :  { %210 = vmin.xlane.f32.xlu0 %v209_v55  ;;  %225 = vmin.xlane.f32.xlu1 %v224_v56  ;;  %v237_v58 = vshra.s32 %v235_v57, 16  ;;  %v236_v12 = vand.u32 65535, %v235_v57 }
 0x17b   :  { %v239_v59 = vcvt.s32.f32 %v237_v58  ;;  %v238_v16 = vcvt.s32.f32 %v236_v12 }
 0x17d   :  { %240 = vmin.xlane.f32.xlu1 %v239_v59 }
 0x202   :  { %v196_v3 = vpop.xlane.xlu0 %195 }
 0x203   :  { %vm197_vm7 = vcmp.eq.f32.partialorder %v194_v48, %v196_v3  ;;  %v202_v24 = vcvt.f32.s32 %v196_v3 }
 0x204   :  { %v198_v7 = vsel %vm197_vm7, %v193_v4, inf }
 0x205   :  { %199 = vmin.xlane.f32.xlu0 %v198_v7  ;;  %v203_v28 = vshll.u32 %v202_v24, 16 }
 0x206   :  { %v211_v8 = vpop.xlane.xlu0 %210  ;;  %v226_v9 = vpop.xlane.xlu1 %225 }
 0x207   :  { %vm212_vm8 = vcmp.eq.f32.partialorder %v209_v55, %v211_v8  ;;  %vm227_vm9 = vcmp.eq.f32.partialorder %v224_v56, %v226_v9  ;;  %v217_v25 = vcvt.f32.s32 %v211_v8  ;;  %v232_v26 = vcvt.f32.s32 %v226_v9 }
 0x208   :  { %v213_v13 = vsel %vm212_vm8, %v208_v10, inf  ;;  %v228_v14 = vsel %vm227_vm9, %v223_v11, inf }
 0x209   :  { %214 = vmin.xlane.f32.xlu0 %v213_v13  ;;  %229 = vmin.xlane.f32.xlu1 %v228_v14  ;;  %v218_v31 = vshll.u32 %v217_v25, 16  ;;  %v233_v32 = vshll.u32 %v232_v26, 16 }
 0x20a   :  { %v241_v15 = vpop.xlane.xlu1 %240 }
 0x20b   :  { %vm242_vm10 = vcmp.eq.f32.partialorder %v239_v59, %v241_v15  ;;  %v247_v35 = vcvt.f32.s32 %v241_v15 }
 0x20c   :  { %v243_v17 = vsel %vm242_vm10, %v238_v16, inf }
 0x20d   :  { %244 = vmin.xlane.f32.xlu1 %v243_v17  ;;  %v248_v44 = vshll.u32 %v247_v35, 16 }
 0x292   :  { %v200_v27 = vpop.xlane.xlu0 %199 }
 0x293   :  { %v201_v29 = vcvt.f32.s32 %v200_v27 }
 0x295   :  { %v204_v30 = vadd.s32 %v203_v28, %v201_v29 }
 0x296   :  { %v215_v33 = vpop.xlane.xlu0 %214  ;;  %v230_v34 = vpop.xlane.xlu1 %229 }
 0x297   :  { %v216_v36 = vcvt.f32.s32 %v215_v33  ;;  %v231_v37 = vcvt.f32.s32 %v230_v34  ;;  %vm250_vm11 = vcmp.eq.s32.totalorder %v509_v39, %v204_v30 }
 0x298   :  { %v373_v40 = vsel %vm250_vm11, 1.0, %v453_v38 }
 0x299   :  { %v219_v41 = vadd.s32 %v218_v31, %v216_v36  ;;  %v234_v42 = vadd.s32 %v233_v32, %v231_v37  ;;  %422 = vmatprep.mubr.msk.f32.mxu0 %vm167_vm2, %v373_v40 }
 0x29a   :  { %v245_v43 = vpop.xlane.xlu1 %244 }
 0x29b   :  { %vm251_vm12 = vcmp.eq.s32.totalorder %v509_v39, %v219_v41  ;;  %v246_v45 = vcvt.f32.s32 %v245_v43  ;;  %vm252_vm13 = vcmp.eq.s32.totalorder %v509_v39, %v234_v42 }
 0x29c   :  { %v374_v46 = vsel %vm251_vm12, 1.0, %v453_v38  ;;  %v375_v47 = vsel %vm252_vm13, 1.0, %v453_v38 }
 0x29d   :  { %v249_v48 = vadd.s32 %v248_v44, %v246_v45  ;;  %423 = vmatmul.mubr.msk.f32.vlgmr.msra.gmra.mrb[4].mxu0 %vm167_vm2, %v374_v46  ;;  %425 = vmatprep.mubr.msk.f32.mxu1 %vm167_vm2, %v375_v47 }
 0x29f   :  { %vm253_vm14 = vcmp.eq.s32.totalorder %v509_v39, %v249_v48 }
 0x2a0   :  { %v376_v49 = vsel %vm253_vm14, 1.0, %v453_v38 }
 0x2a1   :  { %426 = vmatmul.mubr.msk.f32.vlgmr.msra.gmra.mrb[0].mxu1 %vm167_vm2, %v376_v49 }
 0x370   :  { %v424_v50 = vpop.f32.mrb[4].mxu0 }
 0x371   :  { %360 = vst.msk [vmem:[%s571_s4 + $0x8] sm:$0xff] %vm30_vm1, %v424_v50  ;;  %v340_v51 = vpop.f32.mrb[5].mxu0 }
 0x372   :  { %359 = vst.msk [vmem:[%s571_s4] sm:$0xff] %vm30_vm1, %v340_v51 }
 0x374   :  { %v427_v52 = vpop.f32.mrb[0].mxu1 }
 0x375   :  { %362 = vst.msk [vmem:[%s571_s4 + $0x18] sm:$0xff] %vm30_vm1, %v427_v52  ;;  %v350_v39 = vpop.f32.mrb[1].mxu1 }
 0x376   :  { %361 = vst.msk [vmem:[%s571_s4 + $0x10] sm:$0xff] %vm30_vm1, %v350_v39 }

// kernel: vqvae_forward.81
= control target key start
LH: loop header
LB: loop body
LE: loop exit
PB: predicated region body
PF: predicated region fallthrough
CT: control target
= control target key end

     0   :  { %vm19_vm0 = vcmask 261120   ;;  %v187_v1 = vmov 0.0   ;;  %vm62_vm1 = vcmask 293888   ;;  %vm69_vm2 = vcmask 1041408   ;;  %s250_s1 = inlined_call_operand.vmem [shape: bf16[36,32], index: 1, kind: input, shape index: {}]   ;;  %s251_s0 = inlined_call_operand.vmem [shape: bf16[32,36], index: 0, kind: input, shape index: {}]   ;;  %s252_s2 = inlined_call_operand.vmem [shape: f32[1,32], index: 2, kind: input, shape index: {}]   ;;  %s253_s3 = inlined_call_operand.vmem [shape: f32[32,32], index: 3, kind: output, shape index: {}]  }
   0x1   :  { %v182_v0 = vld [vmem:[%s250_s1] sm:$0xff]   ;;  %22 = vst.msk [vmem:[#allocation2 + $0x10] sm:$0xff] %vm19_vm0, %v187_v1  ;;  %20 = vst.msk [vmem:[#allocation2] sm:$0xff] %vm19_vm0, %v187_v1  ;;  %v183_v2 = vld [vmem:[%s250_s1 + $0x8] sm:$0xff]  }
   0x2   :  { %21 = vst.msk [vmem:[#allocation2 + $0x8] sm:$0xff] %vm19_vm0, %v187_v1  ;;  %23 = vst.msk [vmem:[#allocation2 + $0x18] sm:$0xff] %vm19_vm0, %v187_v1  ;;  %170 = vmatprep.subr.bf16.mxu0 %v182_v0  ;;  %v185_v3 = vld [vmem:[%s251_s0] sm:$0xff]   ;;  %v184_v4 = vld [vmem:[%s250_s1 + $0x10] ss:$0 sps:$4 sm:$0x33]  }
   0x3   :  { %171 = vmatpush3.bf16.msra.mxu0 %v182_v0  ;;  %176 = vmatprep.mubr.msk.bf16.mxu0 %vm62_vm1, %v185_v3  ;;  %v71_v5 = vsel %vm69_vm2, %v184_v4, 0  ;;  %v186_v6 = vld [vmem:[%s251_s0 + $0x8] sm:$0xff]   ;;  %v164_v19 = vld [vmem:[%s252_s2] ss:$0 sm:$0xff] }
   0x4   :  { %172 = vmatprep.subr.bf16.mxu0 %v183_v2 }
   0x7   :  { %173 = vmatpush3.bf16.msra.mxu0 %v183_v2 }
   0x8   :  { %180 = vmatprep.subr.msk.bf16.mxu0 %vm69_vm2, %v184_v4  ;;  %v26_v7 = vld [vmem:[#allocation2 + $0x10] sm:$0xff]  ;;  %v24_v8 = vld [vmem:[#allocation2] sm:$0xff] }
   0x9   :  { %v27_v10 = vld [vmem:[#allocation2 + $0x18] sm:$0xff]  ;;  %v25_v13 = vld [vmem:[#allocation2 + $0x8] sm:$0xff] }
   0xb   :  { %175 = vmatpush3.bf16.msra.mxu0 %v71_v5 }
   0xe   :  { %177 = vmatmul.mubr.msk.bf16.vlgmr.msra.gmra.mrb[0].mxu0 %vm62_vm1, %v186_v6 }
  0xe1   :  { %v178_v9 = vpop.f32.mrb[0].mxu0 }
  0xe2   :  { %v124_v11 = vadd.f32 %v178_v9, %v26_v7  ;;  %v107_v12 = vpop.f32.mrb[1].mxu0 }
  0xe3   :  { %v122_v14 = vadd.f32 %v107_v12, %v24_v8  ;;  %v179_v15 = vpop.f32.mrb[2].mxu0 }
  0xe4   :  { %129 = vst.msk [vmem:[#allocation2 + $0x10] sm:$0xff] %vm19_vm0, %v124_v11  ;;  %v125_v16 = vadd.f32 %v179_v15, %v27_v10  ;;  %v110_v17 = vpop.f32.mrb[3].mxu0 }
  0xe5   :  { %127 = vst.msk [vmem:[#allocation2] sm:$0xff] %vm19_vm0, %v122_v14  ;;  %v123_v18 = vadd.f32 %v110_v17, %v25_v13 }
  0xe6   :  { %130 = vst.msk [vmem:[#allocation2 + $0x18] sm:$0xff] %vm19_vm0, %v125_v16 }
  0xe7   :  { %128 = vst.msk [vmem:[#allocation2 + $0x8] sm:$0xff] %vm19_vm0, %v123_v18 }
  0xeb   :  { %v136_v20 = vld [vmem:[#allocation2 + $0x10] sm:$0xff] }
  0xec   :  { %v147_v21 = vadd.f32 %v164_v19, %v136_v20  ;;  %v134_v22 = vld [vmem:[#allocation2] sm:$0xff] }
  0xed   :  { %v145_v23 = vadd.f32 %v164_v19, %v134_v22  ;;  %v137_v24 = vld [vmem:[#allocation2 + $0x18] sm:$0xff] }
  0xee   :  { %151 = vst.msk [vmem:[%s253_s3 + $0x10] sm:$0xff] %vm19_vm0, %v147_v21  ;;  %v148_v25 = vadd.f32 %v164_v19, %v137_v24  ;;  %v135_v26 = vld [vmem:[#allocation2 + $0x8] sm:$0xff] }
  0xef   :  { %149 = vst.msk [vmem:[%s253_s3] sm:$0xff] %vm19_vm0, %v145_v23  ;;  %v146_v27 = vadd.f32 %v164_v19, %v135_v26 }
  0xf0   :  { %152 = vst.msk [vmem:[%s253_s3 + $0x18] sm:$0xff] %vm19_vm0, %v148_v25 }
  0xf1   :  { %150 = vst.msk [vmem:[%s253_s3 + $0x8] sm:$0xff] %vm19_vm0, %v146_v27 }

// kernel: vqvae_forward.105
= control target key start
LH: loop header
LB: loop body
LE: loop exit
PB: predicated region body
PF: predicated region fallthrough
CT: control target
= control target key end

     0   :  { %s1872_s12 = smov 0   ;;  %s1874_s13 = smov 0   ;;  %s2235_s0 = inlined_call_operand.vmem [shape: bf16[512,288], index: 0, kind: input, shape index: {}]   ;;  %s2236_s1 = inlined_call_operand.vmem [shape: bf16[288,3], index: 1, kind: input, shape index: {}]   ;;  %s2237_s2 = inlined_call_operand.vmem [shape: f32[1,3], index: 2, kind: input, shape index: {}]   ;;  %s2238_s3 = inlined_call_operand.vmem [shape: f32[512,3], index: 3, kind: output, shape index: {}]  }
   0x1   :  { %s1876_s14 = smov 0  }
   0x2 LB: > { %s32_s15 = sadd.s32 1, %s1845_s13  ;;  %p1447_p0 = scmp.ge.s32.totalorder %s1849_s14, 1  ;;  %s1849_s14 = sphi %s1876_s14, %s13_s14   ;;  %s1845_s13 = sphi %s1874_s13, %s2240_s13   ;;  %s1841_s12 = sphi %s1872_s12, %s2239_s12  }
   0x3   : > { %p34_p1 = scmp.ge.s32.totalorder %s32_s15, 2  ;;  %p191_p2 = scmp.lt.s32.totalorder %s1849_s14, 3 }
   0x5   : > { %s2242_s15 = smov (%p34_p1, %s32_s15), 0  ;;  %p192_p3 = pnand %p1447_p0, %p191_p2 }
   0x6   : > { %v1745_v0 = vld [vmem:[%s2236_s1 + $0x40] sm:$0xff] (!%p192_p3)   ;;  %s1448_s18 = sshll.u32 (!%p192_p3), %s1841_s12, 5  ;;  %v1747_v2 = vld [vmem:[%s2236_s1 + $0x48] sm:$0xff] (!%p192_p3)   ;;  %v1749_v4 = vld [vmem:[%s2236_s1 + $0x50] sm:$0xff] (!%p192_p3)   ;;  %vm785_vm0 = vcmask (!%p192_p3), 261120   ;;  %vm272_vm1 = vcmask (!%p192_p3), 23552  }
   0x7   : > { %195 = sbr.rel (%p192_p3) target bundleno = 360 (0x168), region = 32  ;;  %v1746_v1 = vld [vmem:[%s2236_s1] sm:$0xff] (!%p192_p3)   ;;  %1537 = vmatprep.subr.bf16.mxu0 (!%p192_p3), %v1745_v0  ;;  %1703 = vmatprep.subr.bf16.mxu1 (!%p192_p3), %v1745_v0  ;;  %p236_p4 = scmp.lt.s32.totalorder (!%p192_p3), %s1448_s18, 63  ;;  %v1748_v3 = vld [vmem:[%s2236_s1 + $0x8] sm:$0xff] (!%p192_p3)   ;;  %v1750_v5 = vld [vmem:[%s2236_s1 + $0x10] sm:$0xff] (!%p192_p3)  }
   0x8   : > { %1538 = vmatpush3.bf16.msra.mxu0 (!%p192_p3), %v1746_v1  ;;  %1711 = vmatpush3.bf16.msra.mxu1 (!%p192_p3), %v1746_v1  ;;  %v1751_v6 = vld [vmem:[%s2236_s1 + $0x58] sm:$0xff] (!%p192_p3)   ;;  %v1753_v8 = vld [vmem:[%s2236_s1 + $0x60] sm:$0xff] (!%p192_p3)   ;;  %v1755_v10 = vld [vmem:[%s2236_s1 + $0x68] sm:$0xff] (!%p192_p3)  }
   0x9   : > { %1539 = vmatprep.subr.bf16.mxu0 (!%p192_p3), %v1747_v2  ;;  %1704 = vmatprep.subr.bf16.mxu1 (!%p192_p3), %v1747_v2  ;;  %v1752_v7 = vld [vmem:[%s2236_s1 + $0x18] sm:$0xff] (!%p192_p3)   ;;  %v1754_v9 = vld [vmem:[%s2236_s1 + $0x20] sm:$0xff] (!%p192_p3)   ;;  %v1756_v13 = vld [vmem:[%s2236_s1 + $0x28] sm:$0xff] (!%p192_p3)   ;;  %v1851_v2 = vmov (!%p192_p3), 0.0  }
   0xa   : > { %v1757_v14 = vld [vmem:[%s2236_s1 + $0x70] sm:$0xff] (!%p192_p3)   ;;  %v1759_v16 = vld [vmem:[%s2236_s1 + $0x78] sm:$0xff] (!%p192_p3)   ;;  %v1767_v18 = vld [vmem:[%s2236_s1 + $0x80] sm:$0xff] (!%p192_p3)   ;;  %275 = vst.msk [vmem:[#allocation2 + $0x10] sm:$0xff] (!%p192_p3), %vm272_vm1, %v1851_v2 }
   0xb   : > { %v1758_v15 = vld [vmem:[%s2236_s1 + $0x30] sm:$0xff] (!%p192_p3)   ;;  %v1760_v17 = vld [vmem:[%s2236_s1 + $0x38] sm:$0xff] (!%p192_p3)   ;;  %v1780_v23 = vld [vmem:[%s2236_s1 + $0x88] sm:$0xff] (!%p192_p3)   ;;  %273 = vst.msk [vmem:[#allocation2] sm:$0xff] (!%p192_p3), %vm272_vm1, %v1851_v2 }
   0xc   : > { %1540 = vmatpush3.bf16.msra.mxu0 (!%p192_p3), %v1748_v3  ;;  %1712 = vmatpush3.bf16.msra.mxu1 (!%p192_p3), %v1748_v3  ;;  %274 = vst.msk [vmem:[#allocation2 + $0x8] sm:$0xff] (!%p192_p3), %vm272_vm1, %v1851_v2  ;;  %276 = vst.msk [vmem:[#allocation2 + $0x18] sm:$0xff] (!%p192_p3), %vm272_vm1, %v1851_v2 }
   0xd   : > { %1541 = vmatprep.subr.bf16.mxu0 (!%p192_p3), %v1749_v4  ;;  %1705 = vmatprep.subr.bf16.mxu1 (!%p192_p3), %v1749_v4  ;;  %277 = vst.msk [vmem:[#allocation2 + $0x20] sm:$0xff] (!%p192_p3), %vm272_vm1, %v1851_v2  ;;  %278 = vst.msk [vmem:[#allocation2 + $0x28] sm:$0xff] (!%p192_p3), %vm272_vm1, %v1851_v2 }
   0xe   : > { %s2244_s18 = smov (!%p236_p4, %s1448_s18), 63  ;;  %279 = vst.msk [vmem:[#allocation2 + $0x30] sm:$0xff] %vm272_vm1, %v1851_v2  ;;  %280 = vst.msk [vmem:[#allocation2 + $0x38] sm:$0xff] %vm272_vm1, %v1851_v2 }
   0xf   : > { %s1719_s4 = smul.u32 12, %s2244_s18  ;;  %281 = vst.msk [vmem:[#allocation2 + $0x40] sm:$0xff] %vm272_vm1, %v1851_v2  ;;  %282 = vst.msk [vmem:[#allocation2 + $0x48] sm:$0xff] %vm272_vm1, %v1851_v2  ;;  %s1451_s7 = sshll.u32 %s2244_s18, 3 }
  0x10   : > { %1542 = vmatpush3.bf16.msra.mxu0 %v1750_v5  ;;  %1713 = vmatpush3.bf16.msra.mxu1 %v1750_v5  ;;  %283 = vst.msk [vmem:[#allocation2 + $0x50] sm:$0xff] %vm272_vm1, %v1851_v2  ;;  %284 = vst.msk [vmem:[#allocation2 + $0x58] sm:$0xff] %vm272_vm1, %v1851_v2 }
  0x11   : > { %1543 = vmatprep.subr.bf16.mxu0 %v1751_v6  ;;  %1706 = vmatprep.subr.bf16.mxu1 %v1751_v6  ;;  %s1923_s11 = scalar_lea.vmem %s2235_s0, %s1719_s4  ;;  %285 = vst.msk [vmem:[#allocation2 + $0x60] sm:$0xff] %vm272_vm1, %v1851_v2  ;;  %286 = vst.msk [vmem:[#allocation2 + $0x68] sm:$0xff] %vm272_vm1, %v1851_v2 }
  0x12   : > { %v1763_v11 = vld [vmem:[%s1923_s11 + $0x4] ss:$12 sps:$4 sm:$0xff]   ;;  %v1761_v19 = vld [vmem:[%s1923_s11] ss:$12 sps:$4 sm:$0xff]   ;;  %v1768_v21 = vld [vmem:[%s1923_s11 + $0x1c] ss:$12 sps:$4 sm:$0xff]  }
  0x13   : > { %v1766_v12 = vld [vmem:[%s1923_s11 + $0x124] ss:$12 sps:$4 sm:$0xff]   ;;  %866 = vmatprep.mubr.bf16.mxu0 %v1763_v11  ;;  %v1764_v20 = vld [vmem:[%s1923_s11 + $0x120] ss:$12 sps:$4 sm:$0xff]   ;;  %v1770_v22 = vld [vmem:[%s1923_s11 + $0x13c] ss:$12 sps:$4 sm:$0xff]  }
  0x14   : > { %1544 = vmatpush3.bf16.msra.mxu0 %v1752_v7  ;;  %1714 = vmatpush3.bf16.msra.mxu1 %v1752_v7  ;;  %v1772_v24 = vld [vmem:[%s1923_s11 + $0x18] ss:$12 sps:$4 sm:$0xff]   ;;  %v1774_v26 = vld [vmem:[%s1923_s11 + $0x34] ss:$12 sps:$4 sm:$0xff]   ;;  %v1778_v28 = vld [vmem:[%s1923_s11 + $0x30] ss:$12 sps:$4 sm:$0xff]  }
  0x15   : > { %1545 = vmatprep.subr.bf16.mxu0 %v1753_v8  ;;  %1707 = vmatprep.subr.bf16.mxu1 %v1753_v8  ;;  %v1773_v25 = vld [vmem:[%s1923_s11 + $0x138] ss:$12 sps:$4 sm:$0xff]   ;;  %v1776_v27 = vld [vmem:[%s1923_s11 + $0x154] ss:$12 sps:$4 sm:$0xff]   ;;  %v1779_v29 = vld [vmem:[%s1923_s11 + $0x150] ss:$12 sps:$4 sm:$0xff]  }
  0x16   : > { %962 = vmatprep.mubr.bf16.mxu1 %v1766_v12  ;;  %v1781_v30 = vld [vmem:[%s1923_s11 + $0x4c] ss:$12 sps:$4 sm:$0xff]   ;;  %v1785_v32 = vld [vmem:[%s1923_s11 + $0x48] ss:$12 sps:$4 sm:$0xff]   ;;  %v1787_v34 = vld [vmem:[%s1923_s11 + $0x64] ss:$12 sps:$4 sm:$0xff]  }
  0x17   : > { %v1783_v31 = vld [vmem:[%s1923_s11 + $0x16c] ss:$12 sps:$4 sm:$0xff]   ;;  %v1786_v33 = vld [vmem:[%s1923_s11 + $0x168] ss:$12 sps:$4 sm:$0xff]   ;;  %v1796_v41 = vld [vmem:[%s1923_s11 + $0x50] ss:$12 sps:$4 sm:$0xff]  }
  0x18   : > { %1546 = vmatpush3.bf16.msra.mxu0 %v1754_v9  ;;  %1715 = vmatpush3.bf16.msra.mxu1 %v1754_v9  ;;  %v1789_v35 = vld [vmem:[%s1923_s11 + $0x8] ss:$12 sps:$4 sm:$0xff]   ;;  %v1790_v36 = vld [vmem:[%s1923_s11 + $0x60] ss:$12 sps:$4 sm:$0xff]   ;;  %v1794_v39 = vld [vmem:[%s1923_s11 + $0x38] ss:$12 sps:$4 sm:$0xff]  }
  0x19   : > { %1547 = vmatprep.subr.bf16.mxu0 %v1755_v10  ;;  %1708 = vmatprep.subr.bf16.mxu1 %v1755_v10  ;;  %v1791_v37 = vld [vmem:[%s1923_s11 + $0x20] ss:$12 sps:$4 sm:$0xff]   ;;  %v1792_v38 = vld [vmem:[%s1923_s11 + $0x7c] ss:$12 sps:$4 sm:$0xff]   ;;  %v1795_v40 = vld [vmem:[%s1923_s11 + $0x78] ss:$12 sps:$4 sm:$0xff]  }
  0x1a   : > { %v1797_v42 = vld [vmem:[%s1923_s11 + $0x94] ss:$12 sps:$4 sm:$0xff]   ;;  %v1800_v44 = vld [vmem:[%s1923_s11 + $0x90] ss:$12 sps:$4 sm:$0xff]   ;;  %v1802_v46 = vld [vmem:[%s1923_s11 + $0xac] ss:$12 sps:$4 sm:$0xff]  }
  0x1b   : > { %v1799_v43 = vld [vmem:[%s1923_s11 + $0x68] ss:$12 sps:$4 sm:$0xff]   ;;  %v1801_v45 = vld [vmem:[%s1923_s11 + $0x80] ss:$12 sps:$4 sm:$0xff]   ;;  %v1804_v47 = vld [vmem:[%s1923_s11 + $0x98] ss:$12 sps:$4 sm:$0xff]  }
  0x1c   : > { %1548 = vmatpush3.bf16.msra.mxu0 %v1756_v13  ;;  %1716 = vmatpush3.bf16.msra.mxu1 %v1756_v13  ;;  %v1805_v48 = vld [vmem:[%s1923_s11 + $0xa8] ss:$12 sps:$4 sm:$0xff]   ;;  %v1806_v49 = vld [vmem:[%s1923_s11 + $0xb0] ss:$12 sps:$4 sm:$0xff]   ;;  %v1810_v52 = vld [vmem:[%s1923_s11 + $0xc0] ss:$12 sps:$4 sm:$0xff]  }
  0x1d   : > { %1549 = vmatprep.subr.bf16.mxu0 %v1757_v14  ;;  %1709 = vmatprep.subr.bf16.mxu1 %v1757_v14  ;;  %v1807_v50 = vld [vmem:[%s1923_s11 + $0xc4] ss:$12 sps:$4 sm:$0xff]   ;;  %v1809_v51 = vld [vmem:[%s1923_s11 + $0xc8] ss:$12 sps:$4 sm:$0xff]   ;;  %v1811_v53 = vld [vmem:[%s1923_s11 + $0xe0] ss:$12 sps:$4 sm:$0xff]  }
  0x1e   : > { %v1812_v54 = vld [vmem:[%s1923_s11 + $0xdc] ss:$12 sps:$4 sm:$0xff]   ;;  %v1814_v55 = vld [vmem:[%s1923_s11 + $0xf8] ss:$12 sps:$4 sm:$0xff]   ;;  %v1817_v58 = vld [vmem:[%s1923_s11 + $0xf4] ss:$12 sps:$4 sm:$0xff]  }
  0x1f   : > { %v1815_v56 = vld [vmem:[%s1923_s11 + $0xd8] ss:$12 sps:$4 sm:$0xff]   ;;  %v1816_v57 = vld [vmem:[%s1923_s11 + $0x110] ss:$12 sps:$4 sm:$0xff]   ;;  %v1819_v59 = vld [vmem:[%s1923_s11 + $0x128] ss:$12 sps:$4 sm:$0xff]  }
  0x20   : > { %1550 = vmatpush3.bf16.msra.mxu0 %v1758_v15  ;;  %1717 = vmatpush3.bf16.msra.mxu1 %v1758_v15  ;;  %v1820_v60 = vld [vmem:[%s1923_s11 + $0xf0] ss:$12 sps:$4 sm:$0xff]   ;;  %v1821_v61 = vld [vmem:[%s1923_s11 + $0x140] ss:$12 sps:$4 sm:$0xff]   ;;  %v1824_v63 = vld [vmem:[%s1923_s11 + $0x158] ss:$12 sps:$4 sm:$0xff]  }
  0x21   : > { %1551 = vmatprep.subr.bf16.mxu0 %v1759_v16  ;;  %1710 = vmatprep.subr.bf16.mxu1 %v1759_v16  ;;  %v1822_v62 = vld [vmem:[%s1923_s11 + $0x10c] ss:$12 sps:$4 sm:$0xff]   ;;  %v1825_v0 = vld [vmem:[%s1923_s11 + $0x108] ss:$12 sps:$4 sm:$0xff]   ;;  %v1826_v1 = vld [vmem:[%s1923_s11 + $0x170] ss:$12 sps:$4 sm:$0xff]   ;;  %s2083_s11 = scalar_lea.vmem %s2238_s3, %s1451_s7 }
  0x22   : > { %287 = vst.msk [vmem:[#allocation2 + $0x70] sm:$0xff] %vm272_vm1, %v1851_v2  ;;  %288 = vst.msk [vmem:[#allocation2 + $0x78] sm:$0xff] %vm272_vm1, %v1851_v2 }
  0x23   : > { %289 = vst.msk [vmem:[#allocation2 + $0x80] sm:$0xff] %vm272_vm1, %v1851_v2  ;;  %290 = vst.msk [vmem:[#allocation2 + $0x88] sm:$0xff] %vm272_vm1, %v1851_v2 }
  0x24   : > { %1552 = vmatpush3.bf16.msra.mxu0 %v1760_v17  ;;  %1718 = vmatpush3.bf16.msra.mxu1 %v1760_v17  ;;  %291 = vst.msk [vmem:[#allocation2 + $0x90] sm:$0xff] %vm272_vm1, %v1851_v2  ;;  %292 = vst.msk [vmem:[#allocation2 + $0x98] sm:$0xff] %vm272_vm1, %v1851_v2 }
  0x25   : > { %1667 = vmatprep.subr.bf16.mxu1 %v1767_v18  ;;  %293 = vst.msk [vmem:[#allocation2 + $0xa0] sm:$0xff] %vm272_vm1, %v1851_v2  ;;  %294 = vst.msk [vmem:[#allocation2 + $0xa8] sm:$0xff] %vm272_vm1, %v1851_v2 }
  0x26   : > { %295 = vst.msk [vmem:[#allocation2 + $0xb0] sm:$0xff] %vm272_vm1, %v1851_v2  ;;  %296 = vst.msk [vmem:[#allocation2 + $0xb8] sm:$0xff] %vm272_vm1, %v1851_v2 }
  0x27   : > { %867 = vmatmul.mubr.bf16.vlgmr.msra.gmra.mrb[0].mxu0 %v1761_v19  ;;  %963 = vmatmul.mubr.bf16.vlgmr.msra.gmra.mrb[0].mxu1 %v1764_v20  ;;  %297 = vst.msk [vmem:[#allocation2 + $0xc0] sm:$0xff] %vm272_vm1, %v1851_v2  ;;  %298 = vst.msk [vmem:[#allocation2 + $0xc8] sm:$0xff] %vm272_vm1, %v1851_v2 }
  0x28   : > { %1668 = vmatpush3.bf16.msra.mxu1 %v1767_v18  ;;  %874 = vmatprep.mubr.bf16.mxu0 %v1768_v21  ;;  %299 = vst.msk [vmem:[#allocation2 + $0xd0] sm:$0xff] %vm272_vm1, %v1851_v2  ;;  %300 = vst.msk [vmem:[#allocation2 + $0xd8] sm:$0xff] %vm272_vm1, %v1851_v2 }
  0x29   : > { %970 = vmatprep.mubr.bf16.mxu1 %v1770_v22  ;;  %1669 = vmatprep.subr.bf16.mxu1 %v1780_v23  ;;  %301 = vst.msk [vmem:[#allocation2 + $0xe0] sm:$0xff] %vm272_vm1, %v1851_v2  ;;  %302 = vst.msk [vmem:[#allocation2 + $0xe8] sm:$0xff] %vm272_vm1, %v1851_v2 }
  0x2a   : > { %303 = vst.msk [vmem:[#allocation2 + $0xf0] sm:$0xff] %vm272_vm1, %v1851_v2  ;;  %304 = vst.msk [vmem:[#allocation2 + $0xf8] sm:$0xff] %vm272_vm1, %v1851_v2  ;;  %v306_v2 = vld [vmem:[#allocation2 + $0x8] sm:$0xff] }
  0x2c   : > { %1670 = vmatpush3.bf16.msra.mxu1 %v1780_v23 }
  0x2f   : > { %875 = vmatmul.mubr.bf16.gmra.mrb[4].mxu0 %v1772_v24  ;;  %971 = vmatmul.mubr.bf16.gmra.mrb[4].mxu1 %v1773_v25 }
  0x30   : > { %882 = vmatprep.mubr.bf16.mxu0 %v1774_v26  ;;  %978 = vmatprep.mubr.bf16.mxu1 %v1776_v27 }
  0x37   : > { %883 = vmatmul.mubr.bf16.gmra.mrb[8].mxu0 %v1778_v28  ;;  %979 = vmatmul.mubr.bf16.gmra.mrb[8].mxu1 %v1779_v29 }
  0x38   : > { %890 = vmatprep.mubr.bf16.mxu0 %v1781_v30  ;;  %986 = vmatprep.mubr.bf16.mxu1 %v1783_v31 }
  0x3f   : > { %891 = vmatmul.mubr.bf16.gmra.mrb[12].mxu0 %v1785_v32  ;;  %987 = vmatmul.mubr.bf16.gmra.mrb[12].mxu1 %v1786_v33 }
  0x40   : > { %898 = vmatprep.mubr.bf16.mxu0 %v1787_v34  ;;  %1671 = vmatprep.mubr.msk.bf16.mxu1 %vm785_vm0, %v1789_v35 }
  0x47   : > { %899 = vmatmul.mubr.bf16.gmra.mrb[16].mxu0 %v1790_v36  ;;  %1672 = vmatmul.mubr.msk.bf16.vlgmr.msra.gmra.mrb[16].mxu1 %vm785_vm0, %v1791_v37 }
  0x48   : > { %906 = vmatprep.mubr.bf16.mxu0 %v1792_v38  ;;  %1675 = vmatprep.mubr.msk.bf16.mxu1 %vm785_vm0, %v1794_v39 }
  0x4f   : > { %907 = vmatmul.mubr.bf16.gmra.mrb[20].mxu0 %v1795_v40  ;;  %1676 = vmatmul.mubr.msk.bf16.gmra.mrb[20].mxu1 %vm785_vm0, %v1796_v41 }
  0x50   : > { %914 = vmatprep.mubr.bf16.mxu0 %v1797_v42  ;;  %1679 = vmatprep.mubr.msk.bf16.mxu1 %vm785_vm0, %v1799_v43 }
  0x57   : > { %915 = vmatmul.mubr.bf16.gmra.mrb[24].mxu0 %v1800_v44  ;;  %1680 = vmatmul.mubr.msk.bf16.gmra.mrb[24].mxu1 %vm785_vm0, %v1801_v45 }
  0x58   : > { %922 = vmatprep.mubr.bf16.mxu0 %v1802_v46  ;;  %1683 = vmatprep.mubr.msk.bf16.mxu1 %vm785_vm0, %v1804_v47 }
  0x5f   : > { %923 = vmatmul.mubr.bf16.gmra.mrb[28].mxu0 %v1805_v48  ;;  %1684 = vmatmul.mubr.msk.bf16.gmra.mrb[28].mxu1 %vm785_vm0, %v1806_v49 }
  0x60   : > { %930 = vmatprep.mubr.bf16.mxu0 %v1807_v50  ;;  %1687 = vmatprep.mubr.msk.bf16.mxu1 %vm785_vm0, %v1809_v51 }
  0x67   : > { %931 = vmatmul.mubr.bf16.gmra.mrb[32].mxu0 %v1810_v52  ;;  %1688 = vmatmul.mubr.msk.bf16.gmra.mrb[32].mxu1 %vm785_vm0, %v1811_v53  ;;  %v307_v52 = vld [vmem:[#allocation2 + $0x10] sm:$0xff] }
  0x68   : > { %938 = vmatprep.mubr.bf16.mxu0 %v1812_v54  ;;  %1691 = vmatprep.mubr.msk.bf16.mxu1 %vm785_vm0, %v1814_v55 }
  0x6f   : > { %939 = vmatmul.mubr.bf16.gmra.mrb[36].mxu0 %v1815_v56  ;;  %1692 = vmatmul.mubr.msk.bf16.gmra.mrb[36].mxu1 %vm785_vm0, %v1816_v57  ;;  %v305_v56 = vld [vmem:[#allocation2] sm:$0xff] }
  0x70   : > { %946 = vmatprep.mubr.bf16.mxu0 %v1817_v58  ;;  %1695 = vmatprep.mubr.msk.bf16.mxu1 %vm785_vm0, %v1819_v59 }
  0x77   : > { %947 = vmatmul.mubr.bf16.gmra.mrb[40].mxu0 %v1820_v60  ;;  %1696 = vmatmul.mubr.msk.bf16.gmra.mrb[40].mxu1 %vm785_vm0, %v1821_v61  ;;  %v308_v61 = vld [vmem:[#allocation2 + $0x18] sm:$0xff] }
  0x78   : > { %954 = vmatprep.mubr.bf16.mxu0 %v1822_v62  ;;  %1699 = vmatprep.mubr.msk.bf16.mxu1 %vm785_vm0, %v1824_v63 }
  0x7f   : > { %955 = vmatmul.mubr.bf16.gmra.mrb[44].mxu0 %v1825_v0  ;;  %1700 = vmatmul.mubr.msk.bf16.gmra.mrb[44].mxu1 %vm785_vm0, %v1826_v1 }
  0xfa   : > { %v1553_v3 = vpop.f32.mrb[0].mxu0  ;;  %v1625_v4 = vpop.f32.mrb[0].mxu1 }
  0xfb   : > { %v1554_v5 = vpop.f32.mrb[1].mxu0  ;;  %v1626_v6 = vpop.f32.mrb[1].mxu1 }
  0xfc   : > { %v1555_v7 = vadd.f32 %v1554_v5, %v1553_v3  ;;  %v2048_v8 = vadd.f32 %v1626_v6, %v1625_v4  ;;  %v1556_v9 = vpop.f32.mrb[2].mxu0  ;;  %v1628_v10 = vpop.f32.mrb[2].mxu1 }
  0xfd   : > { %v1557_v11 = vpop.f32.mrb[3].mxu0  ;;  %v1629_v12 = vpop.f32.mrb[3].mxu1 }
  0xfe   : > { %v1558_v13 = vadd.f32 %v1557_v11, %v1556_v9  ;;  %v2050_v14 = vadd.f32 %v1629_v12, %v1628_v10  ;;  %v311_v11 = vld [vmem:[#allocation2 + $0x30] sm:$0xff] }
 0x102   : > { %v1559_v15 = vpop.f32.mrb[4].mxu0  ;;  %v1631_v16 = vpop.f32.mrb[4].mxu1 }
 0x103   : > { %v1560_v17 = vpop.f32.mrb[5].mxu0  ;;  %v1632_v18 = vpop.f32.mrb[5].mxu1 }
 0x104   : > { %v1561_v19 = vadd.f32 %v1560_v17, %v1559_v15  ;;  %v2052_v20 = vadd.f32 %v1632_v18, %v1631_v16  ;;  %v1562_v21 = vpop.f32.mrb[6].mxu0  ;;  %v1634_v22 = vpop.f32.mrb[6].mxu1  ;;  %v309_v17 = vld [vmem:[#allocation2 + $0x20] sm:$0xff] }
 0x105   : > { %v1563_v23 = vpop.f32.mrb[7].mxu0  ;;  %v1635_v24 = vpop.f32.mrb[7].mxu1 }
 0x106   : > { %v1564_v25 = vadd.f32 %v1563_v23, %v1562_v21  ;;  %v2054_v26 = vadd.f32 %v1635_v24, %v1634_v22  ;;  %v312_v23 = vld [vmem:[#allocation2 + $0x38] sm:$0xff] }
 0x10a   : > { %v1565_v27 = vpop.f32.mrb[8].mxu0  ;;  %v1637_v28 = vpop.f32.mrb[8].mxu1 }
 0x10b   : > { %v1566_v29 = vpop.f32.mrb[9].mxu0  ;;  %v1638_v30 = vpop.f32.mrb[9].mxu1 }
 0x10c   : > { %v1567_v31 = vadd.f32 %v1566_v29, %v1565_v27  ;;  %v2056_v32 = vadd.f32 %v1638_v30, %v1637_v28  ;;  %v1568_v33 = vpop.f32.mrb[10].mxu0  ;;  %v1640_v34 = vpop.f32.mrb[10].mxu1  ;;  %v310_v29 = vld [vmem:[#allocation2 + $0x28] sm:$0xff] }
 0x10d   : > { %v1569_v35 = vpop.f32.mrb[11].mxu0  ;;  %v1641_v36 = vpop.f32.mrb[11].mxu1 }
 0x10e   : > { %v2058_v37 = vadd.f32 %v1569_v35, %v1568_v33  ;;  %v2060_v38 = vadd.f32 %v1641_v36, %v1640_v34 }
 0x112   : > { %v1571_v39 = vpop.f32.mrb[12].mxu0  ;;  %v1643_v40 = vpop.f32.mrb[12].mxu1 }
 0x113   : > { %v1572_v41 = vpop.f32.mrb[13].mxu0  ;;  %v1644_v42 = vpop.f32.mrb[13].mxu1 }
 0x114   : > { %v1573_v43 = vadd.f32 %v1572_v41, %v1571_v39  ;;  %v2062_v44 = vadd.f32 %v1644_v42, %v1643_v40  ;;  %v1574_v45 = vpop.f32.mrb[14].mxu0  ;;  %v1646_v46 = vpop.f32.mrb[14].mxu1 }
 0x115   : > { %v1575_v47 = vpop.f32.mrb[15].mxu0  ;;  %v1647_v48 = vpop.f32.mrb[15].mxu1 }
 0x116   : > { %v1576_v49 = vadd.f32 %v1575_v47, %v1574_v45  ;;  %v2064_v50 = vadd.f32 %v1647_v48, %v1646_v46  ;;  %v315_v48 = vld [vmem:[#allocation2 + $0x50] sm:$0xff] }
 0x11a   : > { %v1577_v51 = vpop.f32.mrb[16].mxu0  ;;  %v1673_v53 = vpop.f32.mrb[16].mxu1 }
 0x11b   : > { %v1038_v54 = vadd.f32 %v1673_v53, %v1561_v19  ;;  %v1578_v55 = vpop.f32.mrb[17].mxu0  ;;  %v1029_v57 = vpop.f32.mrb[17].mxu1  ;;  %v313_v53 = vld [vmem:[#allocation2 + $0x40] sm:$0xff] }
 0x11c   : > { %v2066_v58 = vadd.f32 %v1578_v55, %v1577_v51  ;;  %v1030_v59 = vadd.f32 %v1555_v7, %v1029_v57  ;;  %v1580_v60 = vpop.f32.mrb[18].mxu0  ;;  %v1674_v62 = vpop.f32.mrb[18].mxu1 }
 0x11d   : > { %v1158_v63 = vadd.f32 %v1038_v54, %v307_v52  ;;  %v1041_v0 = vadd.f32 %v1674_v62, %v1564_v25  ;;  %v1581_v1 = vpop.f32.mrb[19].mxu0  ;;  %v1032_v3 = vpop.f32.mrb[19].mxu1 }
 0x11e   : > { %v1156_v4 = vadd.f32 %v1030_v59, %v305_v56  ;;  %v2068_v5 = vadd.f32 %v1581_v1, %v1580_v60  ;;  %v1033_v6 = vadd.f32 %v1558_v13, %v1032_v3  ;;  %v2078_v13 = vld [vmem:[%s2237_s2] ss:$0 sm:$0xff]  ;;  %v316_v59 = vld [vmem:[#allocation2 + $0x58] sm:$0xff] }
 0x11f   : > { %1191 = vst.msk [vmem:[#allocation2 + $0x10] sm:$0xff] %vm272_vm1, %v1158_v63  ;;  %v1159_v9 = vadd.f32 %v1041_v0, %v308_v61  ;;  %v314_v0 = vld [vmem:[#allocation2 + $0x48] sm:$0xff] }
 0x120   : > { %1189 = vst.msk [vmem:[#allocation2] sm:$0xff] %vm272_vm1, %v1156_v4  ;;  %v1157_v10 = vadd.f32 %v1033_v6, %v306_v2 }
 0x121   : > { %1192 = vst.msk [vmem:[#allocation2 + $0x18] sm:$0xff] %vm272_vm1, %v1159_v9 }
 0x122   : > { %1190 = vst.msk [vmem:[#allocation2 + $0x8] sm:$0xff] %vm272_vm1, %v1157_v10  ;;  %v1583_v7 = vpop.f32.mrb[20].mxu0  ;;  %v1677_v12 = vpop.f32.mrb[20].mxu1 }
 0x123   : > { %v1054_v15 = vadd.f32 %v1677_v12, %v1573_v43  ;;  %v1584_v16 = vpop.f32.mrb[21].mxu0  ;;  %v1045_v18 = vpop.f32.mrb[21].mxu1 }
 0x124   : > { %v1585_v19 = vadd.f32 %v1584_v16, %v1583_v7  ;;  %v1046_v21 = vadd.f32 %v1567_v31, %v1045_v18  ;;  %v1586_v22 = vpop.f32.mrb[22].mxu0  ;;  %v1678_v24 = vpop.f32.mrb[22].mxu1 }
 0x125   : > { %v1162_v25 = vadd.f32 %v1054_v15, %v311_v11  ;;  %v1057_v27 = vadd.f32 %v1678_v24, %v1576_v49  ;;  %v1587_v28 = vpop.f32.mrb[23].mxu0  ;;  %v1048_v30 = vpop.f32.mrb[23].mxu1 }
 0x126   : > { %v1226_v33 = vld [vmem:[#allocation2 + $0x10] sm:$0xff]  ;;  %v1160_v34 = vadd.f32 %v1046_v21, %v309_v17  ;;  %v1588_v35 = vadd.f32 %v1587_v28, %v1586_v22  ;;  %v1049_v31 = vadd.f32 %v2058_v37, %v1048_v30  ;;  %v317_v21 = vld [vmem:[#allocation2 + $0x60] sm:$0xff]  ;;  %v318_v30 = vld [vmem:[#allocation2 + $0x68] sm:$0xff] }
 0x127   : > { %v1265_v36 = vadd.f32 %v2078_v13, %v1226_v33  ;;  %v1224_v39 = vld [vmem:[#allocation2] sm:$0xff]  ;;  %1195 = vst.msk [vmem:[#allocation2 + $0x30] sm:$0xff] %vm272_vm1, %v1162_v25  ;;  %v1163_v40 = vadd.f32 %v1057_v27, %v312_v23  ;;  %v319_v28 = vld [vmem:[#allocation2 + $0x70] sm:$0xff] }
 0x128   : > { %v1263_v41 = vadd.f32 %v2078_v13, %v1224_v39  ;;  %v1227_v42 = vld [vmem:[#allocation2 + $0x18] sm:$0xff]  ;;  %1193 = vst.msk [vmem:[#allocation2 + $0x20] sm:$0xff] %vm272_vm1, %v1160_v34  ;;  %v1161_v43 = vadd.f32 %v1049_v31, %v310_v29 }
 0x129   : > { %1297 = vst.msk [vmem:[%s2083_s11 + $0x10] sm:$0xff] %vm272_vm1, %v1265_v36  ;;  %v1266_v45 = vadd.f32 %v2078_v13, %v1227_v42  ;;  %v1225_v46 = vld [vmem:[#allocation2 + $0x8] sm:$0xff]  ;;  %1196 = vst.msk [vmem:[#allocation2 + $0x38] sm:$0xff] %vm272_vm1, %v1163_v40  ;;  %v320_v42 = vld [vmem:[#allocation2 + $0x78] sm:$0xff] }
 0x12a   : > { %1295 = vst.msk [vmem:[%s2083_s11] sm:$0xff] %vm272_vm1, %v1263_v41  ;;  %v1264_v37 = vadd.f32 %v2078_v13, %v1225_v46  ;;  %1194 = vst.msk [vmem:[#allocation2 + $0x28] sm:$0xff] %vm272_vm1, %v1161_v43  ;;  %v1589_v47 = vpop.f32.mrb[24].mxu0  ;;  %v1681_v49 = vpop.f32.mrb[24].mxu1 }
 0x12b   : > { %1298 = vst.msk [vmem:[%s2083_s11 + $0x18] sm:$0xff] %vm272_vm1, %v1266_v45  ;;  %v1070_v51 = vadd.f32 %v1681_v49, %v1585_v19  ;;  %v1590_v52 = vpop.f32.mrb[25].mxu0  ;;  %v1061_v54 = vpop.f32.mrb[25].mxu1 }
 0x12c   : > { %1296 = vst.msk [vmem:[%s2083_s11 + $0x8] sm:$0xff] %vm272_vm1, %v1264_v37  ;;  %v1591_v55 = vadd.f32 %v1590_v52, %v1589_v47  ;;  %v1062_v56 = vadd.f32 %v2066_v58, %v1061_v54  ;;  %v1592_v57 = vpop.f32.mrb[26].mxu0  ;;  %v1682_v60 = vpop.f32.mrb[26].mxu1 }
 0x12d   : > { %v1166_v61 = vadd.f32 %v1070_v51, %v315_v48  ;;  %v1073_v62 = vadd.f32 %v1682_v60, %v1588_v35  ;;  %v1593_v63 = vpop.f32.mrb[27].mxu0  ;;  %v1064_v1 = vpop.f32.mrb[27].mxu1 }
 0x12e   : > { %v1230_v2 = vld [vmem:[#allocation2 + $0x30] sm:$0xff]  ;;  %v1164_v3 = vadd.f32 %v1062_v56, %v313_v53  ;;  %v1594_v4 = vadd.f32 %v1593_v63, %v1592_v57  ;;  %v1065_v6 = vadd.f32 %v2068_v5, %v1064_v1 }
 0x12f   : > { %v1269_v9 = vadd.f32 %v2078_v13, %v1230_v2  ;;  %v1228_v10 = vld [vmem:[#allocation2 + $0x20] sm:$0xff]  ;;  %1199 = vst.msk [vmem:[#allocation2 + $0x50] sm:$0xff] %vm272_vm1, %v1166_v61  ;;  %v1167_v58 = vadd.f32 %v1073_v62, %v316_v59 }
 0x130   : > { %v1267_v7 = vadd.f32 %v2078_v13, %v1228_v10  ;;  %v1231_v11 = vld [vmem:[#allocation2 + $0x38] sm:$0xff]  ;;  %1197 = vst.msk [vmem:[#allocation2 + $0x40] sm:$0xff] %vm272_vm1, %v1164_v3  ;;  %v1165_v12 = vadd.f32 %v1065_v6, %v314_v0  ;;  %v321_v61 = vld [vmem:[#allocation2 + $0x80] sm:$0xff]  ;;  %v322_v3 = vld [vmem:[#allocation2 + $0x88] sm:$0xff] }
 0x131   : > { %1301 = vst.msk [vmem:[%s2083_s11 + $0x30] sm:$0xff] %vm272_vm1, %v1269_v9  ;;  %v1270_v15 = vadd.f32 %v2078_v13, %v1231_v11  ;;  %v1229_v16 = vld [vmem:[#allocation2 + $0x28] sm:$0xff]  ;;  %1200 = vst.msk [vmem:[#allocation2 + $0x58] sm:$0xff] %vm272_vm1, %v1167_v58 }
 0x132   : > { %1299 = vst.msk [vmem:[%s2083_s11 + $0x20] sm:$0xff] %vm272_vm1, %v1267_v7  ;;  %v1268_v5 = vadd.f32 %v2078_v13, %v1229_v16  ;;  %1198 = vst.msk [vmem:[#allocation2 + $0x48] sm:$0xff] %vm272_vm1, %v1165_v12  ;;  %v1595_v17 = vpop.f32.mrb[28].mxu0  ;;  %v1685_v18 = vpop.f32.mrb[28].mxu1 }
 0x133   : > { %1302 = vst.msk [vmem:[%s2083_s11 + $0x38] sm:$0xff] %vm272_vm1, %v1270_v15  ;;  %v1596_v19 = vpop.f32.mrb[29].mxu0  ;;  %v1077_v22 = vpop.f32.mrb[29].mxu1 }
 0x134   : > { %1300 = vst.msk [vmem:[%s2083_s11 + $0x28] sm:$0xff] %vm272_vm1, %v1268_v5  ;;  %v1597_v23 = vadd.f32 %v1596_v19, %v1595_v17  ;;  %v1078_v24 = vadd.f32 %v1591_v55, %v1077_v22  ;;  %v1598_v25 = vpop.f32.mrb[30].mxu0  ;;  %v1686_v27 = vpop.f32.mrb[30].mxu1 }
 0x135   : > { %v1599_v29 = vpop.f32.mrb[31].mxu0  ;;  %v1080_v33 = vpop.f32.mrb[31].mxu1 }
 0x136   : > { %v1234_v34 = vld [vmem:[#allocation2 + $0x50] sm:$0xff]  ;;  %v1086_v35 = vadd.f32 %v1685_v18, %v1597_v23  ;;  %v1168_v31 = vadd.f32 %v1078_v24, %v317_v21  ;;  %v1600_v36 = vadd.f32 %v1599_v29, %v1598_v25  ;;  %v1081_v39 = vadd.f32 %v1594_v4, %v1080_v33 }
 0x137   : > { %v1273_v40 = vadd.f32 %v2078_v13, %v1234_v34  ;;  %v1232_v41 = vld [vmem:[#allocation2 + $0x40] sm:$0xff]  ;;  %v323_v24 = vld [vmem:[#allocation2 + $0x90] sm:$0xff] }
 0x138   : > { %v1271_v43 = vadd.f32 %v2078_v13, %v1232_v41  ;;  %v1235_v45 = vld [vmem:[#allocation2 + $0x58] sm:$0xff]  ;;  %v1170_v46 = vadd.f32 %v1086_v35, %v319_v28  ;;  %1201 = vst.msk [vmem:[#allocation2 + $0x60] sm:$0xff] %vm272_vm1, %v1168_v31  ;;  %v1089_v37 = vadd.f32 %v1686_v27, %v1600_v36  ;;  %v1169_v47 = vadd.f32 %v1081_v39, %v318_v30 }
 0x139   : > { %1305 = vst.msk [vmem:[%s2083_s11 + $0x50] sm:$0xff] %vm272_vm1, %v1273_v40  ;;  %v1274_v48 = vadd.f32 %v2078_v13, %v1235_v45  ;;  %v1233_v49 = vld [vmem:[#allocation2 + $0x48] sm:$0xff]  ;;  %v324_v30 = vld [vmem:[#allocation2 + $0x98] sm:$0xff]  ;;  %v331_v40 = vld [vmem:[#allocation2 + $0xd0] sm:$0xff] }
 0x13a   : > { %1303 = vst.msk [vmem:[%s2083_s11 + $0x40] sm:$0xff] %vm272_vm1, %v1271_v43  ;;  %v1272_v51 = vadd.f32 %v2078_v13, %v1233_v49  ;;  %1203 = vst.msk [vmem:[#allocation2 + $0x70] sm:$0xff] %vm272_vm1, %v1170_v46  ;;  %v1171_v52 = vadd.f32 %v1089_v37, %v320_v42  ;;  %v1601_v53 = vpop.f32.mrb[32].mxu0  ;;  %v1689_v54 = vpop.f32.mrb[32].mxu1  ;;  %v329_v46 = vld [vmem:[#allocation2 + $0xc0] sm:$0xff] }
 0x13b   : > { %1202 = vst.msk [vmem:[#allocation2 + $0x68] sm:$0xff] %vm272_vm1, %v1169_v47  ;;  %1306 = vst.msk [vmem:[%s2083_s11 + $0x58] sm:$0xff] %vm272_vm1, %v1274_v48  ;;  %v1602_v55 = vpop.f32.mrb[33].mxu0  ;;  %v1093_v56 = vpop.f32.mrb[33].mxu1 }
 0x13c   : > { %1304 = vst.msk [vmem:[%s2083_s11 + $0x48] sm:$0xff] %vm272_vm1, %v1272_v51  ;;  %1204 = vst.msk [vmem:[#allocation2 + $0x78] sm:$0xff] %vm272_vm1, %v1171_v52  ;;  %v1603_v57 = vadd.f32 %v1602_v55, %v1601_v53  ;;  %v1604_v59 = vpop.f32.mrb[34].mxu0  ;;  %v1690_v60 = vpop.f32.mrb[34].mxu1  ;;  %v332_v52 = vld [vmem:[#allocation2 + $0xd8] sm:$0xff]  ;;  %v325_v55 = vld [vmem:[#allocation2 + $0xa0] sm:$0xff] }
 0x13d   : > { %v1605_v62 = vpop.f32.mrb[35].mxu0  ;;  %v1096_v63 = vpop.f32.mrb[35].mxu1 }
 0x13e   : > { %v1094_v0 = vadd.f32 %v1603_v57, %v1093_v56  ;;  %v1606_v1 = vadd.f32 %v1605_v62, %v1604_v59  ;;  %v330_v57 = vld [vmem:[#allocation2 + $0xc8] sm:$0xff] }
 0x13f   : > { %v1236_v2 = vld [vmem:[#allocation2 + $0x60] sm:$0xff] }
 0x140   : > { %v1275_v4 = vadd.f32 %v2078_v13, %v1236_v2  ;;  %v1172_v6 = vadd.f32 %v1094_v0, %v321_v61  ;;  %v1097_v9 = vadd.f32 %v1606_v1, %v1096_v63  ;;  %v326_v0 = vld [vmem:[#allocation2 + $0xa8] sm:$0xff] }
 0x141   : > { %v1238_v10 = vld [vmem:[#allocation2 + $0x70] sm:$0xff] }
 0x142   : > { %v1237_v58 = vld [vmem:[#allocation2 + $0x68] sm:$0xff]  ;;  %v1277_v7 = vadd.f32 %v2078_v13, %v1238_v10  ;;  %1307 = vst.msk [vmem:[%s2083_s11 + $0x60] sm:$0xff] %vm272_vm1, %v1275_v4  ;;  %1205 = vst.msk [vmem:[#allocation2 + $0x80] sm:$0xff] %vm272_vm1, %v1172_v6  ;;  %v1173_v12 = vadd.f32 %v1097_v9, %v322_v3  ;;  %v1607_v15 = vpop.f32.mrb[36].mxu0  ;;  %v2142_v16 = vpop.f32.mrb[36].mxu1  ;;  %v335_v9 = vld [vmem:[#allocation2 + $0xf0] sm:$0xff] }
 0x143   : > { %v1276_v11 = vadd.f32 %v2078_v13, %v1237_v58  ;;  %v1239_v5 = vld [vmem:[#allocation2 + $0x78] sm:$0xff]  ;;  %v1608_v17 = vpop.f32.mrb[37].mxu0  ;;  %v1109_v18 = vpop.f32.mrb[37].mxu1 }
 0x144   : > { %1309 = vst.msk [vmem:[%s2083_s11 + $0x70] sm:$0xff] %vm272_vm1, %v1277_v7  ;;  %v1278_v19 = vadd.f32 %v2078_v13, %v1239_v5  ;;  %1206 = vst.msk [vmem:[#allocation2 + $0x88] sm:$0xff] %vm272_vm1, %v1173_v12  ;;  %v1609_v21 = vadd.f32 %v1608_v17, %v1607_v15  ;;  %v1610_v22 = vpop.f32.mrb[38].mxu0  ;;  %v2150_v23 = vpop.f32.mrb[38].mxu1  ;;  %v333_v12 = vld [vmem:[#allocation2 + $0xe0] sm:$0xff] }
 0x145   : > { %1308 = vst.msk [vmem:[%s2083_s11 + $0x68] sm:$0xff] %vm272_vm1, %v1276_v11  ;;  %v1611_v25 = vpop.f32.mrb[39].mxu0  ;;  %v1112_v27 = vpop.f32.mrb[39].mxu1 }
 0x146   : > { %1310 = vst.msk [vmem:[%s2083_s11 + $0x78] sm:$0xff] %vm272_vm1, %v1278_v19  ;;  %v1102_v28 = vadd.f32 %v1689_v54, %v1609_v21  ;;  %v1612_v29 = vadd.f32 %v1611_v25, %v1610_v22  ;;  %v336_v21 = vld [vmem:[#allocation2 + $0xf8] sm:$0xff]  ;;  %v327_v25 = vld [vmem:[#allocation2 + $0xb0] sm:$0xff] }
 0x148   : > { %v1174_v33 = vadd.f32 %v1102_v28, %v323_v24  ;;  %v1105_v34 = vadd.f32 %v1690_v60, %v1612_v29  ;;  %v334_v28 = vld [vmem:[#allocation2 + $0xe8] sm:$0xff] }
 0x149   : > { %v1240_v35 = vld [vmem:[#allocation2 + $0x80] sm:$0xff] }
 0x14a   : > { %v1279_v31 = vadd.f32 %v2078_v13, %v1240_v35  ;;  %1207 = vst.msk [vmem:[#allocation2 + $0x90] sm:$0xff] %vm272_vm1, %v1174_v33  ;;  %v1175_v36 = vadd.f32 %v1105_v34, %v324_v30  ;;  %v1613_v39 = vpop.f32.mrb[40].mxu0  ;;  %v1697_v41 = vpop.f32.mrb[40].mxu1 }
 0x14b   : > { %v1241_v42 = vld [vmem:[#allocation2 + $0x88] sm:$0xff]  ;;  %v1134_v43 = vadd.f32 %v1697_v41, %v2052_v20  ;;  %v1614_v45 = vpop.f32.mrb[41].mxu0  ;;  %v1125_v37 = vpop.f32.mrb[41].mxu1 }
 0x14c   : > { %1311 = vst.msk [vmem:[%s2083_s11 + $0x80] sm:$0xff] %vm272_vm1, %v1279_v31  ;;  %v1280_v47 = vadd.f32 %v2078_v13, %v1241_v42  ;;  %1208 = vst.msk [vmem:[#allocation2 + $0x98] sm:$0xff] %vm272_vm1, %v1175_v36  ;;  %v1615_v48 = vadd.f32 %v1614_v45, %v1613_v39  ;;  %v1126_v49 = vadd.f32 %v2048_v8, %v1125_v37  ;;  %v1616_v51 = vpop.f32.mrb[42].mxu0  ;;  %v1698_v53 = vpop.f32.mrb[42].mxu1  ;;  %v328_v39 = vld [vmem:[#allocation2 + $0xb8] sm:$0xff] }
 0x14d   : > { %v1182_v54 = vadd.f32 %v1134_v43, %v331_v40  ;;  %v1137_v20 = vadd.f32 %v1698_v53, %v2054_v26  ;;  %v1617_v56 = vpop.f32.mrb[43].mxu0  ;;  %v1128_v59 = vpop.f32.mrb[43].mxu1 }
 0x14e   : > { %1312 = vst.msk [vmem:[%s2083_s11 + $0x88] sm:$0xff] %vm272_vm1, %v1280_v47  ;;  %v1110_v60 = vadd.f32 %v1615_v48, %v1109_v18  ;;  %v1180_v61 = vadd.f32 %v1126_v49, %v329_v46  ;;  %v1618_v62 = vadd.f32 %v1617_v56, %v1616_v51  ;;  %v1129_v63 = vadd.f32 %v2050_v14, %v1128_v59 }
 0x14f   : > { %1215 = vst.msk [vmem:[#allocation2 + $0xd0] sm:$0xff] %vm272_vm1, %v1182_v54  ;;  %v1183_v8 = vadd.f32 %v1137_v20, %v332_v52 }
 0x150   : > { %v1176_v1 = vadd.f32 %v1110_v60, %v325_v55  ;;  %1213 = vst.msk [vmem:[#allocation2 + $0xc0] sm:$0xff] %vm272_vm1, %v1180_v61  ;;  %v1113_v2 = vadd.f32 %v1618_v62, %v1112_v27  ;;  %v1181_v26 = vadd.f32 %v1129_v63, %v330_v57 }
 0x151   : > { %v1242_v3 = vld [vmem:[#allocation2 + $0x90] sm:$0xff]  ;;  %1216 = vst.msk [vmem:[#allocation2 + $0xd8] sm:$0xff] %vm272_vm1, %v1183_v8 }
 0x152   : > { %v1281_v4 = vadd.f32 %v2078_v13, %v1242_v3  ;;  %1209 = vst.msk [vmem:[#allocation2 + $0xa0] sm:$0xff] %vm272_vm1, %v1176_v1  ;;  %v1177_v6 = vadd.f32 %v1113_v2, %v326_v0  ;;  %1214 = vst.msk [vmem:[#allocation2 + $0xc8] sm:$0xff] %vm272_vm1, %v1181_v26  ;;  %v1619_v14 = vpop.f32.mrb[44].mxu0  ;;  %v1701_v10 = vpop.f32.mrb[44].mxu1 }
 0x153   : > { %v1243_v58 = vld [vmem:[#allocation2 + $0x98] sm:$0xff]  ;;  %v1150_v7 = vadd.f32 %v1701_v10, %v2062_v44  ;;  %v1620_v11 = vpop.f32.mrb[45].mxu0  ;;  %v1141_v15 = vpop.f32.mrb[45].mxu1 }
 0x154   : > { %1313 = vst.msk [vmem:[%s2083_s11 + $0x90] sm:$0xff] %vm272_vm1, %v1281_v4  ;;  %v1282_v5 = vadd.f32 %v2078_v13, %v1243_v58  ;;  %1210 = vst.msk [vmem:[#allocation2 + $0xa8] sm:$0xff] %vm272_vm1, %v1177_v6  ;;  %v1621_v17 = vadd.f32 %v1620_v11, %v1619_v14  ;;  %v1142_v18 = vadd.f32 %v2056_v32, %v1141_v15  ;;  %v1622_v19 = vpop.f32.mrb[46].mxu0  ;;  %v1702_v22 = vpop.f32.mrb[46].mxu1 }
 0x155   : > { %v1186_v24 = vadd.f32 %v1150_v7, %v335_v9  ;;  %v1153_v44 = vadd.f32 %v1702_v22, %v2064_v50  ;;  %v1623_v27 = vpop.f32.mrb[47].mxu0  ;;  %v1144_v29 = vpop.f32.mrb[47].mxu1 }
 0x156   : > { %1314 = vst.msk [vmem:[%s2083_s11 + $0x98] sm:$0xff] %vm272_vm1, %v1282_v5  ;;  %v1250_v30 = vld [vmem:[#allocation2 + $0xd0] sm:$0xff]  ;;  %v1118_v33 = vadd.f32 %v2142_v16, %v1621_v17  ;;  %v1184_v34 = vadd.f32 %v1142_v18, %v333_v12  ;;  %v1624_v35 = vadd.f32 %v1623_v27, %v1622_v19  ;;  %v1145_v32 = vadd.f32 %v2060_v38, %v1144_v29 }
 0x157   : > { %v1289_v31 = vadd.f32 %v2078_v13, %v1250_v30  ;;  %v1248_v36 = vld [vmem:[#allocation2 + $0xc0] sm:$0xff]  ;;  %1219 = vst.msk [vmem:[#allocation2 + $0xf0] sm:$0xff] %vm272_vm1, %v1186_v24  ;;  %v1187_v50 = vadd.f32 %v1153_v44, %v336_v21 }
 0x158   : > { %v1287_v40 = vadd.f32 %v2078_v13, %v1248_v36  ;;  %v1251_v41 = vld [vmem:[#allocation2 + $0xd8] sm:$0xff]  ;;  %v1178_v42 = vadd.f32 %v1118_v33, %v327_v25  ;;  %1217 = vst.msk [vmem:[#allocation2 + $0xe0] sm:$0xff] %vm272_vm1, %v1184_v34  ;;  %v1121_v16 = vadd.f32 %v2150_v23, %v1624_v35  ;;  %v1185_v43 = vadd.f32 %v1145_v32, %v334_v28 }
 0x159   : > { %1321 = vst.msk [vmem:[%s2083_s11 + $0xd0] sm:$0xff] %vm272_vm1, %v1289_v31  ;;  %v1244_v38 = vld [vmem:[#allocation2 + $0xa0] sm:$0xff]  ;;  %v1290_v45 = vadd.f32 %v2078_v13, %v1251_v41  ;;  %v1249_v46 = vld [vmem:[#allocation2 + $0xc8] sm:$0xff]  ;;  %1220 = vst.msk [vmem:[#allocation2 + $0xf8] sm:$0xff] %vm272_vm1, %v1187_v50 }
 0x15a   : > { %v1283_v37 = vadd.f32 %v2078_v13, %v1244_v38  ;;  %1319 = vst.msk [vmem:[%s2083_s11 + $0xc0] sm:$0xff] %vm272_vm1, %v1287_v40  ;;  %v1288_v47 = vadd.f32 %v2078_v13, %v1249_v46  ;;  %1211 = vst.msk [vmem:[#allocation2 + $0xb0] sm:$0xff] %vm272_vm1, %v1178_v42  ;;  %v1179_v23 = vadd.f32 %v1121_v16, %v328_v39 }
 0x15b   : > { %1218 = vst.msk [vmem:[#allocation2 + $0xe8] sm:$0xff] %vm272_vm1, %v1185_v43  ;;  %1322 = vst.msk [vmem:[%s2083_s11 + $0xd8] sm:$0xff] %vm272_vm1, %v1290_v45  ;;  %v1245_v48 = vld [vmem:[#allocation2 + $0xa8] sm:$0xff] }
 0x15c   : > { %1315 = vst.msk [vmem:[%s2083_s11 + $0xa0] sm:$0xff] %vm272_vm1, %v1283_v37  ;;  %v1284_v49 = vadd.f32 %v2078_v13, %v1245_v48  ;;  %1320 = vst.msk [vmem:[%s2083_s11 + $0xc8] sm:$0xff] %vm272_vm1, %v1288_v47 }
 0x15d   : > { %1212 = vst.msk [vmem:[#allocation2 + $0xb8] sm:$0xff] %vm272_vm1, %v1179_v23 }
 0x15e   : > { %1316 = vst.msk [vmem:[%s2083_s11 + $0xa8] sm:$0xff] %vm272_vm1, %v1284_v49  ;;  %v1254_v51 = vld [vmem:[#allocation2 + $0xf0] sm:$0xff] }
 0x15f   : > { %v1293_v52 = vadd.f32 %v2078_v13, %v1254_v51  ;;  %v1252_v53 = vld [vmem:[#allocation2 + $0xe0] sm:$0xff] }
 0x160   : > { %v1291_v54 = vadd.f32 %v2078_v13, %v1252_v53  ;;  %v1255_v55 = vld [vmem:[#allocation2 + $0xf8] sm:$0xff] }
 0x161   : > { %1325 = vst.msk [vmem:[%s2083_s11 + $0xf0] sm:$0xff] %vm272_vm1, %v1293_v52  ;;  %v1246_v20 = vld [vmem:[#allocation2 + $0xb0] sm:$0xff]  ;;  %v1294_v56 = vadd.f32 %v2078_v13, %v1255_v55 }
 0x162   : > { %v1253_v57 = vld [vmem:[#allocation2 + $0xe8] sm:$0xff]  ;;  %v1285_v59 = vadd.f32 %v2078_v13, %v1246_v20  ;;  %1323 = vst.msk [vmem:[%s2083_s11 + $0xe0] sm:$0xff] %vm272_vm1, %v1291_v54 }
 0x163   : > { %v1292_v60 = vadd.f32 %v2078_v13, %v1253_v57  ;;  %1326 = vst.msk [vmem:[%s2083_s11 + $0xf8] sm:$0xff] %vm272_vm1, %v1294_v56 }
 0x164   : > { %v1247_v61 = vld [vmem:[#allocation2 + $0xb8] sm:$0xff]  ;;  %1317 = vst.msk [vmem:[%s2083_s11 + $0xb0] sm:$0xff] %vm272_vm1, %v1285_v59 }
 0x165   : > { %v1286_v62 = vadd.f32 %v2078_v13, %v1247_v61  ;;  %1324 = vst.msk [vmem:[%s2083_s11 + $0xe8] sm:$0xff] %vm272_vm1, %v1292_v60 }
 0x167   : > { %1318 = vst.msk [vmem:[%s2083_s11 + $0xb8] sm:$0xff] %vm272_vm1, %v1286_v62 }
 0x168 PF: > { %s13_s14 = sadd.s32 1, %s1849_s14   ;;  %s2239_s12 = smov %s1845_s13 }
 0x169   : > { %p10_p5 = scmp.ge.s32.totalorder %s13_s14, 4   ;;  %s2240_s13 = smov %s2242_s15 }
 0x16b   :  { %12 = sbr.rel (!%p10_p5) target bundleno = 2 (0x2), region = 76 }

</bundles_post_ra>
